<compile_context>
chip_gen: v7x
topology: tpu7x:2x2x1
jax: 0.10.0
libtpu: 0.0.40
codegen_flags: <defaults>
</compile_context>

<pallas_src>
import numpy as np

import jax
import jax.numpy as jnp
from jax import lax
from jax.experimental import pallas as pl
from jax.experimental.pallas import tpu as pltpu

_EPS = 1e-5
_NUM_CLASSES = 5


# ----------------------------------------------------------------------------
# Fused Pallas kernel: the whole network in one launch.
# ----------------------------------------------------------------------------
def _cnn_fused_kernel(x_ref,
                      a1_ref, b1_ref, a2_ref, b2_ref, a3_ref, b3_ref,
                      w1_ref, c1_ref, w2_ref, c2_ref, w3_ref, c3_ref,
                      w4_ref, c4_ref,
                      o_ref):
    def affine(x, w_ref, b_ref):
        # bf16 MXU matmul with f32 accumulation; bias add / activations in f32.
        return jnp.dot(x.astype(jnp.bfloat16), w_ref[...],
                       preferred_element_type=jnp.float32) + b_ref[...]

    def conv_relu_pool(x, a_ref, b_ref):
        # a_ref packs conv (+ the previous stage's folded BN) for the 4
        # positions of every 2x2 pool window into 4 contiguous 128-aligned
        # lane blocks; the stride-2 max-pool is a max over those blocks.
        bw = a_ref.shape[1] // 4
        y = jnp.maximum(affine(x, a_ref, b_ref), 0.0)          # relu(conv)
        return jnp.maximum(
            jnp.maximum(y[:, 0 * bw:1 * bw], y[:, 1 * bw:2 * bw]),
            jnp.maximum(y[:, 2 * bw:3 * bw], y[:, 3 * bw:4 * bw]))

    x = x_ref[...]                                    # (N, 256) flattened image
    x = conv_relu_pool(x, a1_ref, b1_ref)             # (N, 512)  stage 1
    x = conv_relu_pool(x, a2_ref, b2_ref)             # (N, 512)  stage 2 (BN1 folded)
    x = conv_relu_pool(x, a3_ref, b3_ref)             # (N, 256)  stage 3 (BN2 folded)
    x = jnp.maximum(affine(x, w1_ref, c1_ref), 0.0)   # fc1 (BN3 + flatten folded)
    x = jnp.maximum(affine(x, w2_ref, c2_ref), 0.0)   # fc2 (lnorm1 folded)
    x = jnp.maximum(affine(x, w3_ref, c3_ref), 0.0)   # fc3 (lnorm2 folded)
    o_ref[...] = affine(x, w4_ref, c4_ref).astype(o_ref.dtype)  # fc4 (lnorm3 folded)


def cnn_forward(kparams, x_nchw):
    """Forward pass.  x_nchw: (N, 1, 16, 16), same layout as the PyTorch module."""
    kp = kparams
    n = x_nchw.shape[0]
    # Flatten the image to (N, H*W*C) in (h, w, c) order -- the feature order
    # the prepared stage matrices were built for (160*... = 256 lanes here).
    x2d = jnp.transpose(x_nchw, (0, 2, 3, 1)).reshape(n, -1).astype(jnp.float32)

    vmem = pl.BlockSpec(memory_space=pltpu.MemorySpace.VMEM)
    out = pl.pallas_call(
        _cnn_fused_kernel,
        out_shape=jax.ShapeDtypeStruct((n, 128), jnp.float32),  # lane-dense out
        in_specs=[vmem] * 15,
        out_specs=vmem,
        # batch=2 -> a single whole-array block; total operands are ~4.5 MiB,
        # comfortably inside VMEM on v5e/v6e/v7x.  For large batches, tile the
        # batch rows with a ("parallel",) grid instead of a single block.
    )(x2d,
      kp["A1"], kp["b1"], kp["A2"], kp["b2"], kp["A3"], kp["b3"],
      kp["W1"], kp["c1"], kp["W2"], kp["c2"], kp["W3"], kp["c3"],
      kp["W4"], kp["c4"])
    return out[:, :_NUM_CLASSES]


# ----------------------------------------------------------------------------
# Weight prep (host-side, runs once): expand conv+pool stages into lane-blocked
# matrices and fold every eval BatchNorm / the flatten permutation forward.
# ----------------------------------------------------------------------------
def _bn_fold(gamma, beta, mean, var, eps=_EPS):
    scale = np.asarray(gamma, np.float32) / np.sqrt(np.asarray(var, np.float32) + eps)
    shift = np.asarray(beta, np.float32) - np.asarray(mean, np.float32) * scale
    return scale, shift


def _conv_pool_matrix(w, b, *, hin, win, cin, fin, pad, hp, wp, cout, bout,
                      in_scale=None, in_shift=None):
    """Expand conv2d(w, b, stride=1, padding=pad) + ReLU + MaxPool2d(2,2) into
    a single matrix.

    Returns (A, brow), A: (fin, 4*bout), brow: (1, 4*bout) such that for images
    flattened as x2d[n, (hi*win + wi)*cin + ci]:
        y   = relu(x2d @ A + brow)
        out = max(y[:, 0:bout], y[:, bout:2*bout], y[:, 2*bout:3*bout], y[:, 3*bout:4*bout])
    equals pool(relu(conv(img))) flattened as out[n, (hp_*wp + wp_)*cout + c].
    Lane block d holds pool-window offset (dh, dw) = divmod(d, 2).  Rows >=
    hin*win*cin and per-block columns >= hp*wp*cout are zero padding (kept so
    every kernel-facing lane width is a multiple of 128).  If in_scale/in_shift
    are given, the previous stage's eval BatchNorm is folded in; zero-padded
    conv borders correctly receive no BN shift contribution.
    """
    kh_n, kw_n, cin_w, cout_w = w.shape
    assert (cin_w, cout_w) == (cin, cout)
    if in_scale is None:
        in_scale = np.ones((cin,), np.float32)
        in_shift = np.zeros((cin,), np.float32)
    a = np.zeros((fin, 4 * bout), np.float32)
    brow = np.zeros((1, 4 * bout), np.float32)
    w_scaled = in_scale[None, None, :, None] * w            # fold BN scale
    for d, (dh, dw) in enumerate(((0, 0), (0, 1), (1, 0), (1, 1))):
        for hp_ in range(hp):
            for wp_ in range(wp):
                ho, wo = 2 * hp_ + dh, 2 * wp_ + dw
                cbase = d * bout + (hp_ * wp + wp_) * cout
                bias = b.astype(np.float32).copy()
                for kh in range(kh_n):
                    hi = ho - pad + kh
                    if hi < 0 or hi >= hin:
                        continue
                    for kw in range(kw_n):
                        wi = wo - pad + kw
                        if wi < 0 or wi >= win:
                            continue
                        rbase = (hi * win + wi) * cin
                        a[rbase:rbase + cin, cbase:cbase + cout] = w_scaled[kh, kw]
                        bias = bias + in_shift @ w[kh, kw]   # fold BN shift
                brow[0, cbase:cbase + cout] = bias
    return a, brow


def _fc1_matrix(fc1_w, fc1_b, *, hp, wp, cin, fin, in_scale, in_shift):
    """Permute fc1 from the Torch (c, h, w) flatten order to our (h, w, c)
    feature order, fold the eval BatchNorm2d that precedes the flatten, and
    zero-pad the input dim to `fin`."""
    nout = fc1_w.shape[1]
    wmat = np.zeros((fin, nout), np.float32)
    bias = fc1_b.astype(np.float32).copy()
    for h in range(hp):
        for w_ in range(wp):
            for c in range(cin):
                j = (h * wp + w_) * cin + c           # our feature index
                t = (c * hp + h) * wp + w_            # torch flatten index
                wmat[j, :] = in_scale[c] * fc1_w[t, :]
                bias = bias + in_shift[c] * fc1_w[t, :]
    return wmat, bias.reshape(1, -1)


def _fold_bn_into_fc(fc_w, fc_b, in_scale, in_shift):
    """Linear layer whose input is bn(h) = h*in_scale + in_shift (eval BN1d):
    fold that affine into the weights/bias so the kernel only sees h."""
    wmat = (in_scale[:, None] * fc_w).astype(np.float32)
    bias = (in_shift @ fc_w + fc_b).reshape(1, -1).astype(np.float32)
    return wmat, bias


def build_kernel_params(params):
    p = {k: np.asarray(v, np.float32) for k, v in params.items()}

    s1, t1 = _bn_fold(p["bn1_gamma"], p["bn1_beta"], p["bn1_mean"], p["bn1_var"])
    s2, t2 = _bn_fold(p["bn2_gamma"], p["bn2_beta"], p["bn2_mean"], p["bn2_var"])
    s3, t3 = _bn_fold(p["bn3_gamma"], p["bn3_beta"], p["bn3_mean"], p["bn3_var"])
    l1s, l1t = _bn_fold(p["lbn1_gamma"], p["lbn1_beta"], p["lbn1_mean"], p["lbn1_var"])
    l2s, l2t = _bn_fold(p["lbn2_gamma"], p["lbn2_beta"], p["lbn2_mean"], p["lbn2_var"])
    l3s, l3t = _bn_fold(p["lbn3_gamma"], p["lbn3_beta"], p["lbn3_mean"], p["lbn3_var"])

    # conv1: 16x16x1 --(k2,p2)--> 19x19x6 --pool--> 9x9x6   (486 real -> 512 lanes)
    a1, b1 = _conv_pool_matrix(p["conv1_w"], p["conv1_b"],
                               hin=16, win=16, cin=1, fin=256, pad=2,
                               hp=9, wp=9, cout=6, bout=512)
    # conv2 (BN1 folded): 9x9x6 --(k3,p2)--> 11x11x16 --pool--> 5x5x16 (400 -> 512)
    a2, b2 = _conv_pool_matrix(p["conv2_w"], p["conv2_b"],
                               hin=9, win=9, cin=6, fin=512, pad=2,
                               hp=5, wp=5, cout=16, bout=512,
                               in_scale=s1, in_shift=t1)
    # conv3 (BN2 folded): 5x5x16 --(k5,p2)--> 5x5x40 --pool--> 2x2x40 (160 -> 256)
    a3, b3 = _conv_pool_matrix(p["conv3_w"], p["conv3_b"],
                               hin=5, win=5, cin=16, fin=512, pad=2,
                               hp=2, wp=2, cout=40, bout=256,
                               in_scale=s2, in_shift=t2)

    # fc1 (BN3 + torch flatten order folded), fc2..fc4 (lnorm1..3 folded).
    w1, c1 = _fc1_matrix(p["fc1_w"], p["fc1_b"], hp=2, wp=2, cin=40, fin=256,
                         in_scale=s3, in_shift=t3)
    w2, c2 = _fold_bn_into_fc(p["fc2_w"], p["fc2_b"], l1s, l1t)
    w3, c3 = _fold_bn_into_fc(p["fc3_w"], p["fc3_b"], l2s, l2t)
    w4, c4 = _fold_bn_into_fc(p["fc4_w"], p["fc4_b"], l3s, l3t)
    # pad the logits (5) to a lane-dense, 128-wide kernel output.
    w4p = np.zeros((w4.shape[0], 128), np.float32)
    w4p[:, :w4.shape[1]] = w4
    c4p = np.zeros((1, 128), np.float32)
    c4p[:, :c4.shape[1]] = c4

    bf16 = lambda x: jnp.asarray(x, jnp.bfloat16)
    f32 = lambda x: jnp.asarray(x, jnp.float32)
    return {"A1": bf16(a1), "b1": f32(b1),
            "A2": bf16(a2), "b2": f32(b2),
            "A3": bf16(a3), "b3": f32(b3),
            "W1": bf16(w1), "c1": f32(c1),
            "W2": bf16(w2), "c2": f32(c2),
            "W3": bf16(w3), "c3": f32(c3),
            "W4": bf16(w4p), "c4": f32(c4p)}


# ----------------------------------------------------------------------------
# Parameter init (mirrors the PyTorch module; raw, un-folded values) and a
# pure-JAX reference forward for correctness checking.
# ----------------------------------------------------------------------------
def init_params(key):
    def nrm(k, shape, std=0.1):
        return std * jax.random.normal(k, shape, dtype=jnp.float32)

    ks = jax.random.split(key, 32)
    p = {}
    # conv weights stored as (KH, KW, Cin, Cout)
    p["conv1_w"] = nrm(ks[0], (2, 2, 1, 6));    p["conv1_b"] = nrm(ks[1], (6,))
    p["conv2_w"] = nrm(ks[2], (3, 3, 6, 16));   p["conv2_b"] = nrm(ks[3], (16,))
    p["conv3_w"] = nrm(ks[4], (5, 5, 16, 40));  p["conv3_b"] = nrm(ks[5], (40,))
    for i, (k0, c) in enumerate(zip((6, 9, 12), (6, 16, 40)), start=1):
        p[f"bn{i}_gamma"] = 1.0 + nrm(ks[k0], (c,))
        p[f"bn{i}_beta"] = nrm(ks[k0 + 1], (c,))
        p[f"bn{i}_mean"] = nrm(ks[k0 + 2], (c,))
        p[f"bn{i}_var"] = jnp.full((c,), 1.1, jnp.float32)
    # fc weights stored as (in, out)
    p["fc1_w"] = nrm(ks[15], (160, 400)); p["fc1_b"] = nrm(ks[16], (400,))
    p["fc2_w"] = nrm(ks[17], (400, 200)); p["fc2_b"] = nrm(ks[18], (200,))
    p["fc3_w"] = nrm(ks[19], (200, 84));  p["fc3_b"] = nrm(ks[20], (84,))
    p["fc4_w"] = nrm(ks[21], (84, 5));    p["fc4_b"] = nrm(ks[22], (5,))
    for i, (k0, c) in enumerate(zip((23, 26, 29), (400, 200, 84)), start=1):
        p[f"lbn{i}_gamma"] = 1.0 + nrm(ks[k0], (c,))
        p[f"lbn{i}_beta"] = nrm(ks[k0 + 1], (c,))
        p[f"lbn{i}_mean"] = nrm(ks[k0 + 2], (c,))
        p[f"lbn{i}_var"] = jnp.full((c,), 1.1, jnp.float32)
    return p


def reference_forward(p, x_nchw, eps=_EPS):
    """Plain-JAX (XLA) reference with the original module's structure."""
    x = jnp.transpose(x_nchw, (0, 2, 3, 1))  # NHWC

    def conv(x, w, b, pad):
        y = lax.conv_general_dilated(x, w, window_strides=(1, 1),
                                     padding=[(pad, pad), (pad, pad)],
                                     dimension_numbers=("NHWC", "HWIO", "NHWC"))
        return y + b

    def pool(x):
        return lax.reduce_window(x, -jnp.inf, lax.max,
                                 (1, 2, 2, 1), (1, 2, 2, 1), "VALID")

    def bn(x, g, bt, m, v):
        return (x - m) * (g / jnp.sqrt(v + eps)) + bt

    x = bn(pool(jax.nn.relu(conv(x, p["conv1_w"], p["conv1_b"], 2))),
           p["bn1_gamma"], p["bn1_beta"], p["bn1_mean"], p["bn1_var"])
    x = bn(pool(jax.nn.relu(conv(x, p["conv2_w"], p["conv2_b"], 2))),
           p["bn2_gamma"], p["bn2_beta"], p["bn2_mean"], p["bn2_var"])
    x = bn(pool(jax.nn.relu(conv(x, p["conv3_w"], p["conv3_b"], 2))),
           p["bn3_gamma"], p["bn3_beta"], p["bn3_mean"], p["bn3_var"])
    n = x.shape[0]
    x = jnp.transpose(x, (0, 3, 1, 2)).reshape(n, -1)  # torch flatten (C,H,W)
    x = bn(jax.nn.relu(x @ p["fc1_w"] + p["fc1_b"]),
           p["lbn1_gamma"], p["lbn1_beta"], p["lbn1_mean"], p["lbn1_var"])
    x = bn(jax.nn.relu(x @ p["fc2_w"] + p["fc2_b"]),
           p["lbn2_gamma"], p["lbn2_beta"], p["lbn2_mean"], p["lbn2_var"])
    x = bn(jax.nn.relu(x @ p["fc3_w"] + p["fc3_b"]),
           p["lbn3_gamma"], p["lbn3_beta"], p["lbn3_mean"], p["lbn3_var"])
    return x @ p["fc4_w"] + p["fc4_b"]


if __name__ == "__main__":
    key = jax.random.PRNGKey(0)
    kp_key, kx_key = jax.random.split(key)
    params = init_params(kp_key)
    kparams = build_kernel_params(params)           # one-time weight prep
    x = jax.random.normal(kx_key, (2, 1, 16, 16), dtype=jnp.float32)  # NCHW

    out = jax.jit(cnn_forward)(kparams, x)
    out = jax.block_until_ready(out)
    assert out.shape == (2, _NUM_CLASSES), out.shape
    assert bool(jnp.all(jnp.isfinite(out)))

    # Correctness check vs. the plain-JAX reference (loose tol for bf16 matmuls)
    ref = reference_forward(params, x)
    err = float(jnp.max(jnp.abs(out - ref)))
    tol = 5e-2 * (1.0 + float(jnp.max(jnp.abs(ref))))
    assert err < tol, f"kernel/reference mismatch: err={err} tol={tol}"

    print("KERNEL_OK")
</pallas_src>

<mosaic_0001>
module attributes {stable_mosaic.version = 11 : i64} {
  func.func @_cnn_fused_kernel(%arg0: memref<2x256xf32, #tpu.memory_space<vmem>>, %arg1: memref<256x2048xbf16, #tpu.memory_space<vmem>>, %arg2: memref<1x2048xf32, #tpu.memory_space<vmem>>, %arg3: memref<512x2048xbf16, #tpu.memory_space<vmem>>, %arg4: memref<1x2048xf32, #tpu.memory_space<vmem>>, %arg5: memref<512x1024xbf16, #tpu.memory_space<vmem>>, %arg6: memref<1x1024xf32, #tpu.memory_space<vmem>>, %arg7: memref<256x400xbf16, #tpu.memory_space<vmem>>, %arg8: memref<1x400xf32, #tpu.memory_space<vmem>>, %arg9: memref<400x200xbf16, #tpu.memory_space<vmem>>, %arg10: memref<1x200xf32, #tpu.memory_space<vmem>>, %arg11: memref<200x84xbf16, #tpu.memory_space<vmem>>, %arg12: memref<1x84xf32, #tpu.memory_space<vmem>>, %arg13: memref<84x128xbf16, #tpu.memory_space<vmem>>, %arg14: memref<1x128xf32, #tpu.memory_space<vmem>>, %arg15: memref<2x128xf32, #tpu.memory_space<vmem>>) attributes {dimension_semantics = [], scalar_prefetch = 0 : i64, scratch_operands = 0 : i64, tpu.core_type = #tpu.core_type<tc>} {
    %c0 = arith.constant 0 : index
    %c0_0 = arith.constant 0 : index
    %0 = vector.load %arg0[%c0, %c0_0] : memref<2x256xf32, #tpu.memory_space<vmem>>, vector<2x256xf32>
    %1 = arith.truncf %0 : vector<2x256xf32> to vector<2x256xbf16>
    %c0_1 = arith.constant 0 : index
    %c0_2 = arith.constant 0 : index
    %2 = vector.load %arg1[%c0_1, %c0_2] : memref<256x2048xbf16, #tpu.memory_space<vmem>>, vector<256x2048xbf16>
    %cst = arith.constant dense<0.000000e+00> : vector<2x2048xf32>
    %3 = tpu.matmul %1, %2, %cst {dimension_numbers = #tpu.dot_dimension_numbers<[1], [0], [0], [1], [0, 0, 1, 1], [], []>} : vector<2x256xbf16>, vector<256x2048xbf16>, vector<2x2048xf32> -> vector<2x2048xf32>
    %c0_3 = arith.constant 0 : index
    %c0_4 = arith.constant 0 : index
    %4 = vector.load %arg2[%c0_3, %c0_4] : memref<1x2048xf32, #tpu.memory_space<vmem>>, vector<1x2048xf32>
    %5 = vector.broadcast %4 : vector<1x2048xf32> to vector<2x2048xf32>
    %6 = arith.addf %3, %5 : vector<2x2048xf32>
    %cst_5 = arith.constant 0.000000e+00 : f32
    %7 = vector.broadcast %cst_5 : f32 to vector<2x2048xf32>
    %8 = arith.maximumf %6, %7 : vector<2x2048xf32>
    %9 = vector.extract_strided_slice %8 {offsets = [0, 0], sizes = [2, 512], strides = [1, 1]} : vector<2x2048xf32> to vector<2x512xf32>
    %10 = vector.extract_strided_slice %8 {offsets = [0, 512], sizes = [2, 512], strides = [1, 1]} : vector<2x2048xf32> to vector<2x512xf32>
    %11 = arith.maximumf %9, %10 : vector<2x512xf32>
    %12 = vector.extract_strided_slice %8 {offsets = [0, 1024], sizes = [2, 512], strides = [1, 1]} : vector<2x2048xf32> to vector<2x512xf32>
    %13 = vector.extract_strided_slice %8 {offsets = [0, 1536], sizes = [2, 512], strides = [1, 1]} : vector<2x2048xf32> to vector<2x512xf32>
    %14 = arith.maximumf %12, %13 : vector<2x512xf32>
    %15 = arith.maximumf %11, %14 : vector<2x512xf32>
    %16 = arith.truncf %15 : vector<2x512xf32> to vector<2x512xbf16>
    %c0_6 = arith.constant 0 : index
    %c0_7 = arith.constant 0 : index
    %17 = vector.load %arg3[%c0_6, %c0_7] : memref<512x2048xbf16, #tpu.memory_space<vmem>>, vector<512x2048xbf16>
    %cst_8 = arith.constant dense<0.000000e+00> : vector<2x2048xf32>
    %18 = tpu.matmul %16, %17, %cst_8 {dimension_numbers = #tpu.dot_dimension_numbers<[1], [0], [0], [1], [0, 0, 1, 1], [], []>} : vector<2x512xbf16>, vector<512x2048xbf16>, vector<2x2048xf32> -> vector<2x2048xf32>
    %c0_9 = arith.constant 0 : index
    %c0_10 = arith.constant 0 : index
    %19 = vector.load %arg4[%c0_9, %c0_10] : memref<1x2048xf32, #tpu.memory_space<vmem>>, vector<1x2048xf32>
    %20 = vector.broadcast %19 : vector<1x2048xf32> to vector<2x2048xf32>
    %21 = arith.addf %18, %20 : vector<2x2048xf32>
    %cst_11 = arith.constant 0.000000e+00 : f32
    %22 = vector.broadcast %cst_11 : f32 to vector<2x2048xf32>
    %23 = arith.maximumf %21, %22 : vector<2x2048xf32>
    %24 = vector.extract_strided_slice %23 {offsets = [0, 0], sizes = [2, 512], strides = [1, 1]} : vector<2x2048xf32> to vector<2x512xf32>
    %25 = vector.extract_strided_slice %23 {offsets = [0, 512], sizes = [2, 512], strides = [1, 1]} : vector<2x2048xf32> to vector<2x512xf32>
    %26 = arith.maximumf %24, %25 : vector<2x512xf32>
    %27 = vector.extract_strided_slice %23 {offsets = [0, 1024], sizes = [2, 512], strides = [1, 1]} : vector<2x2048xf32> to vector<2x512xf32>
    %28 = vector.extract_strided_slice %23 {offsets = [0, 1536], sizes = [2, 512], strides = [1, 1]} : vector<2x2048xf32> to vector<2x512xf32>
    %29 = arith.maximumf %27, %28 : vector<2x512xf32>
    %30 = arith.maximumf %26, %29 : vector<2x512xf32>
    %31 = arith.truncf %30 : vector<2x512xf32> to vector<2x512xbf16>
    %c0_12 = arith.constant 0 : index
    %c0_13 = arith.constant 0 : index
    %32 = vector.load %arg5[%c0_12, %c0_13] : memref<512x1024xbf16, #tpu.memory_space<vmem>>, vector<512x1024xbf16>
    %cst_14 = arith.constant dense<0.000000e+00> : vector<2x1024xf32>
    %33 = tpu.matmul %31, %32, %cst_14 {dimension_numbers = #tpu.dot_dimension_numbers<[1], [0], [0], [1], [0, 0, 1, 1], [], []>} : vector<2x512xbf16>, vector<512x1024xbf16>, vector<2x1024xf32> -> vector<2x1024xf32>
    %c0_15 = arith.constant 0 : index
    %c0_16 = arith.constant 0 : index
    %34 = vector.load %arg6[%c0_15, %c0_16] : memref<1x1024xf32, #tpu.memory_space<vmem>>, vector<1x1024xf32>
    %35 = vector.broadcast %34 : vector<1x1024xf32> to vector<2x1024xf32>
    %36 = arith.addf %33, %35 : vector<2x1024xf32>
    %cst_17 = arith.constant 0.000000e+00 : f32
    %37 = vector.broadcast %cst_17 : f32 to vector<2x1024xf32>
    %38 = arith.maximumf %36, %37 : vector<2x1024xf32>
    %39 = vector.extract_strided_slice %38 {offsets = [0, 0], sizes = [2, 256], strides = [1, 1]} : vector<2x1024xf32> to vector<2x256xf32>
    %40 = vector.extract_strided_slice %38 {offsets = [0, 256], sizes = [2, 256], strides = [1, 1]} : vector<2x1024xf32> to vector<2x256xf32>
    %41 = arith.maximumf %39, %40 : vector<2x256xf32>
    %42 = vector.extract_strided_slice %38 {offsets = [0, 512], sizes = [2, 256], strides = [1, 1]} : vector<2x1024xf32> to vector<2x256xf32>
    %43 = vector.extract_strided_slice %38 {offsets = [0, 768], sizes = [2, 256], strides = [1, 1]} : vector<2x1024xf32> to vector<2x256xf32>
    %44 = arith.maximumf %42, %43 : vector<2x256xf32>
    %45 = arith.maximumf %41, %44 : vector<2x256xf32>
    %46 = arith.truncf %45 : vector<2x256xf32> to vector<2x256xbf16>
    %c0_18 = arith.constant 0 : index
    %c0_19 = arith.constant 0 : index
    %47 = vector.load %arg7[%c0_18, %c0_19] : memref<256x400xbf16, #tpu.memory_space<vmem>>, vector<256x400xbf16>
    %cst_20 = arith.constant dense<0.000000e+00> : vector<2x400xf32>
    %48 = tpu.matmul %46, %47, %cst_20 {dimension_numbers = #tpu.dot_dimension_numbers<[1], [0], [0], [1], [0, 0, 1, 1], [], []>} : vector<2x256xbf16>, vector<256x400xbf16>, vector<2x400xf32> -> vector<2x400xf32>
    %c0_21 = arith.constant 0 : index
    %c0_22 = arith.constant 0 : index
    %49 = vector.load %arg8[%c0_21, %c0_22] : memref<1x400xf32, #tpu.memory_space<vmem>>, vector<1x400xf32>
    %50 = vector.broadcast %49 : vector<1x400xf32> to vector<2x400xf32>
    %51 = arith.addf %48, %50 : vector<2x400xf32>
    %cst_23 = arith.constant 0.000000e+00 : f32
    %52 = vector.broadcast %cst_23 : f32 to vector<2x400xf32>
    %53 = arith.maximumf %51, %52 : vector<2x400xf32>
    %54 = arith.truncf %53 : vector<2x400xf32> to vector<2x400xbf16>
    %c0_24 = arith.constant 0 : index
    %c0_25 = arith.constant 0 : index
    %55 = vector.load %arg9[%c0_24, %c0_25] : memref<400x200xbf16, #tpu.memory_space<vmem>>, vector<400x200xbf16>
    %cst_26 = arith.constant dense<0.000000e+00> : vector<2x200xf32>
    %56 = tpu.matmul %54, %55, %cst_26 {dimension_numbers = #tpu.dot_dimension_numbers<[1], [0], [0], [1], [0, 0, 1, 1], [], []>} : vector<2x400xbf16>, vector<400x200xbf16>, vector<2x200xf32> -> vector<2x200xf32>
    %c0_27 = arith.constant 0 : index
    %c0_28 = arith.constant 0 : index
    %57 = vector.load %arg10[%c0_27, %c0_28] : memref<1x200xf32, #tpu.memory_space<vmem>>, vector<1x200xf32>
    %58 = vector.broadcast %57 : vector<1x200xf32> to vector<2x200xf32>
    %59 = arith.addf %56, %58 : vector<2x200xf32>
    %cst_29 = arith.constant 0.000000e+00 : f32
    %60 = vector.broadcast %cst_29 : f32 to vector<2x200xf32>
    %61 = arith.maximumf %59, %60 : vector<2x200xf32>
    %62 = arith.truncf %61 : vector<2x200xf32> to vector<2x200xbf16>
    %c0_30 = arith.constant 0 : index
    %c0_31 = arith.constant 0 : index
    %63 = vector.load %arg11[%c0_30, %c0_31] : memref<200x84xbf16, #tpu.memory_space<vmem>>, vector<200x84xbf16>
    %cst_32 = arith.constant dense<0.000000e+00> : vector<2x84xf32>
    %64 = tpu.matmul %62, %63, %cst_32 {dimension_numbers = #tpu.dot_dimension_numbers<[1], [0], [0], [1], [0, 0, 1, 1], [], []>} : vector<2x200xbf16>, vector<200x84xbf16>, vector<2x84xf32> -> vector<2x84xf32>
    %c0_33 = arith.constant 0 : index
    %c0_34 = arith.constant 0 : index
    %65 = vector.load %arg12[%c0_33, %c0_34] : memref<1x84xf32, #tpu.memory_space<vmem>>, vector<1x84xf32>
    %66 = vector.broadcast %65 : vector<1x84xf32> to vector<2x84xf32>
    %67 = arith.addf %64, %66 : vector<2x84xf32>
    %cst_35 = arith.constant 0.000000e+00 : f32
    %68 = vector.broadcast %cst_35 : f32 to vector<2x84xf32>
    %69 = arith.maximumf %67, %68 : vector<2x84xf32>
    %70 = arith.truncf %69 : vector<2x84xf32> to vector<2x84xbf16>
    %c0_36 = arith.constant 0 : index
    %c0_37 = arith.constant 0 : index
    %71 = vector.load %arg13[%c0_36, %c0_37] : memref<84x128xbf16, #tpu.memory_space<vmem>>, vector<84x128xbf16>
    %cst_38 = arith.constant dense<0.000000e+00> : vector<2x128xf32>
    %72 = tpu.matmul %70, %71, %cst_38 {dimension_numbers = #tpu.dot_dimension_numbers<[1], [0], [0], [1], [0, 0, 1, 1], [], []>} : vector<2x84xbf16>, vector<84x128xbf16>, vector<2x128xf32> -> vector<2x128xf32>
    %c0_39 = arith.constant 0 : index
    %c0_40 = arith.constant 0 : index
    %73 = vector.load %arg14[%c0_39, %c0_40] : memref<1x128xf32, #tpu.memory_space<vmem>>, vector<1x128xf32>
    %74 = vector.broadcast %73 : vector<1x128xf32> to vector<2x128xf32>
    %75 = arith.addf %72, %74 : vector<2x128xf32>
    %c0_41 = arith.constant 0 : index
    %c0_42 = arith.constant 0 : index
    %76 = vector.load %arg15[%c0_41, %c0_42] : memref<2x128xf32, #tpu.memory_space<vmem>>, vector<2x128xf32>
    tpu.vector_store %arg15[%c0_41, %c0_42], %75 {strides = array<i32>} : memref<2x128xf32, #tpu.memory_space<vmem>>, vector<2x128xf32>,
    return
  }
}

</mosaic_0001>

<bundles_post_ra>
// kernel: cnn_forward.1
= control target key start
LH: loop header
LB: loop body
LE: loop exit
PB: predicated region body
PF: predicated region fallthrough
CT: control target
= control target key end

     0   :  { %20 = vsyncpa [#allocation3], 0  ;;  %s11716_s0 = inlined_call_operand.vmem [shape: f32[2,256], index: 0, kind: input, shape index: {}]   ;;  %s11717_s1 = inlined_call_operand.hbm [shape: bf16[256,2048], index: 1, kind: input, shape index: {}]   ;;  %s11718_s2 = inlined_call_operand.hbm [shape: f32[1,2048], index: 2, kind: input, shape index: {}]   ;;  %s11719_s3 = inlined_call_operand.hbm [shape: bf16[512,2048], index: 3, kind: input, shape index: {}]   ;;  %s11720_s4 = inlined_call_operand.hbm [shape: f32[1,2048], index: 4, kind: input, shape index: {}]   ;;  %s11721_s5 = inlined_call_operand.hbm [shape: bf16[512,1024], index: 5, kind: input, shape index: {}]   ;;  %s11722_s6 = inlined_call_operand.hbm [shape: f32[1,1024], index: 6, kind: input, shape index: {}]   ;;  %s11723_s7 = inlined_call_operand.vmem [shape: bf16[256,400], index: 7, kind: input, shape index: {}]   ;;  %s11724_s8 = inlined_call_operand.hbm [shape: f32[1,400], index: 8, kind: input, shape index: {}]   ;;  %s11725_s9 = inlined_call_operand.hbm [shape: bf16[400,200], index: 9, kind: input, shape index: {}]   ;;  %s11726_s10 = inlined_call_operand.hbm [shape: f32[1,200], index: 10, kind: input, shape index: {}]   ;;  %s11727_s11 = inlined_call_operand.vmem [shape: bf16[200,84], index: 11, kind: input, shape index: {}]   ;;  %s11728_s12 = inlined_call_operand.hbm [shape: f32[1,84], index: 12, kind: input, shape index: {}]   ;;  %s11729_s13 = inlined_call_operand.hbm [shape: bf16[84,128], index: 13, kind: input, shape index: {}]   ;;  %s11730_s14 = inlined_call_operand.hbm [shape: f32[1,128], index: 14, kind: input, shape index: {}]   ;;  %s11731_s15 = inlined_call_operand.hbm [shape: f32[2,128], index: 15, kind: output, shape index: {}]  }
   0x1   :  { %21 = vsyncpa [#allocation6], 0 }
   0x2   :  { %22 = vsyncpa [#allocation9], 0 }
   0x3   :  { %23 = vsyncpa [#allocation12], 0 }
   0x4   :  { %24 = vsyncpa [#allocation15], 0 }
   0x5   :  { %25 = vsyncpa [#allocation18], 0 }
   0x6   :  { %26 = vsyncpa [#allocation21], 0 }
   0x7   :  { %27 = vsyncpa [#allocation4], 0  ;;  %s10916_s18 = smov [#allocation5]   ;;  %s10917_s20 = smov [#allocation8]  }
   0x8   :  { %s48_s19 = sshll.u32 %s10916_s18, 4  ;;  %s70_s21 = sshll.u32 %s10917_s20, 4  ;;  %s49_s19 = int_to_ptr.vmem [resolvable:$true] %s48_s19  ;;  %s71_s21 = int_to_ptr.vmem [resolvable:$true] %s70_s21 }
   0x9   :  { %s10614_s24 = scalar_lea.hbm %s11718_s2, 256 }
   0xa   :  { %p10615_p0 = scmp.ne.s32.totalorder %s11718_s2, %s10614_s24  ;;  %p10618_p1 = scmp.lt.u32.totalorder %s10614_s24, %s11718_s2 }
   0xc   :  { %p10620_p2 = pnand %p10618_p1, %p10615_p0 }
   0xe   :  { %10623 = shalt.err (!%p10620_p2)
}
   0xf   :  { %s10624_s29 = scalar_lea.vmem %s49_s19, 256  ;;  %p10629_p4 = scmp.lt.s32.totalorder %s49_s19, %s49_s19 }
  0x10   :  { %p10625_p3 = scmp.ne.s32.totalorder %s49_s19, %s10624_s29  ;;  %p10630_p5 = scmp.lt.s32.totalorder %s10624_s29, %s10624_s29 }
  0x12   :  { %p10631_p6 = por %p10630_p5, %p10629_p4 }
  0x14   :  { %p10632_p7 = pnand %p10631_p6, %p10625_p3 }
  0x16   :  { %10635 = shalt.err (!%p10632_p7)
}
  0x17   :  { %51 = dma.hbm_to_vmem [thread:$0]  %s11718_s2, 256, %s49_s19, [#allocation6]  }
  0x18   :  { %s10636_s20 = scalar_lea.hbm %s11720_s4, 256 }
  0x19   :  { %p10637_p8 = scmp.ne.s32.totalorder %s11720_s4, %s10636_s20  ;;  %p10640_p9 = scmp.lt.u32.totalorder %s10636_s20, %s11720_s4 }
  0x1b   :  { %p10642_p10 = pnand %p10640_p9, %p10637_p8 }
  0x1d   :  { %10645 = shalt.err (!%p10642_p10)
}
  0x1e   :  { %s10646_s26 = scalar_lea.vmem %s71_s21, 256  ;;  %p10651_p12 = scmp.lt.s32.totalorder %s71_s21, %s71_s21 }
  0x1f   :  { %p10647_p11 = scmp.ne.s32.totalorder %s71_s21, %s10646_s26  ;;  %p10652_p13 = scmp.lt.s32.totalorder %s10646_s26, %s10646_s26 }
  0x21   :  { %p10653_p0 = por %p10652_p13, %p10651_p12 }
  0x23   :  { %p10654_p1 = pnand %p10653_p0, %p10647_p11 }
  0x25   :  { %10657 = shalt.err (!%p10654_p1)
}
  0x26   :  { %73 = dma.hbm_to_vmem [thread:$0]  %s11720_s4, 256, %s71_s21, [#allocation9]  }
  0x27   :  { %s10918_s27 = smov [#allocation11]   ;;  %s10919_s29 = smov [#allocation14]  }
  0x28   :  { %s92_s28 = sshll.u32 %s10918_s27, 4  ;;  %s113_s30 = sshll.u32 %s10919_s29, 4  ;;  %s93_s28 = int_to_ptr.vmem [resolvable:$true] %s92_s28  ;;  %s11043_s30 = int_to_ptr.vmem [resolvable:$true] %s113_s30 }
  0x29   :  { %s10658_s18 = scalar_lea.hbm %s11722_s6, 128 }
  0x2a   :  { %p10659_p2 = scmp.ne.s32.totalorder %s11722_s6, %s10658_s18  ;;  %p10662_p3 = scmp.lt.u32.totalorder %s10658_s18, %s11722_s6 }
  0x2c   :  { %p10664_p4 = pnand %p10662_p3, %p10659_p2 }
  0x2e   :  { %10667 = shalt.err (!%p10664_p4)
}
  0x2f   :  { %s10668_s4 = scalar_lea.vmem %s93_s28, 128  ;;  %p10673_p6 = scmp.lt.s32.totalorder %s93_s28, %s93_s28 }
  0x30   :  { %p10669_p5 = scmp.ne.s32.totalorder %s93_s28, %s10668_s4  ;;  %p10674_p7 = scmp.lt.s32.totalorder %s10668_s4, %s10668_s4 }
  0x32   :  { %p10675_p8 = por %p10674_p7, %p10673_p6 }
  0x34   :  { %p10676_p9 = pnand %p10675_p8, %p10669_p5 }
  0x36   :  { %10679 = shalt.err (!%p10676_p9)
}
  0x37   :  { %95 = dma.hbm_to_vmem [thread:$0]  %s11722_s6, 128, %s93_s28, [#allocation12]  }
  0x38   :  { %s10680_s19 = scalar_lea.hbm %s11725_s9, 6400 }
  0x39   :  { %p10681_p10 = scmp.ne.s32.totalorder %s11725_s9, %s10680_s19  ;;  %p10684_p11 = scmp.lt.u32.totalorder %s10680_s19, %s11725_s9 }
  0x3b   :  { %p10686_p12 = pnand %p10684_p11, %p10681_p10 }
  0x3d   :  { %10689 = shalt.err (!%p10686_p12)
}
  0x3e   :  { %s10690_s18 = scalar_lea.vmem %s11043_s30, 6400  ;;  %p10695_p0 = scmp.lt.s32.totalorder %s11043_s30, %s11043_s30 }
  0x3f   :  { %p10691_p13 = scmp.ne.s32.totalorder %s11043_s30, %s10690_s18  ;;  %p10696_p1 = scmp.lt.s32.totalorder %s10690_s18, %s10690_s18 }
  0x41   :  { %p10697_p2 = por %p10696_p1, %p10695_p0 }
  0x43   :  { %p10698_p3 = pnand %p10697_p2, %p10691_p13 }
  0x45   :  { %10701 = shalt.err (!%p10698_p3)
}
  0x46   :  { %s10920_s6 = smov 128   ;;  %s10921_s28 = smov 8  }
  0x47   :  { %119 = dma.hbm_to_vmem [thread:$0]  %s11725_s9, 6400, %s11043_s30, [#allocation15], %s10920_s6, %s10920_s6, %s10921_s28  }
  0x48   :  { %s10922_s23 = smov [#allocation17]   ;;  %s10923_s4 = smov [#allocation2]  }
  0x49   :  { %s138_s24 = sshll.u32 %s10922_s23, 4  ;;  %s35_s21 = sshll.u32 %s10923_s4, 4  ;;  %s139_s24 = int_to_ptr.vmem [resolvable:$true] %s138_s24  ;;  %s11074_s21 = int_to_ptr.vmem [resolvable:$true] %s35_s21 }
  0x4a   :  { %s10702_s2 = scalar_lea.hbm %s11728_s12, 16 }
  0x4b   :  { %p10703_p4 = scmp.ne.s32.totalorder %s11728_s12, %s10702_s2  ;;  %p10706_p5 = scmp.lt.u32.totalorder %s10702_s2, %s11728_s12 }
  0x4d   :  { %p10708_p6 = pnand %p10706_p5, %p10703_p4 }
  0x4f   :  { %10711 = shalt.err (!%p10708_p6)
}
  0x50   :  { %s10712_s9 = scalar_lea.vmem %s139_s24, 16  ;;  %s10716_s30 = scalar_lea.vmem %s139_s24, 32 }
  0x51   :  { %p10713_p7 = scmp.ne.s32.totalorder %s139_s24, %s10712_s9  ;;  %p10717_p8 = scmp.lt.s32.totalorder %s139_s24, %s139_s24 }
  0x52   :  { %p10718_p9 = scmp.lt.s32.totalorder %s10716_s30, %s10712_s9 }
  0x54   :  { %p10719_p10 = por %p10718_p9, %p10717_p8 }
  0x56   :  { %p10720_p11 = pnand %p10719_p10, %p10713_p7 }
  0x58   :  { %10723 = shalt.err (!%p10720_p11)
}
  0x59   :  { %141 = dma.hbm_to_vmem [thread:$0]  %s11728_s12, 16, %s139_s24, [#allocation18]  }
  0x5a   :  { %s10724_s20 = scalar_lea.hbm %s11717_s1, 32768 }
  0x5b   :  { %p10725_p12 = scmp.ne.s32.totalorder %s11717_s1, %s10724_s20  ;;  %p10728_p13 = scmp.lt.u32.totalorder %s10724_s20, %s11717_s1 }
  0x5d   :  { %p10730_p0 = pnand %p10728_p13, %p10725_p12 }
  0x5f   :  { %10733 = shalt.err (!%p10730_p0)
}
  0x60   :  { %s10734_s26 = scalar_lea.vmem %s11074_s21, 32768  ;;  %p10739_p2 = scmp.lt.s32.totalorder %s11074_s21, %s11074_s21 }
  0x61   :  { %p10735_p1 = scmp.ne.s32.totalorder %s11074_s21, %s10734_s26  ;;  %p10740_p3 = scmp.lt.s32.totalorder %s10734_s26, %s10734_s26 }
  0x63   :  { %p10741_p4 = por %p10740_p3, %p10739_p2 }
  0x65   :  { %p10742_p5 = pnand %p10741_p4, %p10735_p1 }
  0x67   :  { %10745 = shalt.err (!%p10742_p5)
}
  0x68   :  { %s10924_s12 = smov 1024   ;;  %s10925_s24 = smov 64  }
  0x69   :  { %41 = dma.hbm_to_vmem [thread:$0]  %s11717_s1, 32768, %s11074_s21, [#allocation3], %s10924_s12, %s10924_s12, %s10925_s24  }
  0x6a   :  { %s10926_s27 = smov [#allocation7]   ;;  %s10927_s16 = smov [#allocation10]  }
  0x6b   :  { %s57_s29 = sshll.u32 %s10926_s27, 4  ;;  %s79_s9 = sshll.u32 %s10927_s16, 4  ;;  %s58_s29 = int_to_ptr.vmem [resolvable:$true] %s57_s29  ;;  %s11106_s9 = int_to_ptr.vmem [resolvable:$true] %s79_s9 }
  0x6c   :  { %s10746_s18 = scalar_lea.hbm %s11719_s3, 65536 }
  0x6d   :  { %p10747_p6 = scmp.ne.s32.totalorder %s11719_s3, %s10746_s18  ;;  %p10750_p7 = scmp.lt.u32.totalorder %s10746_s18, %s11719_s3 }
  0x6f   :  { %p10752_p8 = pnand %p10750_p7, %p10747_p6 }
  0x71   :  { %10755 = shalt.err (!%p10752_p8)
}
  0x72   :  { %s10756_s1 = scalar_lea.vmem %s58_s29, 65536  ;;  %p10761_p10 = scmp.lt.s32.totalorder %s58_s29, %s58_s29 }
  0x73   :  { %p10757_p9 = scmp.ne.s32.totalorder %s58_s29, %s10756_s1  ;;  %p10762_p11 = scmp.lt.s32.totalorder %s10756_s1, %s10756_s1 }
  0x75   :  { %p10763_p12 = por %p10762_p11, %p10761_p10 }
  0x77   :  { %p10764_p13 = pnand %p10763_p12, %p10757_p9 }
  0x79   :  { %10767 = shalt.err (!%p10764_p13)
}
  0x7a   :  { %63 = dma.hbm_to_vmem [thread:$0]  %s11719_s3, 65536, %s58_s29, [#allocation6], %s10924_s12, %s10924_s12, %s10925_s24  }
  0x7b   :  { %s10768_s26 = scalar_lea.hbm %s11721_s5, 32768 }
  0x7c   :  { %p10769_p0 = scmp.ne.s32.totalorder %s11721_s5, %s10768_s26  ;;  %p10772_p1 = scmp.lt.u32.totalorder %s10768_s26, %s11721_s5 }
  0x7e   :  { %p10774_p2 = pnand %p10772_p1, %p10769_p0 }
  0x80   :  { %10777 = shalt.err (!%p10774_p2)
}
  0x81   :  { %s10778_s30 = scalar_lea.vmem %s11106_s9, 32768  ;;  %p10783_p4 = scmp.lt.s32.totalorder %s11106_s9, %s11106_s9 }
  0x82   :  { %p10779_p3 = scmp.ne.s32.totalorder %s11106_s9, %s10778_s30  ;;  %p10784_p5 = scmp.lt.s32.totalorder %s10778_s30, %s10778_s30 }
  0x84   :  { %p10785_p6 = por %p10784_p5, %p10783_p4 }
  0x86   :  { %p10786_p7 = pnand %p10785_p6, %p10779_p3 }
  0x88   :  { %10789 = shalt.err (!%p10786_p7)
}
  0x89   :  { %s10928_s3 = smov 512   ;;  %s10929_s12 = smov 32  }
  0x8a   :  { %85 = dma.hbm_to_vmem [thread:$0]  %s11721_s5, 32768, %s11106_s9, [#allocation9], %s10928_s3, %s10928_s3, %s10929_s12  }
  0x8b   :  { %s10930_s18 = smov [#allocation13]   ;;  %s10931_s28 = smov [#allocation16]  }
  0x8c   :  { %s104_s6 = sshll.u32 %s10930_s18, 4  ;;  %s126_s20 = sshll.u32 %s10931_s28, 4  ;;  %s105_s6 = int_to_ptr.vmem [resolvable:$true] %s104_s6  ;;  %s127_s20 = int_to_ptr.vmem [resolvable:$true] %s126_s20 }
  0x8d   :  { %s10790_s21 = scalar_lea.hbm %s11724_s8, 64 }
  0x8e   :  { %p10791_p8 = scmp.ne.s32.totalorder %s11724_s8, %s10790_s21  ;;  %p10794_p9 = scmp.lt.u32.totalorder %s10790_s21, %s11724_s8 }
  0x90   :  { %p10796_p10 = pnand %p10794_p9, %p10791_p8 }
  0x92   :  { %10799 = shalt.err (!%p10796_p10)
}
  0x93   :  { %s10800_s5 = scalar_lea.vmem %s105_s6, 64  ;;  %p10805_p12 = scmp.lt.s32.totalorder %s105_s6, %s105_s6 }
  0x94   :  { %p10801_p11 = scmp.ne.s32.totalorder %s105_s6, %s10800_s5  ;;  %p10806_p13 = scmp.lt.s32.totalorder %s10800_s5, %s10800_s5 }
  0x96   :  { %p10807_p0 = por %p10806_p13, %p10805_p12 }
  0x98   :  { %p10808_p1 = pnand %p10807_p0, %p10801_p11 }
  0x9a   :  { %10811 = shalt.err (!%p10808_p1)
}
  0x9b   :  { %107 = dma.hbm_to_vmem [thread:$0]  %s11724_s8, 64, %s105_s6, [#allocation12]  }
  0x9c   :  { %s10812_s16 = scalar_lea.hbm %s11726_s10, 32 }
  0x9d   :  { %p10813_p2 = scmp.ne.s32.totalorder %s11726_s10, %s10812_s16  ;;  %p10816_p3 = scmp.lt.u32.totalorder %s10812_s16, %s11726_s10 }
  0x9f   :  { %p10818_p4 = pnand %p10816_p3, %p10813_p2 }
  0xa1   :  { %10821 = shalt.err (!%p10818_p4)
}
  0xa2   :  { %s10822_s17 = scalar_lea.vmem %s127_s20, 32  ;;  %p10827_p6 = scmp.lt.s32.totalorder %s127_s20, %s127_s20 }
  0xa3   :  { %p10823_p5 = scmp.ne.s32.totalorder %s127_s20, %s10822_s17  ;;  %p10828_p7 = scmp.lt.s32.totalorder %s10822_s17, %s10822_s17 }
  0xa5   :  { %p10829_p8 = por %p10828_p7, %p10827_p6 }
  0xa7   :  { %p10830_p9 = pnand %p10829_p8, %p10823_p5 }
  0xa9   :  { %10833 = shalt.err (!%p10830_p9)
}
  0xaa   :  { %129 = dma.hbm_to_vmem [thread:$0]  %s11726_s10, 32, %s127_s20, [#allocation15]  }
  0xab   :  { %s10932_s6 = smov [#allocation19]   ;;  %s10933_s22 = smov [#allocation20]  }
  0xac   :  { %s147_s28 = sshll.u32 %s10932_s6, 4  ;;  %s160_s1 = sshll.u32 %s10933_s22, 4  ;;  %s148_s28 = int_to_ptr.vmem [resolvable:$true] %s147_s28  ;;  %s161_s1 = int_to_ptr.vmem [resolvable:$true] %s160_s1 }
  0xad   :  { %s10834_s4 = scalar_lea.hbm %s11729_s13, 704 }
  0xae   :  { %p10835_p10 = scmp.ne.s32.totalorder %s11729_s13, %s10834_s4  ;;  %p10838_p11 = scmp.lt.u32.totalorder %s10834_s4, %s11729_s13 }
  0xb0   :  { %p10840_p12 = pnand %p10838_p11, %p10835_p10 }
  0xb2   :  { %10843 = shalt.err (!%p10840_p12)
}
  0xb3   :  { %s10844_s10 = scalar_lea.vmem %s148_s28, 704  ;;  %p10849_p0 = scmp.lt.s32.totalorder %s148_s28, %s148_s28 }
  0xb4   :  { %p10845_p13 = scmp.ne.s32.totalorder %s148_s28, %s10844_s10  ;;  %p10850_p1 = scmp.lt.s32.totalorder %s10844_s10, %s10844_s10 }
  0xb6   :  { %p10851_p2 = por %p10850_p1, %p10849_p0 }
  0xb8   :  { %p10852_p3 = pnand %p10851_p2, %p10845_p13 }
  0xba   :  { %10855 = shalt.err (!%p10852_p3)
}
  0xbb   :  { %s10934_s20 = smov 4   ;;  %s10856_s30 = scalar_lea.hbm %s11730_s14, 16 }
  0xbc   :  { %153 = dma.hbm_to_vmem [thread:$0]  %s11729_s13, 704, %s148_s28, [#allocation18], %s10925_s24, %s10925_s24, %s10934_s20  }
  0xbd   :  { %p10857_p4 = scmp.ne.s32.totalorder %s11730_s14, %s10856_s30  ;;  %p10860_p5 = scmp.lt.u32.totalorder %s10856_s30, %s11730_s14 }
  0xbf   :  { %p10862_p6 = pnand %p10860_p5, %p10857_p4 }
  0xc1   :  { %10865 = shalt.err (!%p10862_p6)
}
  0xc2   :  { %s10866_s8 = scalar_lea.vmem %s161_s1, 16  ;;  %s10870_s18 = scalar_lea.vmem %s161_s1, 32 }
  0xc3   :  { %p10867_p7 = scmp.ne.s32.totalorder %s161_s1, %s10866_s8  ;;  %p10871_p8 = scmp.lt.s32.totalorder %s161_s1, %s161_s1 }
  0xc4   :  { %p10872_p9 = scmp.lt.s32.totalorder %s10870_s18, %s10866_s8 }
  0xc6   :  { %p10873_p10 = por %p10872_p9, %p10871_p8 }
  0xc8   :  { %p10874_p11 = pnand %p10873_p10, %p10867_p7 }
  0xca   :  { %10877 = shalt.err (!%p10874_p11)
}
  0xcb   :  { %163 = dma.hbm_to_vmem [thread:$0]  %s11730_s14, 16, %s161_s1, [#allocation21]  }
  0xcc   :  { %10900 = dma.done.wait [#allocation3], 32768  }
  0xcd   :  { %10901 = vsyncadd [#allocation3], 4294934528 }
  0xce   :  { %10902 = dma.done.wait [#allocation6], 65792  }
  0xcf   :  { %10903 = vsyncadd [#allocation6], 4294901504 }
  0xd0   :  { %10904 = dma.done.wait [#allocation9], 33024  }
  0xd1   :  { %10905 = vsyncadd [#allocation9], 4294934272 }
  0xd2   :  { %10906 = dma.done.wait [#allocation12], 192  }
  0xd3   :  { %10907 = vsyncadd [#allocation12], 4294967104 }
  0xd4   :  { %10908 = dma.done.wait [#allocation15], 6432  }
  0xd5   :  { %10909 = vsyncadd [#allocation15], 4294960864 }
  0xd6   :  { %10910 = dma.done.wait [#allocation18], 720  }
  0xd7   :  { %10911 = vsyncadd [#allocation18], 4294966576 }
  0xd8   :  { %10912 = dma.done.wait [#allocation21], 16  }
  0xd9   :  { %10913 = vsyncadd [#allocation21], 4294967280  ;;  %v215_v0 = vld [vmem:[#allocation2] sm:$0xff]  ;;  %v216_v2 = vld [vmem:[#allocation2 + $0x8] sm:$0xff]  ;;  %vm8769_vm0 = vcmask 130048   ;;  %vm8970_vm1 = vcmask 1043456  }
  0xda   :  { %v223_v1 = vld [vmem:[#allocation2 + $0x40] sm:$0xff]  ;;  %v224_v4 = vld [vmem:[#allocation2 + $0x48] sm:$0xff]  ;;  %vm8966_vm2 = vcmask 588800   ;;  %vm9071_vm3 = vcmask 1041408   ;;  %vm10937_vm4 = vmmov 0   ;;  %vm9067_vm5 = vcmask 687104  }
  0xdb   :  { %v9139_v3 = vcombine.high %v215_v0, %v223_v1  ;;  %v9138_v5 = vcombine.low %v215_v0, %v223_v1  ;;  %v231_v6 = vld [vmem:[#allocation2 + $0x80] sm:$0xff]  ;;  %v9141_v8 = vcombine.high %v216_v2, %v224_v4  ;;  %v9140_v9 = vcombine.low %v216_v2, %v224_v4  ;;  %v232_v11 = vld [vmem:[#allocation2 + $0x88] sm:$0xff] }
  0xdc   :  { %v239_v7 = vld [vmem:[#allocation2 + $0xc0] sm:$0xff]  ;;  %v240_v12 = vld [vmem:[#allocation2 + $0xc8] sm:$0xff] }
  0xdd   :  { %v9155_v10 = vcombine.high %v231_v6, %v239_v7  ;;  %v247_v13 = vld [vmem:[#allocation2 + $0x100] sm:$0xff]  ;;  %1835 = vmatprep.subr.bf16.mxu0 %v9139_v3  ;;  %v9157_v14 = vcombine.high %v232_v11, %v240_v12  ;;  %v248_v16 = vld [vmem:[#allocation2 + $0x108] sm:$0xff]  ;;  %1876 = vmatprep.subr.bf16.mxu1 %v9141_v8  ;;  %v9154_v18 = vcombine.low %v231_v6, %v239_v7 }
  0xde   :  { %v255_v15 = vld [vmem:[#allocation2 + $0x140] sm:$0xff]  ;;  %v256_v17 = vld [vmem:[#allocation2 + $0x148] sm:$0xff]  ;;  %1836 = vmatpush1.bf16.msra.mxu0 %v9138_v5  ;;  %1877 = vmatpush1.bf16.msra.mxu1 %v9140_v9  ;;  %v9156_v19 = vcombine.low %v232_v11, %v240_v12 }
  0xdf   :  { %1837 = vmatprep.subr.bf16.mxu0 %v9155_v10  ;;  %v9171_v20 = vcombine.high %v247_v13, %v255_v15  ;;  %1878 = vmatprep.subr.bf16.mxu1 %v9157_v14  ;;  %v9173_v21 = vcombine.high %v248_v16, %v256_v17  ;;  %v263_v22 = vld [vmem:[#allocation2 + $0x180] sm:$0xff]  ;;  %v264_v24 = vld [vmem:[#allocation2 + $0x188] sm:$0xff]  ;;  %v9170_v26 = vcombine.low %v247_v13, %v255_v15 }
  0xe0   :  { %v271_v23 = vld [vmem:[#allocation2 + $0x1c0] sm:$0xff]  ;;  %v272_v25 = vld [vmem:[#allocation2 + $0x1c8] sm:$0xff]  ;;  %v9172_v27 = vcombine.low %v248_v16, %v256_v17 }
  0xe1   :  { %v9187_v28 = vcombine.high %v263_v22, %v271_v23  ;;  %v9189_v29 = vcombine.high %v264_v24, %v272_v25  ;;  %v279_v30 = vld [vmem:[#allocation2 + $0x200] sm:$0xff]  ;;  %v280_v32 = vld [vmem:[#allocation2 + $0x208] sm:$0xff]  ;;  %v9186_v34 = vcombine.low %v263_v22, %v271_v23  ;;  %v9188_v35 = vcombine.low %v264_v24, %v272_v25 }
  0xe2   :  { %1838 = vmatpush1.bf16.msra.mxu0 %v9154_v18  ;;  %1879 = vmatpush1.bf16.msra.mxu1 %v9156_v19  ;;  %v287_v31 = vld [vmem:[#allocation2 + $0x240] sm:$0xff]  ;;  %v288_v33 = vld [vmem:[#allocation2 + $0x248] sm:$0xff] }
  0xe3   :  { %1839 = vmatprep.subr.bf16.mxu0 %v9171_v20  ;;  %1880 = vmatprep.subr.bf16.mxu1 %v9173_v21  ;;  %v9203_v36 = vcombine.high %v279_v30, %v287_v31  ;;  %v9205_v37 = vcombine.high %v280_v32, %v288_v33  ;;  %v295_v38 = vld [vmem:[#allocation2 + $0x280] sm:$0xff]  ;;  %v296_v40 = vld [vmem:[#allocation2 + $0x288] sm:$0xff]  ;;  %v9202_v42 = vcombine.low %v279_v30, %v287_v31 }
  0xe4   :  { %v303_v39 = vld [vmem:[#allocation2 + $0x2c0] sm:$0xff]  ;;  %v304_v41 = vld [vmem:[#allocation2 + $0x2c8] sm:$0xff]  ;;  %v9204_v43 = vcombine.low %v280_v32, %v288_v33 }
  0xe5   :  { %v9219_v44 = vcombine.high %v295_v38, %v303_v39  ;;  %v9221_v45 = vcombine.high %v296_v40, %v304_v41  ;;  %v311_v46 = vld [vmem:[#allocation2 + $0x300] sm:$0xff]  ;;  %v312_v48 = vld [vmem:[#allocation2 + $0x308] sm:$0xff]  ;;  %v9218_v50 = vcombine.low %v295_v38, %v303_v39  ;;  %v9220_v51 = vcombine.low %v296_v40, %v304_v41 }
  0xe6   :  { %1840 = vmatpush1.bf16.msra.mxu0 %v9170_v26  ;;  %1881 = vmatpush1.bf16.msra.mxu1 %v9172_v27  ;;  %v319_v47 = vld [vmem:[#allocation2 + $0x340] sm:$0xff]  ;;  %v320_v49 = vld [vmem:[#allocation2 + $0x348] sm:$0xff] }
  0xe7   :  { %1841 = vmatprep.subr.bf16.mxu0 %v9187_v28  ;;  %1882 = vmatprep.subr.bf16.mxu1 %v9189_v29  ;;  %v9235_v52 = vcombine.high %v311_v46, %v319_v47  ;;  %v11191_v53 = vld.sshfl [vmem:[%s11716_s0] sm:$0x33 pattern:$0x76325410]  ;;  %v9237_v54 = vcombine.high %v312_v48, %v320_v49  ;;  %v328_v58 = vld [vmem:[#allocation2 + $0x388] sm:$0xff]  ;;  %v9234_v60 = vcombine.low %v311_v46, %v319_v47 }
  0xe8   :  { %v327_v55 = vld [vmem:[#allocation2 + $0x380] sm:$0xff]  ;;  %v210_v57 = vcombine.high %v11191_v53, %v11191_v53  ;;  %v336_v59 = vld [vmem:[#allocation2 + $0x3c8] sm:$0xff]  ;;  %v9236_v62 = vcombine.low %v312_v48, %v320_v49 }
  0xe9   :  { %v335_v56 = vld [vmem:[#allocation2 + $0x3c0] sm:$0xff]  ;;  %v9253_v0 = vcombine.high %v328_v58, %v336_v59  ;;  %v344_v3 = vld [vmem:[#allocation2 + $0x408] sm:$0xff]  ;;  %v9252_v6 = vcombine.low %v328_v58, %v336_v59 }
  0xea   :  { %1842 = vmatpush1.bf16.msra.mxu0 %v9186_v34  ;;  %1883 = vmatpush1.bf16.msra.mxu1 %v9188_v35  ;;  %v11195_v61 = vpack.c.bf16 %v210_v57, %v210_v57  ;;  %v9251_v63 = vcombine.high %v327_v55, %v335_v56  ;;  %v343_v1 = vld [vmem:[#allocation2 + $0x400] sm:$0xff]  ;;  %v352_v4 = vld [vmem:[#allocation2 + $0x448] sm:$0xff]  ;;  %v9250_v5 = vcombine.low %v327_v55, %v335_v56 }
  0xeb   :  { %1843 = vmatprep.subr.bf16.mxu0 %v9203_v36  ;;  %1884 = vmatprep.subr.bf16.mxu1 %v9205_v37  ;;  %v351_v2 = vld [vmem:[#allocation2 + $0x440] sm:$0xff]  ;;  %v9269_v8 = vcombine.high %v344_v3, %v352_v4  ;;  %v360_v11 = vld [vmem:[#allocation2 + $0x488] sm:$0xff]  ;;  %v9268_v14 = vcombine.low %v344_v3, %v352_v4  ;;  %v217_v3 = vld [vmem:[#allocation2 + $0x10] sm:$0xff] }
  0xec   :  { %1867 = vmatprep.mubr.bf16.mxu0 %v11195_v61  ;;  %1908 = vmatprep.mubr.bf16.mxu1 %v11195_v61  ;;  %v9267_v7 = vcombine.high %v343_v1, %v351_v2  ;;  %v359_v9 = vld [vmem:[#allocation2 + $0x480] sm:$0xff]  ;;  %v368_v12 = vld [vmem:[#allocation2 + $0x4c8] sm:$0xff]  ;;  %v9266_v13 = vcombine.low %v343_v1, %v351_v2  ;;  %v225_v4 = vld [vmem:[#allocation2 + $0x50] sm:$0xff] }
  0xed   :  { %v367_v10 = vld [vmem:[#allocation2 + $0x4c0] sm:$0xff]  ;;  %v9285_v16 = vcombine.high %v360_v11, %v368_v12  ;;  %v376_v19 = vld [vmem:[#allocation2 + $0x508] sm:$0xff]  ;;  %v9284_v22 = vcombine.low %v360_v11, %v368_v12  ;;  %v233_v11 = vld [vmem:[#allocation2 + $0x90] sm:$0xff] }
  0xee   :  { %1844 = vmatpush1.bf16.msra.mxu0 %v9202_v42  ;;  %1885 = vmatpush1.bf16.msra.mxu1 %v9204_v43  ;;  %v9283_v15 = vcombine.high %v359_v9, %v367_v10  ;;  %v375_v17 = vld [vmem:[#allocation2 + $0x500] sm:$0xff]  ;;  %v384_v20 = vld [vmem:[#allocation2 + $0x548] sm:$0xff]  ;;  %v9282_v21 = vcombine.low %v359_v9, %v367_v10  ;;  %v9143_v9 = vcombine.high %v217_v3, %v225_v4  ;;  %v241_v12 = vld [vmem:[#allocation2 + $0xd0] sm:$0xff] }
  0xef   :  { %1845 = vmatprep.subr.bf16.mxu0 %v9219_v44  ;;  %1886 = vmatprep.subr.bf16.mxu1 %v9221_v45  ;;  %v383_v18 = vld [vmem:[#allocation2 + $0x540] sm:$0xff]  ;;  %v9301_v24 = vcombine.high %v376_v19, %v384_v20  ;;  %v392_v27 = vld [vmem:[#allocation2 + $0x588] sm:$0xff]  ;;  %v9300_v30 = vcombine.low %v376_v19, %v384_v20  ;;  %v249_v19 = vld [vmem:[#allocation2 + $0x110] sm:$0xff] }
  0xf0   :  { %v9299_v23 = vcombine.high %v375_v17, %v383_v18  ;;  %v391_v25 = vld [vmem:[#allocation2 + $0x580] sm:$0xff]  ;;  %v400_v28 = vld [vmem:[#allocation2 + $0x5c8] sm:$0xff]  ;;  %v9298_v29 = vcombine.low %v375_v17, %v383_v18  ;;  %v9159_v18 = vcombine.high %v233_v11, %v241_v12  ;;  %v257_v20 = vld [vmem:[#allocation2 + $0x150] sm:$0xff] }
  0xf1   :  { %v399_v26 = vld [vmem:[#allocation2 + $0x5c0] sm:$0xff]  ;;  %v9317_v32 = vcombine.high %v392_v27, %v400_v28  ;;  %v408_v35 = vld [vmem:[#allocation2 + $0x608] sm:$0xff]  ;;  %v9316_v38 = vcombine.low %v392_v27, %v400_v28  ;;  %v273_v27 = vld [vmem:[#allocation2 + $0x1d0] sm:$0xff] }
  0xf2   :  { %1846 = vmatpush1.bf16.msra.mxu0 %v9218_v50  ;;  %1887 = vmatpush1.bf16.msra.mxu1 %v9220_v51  ;;  %v9315_v31 = vcombine.high %v391_v25, %v399_v26  ;;  %v407_v33 = vld [vmem:[#allocation2 + $0x600] sm:$0xff]  ;;  %v416_v36 = vld [vmem:[#allocation2 + $0x648] sm:$0xff]  ;;  %v9314_v37 = vcombine.low %v391_v25, %v399_v26  ;;  %v9175_v25 = vcombine.high %v249_v19, %v257_v20  ;;  %v265_v26 = vld [vmem:[#allocation2 + $0x190] sm:$0xff] }
  0xf3   :  { %1847 = vmatprep.subr.bf16.mxu0 %v9235_v52  ;;  %1888 = vmatprep.subr.bf16.mxu1 %v9237_v54  ;;  %v415_v34 = vld [vmem:[#allocation2 + $0x640] sm:$0xff]  ;;  %v9333_v40 = vcombine.high %v408_v35, %v416_v36  ;;  %v424_v43 = vld [vmem:[#allocation2 + $0x688] sm:$0xff]  ;;  %v9332_v46 = vcombine.low %v408_v35, %v416_v36  ;;  %v266_v28 = vld [vmem:[#allocation2 + $0x198] sm:$0xff] }
  0xf4   :  { %v9331_v39 = vcombine.high %v407_v33, %v415_v34  ;;  %v423_v41 = vld [vmem:[#allocation2 + $0x680] sm:$0xff]  ;;  %v432_v44 = vld [vmem:[#allocation2 + $0x6c8] sm:$0xff]  ;;  %v9330_v45 = vcombine.low %v407_v33, %v415_v34  ;;  %v9191_v33 = vcombine.high %v265_v26, %v273_v27  ;;  %v281_v34 = vld [vmem:[#allocation2 + $0x210] sm:$0xff] }
  0xf5   :  { %v431_v42 = vld [vmem:[#allocation2 + $0x6c0] sm:$0xff]  ;;  %v9349_v48 = vcombine.high %v424_v43, %v432_v44  ;;  %v440_v51 = vld [vmem:[#allocation2 + $0x708] sm:$0xff]  ;;  %v9348_v55 = vcombine.low %v424_v43, %v432_v44  ;;  %v289_v35 = vld [vmem:[#allocation2 + $0x250] sm:$0xff] }
  0xf6   :  { %1848 = vmatpush1.bf16.msra.mxu0 %v9234_v60  ;;  %1889 = vmatpush1.bf16.msra.mxu1 %v9236_v62  ;;  %v9347_v47 = vcombine.high %v423_v41, %v431_v42  ;;  %v439_v49 = vld [vmem:[#allocation2 + $0x700] sm:$0xff]  ;;  %v448_v52 = vld [vmem:[#allocation2 + $0x748] sm:$0xff]  ;;  %v9346_v54 = vcombine.low %v423_v41, %v431_v42  ;;  %v282_v36 = vld [vmem:[#allocation2 + $0x218] sm:$0xff]  ;;  %v9207_v41 = vcombine.high %v281_v34, %v289_v35 }
  0xf7   :  { %1849 = vmatprep.subr.bf16.mxu0 %v9251_v63  ;;  %1890 = vmatprep.subr.bf16.mxu1 %v9253_v0  ;;  %v447_v50 = vld [vmem:[#allocation2 + $0x740] sm:$0xff]  ;;  %v9365_v57 = vcombine.high %v440_v51, %v448_v52  ;;  %v456_v60 = vld [vmem:[#allocation2 + $0x788] sm:$0xff]  ;;  %v9364_v0 = vcombine.low %v440_v51, %v448_v52  ;;  %v297_v42 = vld [vmem:[#allocation2 + $0x290] sm:$0xff] }
  0xf8   :  { %v9363_v56 = vcombine.high %v439_v49, %v447_v50  ;;  %v455_v58 = vld [vmem:[#allocation2 + $0x780] sm:$0xff]  ;;  %v464_v62 = vld [vmem:[#allocation2 + $0x7c8] sm:$0xff]  ;;  %v9362_v63 = vcombine.low %v439_v49, %v447_v50  ;;  %v305_v43 = vld [vmem:[#allocation2 + $0x2d0] sm:$0xff] }
  0xf9   :  { %v463_v59 = vld [vmem:[#allocation2 + $0x7c0] sm:$0xff]  ;;  %v9381_v2 = vcombine.high %v456_v60, %v464_v62  ;;  %v298_v44 = vld [vmem:[#allocation2 + $0x298] sm:$0xff]  ;;  %v9223_v49 = vcombine.high %v297_v42, %v305_v43  ;;  %v313_v50 = vld [vmem:[#allocation2 + $0x310] sm:$0xff] }
  0xfa   :  { %1850 = vmatpush1.bf16.msra.mxu0 %v9250_v5  ;;  %1891 = vmatpush1.bf16.msra.mxu1 %v9252_v6  ;;  %v9379_v1 = vcombine.high %v455_v58, %v463_v59  ;;  %v218_v5 = vld [vmem:[#allocation2 + $0x18] sm:$0xff]  ;;  %v321_v51 = vld [vmem:[#allocation2 + $0x350] sm:$0xff] }
  0xfb   :  { %1851 = vmatprep.subr.bf16.mxu0 %v9267_v7  ;;  %1892 = vmatprep.subr.bf16.mxu1 %v9269_v8  ;;  %v226_v6 = vld [vmem:[#allocation2 + $0x58] sm:$0xff]  ;;  %v9378_v7 = vcombine.low %v455_v58, %v463_v59  ;;  %v9380_v8 = vcombine.low %v456_v60, %v464_v62  ;;  %v9239_v58 = vcombine.high %v313_v50, %v321_v51  ;;  %v329_v59 = vld [vmem:[#allocation2 + $0x390] sm:$0xff] }
  0xfc   :  { %v9145_v10 = vcombine.high %v218_v5, %v226_v6  ;;  %v9144_v17 = vcombine.low %v218_v5, %v226_v6  ;;  %v314_v52 = vld [vmem:[#allocation2 + $0x318] sm:$0xff]  ;;  %v337_v60 = vld [vmem:[#allocation2 + $0x3d0] sm:$0xff] }
  0xfd   :  { %v330_v62 = vld [vmem:[#allocation2 + $0x398] sm:$0xff]  ;;  %v353_v5 = vld [vmem:[#allocation2 + $0x450] sm:$0xff] }
  0xfe   :  { %1852 = vmatpush1.bf16.msra.mxu0 %v9266_v13  ;;  %1893 = vmatpush1.bf16.msra.mxu1 %v9268_v14  ;;  %v11201_v13 = vpack.c.bf16 %v11191_v53, %v11191_v53  ;;  %v234_v14 = vld [vmem:[#allocation2 + $0x98] sm:$0xff]  ;;  %v9158_v53 = vcombine.low %v233_v11, %v241_v12  ;;  %v361_v12 = vld [vmem:[#allocation2 + $0x490] sm:$0xff] }
  0xff   :  { %1853 = vmatprep.subr.bf16.mxu0 %v9283_v15  ;;  %1894 = vmatprep.subr.bf16.mxu1 %v9285_v16  ;;  %v242_v15 = vld [vmem:[#allocation2 + $0xd8] sm:$0xff]  ;;  %v9142_v16 = vcombine.low %v217_v3, %v225_v4  ;;  %v9255_v3 = vcombine.high %v329_v59, %v337_v60  ;;  %v345_v4 = vld [vmem:[#allocation2 + $0x410] sm:$0xff] }
 0x100   :  { %v346_v6 = vld [vmem:[#allocation2 + $0x418] sm:$0xff]  ;;  %v9271_v11 = vcombine.high %v345_v4, %v353_v5 }
 0x102   :  { %1854 = vmatpush1.bf16.msra.mxu0 %v9282_v21  ;;  %1895 = vmatpush1.bf16.msra.mxu1 %v9284_v22  ;;  %v250_v21 = vld [vmem:[#allocation2 + $0x118] sm:$0xff]  ;;  %v9161_v22 = vcombine.high %v234_v14, %v242_v15 }
 0x103   :  { %1855 = vmatprep.subr.bf16.mxu0 %v9299_v23  ;;  %1896 = vmatprep.subr.bf16.mxu1 %v9301_v24  ;;  %v258_v23 = vld [vmem:[#allocation2 + $0x158] sm:$0xff]  ;;  %v9160_v24 = vcombine.low %v234_v14, %v242_v15  ;;  %v369_v14 = vld [vmem:[#allocation2 + $0x4d0] sm:$0xff] }
 0x104   :  { %v362_v15 = vld [vmem:[#allocation2 + $0x498] sm:$0xff] }
 0x106   :  { %1856 = vmatpush1.bf16.msra.mxu0 %v9298_v29  ;;  %1897 = vmatpush1.bf16.msra.mxu1 %v9300_v30  ;;  %v9177_v29 = vcombine.high %v250_v21, %v258_v23  ;;  %v274_v30 = vld [vmem:[#allocation2 + $0x1d8] sm:$0xff] }
 0x107   :  { %1857 = vmatprep.subr.bf16.mxu0 %v9315_v31  ;;  %1898 = vmatprep.subr.bf16.mxu1 %v9317_v32  ;;  %v9174_v31 = vcombine.low %v249_v19, %v257_v20  ;;  %v9176_v32 = vcombine.low %v250_v21, %v258_v23  ;;  %v9287_v20 = vcombine.high %v361_v12, %v369_v14  ;;  %v377_v21 = vld [vmem:[#allocation2 + $0x510] sm:$0xff]  ;;  %v378_v23 = vld [vmem:[#allocation2 + $0x518] sm:$0xff] }
 0x10a   :  { %1858 = vmatpush1.bf16.msra.mxu0 %v9314_v37  ;;  %1899 = vmatpush1.bf16.msra.mxu1 %v9316_v38  ;;  %v9193_v37 = vcombine.high %v266_v28, %v274_v30  ;;  %v290_v38 = vld [vmem:[#allocation2 + $0x258] sm:$0xff] }
 0x10b   :  { %1859 = vmatprep.subr.bf16.mxu0 %v9331_v39  ;;  %1900 = vmatprep.subr.bf16.mxu1 %v9333_v40  ;;  %v9190_v39 = vcombine.low %v265_v26, %v273_v27  ;;  %v9192_v40 = vcombine.low %v266_v28, %v274_v30  ;;  %v393_v28 = vld [vmem:[#allocation2 + $0x590] sm:$0xff]  ;;  %v394_v30 = vld [vmem:[#allocation2 + $0x598] sm:$0xff] }
 0x10e   :  { %1860 = vmatpush1.bf16.msra.mxu0 %v9330_v45  ;;  %1901 = vmatpush1.bf16.msra.mxu1 %v9332_v46  ;;  %v9209_v45 = vcombine.high %v282_v36, %v290_v38  ;;  %v306_v46 = vld [vmem:[#allocation2 + $0x2d8] sm:$0xff] }
 0x10f   :  { %1861 = vmatprep.subr.bf16.mxu0 %v9347_v47  ;;  %1902 = vmatprep.subr.bf16.mxu1 %v9349_v48  ;;  %v9206_v47 = vcombine.low %v281_v34, %v289_v35  ;;  %v9208_v48 = vcombine.low %v282_v36, %v290_v38  ;;  %v409_v36 = vld [vmem:[#allocation2 + $0x610] sm:$0xff]  ;;  %v410_v38 = vld [vmem:[#allocation2 + $0x618] sm:$0xff] }
 0x112   :  { %1862 = vmatpush1.bf16.msra.mxu0 %v9346_v54  ;;  %1903 = vmatpush1.bf16.msra.mxu1 %v9348_v55  ;;  %v9225_v54 = vcombine.high %v298_v44, %v306_v46  ;;  %v322_v55 = vld [vmem:[#allocation2 + $0x358] sm:$0xff] }
 0x113   :  { %1863 = vmatprep.subr.bf16.mxu0 %v9363_v56  ;;  %1904 = vmatprep.subr.bf16.mxu1 %v9365_v57  ;;  %v9222_v56 = vcombine.low %v297_v42, %v305_v43  ;;  %v9224_v57 = vcombine.low %v298_v44, %v306_v46  ;;  %v425_v44 = vld [vmem:[#allocation2 + $0x690] sm:$0xff]  ;;  %v426_v46 = vld [vmem:[#allocation2 + $0x698] sm:$0xff] }
 0x116   :  { %1864 = vmatpush1.bf16.msra.mxu0 %v9362_v63  ;;  %1905 = vmatpush1.bf16.msra.mxu1 %v9364_v0  ;;  %v9241_v63 = vcombine.high %v314_v52, %v322_v55  ;;  %v338_v0 = vld [vmem:[#allocation2 + $0x3d8] sm:$0xff] }
 0x117   :  { %1865 = vmatprep.subr.bf16.mxu0 %v9379_v1  ;;  %1906 = vmatprep.subr.bf16.mxu1 %v9381_v2  ;;  %v9238_v1 = vcombine.low %v313_v50, %v321_v51  ;;  %v9240_v2 = vcombine.low %v314_v52, %v322_v55  ;;  %v441_v52 = vld [vmem:[#allocation2 + $0x710] sm:$0xff]  ;;  %v442_v55 = vld [vmem:[#allocation2 + $0x718] sm:$0xff] }
 0x11a   :  { %1866 = vmatpush1.bf16.msra.mxu0 %v9378_v7  ;;  %1907 = vmatpush1.bf16.msra.mxu1 %v9380_v8  ;;  %v9257_v7 = vcombine.high %v330_v62, %v338_v0  ;;  %v354_v8 = vld [vmem:[#allocation2 + $0x458] sm:$0xff] }
 0x11b   :  { %1917 = vmatprep.subr.bf16.mxu0 %v9143_v9  ;;  %1958 = vmatprep.subr.bf16.mxu1 %v9145_v10  ;;  %v9254_v9 = vcombine.low %v329_v59, %v337_v60  ;;  %v9256_v10 = vcombine.low %v330_v62, %v338_v0  ;;  %v9272_v19 = vcombine.low %v346_v6, %v354_v8  ;;  %v457_v62 = vld [vmem:[#allocation2 + $0x790] sm:$0xff]  ;;  %v458_v0 = vld [vmem:[#allocation2 + $0x798] sm:$0xff] }
 0x11d   :  { %1868 = vmatmul.mubr.bf16.vlgmr.msra.gmra.mrb[0].mxu0 %v11201_v13  ;;  %1909 = vmatmul.mubr.bf16.vlgmr.msra.gmra.mrb[0].mxu1 %v11201_v13 }
 0x11e   :  { %1918 = vmatpush1.bf16.msra.mxu0 %v9142_v16  ;;  %1959 = vmatpush1.bf16.msra.mxu1 %v9144_v17  ;;  %v9273_v16 = vcombine.high %v346_v6, %v354_v8  ;;  %v370_v17 = vld [vmem:[#allocation2 + $0x4d8] sm:$0xff]  ;;  %v219_v6 = vld [vmem:[#allocation2 + $0x20] sm:$0xff]  ;;  %v220_v8 = vld [vmem:[#allocation2 + $0x28] sm:$0xff] }
 0x11f   :  { %1919 = vmatprep.subr.bf16.mxu0 %v9159_v18  ;;  %1960 = vmatprep.subr.bf16.mxu1 %v9161_v22  ;;  %v9270_v18 = vcombine.low %v345_v4, %v353_v5  ;;  %v385_v22 = vld [vmem:[#allocation2 + $0x550] sm:$0xff]  ;;  %v9288_v26 = vcombine.low %v362_v15, %v370_v17 }
 0x120   :  { %1949 = vmatprep.mubr.bf16.mxu0 %v11195_v61  ;;  %1990 = vmatprep.mubr.bf16.mxu1 %v11195_v61  ;;  %v9303_v27 = vcombine.high %v377_v21, %v385_v22 }
 0x122   :  { %1920 = vmatpush1.bf16.msra.mxu0 %v9158_v53  ;;  %1961 = vmatpush1.bf16.msra.mxu1 %v9160_v24  ;;  %v9289_v53 = vcombine.high %v362_v15, %v370_v17  ;;  %v386_v24 = vld [vmem:[#allocation2 + $0x558] sm:$0xff]  ;;  %v235_v15 = vld [vmem:[#allocation2 + $0xa0] sm:$0xff]  ;;  %v236_v17 = vld [vmem:[#allocation2 + $0xa8] sm:$0xff] }
 0x123   :  { %1921 = vmatprep.subr.bf16.mxu0 %v9175_v25  ;;  %1962 = vmatprep.subr.bf16.mxu1 %v9177_v29  ;;  %v9286_v25 = vcombine.low %v361_v12, %v369_v14  ;;  %v401_v29 = vld [vmem:[#allocation2 + $0x5d0] sm:$0xff]  ;;  %v9304_v34 = vcombine.low %v378_v23, %v386_v24 }
 0x124   :  { %v9319_v35 = vcombine.high %v393_v28, %v401_v29 }
 0x126   :  { %1922 = vmatpush1.bf16.msra.mxu0 %v9174_v31  ;;  %1963 = vmatpush1.bf16.msra.mxu1 %v9176_v32  ;;  %v9305_v31 = vcombine.high %v378_v23, %v386_v24  ;;  %v402_v32 = vld [vmem:[#allocation2 + $0x5d8] sm:$0xff]  ;;  %v252_v24 = vld [vmem:[#allocation2 + $0x128] sm:$0xff] }
 0x127   :  { %1923 = vmatprep.subr.bf16.mxu0 %v9191_v33  ;;  %1964 = vmatprep.subr.bf16.mxu1 %v9193_v37  ;;  %v9302_v33 = vcombine.low %v377_v21, %v385_v22  ;;  %v417_v37 = vld [vmem:[#allocation2 + $0x650] sm:$0xff]  ;;  %v9320_v42 = vcombine.low %v394_v30, %v402_v32  ;;  %v251_v21 = vld [vmem:[#allocation2 + $0x120] sm:$0xff] }
 0x128   :  { %v9335_v43 = vcombine.high %v409_v36, %v417_v37  ;;  %v259_v22 = vld [vmem:[#allocation2 + $0x160] sm:$0xff] }
 0x12a   :  { %1924 = vmatpush1.bf16.msra.mxu0 %v9190_v39  ;;  %1965 = vmatpush1.bf16.msra.mxu1 %v9192_v40  ;;  %v9321_v39 = vcombine.high %v394_v30, %v402_v32  ;;  %v418_v40 = vld [vmem:[#allocation2 + $0x658] sm:$0xff]  ;;  %v268_v32 = vld [vmem:[#allocation2 + $0x1a8] sm:$0xff] }
 0x12b   :  { %1925 = vmatprep.subr.bf16.mxu0 %v9207_v41  ;;  %1966 = vmatprep.subr.bf16.mxu1 %v9209_v45  ;;  %v9318_v41 = vcombine.low %v393_v28, %v401_v29  ;;  %v433_v45 = vld [vmem:[#allocation2 + $0x6d0] sm:$0xff]  ;;  %v9336_v50 = vcombine.low %v410_v38, %v418_v40  ;;  %v267_v28 = vld [vmem:[#allocation2 + $0x1a0] sm:$0xff] }
 0x12c   :  { %v9351_v51 = vcombine.high %v425_v44, %v433_v45  ;;  %v275_v29 = vld [vmem:[#allocation2 + $0x1e0] sm:$0xff] }
 0x12e   :  { %1926 = vmatpush1.bf16.msra.mxu0 %v9206_v47  ;;  %1967 = vmatpush1.bf16.msra.mxu1 %v9208_v48  ;;  %v9337_v47 = vcombine.high %v410_v38, %v418_v40  ;;  %v434_v48 = vld [vmem:[#allocation2 + $0x6d8] sm:$0xff]  ;;  %v291_v40 = vld [vmem:[#allocation2 + $0x260] sm:$0xff] }
 0x12f   :  { %1927 = vmatprep.subr.bf16.mxu0 %v9223_v49  ;;  %1968 = vmatprep.subr.bf16.mxu1 %v9225_v54  ;;  %v9334_v49 = vcombine.low %v409_v36, %v417_v37  ;;  %v449_v54 = vld [vmem:[#allocation2 + $0x750] sm:$0xff]  ;;  %v9352_v59 = vcombine.low %v426_v46, %v434_v48  ;;  %v9195_v37 = vcombine.high %v267_v28, %v275_v29 }
 0x130   :  { %v9367_v60 = vcombine.high %v441_v52, %v449_v54 }
 0x132   :  { %1928 = vmatpush1.bf16.msra.mxu0 %v9222_v56  ;;  %1969 = vmatpush1.bf16.msra.mxu1 %v9224_v57  ;;  %v9353_v56 = vcombine.high %v426_v46, %v434_v48  ;;  %v450_v57 = vld [vmem:[#allocation2 + $0x758] sm:$0xff]  ;;  %v307_v48 = vld [vmem:[#allocation2 + $0x2e0] sm:$0xff] }
 0x133   :  { %1929 = vmatprep.subr.bf16.mxu0 %v9239_v58  ;;  %1970 = vmatprep.subr.bf16.mxu1 %v9241_v63  ;;  %v9350_v58 = vcombine.low %v425_v44, %v433_v45  ;;  %v465_v63 = vld [vmem:[#allocation2 + $0x7d0] sm:$0xff]  ;;  %v9368_v4 = vcombine.low %v442_v55, %v450_v57 }
 0x134   :  { %v9383_v5 = vcombine.high %v457_v62, %v465_v63 }
 0x136   :  { %1930 = vmatpush1.bf16.msra.mxu0 %v9238_v1  ;;  %1971 = vmatpush1.bf16.msra.mxu1 %v9240_v2  ;;  %v9369_v1 = vcombine.high %v442_v55, %v450_v57  ;;  %v466_v2 = vld [vmem:[#allocation2 + $0x7d8] sm:$0xff]  ;;  %v323_v57 = vld [vmem:[#allocation2 + $0x360] sm:$0xff] }
 0x137   :  { %1931 = vmatprep.subr.bf16.mxu0 %v9255_v3  ;;  %1972 = vmatprep.subr.bf16.mxu1 %v9257_v7  ;;  %v9366_v3 = vcombine.low %v441_v52, %v449_v54  ;;  %v227_v7 = vld [vmem:[#allocation2 + $0x60] sm:$0xff]  ;;  %v9384_v12 = vcombine.low %v458_v0, %v466_v2 }
 0x138   :  { %v9147_v14 = vcombine.high %v219_v6, %v227_v7 }
 0x13a   :  { %1932 = vmatpush1.bf16.msra.mxu0 %v9254_v9  ;;  %1973 = vmatpush1.bf16.msra.mxu1 %v9256_v10  ;;  %v9385_v9 = vcombine.high %v458_v0, %v466_v2  ;;  %v228_v10 = vld [vmem:[#allocation2 + $0x68] sm:$0xff]  ;;  %v339_v2 = vld [vmem:[#allocation2 + $0x3e0] sm:$0xff] }
 0x13b   :  { %1933 = vmatprep.subr.bf16.mxu0 %v9271_v11  ;;  %1974 = vmatprep.subr.bf16.mxu1 %v9273_v16  ;;  %v9382_v11 = vcombine.low %v457_v62, %v465_v63  ;;  %v243_v16 = vld [vmem:[#allocation2 + $0xe0] sm:$0xff]  ;;  %v9148_v23 = vcombine.low %v220_v8, %v228_v10 }
 0x13e   :  { %1934 = vmatpush1.bf16.msra.mxu0 %v9270_v18  ;;  %1975 = vmatpush1.bf16.msra.mxu1 %v9272_v19  ;;  %v9149_v18 = vcombine.high %v220_v8, %v228_v10  ;;  %v244_v19 = vld [vmem:[#allocation2 + $0xe8] sm:$0xff]  ;;  %v355_v10 = vld [vmem:[#allocation2 + $0x460] sm:$0xff] }
 0x13f   :  { %1935 = vmatprep.subr.bf16.mxu0 %v9287_v20  ;;  %1976 = vmatprep.subr.bf16.mxu1 %v9289_v53  ;;  %v9146_v20 = vcombine.low %v219_v6, %v227_v7  ;;  %v9163_v53 = vcombine.high %v235_v15, %v243_v16  ;;  %v9164_v30 = vcombine.low %v236_v17, %v244_v19 }
 0x142   :  { %1936 = vmatpush1.bf16.msra.mxu0 %v9286_v25  ;;  %1977 = vmatpush1.bf16.msra.mxu1 %v9288_v26  ;;  %v260_v25 = vld [vmem:[#allocation2 + $0x168] sm:$0xff]  ;;  %v9165_v26 = vcombine.high %v236_v17, %v244_v19  ;;  %v371_v19 = vld [vmem:[#allocation2 + $0x4e0] sm:$0xff] }
 0x143   :  { %1937 = vmatprep.subr.bf16.mxu0 %v9303_v27  ;;  %1978 = vmatprep.subr.bf16.mxu1 %v9305_v31  ;;  %v9162_v27 = vcombine.low %v235_v15, %v243_v16  ;;  %v9179_v31 = vcombine.high %v251_v21, %v259_v22  ;;  %v9180_v36 = vcombine.low %v252_v24, %v260_v25 }
 0x146   :  { %1938 = vmatpush1.bf16.msra.mxu0 %v9302_v33  ;;  %1979 = vmatpush1.bf16.msra.mxu1 %v9304_v34  ;;  %v9181_v33 = vcombine.high %v252_v24, %v260_v25  ;;  %v276_v34 = vld [vmem:[#allocation2 + $0x1e8] sm:$0xff]  ;;  %v379_v25 = vld [vmem:[#allocation2 + $0x520] sm:$0xff] }
 0x147   :  { %1939 = vmatprep.subr.bf16.mxu0 %v9319_v35  ;;  %1980 = vmatprep.subr.bf16.mxu1 %v9321_v39  ;;  %v9178_v35 = vcombine.low %v251_v21, %v259_v22  ;;  %v9197_v38 = vcombine.high %v268_v32, %v276_v34  ;;  %v283_v39 = vld [vmem:[#allocation2 + $0x220] sm:$0xff]  ;;  %v9196_v44 = vcombine.low %v268_v32, %v276_v34  ;;  %v372_v21 = vld [vmem:[#allocation2 + $0x4e8] sm:$0xff] }
 0x148   :  { %v9211_v45 = vcombine.high %v283_v39, %v291_v40  ;;  %v403_v34 = vld [vmem:[#allocation2 + $0x5e0] sm:$0xff] }
 0x14a   :  { %1940 = vmatpush1.bf16.msra.mxu0 %v9318_v41  ;;  %1981 = vmatpush1.bf16.msra.mxu1 %v9320_v42  ;;  %v284_v41 = vld [vmem:[#allocation2 + $0x228] sm:$0xff] }
 0x14b   :  { %1941 = vmatprep.subr.bf16.mxu0 %v9335_v43  ;;  %1982 = vmatprep.subr.bf16.mxu1 %v9337_v47  ;;  %v292_v42 = vld [vmem:[#allocation2 + $0x268] sm:$0xff]  ;;  %v9194_v43 = vcombine.low %v267_v28, %v275_v29  ;;  %v299_v47 = vld [vmem:[#allocation2 + $0x2a0] sm:$0xff] }
 0x14c   :  { %v9213_v46 = vcombine.high %v284_v41, %v292_v42  ;;  %v9212_v52 = vcombine.low %v284_v41, %v292_v42  ;;  %v9227_v54 = vcombine.high %v299_v47, %v307_v48  ;;  %v388_v28 = vld [vmem:[#allocation2 + $0x568] sm:$0xff]  ;;  %v411_v41 = vld [vmem:[#allocation2 + $0x620] sm:$0xff] }
 0x14d   :  { %v419_v42 = vld [vmem:[#allocation2 + $0x660] sm:$0xff] }
 0x14e   :  { %1942 = vmatpush1.bf16.msra.mxu0 %v9334_v49  ;;  %1983 = vmatpush1.bf16.msra.mxu1 %v9336_v50  ;;  %v300_v49 = vld [vmem:[#allocation2 + $0x2a8] sm:$0xff] }
 0x14f   :  { %1943 = vmatprep.subr.bf16.mxu0 %v9351_v51  ;;  %1984 = vmatprep.subr.bf16.mxu1 %v9353_v56  ;;  %v308_v50 = vld [vmem:[#allocation2 + $0x2e8] sm:$0xff]  ;;  %v9210_v51 = vcombine.low %v283_v39, %v291_v40  ;;  %v315_v56 = vld [vmem:[#allocation2 + $0x320] sm:$0xff] }
 0x150   :  { %v9229_v55 = vcombine.high %v300_v49, %v308_v50  ;;  %v9228_v62 = vcombine.low %v300_v49, %v308_v50  ;;  %v9243_v63 = vcombine.high %v315_v56, %v323_v57  ;;  %v427_v49 = vld [vmem:[#allocation2 + $0x6a0] sm:$0xff] }
 0x151   :  { %v435_v50 = vld [vmem:[#allocation2 + $0x6e0] sm:$0xff] }
 0x152   :  { %1944 = vmatpush1.bf16.msra.mxu0 %v9350_v58  ;;  %1985 = vmatpush1.bf16.msra.mxu1 %v9352_v59  ;;  %v316_v58 = vld [vmem:[#allocation2 + $0x328] sm:$0xff] }
 0x153   :  { %1945 = vmatprep.subr.bf16.mxu0 %v9367_v60  ;;  %1986 = vmatprep.subr.bf16.mxu1 %v9369_v1  ;;  %v324_v59 = vld [vmem:[#allocation2 + $0x368] sm:$0xff]  ;;  %v9226_v60 = vcombine.low %v299_v47, %v307_v48  ;;  %v331_v1 = vld [vmem:[#allocation2 + $0x3a0] sm:$0xff]  ;;  %v9339_v47 = vcombine.high %v411_v41, %v419_v42 }
 0x154   :  { %v9245_v0 = vcombine.high %v316_v58, %v324_v59  ;;  %v9244_v6 = vcombine.low %v316_v58, %v324_v59  ;;  %v9259_v7 = vcombine.high %v331_v1, %v339_v2  ;;  %v443_v58 = vld [vmem:[#allocation2 + $0x720] sm:$0xff] }
 0x155   :  { %v451_v59 = vld [vmem:[#allocation2 + $0x760] sm:$0xff] }
 0x156   :  { %1946 = vmatpush1.bf16.msra.mxu0 %v9366_v3  ;;  %1987 = vmatpush1.bf16.msra.mxu1 %v9368_v4  ;;  %v332_v3 = vld [vmem:[#allocation2 + $0x3a8] sm:$0xff] }
 0x157   :  { %1947 = vmatprep.subr.bf16.mxu0 %v9383_v5  ;;  %1988 = vmatprep.subr.bf16.mxu1 %v9385_v9  ;;  %v340_v4 = vld [vmem:[#allocation2 + $0x3e8] sm:$0xff]  ;;  %v9242_v5 = vcombine.low %v315_v56, %v323_v57  ;;  %v347_v9 = vld [vmem:[#allocation2 + $0x420] sm:$0xff]  ;;  %v9355_v56 = vcombine.high %v427_v49, %v435_v50 }
 0x158   :  { %v9261_v8 = vcombine.high %v332_v3, %v340_v4  ;;  %v9260_v15 = vcombine.low %v332_v3, %v340_v4  ;;  %v9275_v16 = vcombine.high %v347_v9, %v355_v10  ;;  %v9274_v22 = vcombine.low %v347_v9, %v355_v10  ;;  %v459_v3 = vld [vmem:[#allocation2 + $0x7a0] sm:$0xff] }
 0x159   :  { %v467_v4 = vld [vmem:[#allocation2 + $0x7e0] sm:$0xff] }
 0x15a   :  { %1948 = vmatpush1.bf16.msra.mxu0 %v9382_v11  ;;  %1989 = vmatpush1.bf16.msra.mxu1 %v9384_v12  ;;  %v348_v11 = vld [vmem:[#allocation2 + $0x428] sm:$0xff]  ;;  %v9387_v9 = vcombine.high %v459_v3, %v467_v4 }
 0x15b   :  { %1999 = vmatprep.subr.bf16.mxu0 %v9147_v14  ;;  %2040 = vmatprep.subr.bf16.mxu1 %v9149_v18  ;;  %v356_v12 = vld [vmem:[#allocation2 + $0x468] sm:$0xff]  ;;  %v9258_v14 = vcombine.low %v331_v1, %v339_v2  ;;  %v363_v18 = vld [vmem:[#allocation2 + $0x4a0] sm:$0xff]  ;;  %v9371_v1 = vcombine.high %v443_v58, %v451_v59 }
 0x15c   :  { %v9277_v17 = vcombine.high %v348_v11, %v356_v12  ;;  %v9290_v29 = vcombine.low %v363_v18, %v371_v19 }
 0x15d   :  { %1950 = vmatmul.mubr.bf16.vlgmr.msra.gmra.mrb[4].mxu0 %v11201_v13  ;;  %1991 = vmatmul.mubr.bf16.vlgmr.msra.gmra.mrb[4].mxu1 %v11201_v13 }
 0x15e   :  { %2000 = vmatpush1.bf16.msra.mxu0 %v9146_v20  ;;  %2041 = vmatpush1.bf16.msra.mxu1 %v9148_v23  ;;  %v364_v20 = vld [vmem:[#allocation2 + $0x4a8] sm:$0xff]  ;;  %v9276_v23 = vcombine.low %v348_v11, %v356_v12  ;;  %v221_v11 = vld [vmem:[#allocation2 + $0x30] sm:$0xff] }
 0x15f   :  { %2001 = vmatprep.subr.bf16.mxu0 %v9163_v53  ;;  %2042 = vmatprep.subr.bf16.mxu1 %v9165_v26  ;;  %v9291_v53 = vcombine.high %v363_v18, %v371_v19  ;;  %v9293_v24 = vcombine.high %v364_v20, %v372_v21  ;;  %v387_v26 = vld [vmem:[#allocation2 + $0x560] sm:$0xff]  ;;  %v229_v12 = vld [vmem:[#allocation2 + $0x70] sm:$0xff] }
 0x160   :  { %2031 = vmatprep.mubr.bf16.mxu0 %v11195_v61  ;;  %2072 = vmatprep.mubr.bf16.mxu1 %v11195_v61  ;;  %v9151_v18 = vcombine.high %v221_v11, %v229_v12 }
 0x162   :  { %2002 = vmatpush1.bf16.msra.mxu0 %v9162_v27  ;;  %2043 = vmatpush1.bf16.msra.mxu1 %v9164_v30  ;;  %v380_v27 = vld [vmem:[#allocation2 + $0x528] sm:$0xff]  ;;  %v9292_v30 = vcombine.low %v364_v20, %v372_v21  ;;  %v237_v20 = vld [vmem:[#allocation2 + $0xb0] sm:$0xff] }
 0x163   :  { %2003 = vmatprep.subr.bf16.mxu0 %v9179_v31  ;;  %2044 = vmatprep.subr.bf16.mxu1 %v9181_v33  ;;  %v9307_v31 = vcombine.high %v379_v25, %v387_v26  ;;  %v9309_v32 = vcombine.high %v380_v27, %v388_v28  ;;  %v395_v33 = vld [vmem:[#allocation2 + $0x5a0] sm:$0xff]  ;;  %v245_v21 = vld [vmem:[#allocation2 + $0xf0] sm:$0xff] }
 0x164   :  { %v9323_v39 = vcombine.high %v395_v33, %v403_v34 }
 0x166   :  { %2004 = vmatpush1.bf16.msra.mxu0 %v9178_v35  ;;  %2045 = vmatpush1.bf16.msra.mxu1 %v9180_v36  ;;  %v396_v35 = vld [vmem:[#allocation2 + $0x5a8] sm:$0xff] }
 0x167   :  { %2005 = vmatprep.subr.bf16.mxu0 %v9195_v37  ;;  %2046 = vmatprep.subr.bf16.mxu1 %v9197_v38  ;;  %v404_v36 = vld [vmem:[#allocation2 + $0x5e8] sm:$0xff]  ;;  %v9306_v37 = vcombine.low %v379_v25, %v387_v26  ;;  %v9308_v38 = vcombine.low %v380_v27, %v388_v28  ;;  %v9167_v25 = vcombine.high %v237_v20, %v245_v21  ;;  %v253_v27 = vld [vmem:[#allocation2 + $0x130] sm:$0xff] }
 0x168   :  { %v9325_v40 = vcombine.high %v396_v35, %v404_v36  ;;  %v261_v28 = vld [vmem:[#allocation2 + $0x170] sm:$0xff] }
 0x16a   :  { %2006 = vmatpush1.bf16.msra.mxu0 %v9194_v43  ;;  %2047 = vmatpush1.bf16.msra.mxu1 %v9196_v44  ;;  %v412_v43 = vld [vmem:[#allocation2 + $0x628] sm:$0xff] }
 0x16b   :  { %2007 = vmatprep.subr.bf16.mxu0 %v9211_v45  ;;  %2048 = vmatprep.subr.bf16.mxu1 %v9213_v46  ;;  %v420_v44 = vld [vmem:[#allocation2 + $0x668] sm:$0xff]  ;;  %v9322_v45 = vcombine.low %v395_v33, %v403_v34  ;;  %v9324_v46 = vcombine.low %v396_v35, %v404_v36  ;;  %v9183_v33 = vcombine.high %v253_v27, %v261_v28  ;;  %v269_v35 = vld [vmem:[#allocation2 + $0x1b0] sm:$0xff] }
 0x16c   :  { %v9341_v48 = vcombine.high %v412_v43, %v420_v44  ;;  %v277_v36 = vld [vmem:[#allocation2 + $0x1f0] sm:$0xff] }
 0x16e   :  { %2008 = vmatpush1.bf16.msra.mxu0 %v9210_v51  ;;  %2049 = vmatpush1.bf16.msra.mxu1 %v9212_v52  ;;  %v428_v51 = vld [vmem:[#allocation2 + $0x6a8] sm:$0xff] }
 0x16f   :  { %2009 = vmatprep.subr.bf16.mxu0 %v9227_v54  ;;  %2050 = vmatprep.subr.bf16.mxu1 %v9229_v55  ;;  %v436_v52 = vld [vmem:[#allocation2 + $0x6e8] sm:$0xff]  ;;  %v9338_v54 = vcombine.low %v411_v41, %v419_v42  ;;  %v9340_v55 = vcombine.low %v412_v43, %v420_v44  ;;  %v9199_v41 = vcombine.high %v269_v35, %v277_v36  ;;  %v285_v43 = vld [vmem:[#allocation2 + $0x230] sm:$0xff] }
 0x170   :  { %v9357_v57 = vcombine.high %v428_v51, %v436_v52  ;;  %v293_v44 = vld [vmem:[#allocation2 + $0x270] sm:$0xff] }
 0x172   :  { %2010 = vmatpush1.bf16.msra.mxu0 %v9226_v60  ;;  %2051 = vmatpush1.bf16.msra.mxu1 %v9228_v62  ;;  %v444_v60 = vld [vmem:[#allocation2 + $0x728] sm:$0xff] }
 0x173   :  { %2011 = vmatprep.subr.bf16.mxu0 %v9243_v63  ;;  %2052 = vmatprep.subr.bf16.mxu1 %v9245_v0  ;;  %v452_v62 = vld [vmem:[#allocation2 + $0x768] sm:$0xff]  ;;  %v9354_v63 = vcombine.low %v427_v49, %v435_v50  ;;  %v9356_v0 = vcombine.low %v428_v51, %v436_v52  ;;  %v9215_v49 = vcombine.high %v285_v43, %v293_v44  ;;  %v301_v50 = vld [vmem:[#allocation2 + $0x2b0] sm:$0xff]  ;;  %v302_v52 = vld [vmem:[#allocation2 + $0x2b8] sm:$0xff] }
 0x174   :  { %v9373_v2 = vcombine.high %v444_v60, %v452_v62  ;;  %v309_v51 = vld [vmem:[#allocation2 + $0x2f0] sm:$0xff] }
 0x176   :  { %2012 = vmatpush1.bf16.msra.mxu0 %v9242_v5  ;;  %2053 = vmatpush1.bf16.msra.mxu1 %v9244_v6  ;;  %v460_v5 = vld [vmem:[#allocation2 + $0x7a8] sm:$0xff] }
 0x177   :  { %2013 = vmatprep.subr.bf16.mxu0 %v9259_v7  ;;  %2054 = vmatprep.subr.bf16.mxu1 %v9261_v8  ;;  %v468_v6 = vld [vmem:[#allocation2 + $0x7e8] sm:$0xff]  ;;  %v9370_v7 = vcombine.low %v443_v58, %v451_v59  ;;  %v9372_v8 = vcombine.low %v444_v60, %v452_v62  ;;  %v317_v59 = vld [vmem:[#allocation2 + $0x330] sm:$0xff]  ;;  %v318_v62 = vld [vmem:[#allocation2 + $0x338] sm:$0xff] }
 0x178   :  { %v9389_v10 = vcombine.high %v460_v5, %v468_v6  ;;  %v325_v60 = vld [vmem:[#allocation2 + $0x370] sm:$0xff] }
 0x17a   :  { %2014 = vmatpush1.bf16.msra.mxu0 %v9258_v14  ;;  %2055 = vmatpush1.bf16.msra.mxu1 %v9260_v15  ;;  %v222_v14 = vld [vmem:[#allocation2 + $0x38] sm:$0xff] }
 0x17b   :  { %2015 = vmatprep.subr.bf16.mxu0 %v9275_v16  ;;  %2056 = vmatprep.subr.bf16.mxu1 %v9277_v17  ;;  %v230_v15 = vld [vmem:[#allocation2 + $0x78] sm:$0xff]  ;;  %v9386_v16 = vcombine.low %v459_v3, %v467_v4  ;;  %v9388_v17 = vcombine.low %v460_v5, %v468_v6  ;;  %v333_v4 = vld [vmem:[#allocation2 + $0x3b0] sm:$0xff] }
 0x17c   :  { %v9153_v19 = vcombine.high %v222_v14, %v230_v15  ;;  %v341_v5 = vld [vmem:[#allocation2 + $0x3f0] sm:$0xff]  ;;  %v334_v6 = vld [vmem:[#allocation2 + $0x3b8] sm:$0xff] }
 0x17e   :  { %2016 = vmatpush1.bf16.msra.mxu0 %v9274_v22  ;;  %2057 = vmatpush1.bf16.msra.mxu1 %v9276_v23  ;;  %v238_v22 = vld [vmem:[#allocation2 + $0xb8] sm:$0xff] }
 0x17f   :  { %2017 = vmatprep.subr.bf16.mxu0 %v9291_v53  ;;  %2058 = vmatprep.subr.bf16.mxu1 %v9293_v24  ;;  %v246_v23 = vld [vmem:[#allocation2 + $0xf8] sm:$0xff]  ;;  %v9150_v53 = vcombine.low %v221_v11, %v229_v12  ;;  %v9152_v24 = vcombine.low %v222_v14, %v230_v15  ;;  %v349_v12 = vld [vmem:[#allocation2 + $0x430] sm:$0xff] }
 0x180   :  { %v9169_v26 = vcombine.high %v238_v22, %v246_v23  ;;  %v357_v14 = vld [vmem:[#allocation2 + $0x470] sm:$0xff]  ;;  %v350_v15 = vld [vmem:[#allocation2 + $0x438] sm:$0xff] }
 0x182   :  { %2018 = vmatpush1.bf16.msra.mxu0 %v9290_v29  ;;  %2059 = vmatpush1.bf16.msra.mxu1 %v9292_v30  ;;  %v254_v29 = vld [vmem:[#allocation2 + $0x138] sm:$0xff] }
 0x183   :  { %2019 = vmatprep.subr.bf16.mxu0 %v9307_v31  ;;  %2060 = vmatprep.subr.bf16.mxu1 %v9309_v32  ;;  %v262_v30 = vld [vmem:[#allocation2 + $0x178] sm:$0xff]  ;;  %v9166_v31 = vcombine.low %v237_v20, %v245_v21  ;;  %v9168_v32 = vcombine.low %v238_v22, %v246_v23  ;;  %v365_v21 = vld [vmem:[#allocation2 + $0x4b0] sm:$0xff] }
 0x184   :  { %v9185_v34 = vcombine.high %v254_v29, %v262_v30  ;;  %v373_v22 = vld [vmem:[#allocation2 + $0x4f0] sm:$0xff]  ;;  %v366_v23 = vld [vmem:[#allocation2 + $0x4b8] sm:$0xff] }
 0x186   :  { %2020 = vmatpush1.bf16.msra.mxu0 %v9306_v37  ;;  %2061 = vmatpush1.bf16.msra.mxu1 %v9308_v38  ;;  %v270_v37 = vld [vmem:[#allocation2 + $0x1b8] sm:$0xff] }
 0x187   :  { %2021 = vmatprep.subr.bf16.mxu0 %v9323_v39  ;;  %2062 = vmatprep.subr.bf16.mxu1 %v9325_v40  ;;  %v278_v38 = vld [vmem:[#allocation2 + $0x1f8] sm:$0xff]  ;;  %v9182_v39 = vcombine.low %v253_v27, %v261_v28  ;;  %v9184_v40 = vcombine.low %v254_v29, %v262_v30  ;;  %v381_v28 = vld [vmem:[#allocation2 + $0x530] sm:$0xff] }
 0x188   :  { %v9201_v42 = vcombine.high %v270_v37, %v278_v38  ;;  %v389_v29 = vld [vmem:[#allocation2 + $0x570] sm:$0xff]  ;;  %v382_v30 = vld [vmem:[#allocation2 + $0x538] sm:$0xff] }
 0x18a   :  { %2022 = vmatpush1.bf16.msra.mxu0 %v9322_v45  ;;  %2063 = vmatpush1.bf16.msra.mxu1 %v9324_v46  ;;  %v286_v45 = vld [vmem:[#allocation2 + $0x238] sm:$0xff] }
 0x18b   :  { %2023 = vmatprep.subr.bf16.mxu0 %v9339_v47  ;;  %2064 = vmatprep.subr.bf16.mxu1 %v9341_v48  ;;  %v294_v46 = vld [vmem:[#allocation2 + $0x278] sm:$0xff]  ;;  %v9198_v47 = vcombine.low %v269_v35, %v277_v36  ;;  %v9200_v48 = vcombine.low %v270_v37, %v278_v38  ;;  %v397_v36 = vld [vmem:[#allocation2 + $0x5b0] sm:$0xff] }
 0x18c   :  { %v405_v37 = vld [vmem:[#allocation2 + $0x5f0] sm:$0xff]  ;;  %v398_v38 = vld [vmem:[#allocation2 + $0x5b8] sm:$0xff] }
 0x18e   :  { %2024 = vmatpush1.bf16.msra.mxu0 %v9338_v54  ;;  %2065 = vmatpush1.bf16.msra.mxu1 %v9340_v55  ;;  %v310_v54 = vld [vmem:[#allocation2 + $0x2f8] sm:$0xff]  ;;  %v9214_v55 = vcombine.low %v285_v43, %v293_v44  ;;  %v413_v44 = vld [vmem:[#allocation2 + $0x630] sm:$0xff] }
 0x18f   :  { %2025 = vmatprep.subr.bf16.mxu0 %v9355_v56  ;;  %2066 = vmatprep.subr.bf16.mxu1 %v9357_v57  ;;  %v9216_v56 = vcombine.low %v286_v45, %v294_v46  ;;  %v9231_v57 = vcombine.high %v301_v50, %v309_v51  ;;  %v9233_v58 = vcombine.high %v302_v52, %v310_v54 }
 0x192   :  { %2026 = vmatpush1.bf16.msra.mxu0 %v9354_v63  ;;  %2067 = vmatpush1.bf16.msra.mxu1 %v9356_v0  ;;  %v326_v63 = vld [vmem:[#allocation2 + $0x378] sm:$0xff]  ;;  %v9230_v0 = vcombine.low %v301_v50, %v309_v51  ;;  %v429_v51 = vld [vmem:[#allocation2 + $0x6b0] sm:$0xff] }
 0x193   :  { %2027 = vmatprep.subr.bf16.mxu0 %v9371_v1  ;;  %2068 = vmatprep.subr.bf16.mxu1 %v9373_v2  ;;  %v9232_v1 = vcombine.low %v302_v52, %v310_v54  ;;  %v9247_v2 = vcombine.high %v317_v59, %v325_v60  ;;  %v9249_v3 = vcombine.high %v318_v62, %v326_v63  ;;  %v437_v52 = vld [vmem:[#allocation2 + $0x6f0] sm:$0xff]  ;;  %v430_v54 = vld [vmem:[#allocation2 + $0x6b8] sm:$0xff] }
 0x196   :  { %2028 = vmatpush1.bf16.msra.mxu0 %v9370_v7  ;;  %2069 = vmatpush1.bf16.msra.mxu1 %v9372_v8  ;;  %v342_v7 = vld [vmem:[#allocation2 + $0x3f8] sm:$0xff]  ;;  %v9246_v8 = vcombine.low %v317_v59, %v325_v60  ;;  %v445_v60 = vld [vmem:[#allocation2 + $0x730] sm:$0xff] }
 0x197   :  { %2029 = vmatprep.subr.bf16.mxu0 %v9387_v9  ;;  %2070 = vmatprep.subr.bf16.mxu1 %v9389_v10  ;;  %v9248_v9 = vcombine.low %v318_v62, %v326_v63  ;;  %v9263_v10 = vcombine.high %v333_v4, %v341_v5  ;;  %v9265_v11 = vcombine.high %v334_v6, %v342_v7  ;;  %v453_v62 = vld [vmem:[#allocation2 + $0x770] sm:$0xff]  ;;  %v446_v63 = vld [vmem:[#allocation2 + $0x738] sm:$0xff] }
 0x19a   :  { %2030 = vmatpush1.bf16.msra.mxu0 %v9386_v16  ;;  %2071 = vmatpush1.bf16.msra.mxu1 %v9388_v17  ;;  %v358_v16 = vld [vmem:[#allocation2 + $0x478] sm:$0xff]  ;;  %v9262_v17 = vcombine.low %v333_v4, %v341_v5  ;;  %v461_v5 = vld [vmem:[#allocation2 + $0x7b0] sm:$0xff] }
 0x19b   :  { %2081 = vmatprep.subr.bf16.mxu0 %v9151_v18  ;;  %2122 = vmatprep.subr.bf16.mxu1 %v9153_v19  ;;  %v9264_v18 = vcombine.low %v334_v6, %v342_v7  ;;  %v9279_v19 = vcombine.high %v349_v12, %v357_v14  ;;  %v9281_v20 = vcombine.high %v350_v15, %v358_v16  ;;  %v469_v6 = vld [vmem:[#allocation2 + $0x7f0] sm:$0xff]  ;;  %v462_v7 = vld [vmem:[#allocation2 + $0x7b8] sm:$0xff] }
 0x19d   :  { %2032 = vmatmul.mubr.bf16.vlgmr.msra.gmra.mrb[8].mxu0 %v11201_v13  ;;  %2073 = vmatmul.mubr.bf16.vlgmr.msra.gmra.mrb[8].mxu1 %v11201_v13 }
 0x19e   :  { %2082 = vmatpush1.bf16.msra.mxu0 %v9150_v53  ;;  %2123 = vmatpush1.bf16.msra.mxu1 %v9152_v24  ;;  %v374_v53 = vld [vmem:[#allocation2 + $0x4f8] sm:$0xff]  ;;  %v9278_v24 = vcombine.low %v349_v12, %v357_v14  ;;  %v9390_v14 = vcombine.low %v461_v5, %v469_v6 }
 0x19f   :  { %2083 = vmatprep.subr.bf16.mxu0 %v9167_v25  ;;  %2124 = vmatprep.subr.bf16.mxu1 %v9169_v26  ;;  %v9280_v25 = vcombine.low %v350_v15, %v358_v16  ;;  %v9295_v26 = vcombine.high %v365_v21, %v373_v22  ;;  %v9297_v27 = vcombine.high %v366_v23, %v374_v53 }
 0x1a0   :  { %2113 = vmatprep.mubr.bf16.mxu0 %v11195_v61  ;;  %2154 = vmatprep.mubr.bf16.mxu1 %v11195_v61  ;;  %v9217_v61 = vcombine.high %v286_v45, %v294_v46  ;;  %v421_v45 = vld [vmem:[#allocation2 + $0x670] sm:$0xff]  ;;  %v414_v46 = vld [vmem:[#allocation2 + $0x638] sm:$0xff] }
 0x1a2   :  { %2084 = vmatpush1.bf16.msra.mxu0 %v9166_v31  ;;  %2125 = vmatpush1.bf16.msra.mxu1 %v9168_v32  ;;  %v390_v31 = vld [vmem:[#allocation2 + $0x578] sm:$0xff]  ;;  %v9294_v32 = vcombine.low %v365_v21, %v373_v22 }
 0x1a3   :  { %2085 = vmatprep.subr.bf16.mxu0 %v9183_v33  ;;  %2126 = vmatprep.subr.bf16.mxu1 %v9185_v34  ;;  %v9296_v33 = vcombine.low %v366_v23, %v374_v53  ;;  %v9311_v34 = vcombine.high %v381_v28, %v389_v29  ;;  %v9313_v35 = vcombine.high %v382_v30, %v390_v31  ;;  %v2195_v53 = vld [vmem:[#allocation7] sm:$0xff] }
 0x1a6   :  { %2086 = vmatpush1.bf16.msra.mxu0 %v9182_v39  ;;  %2127 = vmatpush1.bf16.msra.mxu1 %v9184_v40  ;;  %v406_v39 = vld [vmem:[#allocation2 + $0x5f8] sm:$0xff]  ;;  %v9310_v40 = vcombine.low %v381_v28, %v389_v29  ;;  %v2211_v29 = vld [vmem:[#allocation7 + $0x80] sm:$0xff] }
 0x1a7   :  { %2087 = vmatprep.subr.bf16.mxu0 %v9199_v41  ;;  %2128 = vmatprep.subr.bf16.mxu1 %v9201_v42  ;;  %v9312_v41 = vcombine.low %v382_v30, %v390_v31  ;;  %v9327_v42 = vcombine.high %v397_v36, %v405_v37  ;;  %v9329_v43 = vcombine.high %v398_v38, %v406_v39  ;;  %v2204_v28 = vld [vmem:[#allocation7 + $0x48] sm:$0xff] }
 0x1aa   :  { %2088 = vmatpush1.bf16.msra.mxu0 %v9198_v47  ;;  %2129 = vmatpush1.bf16.msra.mxu1 %v9200_v48  ;;  %v422_v47 = vld [vmem:[#allocation2 + $0x678] sm:$0xff]  ;;  %v9326_v48 = vcombine.low %v397_v36, %v405_v37  ;;  %v2235_v37 = vld [vmem:[#allocation7 + $0x140] sm:$0xff] }
 0x1ab   :  { %2089 = vmatprep.subr.bf16.mxu0 %v9215_v49  ;;  %2130 = vmatprep.subr.bf16.mxu1 %v9217_v61  ;;  %v9328_v49 = vcombine.low %v398_v38, %v406_v39  ;;  %v9343_v61 = vcombine.high %v413_v44, %v421_v45  ;;  %v9345_v50 = vcombine.high %v414_v46, %v422_v47  ;;  %v2228_v38 = vld [vmem:[#allocation7 + $0x108] sm:$0xff] }
 0x1ac   :  { %v2236_v39 = vld [vmem:[#allocation7 + $0x148] sm:$0xff] }
 0x1ae   :  { %2090 = vmatpush1.bf16.msra.mxu0 %v9214_v55  ;;  %2131 = vmatpush1.bf16.msra.mxu1 %v9216_v56  ;;  %v438_v55 = vld [vmem:[#allocation2 + $0x6f8] sm:$0xff]  ;;  %v9342_v56 = vcombine.low %v413_v44, %v421_v45  ;;  %v2243_v44 = vld [vmem:[#allocation7 + $0x180] sm:$0xff] }
 0x1af   :  { %2091 = vmatprep.subr.bf16.mxu0 %v9231_v57  ;;  %2132 = vmatprep.subr.bf16.mxu1 %v9233_v58  ;;  %v9344_v57 = vcombine.low %v414_v46, %v422_v47  ;;  %v9359_v58 = vcombine.high %v429_v51, %v437_v52  ;;  %v9361_v59 = vcombine.high %v430_v54, %v438_v55  ;;  %v2251_v45 = vld [vmem:[#allocation7 + $0x1c0] sm:$0xff]  ;;  %v2244_v46 = vld [vmem:[#allocation7 + $0x188] sm:$0xff] }
 0x1b0   :  { %v2252_v47 = vld [vmem:[#allocation7 + $0x1c8] sm:$0xff] }
 0x1b2   :  { %2092 = vmatpush1.bf16.msra.mxu0 %v9230_v0  ;;  %2133 = vmatpush1.bf16.msra.mxu1 %v9232_v1  ;;  %v454_v0 = vld [vmem:[#allocation2 + $0x778] sm:$0xff]  ;;  %v9358_v1 = vcombine.low %v429_v51, %v437_v52  ;;  %v2259_v51 = vld [vmem:[#allocation7 + $0x200] sm:$0xff] }
 0x1b3   :  { %2093 = vmatprep.subr.bf16.mxu0 %v9247_v2  ;;  %2134 = vmatprep.subr.bf16.mxu1 %v9249_v3  ;;  %v9360_v2 = vcombine.low %v430_v54, %v438_v55  ;;  %v9375_v3 = vcombine.high %v445_v60, %v453_v62  ;;  %v9377_v4 = vcombine.high %v446_v63, %v454_v0  ;;  %v2267_v52 = vld [vmem:[#allocation7 + $0x240] sm:$0xff]  ;;  %v2260_v54 = vld [vmem:[#allocation7 + $0x208] sm:$0xff] }
 0x1b4   :  { %v2268_v55 = vld [vmem:[#allocation7 + $0x248] sm:$0xff] }
 0x1b6   :  { %2094 = vmatpush1.bf16.msra.mxu0 %v9246_v8  ;;  %2135 = vmatpush1.bf16.msra.mxu1 %v9248_v9  ;;  %v470_v8 = vld [vmem:[#allocation2 + $0x7f8] sm:$0xff]  ;;  %v9374_v9 = vcombine.low %v445_v60, %v453_v62  ;;  %v2275_v60 = vld [vmem:[#allocation7 + $0x280] sm:$0xff] }
 0x1b7   :  { %2095 = vmatprep.subr.bf16.mxu0 %v9263_v10  ;;  %2136 = vmatprep.subr.bf16.mxu1 %v9265_v11  ;;  %v9376_v10 = vcombine.low %v446_v63, %v454_v0  ;;  %v9391_v11 = vcombine.high %v461_v5, %v469_v6  ;;  %v9393_v12 = vcombine.high %v462_v7, %v470_v8  ;;  %v2283_v62 = vld [vmem:[#allocation7 + $0x2c0] sm:$0xff]  ;;  %v2276_v63 = vld [vmem:[#allocation7 + $0x288] sm:$0xff] }
 0x1b8   :  { %v9392_v15 = vcombine.low %v462_v7, %v470_v8  ;;  %v2284_v0 = vld [vmem:[#allocation7 + $0x2c8] sm:$0xff]  ;;  %v2291_v5 = vld [vmem:[#allocation7 + $0x300] sm:$0xff] }
 0x1b9   :  { %v2299_v6 = vld [vmem:[#allocation7 + $0x340] sm:$0xff]  ;;  %v2292_v7 = vld [vmem:[#allocation7 + $0x308] sm:$0xff] }
 0x1ba   :  { %2096 = vmatpush1.bf16.msra.mxu0 %v9262_v17  ;;  %2137 = vmatpush1.bf16.msra.mxu1 %v9264_v18  ;;  %v2300_v8 = vld [vmem:[#allocation7 + $0x348] sm:$0xff] }
 0x1bb   :  { %2097 = vmatprep.subr.bf16.mxu0 %v9279_v19  ;;  %2138 = vmatprep.subr.bf16.mxu1 %v9281_v20 }
 0x1be   :  { %2098 = vmatpush1.bf16.msra.mxu0 %v9278_v24  ;;  %2139 = vmatpush1.bf16.msra.mxu1 %v9280_v25  ;;  %v2203_v24 = vld [vmem:[#allocation7 + $0x40] sm:$0xff]  ;;  %v2196_v25 = vld [vmem:[#allocation7 + $0x8] sm:$0xff] }
 0x1bf   :  { %2099 = vmatprep.subr.bf16.mxu0 %v9295_v26  ;;  %2140 = vmatprep.subr.bf16.mxu1 %v9297_v27  ;;  %v9394_v26 = vcombine.low %v2195_v53, %v2203_v24  ;;  %v9395_v27 = vcombine.high %v2195_v53, %v2203_v24  ;;  %v9396_v30 = vcombine.low %v2196_v25, %v2204_v28 }
 0x1c0   :  { %v9397_v31 = vcombine.high %v2196_v25, %v2204_v28  ;;  %v2323_v25 = vld [vmem:[#allocation7 + $0x400] sm:$0xff]  ;;  %v2332_v28 = vld [vmem:[#allocation7 + $0x448] sm:$0xff] }
 0x1c2   :  { %2100 = vmatpush1.bf16.msra.mxu0 %v9294_v32  ;;  %2141 = vmatpush1.bf16.msra.mxu1 %v9296_v33  ;;  %v2212_v33 = vld [vmem:[#allocation7 + $0x88] sm:$0xff] }
 0x1c3   :  { %2101 = vmatprep.subr.bf16.mxu0 %v9311_v34  ;;  %2142 = vmatprep.subr.bf16.mxu1 %v9313_v35  ;;  %v2220_v34 = vld [vmem:[#allocation7 + $0xc8] sm:$0xff]  ;;  %v2227_v35 = vld [vmem:[#allocation7 + $0x100] sm:$0xff] }
 0x1c4   :  { %v9413_v36 = vcombine.high %v2212_v33, %v2220_v34 }
 0x1c6   :  { %2102 = vmatpush1.bf16.msra.mxu0 %v9310_v40  ;;  %2143 = vmatpush1.bf16.msra.mxu1 %v9312_v41  ;;  %v9412_v41 = vcombine.low %v2212_v33, %v2220_v34  ;;  %v2347_v33 = vld [vmem:[#allocation7 + $0x4c0] sm:$0xff]  ;;  %v2340_v34 = vld [vmem:[#allocation7 + $0x488] sm:$0xff] }
 0x1c7   :  { %2103 = vmatprep.subr.bf16.mxu0 %v9327_v42  ;;  %2144 = vmatprep.subr.bf16.mxu1 %v9329_v43  ;;  %v9427_v42 = vcombine.high %v2227_v35, %v2235_v37  ;;  %v9429_v43 = vcombine.high %v2228_v38, %v2236_v39 }
 0x1ca   :  { %2104 = vmatpush1.bf16.msra.mxu0 %v9326_v48  ;;  %2145 = vmatpush1.bf16.msra.mxu1 %v9328_v49  ;;  %v9426_v48 = vcombine.low %v2227_v35, %v2235_v37  ;;  %v9428_v49 = vcombine.low %v2228_v38, %v2236_v39  ;;  %v2348_v35 = vld [vmem:[#allocation7 + $0x4c8] sm:$0xff] }
 0x1cb   :  { %2105 = vmatprep.subr.bf16.mxu0 %v9343_v61  ;;  %2146 = vmatprep.subr.bf16.mxu1 %v9345_v50  ;;  %v9443_v61 = vcombine.high %v2243_v44, %v2251_v45  ;;  %v9445_v50 = vcombine.high %v2244_v46, %v2252_v47  ;;  %v9541_v39 = vcombine.high %v2340_v34, %v2348_v35 }
 0x1ce   :  { %2106 = vmatpush1.bf16.msra.mxu0 %v9342_v56  ;;  %2147 = vmatpush1.bf16.msra.mxu1 %v9344_v57  ;;  %v9442_v56 = vcombine.low %v2243_v44, %v2251_v45  ;;  %v9444_v57 = vcombine.low %v2244_v46, %v2252_v47  ;;  %v9540_v45 = vcombine.low %v2340_v34, %v2348_v35 }
 0x1cf   :  { %2107 = vmatprep.subr.bf16.mxu0 %v9359_v58  ;;  %2148 = vmatprep.subr.bf16.mxu1 %v9361_v59  ;;  %v9459_v58 = vcombine.high %v2259_v51, %v2267_v52  ;;  %v9461_v59 = vcombine.high %v2260_v54, %v2268_v55 }
 0x1d2   :  { %2108 = vmatpush1.bf16.msra.mxu0 %v9358_v1  ;;  %2149 = vmatpush1.bf16.msra.mxu1 %v9360_v2  ;;  %v9458_v1 = vcombine.low %v2259_v51, %v2267_v52  ;;  %v9460_v2 = vcombine.low %v2260_v54, %v2268_v55  ;;  %v475_v52 = vlaneseq }
 0x1d3   :  { %2109 = vmatprep.subr.bf16.mxu0 %v9375_v3  ;;  %2150 = vmatprep.subr.bf16.mxu1 %v9377_v4  ;;  %v9475_v3 = vcombine.high %v2275_v60, %v2283_v62  ;;  %v9477_v4 = vcombine.high %v2276_v63, %v2284_v0 }
 0x1d6   :  { %2110 = vmatpush1.bf16.msra.mxu0 %v9374_v9  ;;  %2151 = vmatpush1.bf16.msra.mxu1 %v9376_v10  ;;  %v9474_v9 = vcombine.low %v2275_v60, %v2283_v62  ;;  %v9476_v10 = vcombine.low %v2276_v63, %v2284_v0  ;;  %v2396_v60 = vld [vmem:[#allocation7 + $0x648] sm:$0xff]  ;;  %v476_v63 = vshrl.u32 %v475_v52, 7 }
 0x1d7   :  { %2111 = vmatprep.subr.bf16.mxu0 %v9391_v11  ;;  %2152 = vmatprep.subr.bf16.mxu1 %v9393_v12  ;;  %v9491_v11 = vcombine.high %v2291_v5, %v2299_v6  ;;  %v9493_v12 = vcombine.high %v2292_v7, %v2300_v8  ;;  %v2428_v52 = vld [vmem:[#allocation7 + $0x748] sm:$0xff] }
 0x1da   :  { %2112 = vmatpush1.bf16.msra.mxu0 %v9390_v14  ;;  %2153 = vmatpush1.bf16.msra.mxu1 %v9392_v15  ;;  %v2307_v14 = vld [vmem:[#allocation7 + $0x380] sm:$0xff] }
 0x1db   :  { %5351 = vmatprep.subr.bf16.mxu0 %v9395_v27  ;;  %5433 = vmatprep.subr.bf16.mxu1 %v9397_v31  ;;  %v2315_v15 = vld [vmem:[#allocation7 + $0x3c0] sm:$0xff]  ;;  %v2324_v27 = vld [vmem:[#allocation7 + $0x408] sm:$0xff] }
 0x1dc   :  { %v9507_v53 = vcombine.high %v2307_v14, %v2315_v15  ;;  %v9525_v31 = vcombine.high %v2324_v27, %v2332_v28  ;;  %v9524_v37 = vcombine.low %v2324_v27, %v2332_v28  ;;  %v2403_v28 = vld [vmem:[#allocation7 + $0x680] sm:$0xff] }
 0x1dd   :  { %2114 = vmatmul.mubr.bf16.vlgmr.msra.gmra.mrb[12].mxu0 %v11201_v13  ;;  %2155 = vmatmul.mubr.bf16.vlgmr.msra.gmra.mrb[12].mxu1 %v11201_v13  ;;  %v2219_v13 = vld [vmem:[#allocation7 + $0xc0] sm:$0xff] }
 0x1de   :  { %v9411_v32 = vcombine.high %v2211_v29, %v2219_v13  ;;  %5352 = vmatpush1.bf16.msra.mxu0 %v9394_v26  ;;  %v9410_v40 = vcombine.low %v2211_v29, %v2219_v13  ;;  %5434 = vmatpush1.bf16.msra.mxu1 %v9396_v30  ;;  %v2331_v26 = vld [vmem:[#allocation7 + $0x440] sm:$0xff]  ;;  %v9506_v29 = vcombine.low %v2307_v14, %v2315_v15  ;;  %v11238_v15 = vsub.s32 6, %v476_v63 }
 0x1df   :  { %5435 = vmatprep.subr.bf16.mxu1 %v9413_v36  ;;  %v9523_v30 = vcombine.high %v2323_v25, %v2331_v26  ;;  %v9522_v36 = vcombine.low %v2323_v25, %v2331_v26 }
 0x1e0   :  { %5353 = vmatprep.subr.bf16.mxu0 %v9411_v32  ;;  %v2339_v32 = vld [vmem:[#allocation7 + $0x480] sm:$0xff] }
 0x1e1   :  { %v9539_v38 = vcombine.high %v2339_v32, %v2347_v33  ;;  %v9538_v44 = vcombine.low %v2339_v32, %v2347_v33  ;;  %v2412_v33 = vld [vmem:[#allocation7 + $0x6c8] sm:$0xff] }
 0x1e2   :  { %5354 = vmatpush1.bf16.msra.mxu0 %v9410_v40  ;;  %5436 = vmatpush1.bf16.msra.mxu1 %v9412_v41  ;;  %v2355_v40 = vld [vmem:[#allocation7 + $0x500] sm:$0xff] }
 0x1e3   :  { %5355 = vmatprep.subr.bf16.mxu0 %v9427_v42  ;;  %5437 = vmatprep.subr.bf16.mxu1 %v9429_v43  ;;  %v2363_v41 = vld [vmem:[#allocation7 + $0x540] sm:$0xff]  ;;  %v2356_v42 = vld [vmem:[#allocation7 + $0x508] sm:$0xff] }
 0x1e4   :  { %v2364_v43 = vld [vmem:[#allocation7 + $0x548] sm:$0xff]  ;;  %v9555_v46 = vcombine.high %v2355_v40, %v2363_v41  ;;  %v9554_v51 = vcombine.low %v2355_v40, %v2363_v41 }
 0x1e5   :  { %v9557_v47 = vcombine.high %v2356_v42, %v2364_v43  ;;  %v9556_v54 = vcombine.low %v2356_v42, %v2364_v43 }
 0x1e6   :  { %5356 = vmatpush1.bf16.msra.mxu0 %v9426_v48  ;;  %5438 = vmatpush1.bf16.msra.mxu1 %v9428_v49  ;;  %v2371_v48 = vld [vmem:[#allocation7 + $0x580] sm:$0xff] }
 0x1e7   :  { %5357 = vmatprep.subr.bf16.mxu0 %v9443_v61  ;;  %5439 = vmatprep.subr.bf16.mxu1 %v9445_v50  ;;  %v2379_v49 = vld [vmem:[#allocation7 + $0x5c0] sm:$0xff]  ;;  %v2372_v61 = vld [vmem:[#allocation7 + $0x588] sm:$0xff] }
 0x1e8   :  { %v2380_v50 = vld [vmem:[#allocation7 + $0x5c8] sm:$0xff]  ;;  %v9571_v55 = vcombine.high %v2371_v48, %v2379_v49  ;;  %v9570_v62 = vcombine.low %v2371_v48, %v2379_v49 }
 0x1e9   :  { %v9572_v0 = vcombine.low %v2372_v61, %v2380_v50 }
 0x1ea   :  { %5358 = vmatpush1.bf16.msra.mxu0 %v9442_v56  ;;  %5440 = vmatpush1.bf16.msra.mxu1 %v9444_v57  ;;  %v9573_v56 = vcombine.high %v2372_v61, %v2380_v50  ;;  %v2387_v57 = vld [vmem:[#allocation7 + $0x600] sm:$0xff] }
 0x1eb   :  { %5359 = vmatprep.subr.bf16.mxu0 %v9459_v58  ;;  %5441 = vmatprep.subr.bf16.mxu1 %v9461_v59  ;;  %v2395_v58 = vld [vmem:[#allocation7 + $0x640] sm:$0xff]  ;;  %v2388_v59 = vld [vmem:[#allocation7 + $0x608] sm:$0xff] }
 0x1ee   :  { %5360 = vmatpush1.bf16.msra.mxu0 %v9458_v1  ;;  %5442 = vmatpush1.bf16.msra.mxu1 %v9460_v2  ;;  %v9587_v1 = vcombine.high %v2387_v57, %v2395_v58  ;;  %v9589_v2 = vcombine.high %v2388_v59, %v2396_v60 }
 0x1ef   :  { %5361 = vmatprep.subr.bf16.mxu0 %v9475_v3  ;;  %5443 = vmatprep.subr.bf16.mxu1 %v9477_v4  ;;  %v9586_v3 = vcombine.low %v2387_v57, %v2395_v58  ;;  %v11225_v4 = vsub.s32 0, %v476_v63 }
 0x1f0   :  { %v11217_v16 = vpop.f32.mrb[0].mxu0  ;;  %v11221_v18 = vpop.f32.mrb[0].mxu1 }
 0x1f1   :  { %v11219_v17 = vpop.f32.mrb[1].mxu0  ;;  %v11223_v20 = vpop.f32.mrb[1].mxu1 }
 0x1f2   :  { %v1873_v19 = vpop.f32.mrb[2].mxu0  ;;  %v1914_v22 = vpop.f32.mrb[2].mxu1  ;;  %5362 = vmatpush1.bf16.msra.mxu0 %v9474_v9  ;;  %5444 = vmatpush1.bf16.msra.mxu1 %v9476_v10  ;;  %v11231_v9 = vsub.s32 3, %v476_v63 }
 0x1f3   :  { %v1874_v21 = vpop.f32.mrb[3].mxu0  ;;  %v1915_v23 = vpop.f32.mrb[3].mxu1  ;;  %v2308_v19 = vld [vmem:[#allocation7 + $0x388] sm:$0xff]  ;;  %v9490_v22 = vcombine.low %v2291_v5, %v2299_v6  ;;  %5363 = vmatprep.subr.bf16.mxu0 %v9491_v11  ;;  %5445 = vmatprep.subr.bf16.mxu1 %v9493_v12  ;;  %v11227_v5 = vsub.s32 1, %v476_v63  ;;  %v9588_v6 = vcombine.low %v2388_v59, %v2396_v60  ;;  %v11235_v12 = vsub.s32 4, %v476_v63 }
 0x1f4   :  { %v2316_v21 = vld [vmem:[#allocation7 + $0x3c8] sm:$0xff]  ;;  %v9492_v23 = vcombine.low %v2292_v7, %v2300_v8  ;;  %v471_v7 = vld [vmem:[#allocation5] sm:$0xff]  ;;  %v11229_v8 = vsub.s32 2, %v476_v63 }
 0x1f5   :  { %v9509_v24 = vcombine.high %v2308_v19, %v2316_v21  ;;  %v9508_v13 = vcombine.low %v2308_v19, %v2316_v21  ;;  %v478_v10 = vrot.slane %v471_v7, %v11225_v4  ;;  %v482_v11 = vrot.slane %v471_v7, %v11227_v5 }
 0x1f6   :  { %5364 = vmatpush1.bf16.msra.mxu0 %v9490_v22  ;;  %5446 = vmatpush1.bf16.msra.mxu1 %v9492_v23  ;;  %v486_v14 = vrot.slane %v471_v7, %v11229_v8  ;;  %v11240_v19 = vsub.s32 5, %v476_v63  ;;  %v490_v21 = vrot.slane %v471_v7, %v11231_v9  ;;  %v11243_v22 = vsub.s32 7, %v476_v63 }
 0x1f7   :  { %5365 = vmatprep.subr.bf16.mxu0 %v9507_v53  ;;  %5447 = vmatprep.subr.bf16.mxu1 %v9509_v24  ;;  %v1870_v23 = vadd.f32 %v11217_v16, %v478_v10  ;;  %v1872_v53 = vadd.f32 %v11219_v17, %v482_v11  ;;  %v494_v24 = vrot.slane %v471_v7, %v11235_v12  ;;  %v2444_v10 = vld [vmem:[#allocation7 + $0x7c8] sm:$0xff] }
 0x1f8   :  { %v1911_v25 = vadd.f32 %v11221_v18, %v486_v14  ;;  %v502_v26 = vrot.slane %v471_v7, %v11238_v15  ;;  %v498_v27 = vrot.slane %v471_v7, %v11240_v19 }
 0x1fa   :  { %5366 = vmatpush1.bf16.msra.mxu0 %v9506_v29  ;;  %5448 = vmatpush1.bf16.msra.mxu1 %v9508_v13  ;;  %v2411_v29 = vld [vmem:[#allocation7 + $0x6c0] sm:$0xff]  ;;  %v2404_v13 = vld [vmem:[#allocation7 + $0x688] sm:$0xff]  ;;  %v2165_v40 = vmax.f32 %v1911_v25, 0.0 }
 0x1fb   :  { %5367 = vmatprep.subr.bf16.mxu0 %v9523_v30  ;;  %5449 = vmatprep.subr.bf16.mxu1 %v9525_v31  ;;  %v1913_v30 = vadd.f32 %v11223_v20, %v490_v21  ;;  %v506_v31 = vrot.slane %v471_v7, %v11243_v22  ;;  %v9603_v32 = vcombine.high %v2403_v28, %v2411_v29  ;;  %v2419_v20 = vld [vmem:[#allocation7 + $0x700] sm:$0xff] }
 0x1fc   :  { %v9602_v34 = vcombine.low %v2403_v28, %v2411_v29  ;;  %v9604_v17 = vcombine.low %v2404_v13, %v2412_v33  ;;  %v9605_v35 = vcombine.high %v2404_v13, %v2412_v33 }
 0x1fe   :  { %5368 = vmatpush1.bf16.msra.mxu0 %v9522_v36  ;;  %5450 = vmatpush1.bf16.msra.mxu1 %v9524_v37  ;;  %v2163_v36 = vmax.f32 %v1870_v23, 0.0  ;;  %v2164_v37 = vmax.f32 %v1872_v53, 0.0  ;;  %v11261_v23 = vld [vmem:[#allocation7 + $0x800] sm:$0xff] }
 0x1ff   :  { %5369 = vmatprep.subr.bf16.mxu0 %v9539_v38  ;;  %5451 = vmatprep.subr.bf16.mxu1 %v9541_v39  ;;  %v11263_v53 = vld [vmem:[#allocation7 + $0x840] sm:$0xff] }
 0x200   :  { %v9651_v25 = vcombine.high %v11261_v23, %v11263_v53 }
 0x202   :  { %5370 = vmatpush1.bf16.msra.mxu0 %v9538_v44  ;;  %5452 = vmatpush1.bf16.msra.mxu1 %v9540_v45  ;;  %v2427_v45 = vld [vmem:[#allocation7 + $0x740] sm:$0xff] }
 0x203   :  { %5371 = vmatprep.subr.bf16.mxu0 %v9555_v46  ;;  %5453 = vmatprep.subr.bf16.mxu1 %v9557_v47  ;;  %v2420_v46 = vld [vmem:[#allocation7 + $0x708] sm:$0xff]  ;;  %v2166_v47 = vmax.f32 %v1913_v30, 0.0  ;;  %v9618_v57 = vcombine.low %v2419_v20, %v2427_v45 }
 0x204   :  { %v9620_v58 = vcombine.low %v2420_v46, %v2428_v52 }
 0x206   :  { %5372 = vmatpush1.bf16.msra.mxu0 %v9554_v51  ;;  %5454 = vmatpush1.bf16.msra.mxu1 %v9556_v54  ;;  %v9619_v51 = vcombine.high %v2419_v20, %v2427_v45 }
 0x207   :  { %5373 = vmatprep.subr.bf16.mxu0 %v9571_v55  ;;  %5455 = vmatprep.subr.bf16.mxu1 %v9573_v56 }
 0x20a   :  { %5374 = vmatpush1.bf16.msra.mxu0 %v9570_v62  ;;  %5456 = vmatpush1.bf16.msra.mxu1 %v9572_v0  ;;  %v9621_v62 = vcombine.high %v2420_v46, %v2428_v52 }
 0x20b   :  { %5375 = vmatprep.subr.bf16.mxu0 %v9587_v1  ;;  %5457 = vmatprep.subr.bf16.mxu1 %v9589_v2  ;;  %v2435_v1 = vld [vmem:[#allocation7 + $0x780] sm:$0xff] }
 0x20c   :  { %v2443_v2 = vld [vmem:[#allocation7 + $0x7c0] sm:$0xff] }
 0x20d   :  { %v9635_v7 = vcombine.high %v2435_v1, %v2443_v2  ;;  %v9634_v11 = vcombine.low %v2435_v1, %v2443_v2 }
 0x20e   :  { %5376 = vmatpush1.bf16.msra.mxu0 %v9586_v3  ;;  %5458 = vmatpush1.bf16.msra.mxu1 %v9588_v6  ;;  %v2436_v3 = vld [vmem:[#allocation7 + $0x788] sm:$0xff] }
 0x20f   :  { %5377 = vmatprep.subr.bf16.mxu0 %v9603_v32  ;;  %5459 = vmatprep.subr.bf16.mxu1 %v9605_v35  ;;  %v9636_v14 = vcombine.low %v2436_v3, %v2444_v10  ;;  %v9637_v21 = vcombine.high %v2436_v3, %v2444_v10  ;;  %v472_v35 = vld [vmem:[#allocation5 + $0x8] sm:$0xff] }
 0x210   :  { %v538_v20 = vrot.slane %v472_v35, %v11243_v22 }
 0x212   :  { %5378 = vmatpush1.bf16.msra.mxu0 %v9602_v34  ;;  %5460 = vmatpush1.bf16.msra.mxu1 %v9604_v17 }
 0x213   :  { %5379 = vmatprep.subr.bf16.mxu0 %v9619_v51  ;;  %5461 = vmatprep.subr.bf16.mxu1 %v9621_v62 }
 0x216   :  { %5380 = vmatpush1.bf16.msra.mxu0 %v9618_v57  ;;  %5462 = vmatpush1.bf16.msra.mxu1 %v9620_v58 }
 0x217   :  { %5381 = vmatprep.subr.bf16.mxu0 %v9635_v7  ;;  %5463 = vmatprep.subr.bf16.mxu1 %v9637_v21 }
 0x21a   :  { %5382 = vmatpush1.bf16.msra.mxu0 %v9634_v11  ;;  %5464 = vmatpush1.bf16.msra.mxu1 %v9636_v14 }
 0x21b   :  { %5392 = vmatprep.subr.bf16.mxu0 %v9651_v25 }
 0x230   :  { %v1951_v16 = vpop.f32.mrb[4].mxu0  ;;  %v1992_v38 = vpop.f32.mrb[4].mxu1 }
 0x231   :  { %v1952_v18 = vadd.f32 %v1951_v16, %v494_v24  ;;  %v1953_v39 = vpop.f32.mrb[5].mxu0  ;;  %v1993_v41 = vadd.f32 %v1992_v38, %v502_v26  ;;  %v1994_v43 = vpop.f32.mrb[5].mxu1  ;;  %v11265_v24 = vld [vmem:[#allocation7 + $0x808] sm:$0xff]  ;;  %v514_v38 = vrot.slane %v472_v35, %v11227_v5 }
 0x232   :  { %v1954_v42 = vadd.f32 %v1953_v39, %v498_v27  ;;  %v1955_v44 = vpop.f32.mrb[6].mxu0  ;;  %v1995_v49 = vadd.f32 %v1994_v43, %v506_v31  ;;  %v1996_v50 = vpop.f32.mrb[6].mxu1  ;;  %v11269_v26 = vld [vmem:[#allocation7 + $0x848] sm:$0xff]  ;;  %v9650_v27 = vcombine.low %v11261_v23, %v11263_v53  ;;  %v526_v39 = vrot.slane %v472_v35, %v11235_v12 }
 0x233   :  { %v2167_v48 = vmax.f32 %v1952_v18, 0.0  ;;  %v1956_v61 = vpop.f32.mrb[7].mxu0  ;;  %v2169_v54 = vmax.f32 %v1993_v41, 0.0  ;;  %v1997_v56 = vpop.f32.mrb[7].mxu1  ;;  %v9652_v28 = vcombine.low %v11265_v24, %v11269_v26  ;;  %v9653_v29 = vcombine.high %v11265_v24, %v11269_v26 }
 0x234   :  { %v2168_v55 = vmax.f32 %v1954_v42, 0.0  ;;  %v2170_v60 = vmax.f32 %v1995_v49, 0.0  ;;  %v522_v18 = vrot.slane %v472_v35, %v11231_v9  ;;  %v534_v41 = vrot.slane %v472_v35, %v11238_v15 }
 0x235   :  { %v11253_v59 = vmax.f32 %v2163_v36, %v2167_v48  ;;  %v11255_v63 = vmax.f32 %v2165_v40, %v2169_v54  ;;  %5474 = vmatprep.subr.bf16.mxu1 %v9653_v29  ;;  %v518_v36 = vrot.slane %v472_v35, %v11229_v8  ;;  %v530_v42 = vrot.slane %v472_v35, %v11240_v19 }
 0x236   :  { %v11257_v0 = vmax.f32 %v2164_v37, %v2168_v55  ;;  %v11259_v6 = vmax.f32 %v2166_v47, %v2170_v60  ;;  %v510_v37 = vrot.slane %v472_v35, %v11225_v4 }
 0x270   :  { %v2033_v13 = vpop.f32.mrb[8].mxu0  ;;  %v2074_v31 = vpop.f32.mrb[8].mxu1 }
 0x271   :  { %v2035_v30 = vpop.f32.mrb[9].mxu0  ;;  %v2076_v33 = vpop.f32.mrb[9].mxu1  ;;  %v2075_v40 = vadd.f32 %v2074_v31, %v518_v36  ;;  %v2034_v43 = vadd.f32 %v2033_v13, %v510_v37  ;;  %v2467_v31 = vld [vmem:[#allocation7 + $0x880] sm:$0xff] }
 0x272   :  { %v2037_v32 = vpop.f32.mrb[10].mxu0  ;;  %v2078_v34 = vpop.f32.mrb[10].mxu1  ;;  %v2077_v44 = vadd.f32 %v2076_v33, %v522_v18  ;;  %v2036_v45 = vadd.f32 %v2035_v30, %v514_v38  ;;  %v2475_v33 = vld [vmem:[#allocation7 + $0x8c0] sm:$0xff]  ;;  %v2484_v18 = vld [vmem:[#allocation7 + $0x908] sm:$0xff] }
 0x273   :  { %v2038_v16 = vpop.f32.mrb[11].mxu0  ;;  %v2079_v17 = vpop.f32.mrb[11].mxu1  ;;  %v2173_v61 = vmax.f32 %v2075_v40, 0.0  ;;  %v2171_v55 = vmax.f32 %v2034_v43, 0.0  ;;  %v2476_v34 = vld [vmem:[#allocation7 + $0x8c8] sm:$0xff]  ;;  %v2483_v36 = vld [vmem:[#allocation7 + $0x900] sm:$0xff] }
 0x274   :  { %v2174_v56 = vmax.f32 %v2077_v44, 0.0  ;;  %v2172_v1 = vmax.f32 %v2036_v45, 0.0  ;;  %v2468_v16 = vld [vmem:[#allocation7 + $0x888] sm:$0xff]  ;;  %v2491_v37 = vld [vmem:[#allocation7 + $0x940] sm:$0xff] }
 0x275   :  { %v9683_v40 = vcombine.high %v2483_v36, %v2491_v37  ;;  %v2507_v43 = vld [vmem:[#allocation7 + $0x9c0] sm:$0xff]  ;;  %v2500_v44 = vld [vmem:[#allocation7 + $0x988] sm:$0xff]  ;;  %v9682_v23 = vcombine.low %v2483_v36, %v2491_v37 }
 0x276   :  { %v2516_v45 = vld [vmem:[#allocation7 + $0xa08] sm:$0xff] }
 0x277   :  { %v2580_v36 = vld [vmem:[#allocation7 + $0xc08] sm:$0xff] }
 0x2b0   :  { %v2115_v46 = vpop.f32.mrb[12].mxu0  ;;  %v2156_v48 = vpop.f32.mrb[12].mxu1 }
 0x2b1   :  { %v2116_v47 = vadd.f32 %v2115_v46, %v526_v39  ;;  %v2117_v49 = vpop.f32.mrb[13].mxu0  ;;  %v2157_v50 = vadd.f32 %v2156_v48, %v534_v41  ;;  %v2158_v52 = vpop.f32.mrb[13].mxu1  ;;  %v9668_v39 = vcombine.low %v2468_v16, %v2476_v34  ;;  %v2524_v46 = vld [vmem:[#allocation7 + $0xa48] sm:$0xff] }
 0x2b2   :  { %v2118_v51 = vadd.f32 %v2117_v49, %v530_v42  ;;  %v2119_v54 = vpop.f32.mrb[14].mxu0  ;;  %v2159_v58 = vadd.f32 %v2158_v52, %v538_v20  ;;  %v2160_v62 = vpop.f32.mrb[14].mxu1  ;;  %v2499_v42 = vld [vmem:[#allocation7 + $0x980] sm:$0xff]  ;;  %v2508_v20 = vld [vmem:[#allocation7 + $0x9c8] sm:$0xff] }
 0x2b3   :  { %v2175_v57 = vmax.f32 %v2116_v47, 0.0  ;;  %v2120_v60 = vpop.f32.mrb[15].mxu0  ;;  %v2177_v2 = vmax.f32 %v2157_v50, 0.0  ;;  %v2161_v7 = vpop.f32.mrb[15].mxu1  ;;  %v9699_v24 = vcombine.high %v2499_v42, %v2507_v43  ;;  %v9701_v26 = vcombine.high %v2500_v44, %v2508_v20  ;;  %v2531_v50 = vld [vmem:[#allocation7 + $0xa80] sm:$0xff]  ;;  %v2532_v52 = vld [vmem:[#allocation7 + $0xa88] sm:$0xff] }
 0x2b4   :  { %v2176_v3 = vmax.f32 %v2118_v51, 0.0  ;;  %v2178_v11 = vmax.f32 %v2159_v58, 0.0  ;;  %v9698_v47 = vcombine.low %v2499_v42, %v2507_v43  ;;  %v9700_v48 = vcombine.low %v2500_v44, %v2508_v20  ;;  %v2539_v51 = vld [vmem:[#allocation7 + $0xac0] sm:$0xff]  ;;  %v2540_v54 = vld [vmem:[#allocation7 + $0xac8] sm:$0xff] }
 0x2b5   :  { %v2183_v10 = vmax.f32 %v2171_v55, %v2175_v57  ;;  %v2185_v14 = vmax.f32 %v2173_v61, %v2177_v2  ;;  %v9717_v61 = vcombine.high %v2516_v45, %v2524_v46  ;;  %v9731_v57 = vcombine.high %v2531_v50, %v2539_v51  ;;  %v2547_v60 = vld [vmem:[#allocation7 + $0xb00] sm:$0xff]  ;;  %v2556_v2 = vld [vmem:[#allocation7 + $0xb48] sm:$0xff] }
 0x2b6   :  { %v2184_v21 = vmax.f32 %v2172_v1, %v2176_v3  ;;  %v2186_v29 = vmax.f32 %v2174_v56, %v2178_v11  ;;  %v9716_v56 = vcombine.low %v2516_v45, %v2524_v46  ;;  %v9733_v58 = vcombine.high %v2532_v52, %v2540_v54  ;;  %v2555_v62 = vld [vmem:[#allocation7 + $0xb40] sm:$0xff]  ;;  %v2548_v1 = vld [vmem:[#allocation7 + $0xb08] sm:$0xff] }
 0x2b7   :  { %v2187_v25 = vmax.f32 %v11253_v59, %v2183_v10  ;;  %v11287_v13 = vmax.f32 %v11255_v63, %v2185_v14  ;;  %v9667_v59 = vcombine.high %v2467_v31, %v2475_v33  ;;  %v9669_v63 = vcombine.high %v2468_v16, %v2476_v34  ;;  %v2563_v14 = vld [vmem:[#allocation7 + $0xb80] sm:$0xff] }
 0x2b8   :  { %v2188_v30 = vmax.f32 %v11257_v0, %v2184_v21  ;;  %v2190_v32 = vmax.f32 %v11259_v6, %v2186_v29  ;;  %v2492_v0 = vld [vmem:[#allocation7 + $0x948] sm:$0xff]  ;;  %v9666_v6 = vcombine.low %v2467_v31, %v2475_v33  ;;  %v9730_v3 = vcombine.low %v2531_v50, %v2539_v51  ;;  %v2571_v21 = vld [vmem:[#allocation7 + $0xbc0] sm:$0xff] }
 0x2b9   :  { %v11293_v35 = vpack.c.bf16 %v2187_v25, %v2187_v25  ;;  %v9685_v41 = vcombine.high %v2484_v18, %v2492_v0  ;;  %v9684_v53 = vcombine.low %v2484_v18, %v2492_v0  ;;  %v9732_v7 = vcombine.low %v2532_v52, %v2540_v54  ;;  %v2564_v25 = vld [vmem:[#allocation7 + $0xb88] sm:$0xff]  ;;  %v2579_v16 = vld [vmem:[#allocation7 + $0xc00] sm:$0xff] }
 0x2ba   :  { %v11291_v17 = vpack.c.bf16 %v2188_v30, %v2188_v30  ;;  %v11297_v38 = vpack.c.bf16 %v2190_v32, %v2190_v32  ;;  %v9747_v10 = vcombine.high %v2547_v60, %v2555_v62  ;;  %v9749_v11 = vcombine.high %v2548_v1, %v2556_v2  ;;  %v2572_v29 = vld [vmem:[#allocation7 + $0xbc8] sm:$0xff]  ;;  %v2587_v34 = vld [vmem:[#allocation7 + $0xc40] sm:$0xff] }
 0x2bb   :  { %v9746_v30 = vcombine.low %v2547_v60, %v2555_v62  ;;  %v9748_v31 = vcombine.low %v2548_v1, %v2556_v2  ;;  %v9763_v32 = vcombine.high %v2563_v14, %v2571_v21  ;;  %v9765_v33 = vcombine.high %v2564_v25, %v2572_v29 }
 0x2bc   :  { %5383 = vmatprep.mubr.bf16.mxu0 %v11291_v17  ;;  %5465 = vmatprep.mubr.bf16.mxu1 %v11291_v17  ;;  %v9764_v37 = vcombine.low %v2564_v25, %v2572_v29  ;;  %v9779_v18 = vcombine.high %v2579_v16, %v2587_v34  ;;  %v9778_v42 = vcombine.low %v2579_v16, %v2587_v34 }
 0x2bd   :  { %5384 = vmatmul.mubr.bf16.vlgmr.msra.gmra.mrb[16].mxu0 %v11293_v35  ;;  %5466 = vmatmul.mubr.bf16.vlgmr.msra.gmra.mrb[16].mxu1 %v11293_v35 }
 0x2be   :  { %5393 = vmatpush1.bf16.msra.mxu0 %v9650_v27  ;;  %5475 = vmatpush1.bf16.msra.mxu1 %v9652_v28  ;;  %v2515_v27 = vld [vmem:[#allocation7 + $0xa00] sm:$0xff] }
 0x2bf   :  { %5424 = vmatprep.mubr.bf16.mxu0 %v11297_v38  ;;  %5506 = vmatprep.mubr.bf16.mxu1 %v11297_v38  ;;  %v2523_v28 = vld [vmem:[#allocation7 + $0xa40] sm:$0xff] }
 0x2c0   :  { %5394 = vmatprep.subr.bf16.mxu0 %v9667_v59  ;;  %5476 = vmatprep.subr.bf16.mxu1 %v9669_v63  ;;  %v9715_v49 = vcombine.high %v2515_v27, %v2523_v28  ;;  %v9714_v55 = vcombine.low %v2515_v27, %v2523_v28  ;;  %v2588_v59 = vld [vmem:[#allocation7 + $0xc48] sm:$0xff]  ;;  %v9762_v63 = vcombine.low %v2563_v14, %v2571_v21 }
 0x2c1   :  { %v9781_v0 = vcombine.high %v2580_v36, %v2588_v59  ;;  %v9780_v43 = vcombine.low %v2580_v36, %v2588_v59 }
 0x2c2   :  { %5395 = vmatpush1.bf16.msra.mxu0 %v9666_v6  ;;  %5477 = vmatpush1.bf16.msra.mxu1 %v9668_v39  ;;  %v2595_v6 = vld [vmem:[#allocation7 + $0xc80] sm:$0xff] }
 0x2c3   :  { %5396 = vmatprep.subr.bf16.mxu0 %v9683_v40  ;;  %5478 = vmatprep.subr.bf16.mxu1 %v9685_v41  ;;  %v2603_v39 = vld [vmem:[#allocation7 + $0xcc0] sm:$0xff]  ;;  %v2596_v40 = vld [vmem:[#allocation7 + $0xc88] sm:$0xff] }
 0x2c4   :  { %v2604_v41 = vld [vmem:[#allocation7 + $0xcc8] sm:$0xff]  ;;  %v9795_v44 = vcombine.high %v2595_v6, %v2603_v39  ;;  %v9794_v27 = vcombine.low %v2595_v6, %v2603_v39 }
 0x2c5   :  { %v9797_v20 = vcombine.high %v2596_v40, %v2604_v41  ;;  %v9796_v28 = vcombine.low %v2596_v40, %v2604_v41 }
 0x2c6   :  { %5397 = vmatpush1.bf16.msra.mxu0 %v9682_v23  ;;  %5479 = vmatpush1.bf16.msra.mxu1 %v9684_v53  ;;  %v2611_v23 = vld [vmem:[#allocation7 + $0xd00] sm:$0xff] }
 0x2c7   :  { %5398 = vmatprep.subr.bf16.mxu0 %v9699_v24  ;;  %5480 = vmatprep.subr.bf16.mxu1 %v9701_v26  ;;  %v2619_v53 = vld [vmem:[#allocation7 + $0xd40] sm:$0xff]  ;;  %v2612_v24 = vld [vmem:[#allocation7 + $0xd08] sm:$0xff] }
 0x2c8   :  { %v2620_v26 = vld [vmem:[#allocation7 + $0xd48] sm:$0xff]  ;;  %v9811_v45 = vcombine.high %v2611_v23, %v2619_v53  ;;  %v9810_v50 = vcombine.low %v2611_v23, %v2619_v53 }
 0x2c9   :  { %v9813_v46 = vcombine.high %v2612_v24, %v2620_v26  ;;  %v9812_v51 = vcombine.low %v2612_v24, %v2620_v26 }
 0x2ca   :  { %5399 = vmatpush1.bf16.msra.mxu0 %v9698_v47  ;;  %5481 = vmatpush1.bf16.msra.mxu1 %v9700_v48  ;;  %v2627_v47 = vld [vmem:[#allocation7 + $0xd80] sm:$0xff] }
 0x2cb   :  { %5400 = vmatprep.subr.bf16.mxu0 %v9715_v49  ;;  %5482 = vmatprep.subr.bf16.mxu1 %v9717_v61  ;;  %v2635_v48 = vld [vmem:[#allocation7 + $0xdc0] sm:$0xff]  ;;  %v2628_v49 = vld [vmem:[#allocation7 + $0xd88] sm:$0xff] }
 0x2cc   :  { %v2636_v61 = vld [vmem:[#allocation7 + $0xdc8] sm:$0xff]  ;;  %v9827_v52 = vcombine.high %v2627_v47, %v2635_v48  ;;  %v9826_v60 = vcombine.low %v2627_v47, %v2635_v48  ;;  %v11311_v48 = vpack.c.bf16 %v11287_v13, %v11287_v13 }
 0x2cd   :  { %v9829_v54 = vcombine.high %v2628_v49, %v2636_v61  ;;  %v9828_v62 = vcombine.low %v2628_v49, %v2636_v61 }
 0x2ce   :  { %5401 = vmatpush1.bf16.msra.mxu0 %v9714_v55  ;;  %5483 = vmatpush1.bf16.msra.mxu1 %v9716_v56  ;;  %v2643_v55 = vld [vmem:[#allocation7 + $0xe00] sm:$0xff] }
 0x2cf   :  { %5402 = vmatprep.subr.bf16.mxu0 %v9731_v57  ;;  %5484 = vmatprep.subr.bf16.mxu1 %v9733_v58  ;;  %v2651_v56 = vld [vmem:[#allocation7 + $0xe40] sm:$0xff]  ;;  %v2644_v57 = vld [vmem:[#allocation7 + $0xe08] sm:$0xff] }
 0x2d0   :  { %v2652_v58 = vld [vmem:[#allocation7 + $0xe48] sm:$0xff]  ;;  %v9843_v1 = vcombine.high %v2643_v55, %v2651_v56  ;;  %v9842_v14 = vcombine.low %v2643_v55, %v2651_v56  ;;  %v2238_v55 = vld [vmem:[#allocation7 + $0x158] sm:$0xff] }
 0x2d1   :  { %v9845_v2 = vcombine.high %v2644_v57, %v2652_v58  ;;  %v9844_v21 = vcombine.low %v2644_v57, %v2652_v58 }
 0x2d2   :  { %5403 = vmatpush1.bf16.msra.mxu0 %v9730_v3  ;;  %5485 = vmatpush1.bf16.msra.mxu1 %v9732_v7  ;;  %v2659_v3 = vld [vmem:[#allocation7 + $0xe80] sm:$0xff] }
 0x2d3   :  { %5404 = vmatprep.subr.bf16.mxu0 %v9747_v10  ;;  %5486 = vmatprep.subr.bf16.mxu1 %v9749_v11  ;;  %v2667_v7 = vld [vmem:[#allocation7 + $0xec0] sm:$0xff]  ;;  %v2660_v10 = vld [vmem:[#allocation7 + $0xe88] sm:$0xff] }
 0x2d4   :  { %v2668_v11 = vld [vmem:[#allocation7 + $0xec8] sm:$0xff]  ;;  %v9859_v25 = vcombine.high %v2659_v3, %v2667_v7  ;;  %v9858_v16 = vcombine.low %v2659_v3, %v2667_v7 }
 0x2d5   :  { %v9861_v29 = vcombine.high %v2660_v10, %v2668_v11  ;;  %v9860_v34 = vcombine.low %v2660_v10, %v2668_v11 }
 0x2d6   :  { %5405 = vmatpush1.bf16.msra.mxu0 %v9746_v30  ;;  %5487 = vmatpush1.bf16.msra.mxu1 %v9748_v31  ;;  %v2675_v30 = vld [vmem:[#allocation7 + $0xf00] sm:$0xff] }
 0x2d7   :  { %5406 = vmatprep.subr.bf16.mxu0 %v9763_v32  ;;  %5488 = vmatprep.subr.bf16.mxu1 %v9765_v33  ;;  %v2683_v31 = vld [vmem:[#allocation7 + $0xf40] sm:$0xff]  ;;  %v2676_v32 = vld [vmem:[#allocation7 + $0xf08] sm:$0xff] }
 0x2d8   :  { %v2684_v33 = vld [vmem:[#allocation7 + $0xf48] sm:$0xff]  ;;  %v9875_v36 = vcombine.high %v2675_v30, %v2683_v31  ;;  %v9874_v6 = vcombine.low %v2675_v30, %v2683_v31 }
 0x2d9   :  { %v9877_v59 = vcombine.high %v2676_v32, %v2684_v33  ;;  %v9876_v39 = vcombine.low %v2676_v32, %v2684_v33 }
 0x2da   :  { %5407 = vmatpush1.bf16.msra.mxu0 %v9762_v63  ;;  %5489 = vmatpush1.bf16.msra.mxu1 %v9764_v37  ;;  %v2691_v63 = vld [vmem:[#allocation7 + $0xf80] sm:$0xff] }
 0x2db   :  { %5408 = vmatprep.subr.bf16.mxu0 %v9779_v18  ;;  %5490 = vmatprep.subr.bf16.mxu1 %v9781_v0  ;;  %v2699_v37 = vld [vmem:[#allocation7 + $0xfc0] sm:$0xff]  ;;  %v2692_v18 = vld [vmem:[#allocation7 + $0xf88] sm:$0xff] }
 0x2dc   :  { %v2700_v0 = vld [vmem:[#allocation7 + $0xfc8] sm:$0xff]  ;;  %v9891_v40 = vcombine.high %v2691_v63, %v2699_v37  ;;  %v9890_v23 = vcombine.low %v2691_v63, %v2699_v37 }
 0x2dd   :  { %v9893_v41 = vcombine.high %v2692_v18, %v2700_v0  ;;  %v9892_v53 = vcombine.low %v2692_v18, %v2700_v0 }
 0x2de   :  { %5409 = vmatpush1.bf16.msra.mxu0 %v9778_v42  ;;  %5491 = vmatpush1.bf16.msra.mxu1 %v9780_v43  ;;  %v2197_v42 = vld [vmem:[#allocation7 + $0x10] sm:$0xff] }
 0x2df   :  { %5410 = vmatprep.subr.bf16.mxu0 %v9795_v44  ;;  %5492 = vmatprep.subr.bf16.mxu1 %v9797_v20  ;;  %v2205_v43 = vld [vmem:[#allocation7 + $0x50] sm:$0xff]  ;;  %v2198_v44 = vld [vmem:[#allocation7 + $0x18] sm:$0xff] }
 0x2e0   :  { %v2206_v20 = vld [vmem:[#allocation7 + $0x58] sm:$0xff]  ;;  %v9399_v24 = vcombine.high %v2197_v42, %v2205_v43  ;;  %v9398_v47 = vcombine.low %v2197_v42, %v2205_v43 }
 0x2e1   :  { %v9401_v26 = vcombine.high %v2198_v44, %v2206_v20  ;;  %v9400_v49 = vcombine.low %v2198_v44, %v2206_v20 }
 0x2e2   :  { %5411 = vmatpush1.bf16.msra.mxu0 %v9794_v27  ;;  %5493 = vmatpush1.bf16.msra.mxu1 %v9796_v28  ;;  %v2213_v27 = vld [vmem:[#allocation7 + $0x90] sm:$0xff] }
 0x2e3   :  { %5412 = vmatprep.subr.bf16.mxu0 %v9811_v45  ;;  %5494 = vmatprep.subr.bf16.mxu1 %v9813_v46  ;;  %v2221_v28 = vld [vmem:[#allocation7 + $0xd0] sm:$0xff]  ;;  %v2214_v45 = vld [vmem:[#allocation7 + $0x98] sm:$0xff] }
 0x2e4   :  { %v2222_v46 = vld [vmem:[#allocation7 + $0xd8] sm:$0xff]  ;;  %v9415_v61 = vcombine.high %v2213_v27, %v2221_v28  ;;  %v9414_v56 = vcombine.low %v2213_v27, %v2221_v28 }
 0x2e5   :  { %v9416_v13 = vcombine.low %v2214_v45, %v2222_v46 }
 0x2e6   :  { %5413 = vmatpush1.bf16.msra.mxu0 %v9810_v50  ;;  %5495 = vmatpush1.bf16.msra.mxu1 %v9812_v51  ;;  %v9417_v50 = vcombine.high %v2214_v45, %v2222_v46  ;;  %v2229_v51 = vld [vmem:[#allocation7 + $0x110] sm:$0xff] }
 0x2e7   :  { %5414 = vmatprep.subr.bf16.mxu0 %v9827_v52  ;;  %5496 = vmatprep.subr.bf16.mxu1 %v9829_v54  ;;  %v2237_v52 = vld [vmem:[#allocation7 + $0x150] sm:$0xff]  ;;  %v2230_v54 = vld [vmem:[#allocation7 + $0x118] sm:$0xff] }
 0x2e8   :  { %v9431_v57 = vcombine.high %v2229_v51, %v2237_v52  ;;  %v9433_v58 = vcombine.high %v2230_v54, %v2238_v55  ;;  %v9430_v3 = vcombine.low %v2229_v51, %v2237_v52  ;;  %v9432_v7 = vcombine.low %v2230_v54, %v2238_v55 }
 0x2ea   :  { %5415 = vmatpush1.bf16.msra.mxu0 %v9826_v60  ;;  %5497 = vmatpush1.bf16.msra.mxu1 %v9828_v62  ;;  %v2245_v60 = vld [vmem:[#allocation7 + $0x190] sm:$0xff] }
 0x2eb   :  { %5416 = vmatprep.subr.bf16.mxu0 %v9843_v1  ;;  %5498 = vmatprep.subr.bf16.mxu1 %v9845_v2  ;;  %v2253_v62 = vld [vmem:[#allocation7 + $0x1d0] sm:$0xff]  ;;  %v2246_v1 = vld [vmem:[#allocation7 + $0x198] sm:$0xff] }
 0x2ec   :  { %v2254_v2 = vld [vmem:[#allocation7 + $0x1d8] sm:$0xff]  ;;  %v9447_v10 = vcombine.high %v2245_v60, %v2253_v62  ;;  %v9446_v30 = vcombine.low %v2245_v60, %v2253_v62 }
 0x2ed   :  { %v9449_v11 = vcombine.high %v2246_v1, %v2254_v2  ;;  %v9448_v31 = vcombine.low %v2246_v1, %v2254_v2 }
 0x2ee   :  { %5417 = vmatpush1.bf16.msra.mxu0 %v9842_v14  ;;  %5499 = vmatpush1.bf16.msra.mxu1 %v9844_v21  ;;  %v2261_v14 = vld [vmem:[#allocation7 + $0x210] sm:$0xff] }
 0x2ef   :  { %5418 = vmatprep.subr.bf16.mxu0 %v9859_v25  ;;  %5500 = vmatprep.subr.bf16.mxu1 %v9861_v29  ;;  %v2269_v21 = vld [vmem:[#allocation7 + $0x250] sm:$0xff]  ;;  %v2262_v25 = vld [vmem:[#allocation7 + $0x218] sm:$0xff] }
 0x2f0   :  { %v2270_v29 = vld [vmem:[#allocation7 + $0x258] sm:$0xff]  ;;  %v9463_v32 = vcombine.high %v2261_v14, %v2269_v21  ;;  %v9462_v63 = vcombine.low %v2261_v14, %v2269_v21 }
 0x2f1   :  { %v9465_v33 = vcombine.high %v2262_v25, %v2270_v29  ;;  %v9464_v37 = vcombine.low %v2262_v25, %v2270_v29 }
 0x2f2   :  { %5419 = vmatpush1.bf16.msra.mxu0 %v9858_v16  ;;  %5501 = vmatpush1.bf16.msra.mxu1 %v9860_v34  ;;  %v2277_v16 = vld [vmem:[#allocation7 + $0x290] sm:$0xff] }
 0x2f3   :  { %5420 = vmatprep.subr.bf16.mxu0 %v9875_v36  ;;  %5502 = vmatprep.subr.bf16.mxu1 %v9877_v59  ;;  %v2285_v34 = vld [vmem:[#allocation7 + $0x2d0] sm:$0xff]  ;;  %v2278_v36 = vld [vmem:[#allocation7 + $0x298] sm:$0xff] }
 0x2f4   :  { %v2286_v59 = vld [vmem:[#allocation7 + $0x2d8] sm:$0xff]  ;;  %v9479_v18 = vcombine.high %v2277_v16, %v2285_v34  ;;  %v9478_v42 = vcombine.low %v2277_v16, %v2285_v34 }
 0x2f5   :  { %v9481_v0 = vcombine.high %v2278_v36, %v2286_v59  ;;  %v9480_v43 = vcombine.low %v2278_v36, %v2286_v59 }
 0x2f6   :  { %5421 = vmatpush1.bf16.msra.mxu0 %v9874_v6  ;;  %5503 = vmatpush1.bf16.msra.mxu1 %v9876_v39  ;;  %v2293_v6 = vld [vmem:[#allocation7 + $0x310] sm:$0xff] }
 0x2f7   :  { %5422 = vmatprep.subr.bf16.mxu0 %v9891_v40  ;;  %5504 = vmatprep.subr.bf16.mxu1 %v9893_v41  ;;  %v2301_v39 = vld [vmem:[#allocation7 + $0x350] sm:$0xff]  ;;  %v2294_v40 = vld [vmem:[#allocation7 + $0x318] sm:$0xff] }
 0x2f8   :  { %v2302_v41 = vld [vmem:[#allocation7 + $0x358] sm:$0xff]  ;;  %v9495_v44 = vcombine.high %v2293_v6, %v2301_v39  ;;  %v9494_v27 = vcombine.low %v2293_v6, %v2301_v39 }
 0x2f9   :  { %v9497_v20 = vcombine.high %v2294_v40, %v2302_v41  ;;  %v9496_v28 = vcombine.low %v2294_v40, %v2302_v41 }
 0x2fa   :  { %5423 = vmatpush1.bf16.msra.mxu0 %v9890_v23  ;;  %5505 = vmatpush1.bf16.msra.mxu1 %v9892_v53  ;;  %v2309_v23 = vld [vmem:[#allocation7 + $0x390] sm:$0xff] }
 0x2fb   :  { %5515 = vmatprep.subr.bf16.mxu0 %v9399_v24  ;;  %5597 = vmatprep.subr.bf16.mxu1 %v9401_v26  ;;  %v2317_v53 = vld [vmem:[#allocation7 + $0x3d0] sm:$0xff]  ;;  %v2310_v24 = vld [vmem:[#allocation7 + $0x398] sm:$0xff] }
 0x2fc   :  { %v2318_v26 = vld [vmem:[#allocation7 + $0x3d8] sm:$0xff]  ;;  %v9511_v45 = vcombine.high %v2309_v23, %v2317_v53  ;;  %v9510_v51 = vcombine.low %v2309_v23, %v2317_v53 }
 0x2fd   :  { %5425 = vmatmul.mubr.bf16.vlgmr.msra.gmra.mrb[16].mxu0 %v11311_v48  ;;  %5507 = vmatmul.mubr.bf16.vlgmr.msra.gmra.mrb[16].mxu1 %v11311_v48  ;;  %v9513_v46 = vcombine.high %v2310_v24, %v2318_v26  ;;  %v9512_v52 = vcombine.low %v2310_v24, %v2318_v26 }
 0x2fe   :  { %5516 = vmatpush1.bf16.msra.mxu0 %v9398_v47  ;;  %5547 = vmatprep.mubr.bf16.mxu0 %v11291_v17  ;;  %v2325_v47 = vld [vmem:[#allocation7 + $0x410] sm:$0xff] }
 0x2ff   :  { %5598 = vmatpush1.bf16.msra.mxu1 %v9400_v49  ;;  %5629 = vmatprep.mubr.bf16.mxu1 %v11291_v17  ;;  %v2333_v49 = vld [vmem:[#allocation7 + $0x450] sm:$0xff] }
 0x300   :  { %5517 = vmatprep.subr.bf16.mxu0 %v9415_v61  ;;  %5599 = vmatprep.subr.bf16.mxu1 %v9417_v50  ;;  %v2326_v61 = vld [vmem:[#allocation7 + $0x418] sm:$0xff]  ;;  %v9527_v54 = vcombine.high %v2325_v47, %v2333_v49  ;;  %v9526_v60 = vcombine.low %v2325_v47, %v2333_v49 }
 0x301   :  { %v2334_v50 = vld [vmem:[#allocation7 + $0x458] sm:$0xff] }
 0x302   :  { %5518 = vmatpush1.bf16.msra.mxu0 %v9414_v56  ;;  %v9529_v55 = vcombine.high %v2326_v61, %v2334_v50  ;;  %v2341_v56 = vld [vmem:[#allocation7 + $0x490] sm:$0xff]  ;;  %v9528_v62 = vcombine.low %v2326_v61, %v2334_v50 }
 0x303   :  { %5600 = vmatpush1.bf16.msra.mxu1 %v9416_v13  ;;  %5519 = vmatprep.subr.bf16.mxu0 %v9431_v57  ;;  %v2349_v13 = vld [vmem:[#allocation7 + $0x4d0] sm:$0xff]  ;;  %v2342_v57 = vld [vmem:[#allocation7 + $0x498] sm:$0xff] }
 0x304   :  { %5601 = vmatprep.subr.bf16.mxu1 %v9433_v58  ;;  %v2350_v58 = vld [vmem:[#allocation7 + $0x4d8] sm:$0xff]  ;;  %v9543_v1 = vcombine.high %v2341_v56, %v2349_v13  ;;  %v9542_v14 = vcombine.low %v2341_v56, %v2349_v13 }
 0x305   :  { %v9545_v2 = vcombine.high %v2342_v57, %v2350_v58  ;;  %v9544_v21 = vcombine.low %v2342_v57, %v2350_v58 }
 0x306   :  { %5520 = vmatpush1.bf16.msra.mxu0 %v9430_v3  ;;  %v2357_v3 = vld [vmem:[#allocation7 + $0x510] sm:$0xff] }
 0x307   :  { %5602 = vmatpush1.bf16.msra.mxu1 %v9432_v7  ;;  %5521 = vmatprep.subr.bf16.mxu0 %v9447_v10  ;;  %v2365_v7 = vld [vmem:[#allocation7 + $0x550] sm:$0xff]  ;;  %v2358_v10 = vld [vmem:[#allocation7 + $0x518] sm:$0xff] }
 0x308   :  { %5603 = vmatprep.subr.bf16.mxu1 %v9449_v11  ;;  %v2366_v11 = vld [vmem:[#allocation7 + $0x558] sm:$0xff]  ;;  %v9559_v25 = vcombine.high %v2357_v3, %v2365_v7  ;;  %v9558_v16 = vcombine.low %v2357_v3, %v2365_v7 }
 0x309   :  { %v9561_v29 = vcombine.high %v2358_v10, %v2366_v11  ;;  %v9560_v34 = vcombine.low %v2358_v10, %v2366_v11 }
 0x30a   :  { %5522 = vmatpush1.bf16.msra.mxu0 %v9446_v30  ;;  %v2373_v30 = vld [vmem:[#allocation7 + $0x590] sm:$0xff] }
 0x30b   :  { %5604 = vmatpush1.bf16.msra.mxu1 %v9448_v31  ;;  %5523 = vmatprep.subr.bf16.mxu0 %v9463_v32  ;;  %v2381_v31 = vld [vmem:[#allocation7 + $0x5d0] sm:$0xff]  ;;  %v2374_v32 = vld [vmem:[#allocation7 + $0x598] sm:$0xff] }
 0x30c   :  { %5605 = vmatprep.subr.bf16.mxu1 %v9465_v33  ;;  %v2382_v33 = vld [vmem:[#allocation7 + $0x5d8] sm:$0xff]  ;;  %v9575_v36 = vcombine.high %v2373_v30, %v2381_v31  ;;  %v9574_v6 = vcombine.low %v2373_v30, %v2381_v31 }
 0x30d   :  { %v9577_v59 = vcombine.high %v2374_v32, %v2382_v33  ;;  %v9576_v39 = vcombine.low %v2374_v32, %v2382_v33  ;;  %v2478_v30 = vld [vmem:[#allocation7 + $0x8d8] sm:$0xff]  ;;  %v2485_v33 = vld [vmem:[#allocation7 + $0x910] sm:$0xff] }
 0x30e   :  { %5524 = vmatpush1.bf16.msra.mxu0 %v9462_v63  ;;  %v2389_v63 = vld [vmem:[#allocation7 + $0x610] sm:$0xff] }
 0x30f   :  { %5606 = vmatpush1.bf16.msra.mxu1 %v9464_v37  ;;  %5525 = vmatprep.subr.bf16.mxu0 %v9479_v18  ;;  %v2397_v37 = vld [vmem:[#allocation7 + $0x650] sm:$0xff]  ;;  %v2390_v18 = vld [vmem:[#allocation7 + $0x618] sm:$0xff] }
 0x310   :  { %5607 = vmatprep.subr.bf16.mxu1 %v9481_v0  ;;  %v2398_v0 = vld [vmem:[#allocation7 + $0x658] sm:$0xff]  ;;  %v9591_v40 = vcombine.high %v2389_v63, %v2397_v37  ;;  %v9590_v23 = vcombine.low %v2389_v63, %v2397_v37 }
 0x311   :  { %v9593_v41 = vcombine.high %v2390_v18, %v2398_v0  ;;  %v9592_v53 = vcombine.low %v2390_v18, %v2398_v0 }
 0x312   :  { %5526 = vmatpush1.bf16.msra.mxu0 %v9478_v42  ;;  %v2405_v42 = vld [vmem:[#allocation7 + $0x690] sm:$0xff] }
 0x313   :  { %5608 = vmatpush1.bf16.msra.mxu1 %v9480_v43  ;;  %5527 = vmatprep.subr.bf16.mxu0 %v9495_v44  ;;  %v2413_v43 = vld [vmem:[#allocation7 + $0x6d0] sm:$0xff]  ;;  %v2406_v44 = vld [vmem:[#allocation7 + $0x698] sm:$0xff] }
 0x314   :  { %5609 = vmatprep.subr.bf16.mxu1 %v9497_v20  ;;  %v2414_v20 = vld [vmem:[#allocation7 + $0x6d8] sm:$0xff]  ;;  %v9607_v24 = vcombine.high %v2405_v42, %v2413_v43  ;;  %v9606_v47 = vcombine.low %v2405_v42, %v2413_v43 }
 0x315   :  { %v9609_v26 = vcombine.high %v2406_v44, %v2414_v20  ;;  %v9608_v49 = vcombine.low %v2406_v44, %v2414_v20 }
 0x316   :  { %5528 = vmatpush1.bf16.msra.mxu0 %v9494_v27  ;;  %v2421_v27 = vld [vmem:[#allocation7 + $0x710] sm:$0xff] }
 0x317   :  { %5610 = vmatpush1.bf16.msra.mxu1 %v9496_v28  ;;  %5529 = vmatprep.subr.bf16.mxu0 %v9511_v45  ;;  %v2429_v28 = vld [vmem:[#allocation7 + $0x750] sm:$0xff]  ;;  %v2422_v45 = vld [vmem:[#allocation7 + $0x718] sm:$0xff] }
 0x318   :  { %5611 = vmatprep.subr.bf16.mxu1 %v9513_v46  ;;  %v2430_v46 = vld [vmem:[#allocation7 + $0x758] sm:$0xff]  ;;  %v9623_v61 = vcombine.high %v2421_v27, %v2429_v28  ;;  %v9622_v56 = vcombine.low %v2421_v27, %v2429_v28 }
 0x319   :  { %v9625_v50 = vcombine.high %v2422_v45, %v2430_v46  ;;  %v9624_v13 = vcombine.low %v2422_v45, %v2430_v46 }
 0x31a   :  { %5530 = vmatpush1.bf16.msra.mxu0 %v9510_v51  ;;  %v2437_v51 = vld [vmem:[#allocation7 + $0x790] sm:$0xff] }
 0x31b   :  { %5612 = vmatpush1.bf16.msra.mxu1 %v9512_v52  ;;  %5531 = vmatprep.subr.bf16.mxu0 %v9527_v54  ;;  %v2445_v52 = vld [vmem:[#allocation7 + $0x7d0] sm:$0xff]  ;;  %v2438_v54 = vld [vmem:[#allocation7 + $0x798] sm:$0xff] }
 0x31c   :  { %5613 = vmatprep.subr.bf16.mxu1 %v9529_v55  ;;  %v2446_v55 = vld [vmem:[#allocation7 + $0x7d8] sm:$0xff]  ;;  %v9639_v57 = vcombine.high %v2437_v51, %v2445_v52  ;;  %v9638_v3 = vcombine.low %v2437_v51, %v2445_v52 }
 0x31d   :  { %v9641_v58 = vcombine.high %v2438_v54, %v2446_v55  ;;  %v9640_v7 = vcombine.low %v2438_v54, %v2446_v55 }
 0x31e   :  { %5532 = vmatpush1.bf16.msra.mxu0 %v9526_v60  ;;  %v2453_v60 = vld [vmem:[#allocation7 + $0x810] sm:$0xff] }
 0x31f   :  { %5614 = vmatpush1.bf16.msra.mxu1 %v9528_v62  ;;  %5533 = vmatprep.subr.bf16.mxu0 %v9543_v1  ;;  %v2461_v62 = vld [vmem:[#allocation7 + $0x850] sm:$0xff]  ;;  %v2454_v1 = vld [vmem:[#allocation7 + $0x818] sm:$0xff] }
 0x320   :  { %5615 = vmatprep.subr.bf16.mxu1 %v9545_v2  ;;  %v2462_v2 = vld [vmem:[#allocation7 + $0x858] sm:$0xff]  ;;  %v9655_v10 = vcombine.high %v2453_v60, %v2461_v62 }
 0x321   :  { %v9657_v11 = vcombine.high %v2454_v1, %v2462_v2  ;;  %v9656_v31 = vcombine.low %v2454_v1, %v2462_v2 }
 0x322   :  { %5534 = vmatpush1.bf16.msra.mxu0 %v9542_v14  ;;  %v2469_v14 = vld [vmem:[#allocation7 + $0x890] sm:$0xff] }
 0x323   :  { %5616 = vmatpush1.bf16.msra.mxu1 %v9544_v21  ;;  %5535 = vmatprep.subr.bf16.mxu0 %v9559_v25  ;;  %v2477_v21 = vld [vmem:[#allocation7 + $0x8d0] sm:$0xff]  ;;  %v9654_v25 = vcombine.low %v2453_v60, %v2461_v62 }
 0x324   :  { %5617 = vmatprep.subr.bf16.mxu1 %v9561_v29  ;;  %v2470_v29 = vld [vmem:[#allocation7 + $0x898] sm:$0xff]  ;;  %v9671_v32 = vcombine.high %v2469_v14, %v2477_v21  ;;  %v9670_v63 = vcombine.low %v2469_v14, %v2477_v21 }
 0x325   :  { %v9672_v37 = vcombine.low %v2470_v29, %v2478_v30 }
 0x326   :  { %5536 = vmatpush1.bf16.msra.mxu0 %v9558_v16  ;;  %v2493_v16 = vld [vmem:[#allocation7 + $0x950] sm:$0xff] }
 0x327   :  { %5618 = vmatpush1.bf16.msra.mxu1 %v9560_v34  ;;  %5537 = vmatprep.subr.bf16.mxu0 %v9575_v36  ;;  %v9673_v34 = vcombine.high %v2470_v29, %v2478_v30  ;;  %v2486_v36 = vld [vmem:[#allocation7 + $0x918] sm:$0xff]  ;;  %v9687_v18 = vcombine.high %v2485_v33, %v2493_v16  ;;  %v9686_v42 = vcombine.low %v2485_v33, %v2493_v16  ;;  %v2581_v30 = vld [vmem:[#allocation7 + $0xc10] sm:$0xff] }
 0x328   :  { %5619 = vmatprep.subr.bf16.mxu1 %v9577_v59  ;;  %v2494_v59 = vld [vmem:[#allocation7 + $0x958] sm:$0xff] }
 0x329   :  { %v9689_v0 = vcombine.high %v2486_v36, %v2494_v59  ;;  %v9688_v43 = vcombine.low %v2486_v36, %v2494_v59  ;;  %v2590_v33 = vld [vmem:[#allocation7 + $0xc58] sm:$0xff] }
 0x32a   :  { %5538 = vmatpush1.bf16.msra.mxu0 %v9574_v6  ;;  %v2501_v6 = vld [vmem:[#allocation7 + $0x990] sm:$0xff] }
 0x32b   :  { %5620 = vmatpush1.bf16.msra.mxu1 %v9576_v39  ;;  %5539 = vmatprep.subr.bf16.mxu0 %v9591_v40  ;;  %v2509_v39 = vld [vmem:[#allocation7 + $0x9d0] sm:$0xff]  ;;  %v2502_v40 = vld [vmem:[#allocation7 + $0x998] sm:$0xff] }
 0x32c   :  { %5621 = vmatprep.subr.bf16.mxu1 %v9593_v41  ;;  %v2510_v41 = vld [vmem:[#allocation7 + $0x9d8] sm:$0xff]  ;;  %v9703_v44 = vcombine.high %v2501_v6, %v2509_v39  ;;  %v9702_v27 = vcombine.low %v2501_v6, %v2509_v39 }
 0x32d   :  { %v9705_v20 = vcombine.high %v2502_v40, %v2510_v41  ;;  %v9704_v28 = vcombine.low %v2502_v40, %v2510_v41 }
 0x32e   :  { %5540 = vmatpush1.bf16.msra.mxu0 %v9590_v23  ;;  %v2517_v23 = vld [vmem:[#allocation7 + $0xa10] sm:$0xff] }
 0x32f   :  { %5622 = vmatpush1.bf16.msra.mxu1 %v9592_v53  ;;  %5541 = vmatprep.subr.bf16.mxu0 %v9607_v24  ;;  %v2525_v53 = vld [vmem:[#allocation7 + $0xa50] sm:$0xff]  ;;  %v2518_v24 = vld [vmem:[#allocation7 + $0xa18] sm:$0xff] }
 0x330   :  { %5623 = vmatprep.subr.bf16.mxu1 %v9609_v26  ;;  %v2526_v26 = vld [vmem:[#allocation7 + $0xa58] sm:$0xff]  ;;  %v9719_v45 = vcombine.high %v2517_v23, %v2525_v53  ;;  %v9718_v51 = vcombine.low %v2517_v23, %v2525_v53 }
 0x331   :  { %v9721_v46 = vcombine.high %v2518_v24, %v2526_v26  ;;  %v9720_v52 = vcombine.low %v2518_v24, %v2526_v26 }
 0x332   :  { %5542 = vmatpush1.bf16.msra.mxu0 %v9606_v47  ;;  %v2533_v47 = vld [vmem:[#allocation7 + $0xa90] sm:$0xff] }
 0x333   :  { %5624 = vmatpush1.bf16.msra.mxu1 %v9608_v49  ;;  %5543 = vmatprep.subr.bf16.mxu0 %v9623_v61  ;;  %v2541_v49 = vld [vmem:[#allocation7 + $0xad0] sm:$0xff]  ;;  %v2534_v61 = vld [vmem:[#allocation7 + $0xa98] sm:$0xff] }
 0x334   :  { %5625 = vmatprep.subr.bf16.mxu1 %v9625_v50  ;;  %v2542_v50 = vld [vmem:[#allocation7 + $0xad8] sm:$0xff]  ;;  %v9735_v54 = vcombine.high %v2533_v47, %v2541_v49  ;;  %v9734_v60 = vcombine.low %v2533_v47, %v2541_v49 }
 0x335   :  { %v9737_v55 = vcombine.high %v2534_v61, %v2542_v50  ;;  %v9736_v62 = vcombine.low %v2534_v61, %v2542_v50 }
 0x336   :  { %5544 = vmatpush1.bf16.msra.mxu0 %v9622_v56  ;;  %v2549_v56 = vld [vmem:[#allocation7 + $0xb10] sm:$0xff] }
 0x337   :  { %5626 = vmatpush1.bf16.msra.mxu1 %v9624_v13  ;;  %5545 = vmatprep.subr.bf16.mxu0 %v9639_v57  ;;  %v2557_v13 = vld [vmem:[#allocation7 + $0xb50] sm:$0xff]  ;;  %v2550_v57 = vld [vmem:[#allocation7 + $0xb18] sm:$0xff] }
 0x338   :  { %5627 = vmatprep.subr.bf16.mxu1 %v9641_v58  ;;  %v2558_v58 = vld [vmem:[#allocation7 + $0xb58] sm:$0xff]  ;;  %v9751_v1 = vcombine.high %v2549_v56, %v2557_v13  ;;  %v9750_v14 = vcombine.low %v2549_v56, %v2557_v13 }
 0x339   :  { %v9753_v2 = vcombine.high %v2550_v57, %v2558_v58  ;;  %v9752_v21 = vcombine.low %v2550_v57, %v2558_v58 }
 0x33a   :  { %5546 = vmatpush1.bf16.msra.mxu0 %v9638_v3  ;;  %v2565_v3 = vld [vmem:[#allocation7 + $0xb90] sm:$0xff] }
 0x33b   :  { %5628 = vmatpush1.bf16.msra.mxu1 %v9640_v7  ;;  %5556 = vmatprep.subr.bf16.mxu0 %v9655_v10  ;;  %v2573_v7 = vld [vmem:[#allocation7 + $0xbd0] sm:$0xff]  ;;  %v2566_v10 = vld [vmem:[#allocation7 + $0xb98] sm:$0xff] }
 0x33c   :  { %5638 = vmatprep.subr.bf16.mxu1 %v9657_v11  ;;  %v2574_v11 = vld [vmem:[#allocation7 + $0xbd8] sm:$0xff]  ;;  %v9766_v16 = vcombine.low %v2565_v3, %v2573_v7 }
 0x33d   :  { %5548 = vmatmul.mubr.bf16.vlgmr.msra.gmra.mrb[20].mxu0 %v11293_v35  ;;  %v9769_v29 = vcombine.high %v2566_v10, %v2574_v11 }
 0x33e   :  { %5630 = vmatmul.mubr.bf16.vlgmr.msra.gmra.mrb[20].mxu1 %v11293_v35  ;;  %5557 = vmatpush1.bf16.msra.mxu0 %v9654_v25  ;;  %v9767_v25 = vcombine.high %v2565_v3, %v2573_v7 }
 0x33f   :  { %5588 = vmatprep.mubr.bf16.mxu0 %v11297_v38  ;;  %5639 = vmatpush1.bf16.msra.mxu1 %v9656_v31  ;;  %v2589_v31 = vld [vmem:[#allocation7 + $0xc50] sm:$0xff] }
 0x340   :  { %5670 = vmatprep.mubr.bf16.mxu1 %v11297_v38  ;;  %5558 = vmatprep.subr.bf16.mxu0 %v9671_v32  ;;  %v2582_v32 = vld [vmem:[#allocation7 + $0xc18] sm:$0xff]  ;;  %v9783_v36 = vcombine.high %v2581_v30, %v2589_v31  ;;  %v9782_v6 = vcombine.low %v2581_v30, %v2589_v31 }
 0x341   :  { %5640 = vmatprep.subr.bf16.mxu1 %v9673_v34  ;;  %v9768_v34 = vcombine.low %v2566_v10, %v2574_v11  ;;  %v9785_v59 = vcombine.high %v2582_v32, %v2590_v33  ;;  %v9784_v39 = vcombine.low %v2582_v32, %v2590_v33 }
 0x342   :  { %5559 = vmatpush1.bf16.msra.mxu0 %v9670_v63  ;;  %v2597_v63 = vld [vmem:[#allocation7 + $0xc90] sm:$0xff] }
 0x343   :  { %5641 = vmatpush1.bf16.msra.mxu1 %v9672_v37  ;;  %5560 = vmatprep.subr.bf16.mxu0 %v9687_v18  ;;  %v2605_v37 = vld [vmem:[#allocation7 + $0xcd0] sm:$0xff]  ;;  %v2598_v18 = vld [vmem:[#allocation7 + $0xc98] sm:$0xff] }
 0x344   :  { %5642 = vmatprep.subr.bf16.mxu1 %v9689_v0  ;;  %v2606_v0 = vld [vmem:[#allocation7 + $0xcd8] sm:$0xff]  ;;  %v9799_v40 = vcombine.high %v2597_v63, %v2605_v37  ;;  %v9798_v23 = vcombine.low %v2597_v63, %v2605_v37 }
 0x345   :  { %v9801_v41 = vcombine.high %v2598_v18, %v2606_v0  ;;  %v9800_v53 = vcombine.low %v2598_v18, %v2606_v0 }
 0x346   :  { %5561 = vmatpush1.bf16.msra.mxu0 %v9686_v42  ;;  %v2613_v42 = vld [vmem:[#allocation7 + $0xd10] sm:$0xff] }
 0x347   :  { %5643 = vmatpush1.bf16.msra.mxu1 %v9688_v43  ;;  %5562 = vmatprep.subr.bf16.mxu0 %v9703_v44  ;;  %v2621_v43 = vld [vmem:[#allocation7 + $0xd50] sm:$0xff]  ;;  %v2614_v44 = vld [vmem:[#allocation7 + $0xd18] sm:$0xff] }
 0x348   :  { %5644 = vmatprep.subr.bf16.mxu1 %v9705_v20  ;;  %v2622_v20 = vld [vmem:[#allocation7 + $0xd58] sm:$0xff]  ;;  %v9815_v24 = vcombine.high %v2613_v42, %v2621_v43  ;;  %v9814_v47 = vcombine.low %v2613_v42, %v2621_v43 }
 0x349   :  { %v9817_v26 = vcombine.high %v2614_v44, %v2622_v20  ;;  %v9816_v49 = vcombine.low %v2614_v44, %v2622_v20 }
 0x34a   :  { %5563 = vmatpush1.bf16.msra.mxu0 %v9702_v27  ;;  %v2629_v27 = vld [vmem:[#allocation7 + $0xd90] sm:$0xff] }
 0x34b   :  { %5645 = vmatpush1.bf16.msra.mxu1 %v9704_v28  ;;  %5564 = vmatprep.subr.bf16.mxu0 %v9719_v45  ;;  %v2637_v28 = vld [vmem:[#allocation7 + $0xdd0] sm:$0xff]  ;;  %v2630_v45 = vld [vmem:[#allocation7 + $0xd98] sm:$0xff] }
 0x34c   :  { %5646 = vmatprep.subr.bf16.mxu1 %v9721_v46  ;;  %v2638_v46 = vld [vmem:[#allocation7 + $0xdd8] sm:$0xff]  ;;  %v9831_v61 = vcombine.high %v2629_v27, %v2637_v28  ;;  %v9830_v56 = vcombine.low %v2629_v27, %v2637_v28  ;;  %v2224_v27 = vld [vmem:[#allocation7 + $0xe8] sm:$0xff] }
 0x34d   :  { %v9833_v50 = vcombine.high %v2630_v45, %v2638_v46  ;;  %v9832_v13 = vcombine.low %v2630_v45, %v2638_v46  ;;  %v2231_v46 = vld [vmem:[#allocation7 + $0x120] sm:$0xff] }
 0x34e   :  { %5565 = vmatpush1.bf16.msra.mxu0 %v9718_v51  ;;  %v2645_v51 = vld [vmem:[#allocation7 + $0xe10] sm:$0xff] }
 0x34f   :  { %5647 = vmatpush1.bf16.msra.mxu1 %v9720_v52  ;;  %5566 = vmatprep.subr.bf16.mxu0 %v9735_v54  ;;  %v2653_v52 = vld [vmem:[#allocation7 + $0xe50] sm:$0xff]  ;;  %v2646_v54 = vld [vmem:[#allocation7 + $0xe18] sm:$0xff] }
 0x350   :  { %5648 = vmatprep.subr.bf16.mxu1 %v9737_v55  ;;  %v2654_v55 = vld [vmem:[#allocation7 + $0xe58] sm:$0xff]  ;;  %v9847_v57 = vcombine.high %v2645_v51, %v2653_v52  ;;  %v9846_v3 = vcombine.low %v2645_v51, %v2653_v52 }
 0x351   :  { %v9849_v58 = vcombine.high %v2646_v54, %v2654_v55  ;;  %v9848_v7 = vcombine.low %v2646_v54, %v2654_v55 }
 0x352   :  { %5567 = vmatpush1.bf16.msra.mxu0 %v9734_v60  ;;  %v2661_v60 = vld [vmem:[#allocation7 + $0xe90] sm:$0xff] }
 0x353   :  { %5649 = vmatpush1.bf16.msra.mxu1 %v9736_v62  ;;  %5568 = vmatprep.subr.bf16.mxu0 %v9751_v1  ;;  %v2669_v62 = vld [vmem:[#allocation7 + $0xed0] sm:$0xff]  ;;  %v2662_v1 = vld [vmem:[#allocation7 + $0xe98] sm:$0xff] }
 0x354   :  { %5650 = vmatprep.subr.bf16.mxu1 %v9753_v2  ;;  %v2670_v2 = vld [vmem:[#allocation7 + $0xed8] sm:$0xff]  ;;  %v9863_v10 = vcombine.high %v2661_v60, %v2669_v62  ;;  %v9862_v30 = vcombine.low %v2661_v60, %v2669_v62 }
 0x355   :  { %v9865_v11 = vcombine.high %v2662_v1, %v2670_v2  ;;  %v9864_v31 = vcombine.low %v2662_v1, %v2670_v2 }
 0x356   :  { %5569 = vmatpush1.bf16.msra.mxu0 %v9750_v14  ;;  %v2677_v14 = vld [vmem:[#allocation7 + $0xf10] sm:$0xff] }
 0x357   :  { %5651 = vmatpush1.bf16.msra.mxu1 %v9752_v21  ;;  %5570 = vmatprep.subr.bf16.mxu0 %v9767_v25  ;;  %v2685_v21 = vld [vmem:[#allocation7 + $0xf50] sm:$0xff]  ;;  %v2678_v25 = vld [vmem:[#allocation7 + $0xf18] sm:$0xff] }
 0x358   :  { %5652 = vmatprep.subr.bf16.mxu1 %v9769_v29  ;;  %v2686_v29 = vld [vmem:[#allocation7 + $0xf58] sm:$0xff]  ;;  %v9879_v32 = vcombine.high %v2677_v14, %v2685_v21  ;;  %v9878_v63 = vcombine.low %v2677_v14, %v2685_v21 }
 0x359   :  { %v9881_v33 = vcombine.high %v2678_v25, %v2686_v29  ;;  %v9880_v37 = vcombine.low %v2678_v25, %v2686_v29 }
 0x35a   :  { %5571 = vmatpush1.bf16.msra.mxu0 %v9766_v16  ;;  %v2693_v16 = vld [vmem:[#allocation7 + $0xf90] sm:$0xff] }
 0x35b   :  { %5653 = vmatpush1.bf16.msra.mxu1 %v9768_v34  ;;  %5572 = vmatprep.subr.bf16.mxu0 %v9783_v36  ;;  %v2701_v34 = vld [vmem:[#allocation7 + $0xfd0] sm:$0xff]  ;;  %v2694_v36 = vld [vmem:[#allocation7 + $0xf98] sm:$0xff] }
 0x35c   :  { %5654 = vmatprep.subr.bf16.mxu1 %v9785_v59  ;;  %v2702_v59 = vld [vmem:[#allocation7 + $0xfd8] sm:$0xff]  ;;  %v9895_v18 = vcombine.high %v2693_v16, %v2701_v34  ;;  %v9894_v42 = vcombine.low %v2693_v16, %v2701_v34 }
 0x35d   :  { %v9897_v0 = vcombine.high %v2694_v36, %v2702_v59  ;;  %v9896_v43 = vcombine.low %v2694_v36, %v2702_v59 }
 0x35e   :  { %5573 = vmatpush1.bf16.msra.mxu0 %v9782_v6  ;;  %v2199_v6 = vld [vmem:[#allocation7 + $0x20] sm:$0xff] }
 0x35f   :  { %5655 = vmatpush1.bf16.msra.mxu1 %v9784_v39  ;;  %5574 = vmatprep.subr.bf16.mxu0 %v9799_v40  ;;  %v2207_v39 = vld [vmem:[#allocation7 + $0x60] sm:$0xff]  ;;  %v2200_v40 = vld [vmem:[#allocation7 + $0x28] sm:$0xff] }
 0x360   :  { %5656 = vmatprep.subr.bf16.mxu1 %v9801_v41  ;;  %v2208_v41 = vld [vmem:[#allocation7 + $0x68] sm:$0xff]  ;;  %v9403_v44 = vcombine.high %v2199_v6, %v2207_v39 }
 0x361   :  { %v9405_v20 = vcombine.high %v2200_v40, %v2208_v41  ;;  %v9404_v28 = vcombine.low %v2200_v40, %v2208_v41 }
 0x362   :  { %5575 = vmatpush1.bf16.msra.mxu0 %v9798_v23  ;;  %v2215_v23 = vld [vmem:[#allocation7 + $0xa0] sm:$0xff] }
 0x363   :  { %5657 = vmatpush1.bf16.msra.mxu1 %v9800_v53  ;;  %5576 = vmatprep.subr.bf16.mxu0 %v9815_v24  ;;  %v2223_v53 = vld [vmem:[#allocation7 + $0xe0] sm:$0xff]  ;;  %v9402_v24 = vcombine.low %v2199_v6, %v2207_v39 }
 0x364   :  { %5658 = vmatprep.subr.bf16.mxu1 %v9817_v26  ;;  %v2216_v26 = vld [vmem:[#allocation7 + $0xa8] sm:$0xff]  ;;  %v9419_v45 = vcombine.high %v2215_v23, %v2223_v53  ;;  %v9418_v51 = vcombine.low %v2215_v23, %v2223_v53 }
 0x365   :  { %v9420_v52 = vcombine.low %v2216_v26, %v2224_v27 }
 0x366   :  { %5577 = vmatpush1.bf16.msra.mxu0 %v9814_v47  ;;  %v2239_v47 = vld [vmem:[#allocation7 + $0x160] sm:$0xff] }
 0x367   :  { %5659 = vmatpush1.bf16.msra.mxu1 %v9816_v49  ;;  %5578 = vmatprep.subr.bf16.mxu0 %v9831_v61  ;;  %v9421_v49 = vcombine.high %v2216_v26, %v2224_v27  ;;  %v2232_v61 = vld [vmem:[#allocation7 + $0x128] sm:$0xff]  ;;  %v9435_v54 = vcombine.high %v2231_v46, %v2239_v47  ;;  %v9434_v60 = vcombine.low %v2231_v46, %v2239_v47  ;;  %v2327_v27 = vld [vmem:[#allocation7 + $0x420] sm:$0xff] }
 0x368   :  { %5660 = vmatprep.subr.bf16.mxu1 %v9833_v50  ;;  %v2240_v50 = vld [vmem:[#allocation7 + $0x168] sm:$0xff] }
 0x369   :  { %v9437_v55 = vcombine.high %v2232_v61, %v2240_v50  ;;  %v9436_v62 = vcombine.low %v2232_v61, %v2240_v50  ;;  %v2336_v46 = vld [vmem:[#allocation7 + $0x468] sm:$0xff] }
 0x36a   :  { %5579 = vmatpush1.bf16.msra.mxu0 %v9830_v56  ;;  %v2247_v56 = vld [vmem:[#allocation7 + $0x1a0] sm:$0xff] }
 0x36b   :  { %5661 = vmatpush1.bf16.msra.mxu1 %v9832_v13  ;;  %5580 = vmatprep.subr.bf16.mxu0 %v9847_v57  ;;  %v2255_v13 = vld [vmem:[#allocation7 + $0x1e0] sm:$0xff]  ;;  %v2248_v57 = vld [vmem:[#allocation7 + $0x1a8] sm:$0xff] }
 0x36c   :  { %5662 = vmatprep.subr.bf16.mxu1 %v9849_v58  ;;  %v2256_v58 = vld [vmem:[#allocation7 + $0x1e8] sm:$0xff]  ;;  %v9451_v1 = vcombine.high %v2247_v56, %v2255_v13  ;;  %v9450_v14 = vcombine.low %v2247_v56, %v2255_v13 }
 0x36d   :  { %v9453_v2 = vcombine.high %v2248_v57, %v2256_v58  ;;  %v9452_v21 = vcombine.low %v2248_v57, %v2256_v58 }
 0x36e   :  { %5581 = vmatpush1.bf16.msra.mxu0 %v9846_v3  ;;  %v2263_v3 = vld [vmem:[#allocation7 + $0x220] sm:$0xff] }
 0x36f   :  { %5663 = vmatpush1.bf16.msra.mxu1 %v9848_v7  ;;  %5582 = vmatprep.subr.bf16.mxu0 %v9863_v10  ;;  %v2271_v7 = vld [vmem:[#allocation7 + $0x260] sm:$0xff]  ;;  %v2264_v10 = vld [vmem:[#allocation7 + $0x228] sm:$0xff] }
 0x370   :  { %5664 = vmatprep.subr.bf16.mxu1 %v9865_v11  ;;  %v2272_v11 = vld [vmem:[#allocation7 + $0x268] sm:$0xff]  ;;  %v9467_v25 = vcombine.high %v2263_v3, %v2271_v7  ;;  %v9466_v16 = vcombine.low %v2263_v3, %v2271_v7 }
 0x371   :  { %v9469_v29 = vcombine.high %v2264_v10, %v2272_v11  ;;  %v9468_v34 = vcombine.low %v2264_v10, %v2272_v11 }
 0x372   :  { %5583 = vmatpush1.bf16.msra.mxu0 %v9862_v30  ;;  %v2279_v30 = vld [vmem:[#allocation7 + $0x2a0] sm:$0xff] }
 0x373   :  { %5665 = vmatpush1.bf16.msra.mxu1 %v9864_v31  ;;  %5584 = vmatprep.subr.bf16.mxu0 %v9879_v32  ;;  %v2287_v31 = vld [vmem:[#allocation7 + $0x2e0] sm:$0xff]  ;;  %v2280_v32 = vld [vmem:[#allocation7 + $0x2a8] sm:$0xff] }
 0x374   :  { %5666 = vmatprep.subr.bf16.mxu1 %v9881_v33  ;;  %v2288_v33 = vld [vmem:[#allocation7 + $0x2e8] sm:$0xff]  ;;  %v9483_v36 = vcombine.high %v2279_v30, %v2287_v31  ;;  %v9482_v6 = vcombine.low %v2279_v30, %v2287_v31 }
 0x375   :  { %v9485_v59 = vcombine.high %v2280_v32, %v2288_v33  ;;  %v9484_v39 = vcombine.low %v2280_v32, %v2288_v33 }
 0x376   :  { %5585 = vmatpush1.bf16.msra.mxu0 %v9878_v63  ;;  %v2295_v63 = vld [vmem:[#allocation7 + $0x320] sm:$0xff] }
 0x377   :  { %5667 = vmatpush1.bf16.msra.mxu1 %v9880_v37  ;;  %5586 = vmatprep.subr.bf16.mxu0 %v9895_v18  ;;  %v2303_v37 = vld [vmem:[#allocation7 + $0x360] sm:$0xff]  ;;  %v2296_v18 = vld [vmem:[#allocation7 + $0x328] sm:$0xff] }
 0x378   :  { %5668 = vmatprep.subr.bf16.mxu1 %v9897_v0  ;;  %v2304_v0 = vld [vmem:[#allocation7 + $0x368] sm:$0xff]  ;;  %v9499_v40 = vcombine.high %v2295_v63, %v2303_v37  ;;  %v9498_v23 = vcombine.low %v2295_v63, %v2303_v37 }
 0x379   :  { %v9501_v41 = vcombine.high %v2296_v18, %v2304_v0  ;;  %v9500_v53 = vcombine.low %v2296_v18, %v2304_v0 }
 0x37a   :  { %5587 = vmatpush1.bf16.msra.mxu0 %v9894_v42  ;;  %v2311_v42 = vld [vmem:[#allocation7 + $0x3a0] sm:$0xff] }
 0x37b   :  { %5669 = vmatpush1.bf16.msra.mxu1 %v9896_v43  ;;  %5679 = vmatprep.subr.bf16.mxu0 %v9403_v44  ;;  %v2319_v43 = vld [vmem:[#allocation7 + $0x3e0] sm:$0xff]  ;;  %v2312_v44 = vld [vmem:[#allocation7 + $0x3a8] sm:$0xff] }
 0x37c   :  { %5761 = vmatprep.subr.bf16.mxu1 %v9405_v20  ;;  %v2320_v20 = vld [vmem:[#allocation7 + $0x3e8] sm:$0xff]  ;;  %v9514_v47 = vcombine.low %v2311_v42, %v2319_v43 }
 0x37d   :  { %5589 = vmatmul.mubr.bf16.vlgmr.msra.gmra.mrb[20].mxu0 %v11311_v48  ;;  %v9517_v26 = vcombine.high %v2312_v44, %v2320_v20 }
 0x37e   :  { %5671 = vmatmul.mubr.bf16.vlgmr.msra.gmra.mrb[20].mxu1 %v11311_v48  ;;  %5680 = vmatpush1.bf16.msra.mxu0 %v9402_v24  ;;  %v9515_v24 = vcombine.high %v2311_v42, %v2319_v43 }
 0x37f   :  { %5711 = vmatprep.mubr.bf16.mxu0 %v11291_v17  ;;  %5762 = vmatpush1.bf16.msra.mxu1 %v9404_v28  ;;  %v2335_v28 = vld [vmem:[#allocation7 + $0x460] sm:$0xff] }
 0x380   :  { %5793 = vmatprep.mubr.bf16.mxu1 %v11291_v17  ;;  %5681 = vmatprep.subr.bf16.mxu0 %v9419_v45  ;;  %v2328_v45 = vld [vmem:[#allocation7 + $0x428] sm:$0xff]  ;;  %v9531_v61 = vcombine.high %v2327_v27, %v2335_v28  ;;  %v9530_v56 = vcombine.low %v2327_v27, %v2335_v28 }
 0x381   :  { %5763 = vmatprep.subr.bf16.mxu1 %v9421_v49  ;;  %v9516_v49 = vcombine.low %v2312_v44, %v2320_v20  ;;  %v9533_v50 = vcombine.high %v2328_v45, %v2336_v46  ;;  %v9532_v13 = vcombine.low %v2328_v45, %v2336_v46 }
 0x382   :  { %5682 = vmatpush1.bf16.msra.mxu0 %v9418_v51  ;;  %v2343_v51 = vld [vmem:[#allocation7 + $0x4a0] sm:$0xff] }
 0x383   :  { %5764 = vmatpush1.bf16.msra.mxu1 %v9420_v52  ;;  %5683 = vmatprep.subr.bf16.mxu0 %v9435_v54  ;;  %v2351_v52 = vld [vmem:[#allocation7 + $0x4e0] sm:$0xff]  ;;  %v2344_v54 = vld [vmem:[#allocation7 + $0x4a8] sm:$0xff] }
 0x384   :  { %5765 = vmatprep.subr.bf16.mxu1 %v9437_v55  ;;  %v2352_v55 = vld [vmem:[#allocation7 + $0x4e8] sm:$0xff]  ;;  %v9547_v57 = vcombine.high %v2343_v51, %v2351_v52  ;;  %v9546_v3 = vcombine.low %v2343_v51, %v2351_v52 }
 0x385   :  { %v9549_v58 = vcombine.high %v2344_v54, %v2352_v55  ;;  %v9548_v7 = vcombine.low %v2344_v54, %v2352_v55 }
 0x386   :  { %5684 = vmatpush1.bf16.msra.mxu0 %v9434_v60  ;;  %v2359_v60 = vld [vmem:[#allocation7 + $0x520] sm:$0xff] }
 0x387   :  { %5766 = vmatpush1.bf16.msra.mxu1 %v9436_v62  ;;  %5685 = vmatprep.subr.bf16.mxu0 %v9451_v1  ;;  %v2367_v62 = vld [vmem:[#allocation7 + $0x560] sm:$0xff]  ;;  %v2360_v1 = vld [vmem:[#allocation7 + $0x528] sm:$0xff] }
 0x388   :  { %5767 = vmatprep.subr.bf16.mxu1 %v9453_v2  ;;  %v2368_v2 = vld [vmem:[#allocation7 + $0x568] sm:$0xff]  ;;  %v9563_v10 = vcombine.high %v2359_v60, %v2367_v62  ;;  %v9562_v30 = vcombine.low %v2359_v60, %v2367_v62 }
 0x389   :  { %v9565_v11 = vcombine.high %v2360_v1, %v2368_v2  ;;  %v9564_v31 = vcombine.low %v2360_v1, %v2368_v2 }
 0x38a   :  { %5686 = vmatpush1.bf16.msra.mxu0 %v9450_v14  ;;  %v2375_v14 = vld [vmem:[#allocation7 + $0x5a0] sm:$0xff] }
 0x38b   :  { %5768 = vmatpush1.bf16.msra.mxu1 %v9452_v21  ;;  %5687 = vmatprep.subr.bf16.mxu0 %v9467_v25  ;;  %v2383_v21 = vld [vmem:[#allocation7 + $0x5e0] sm:$0xff]  ;;  %v2376_v25 = vld [vmem:[#allocation7 + $0x5a8] sm:$0xff] }
 0x38c   :  { %5769 = vmatprep.subr.bf16.mxu1 %v9469_v29  ;;  %v2384_v29 = vld [vmem:[#allocation7 + $0x5e8] sm:$0xff]  ;;  %v9579_v32 = vcombine.high %v2375_v14, %v2383_v21  ;;  %v9578_v63 = vcombine.low %v2375_v14, %v2383_v21 }
 0x38d   :  { %v9581_v33 = vcombine.high %v2376_v25, %v2384_v29  ;;  %v9580_v37 = vcombine.low %v2376_v25, %v2384_v29  ;;  %v2480_v14 = vld [vmem:[#allocation7 + $0x8e8] sm:$0xff]  ;;  %v2487_v29 = vld [vmem:[#allocation7 + $0x920] sm:$0xff] }
 0x38e   :  { %5688 = vmatpush1.bf16.msra.mxu0 %v9466_v16  ;;  %v2391_v16 = vld [vmem:[#allocation7 + $0x620] sm:$0xff] }
 0x38f   :  { %5770 = vmatpush1.bf16.msra.mxu1 %v9468_v34  ;;  %5689 = vmatprep.subr.bf16.mxu0 %v9483_v36  ;;  %v2399_v34 = vld [vmem:[#allocation7 + $0x660] sm:$0xff]  ;;  %v2392_v36 = vld [vmem:[#allocation7 + $0x628] sm:$0xff] }
 0x390   :  { %5771 = vmatprep.subr.bf16.mxu1 %v9485_v59  ;;  %v2400_v59 = vld [vmem:[#allocation7 + $0x668] sm:$0xff]  ;;  %v9595_v18 = vcombine.high %v2391_v16, %v2399_v34  ;;  %v9594_v42 = vcombine.low %v2391_v16, %v2399_v34 }
 0x391   :  { %v9597_v0 = vcombine.high %v2392_v36, %v2400_v59  ;;  %v9596_v43 = vcombine.low %v2392_v36, %v2400_v59 }
 0x392   :  { %5690 = vmatpush1.bf16.msra.mxu0 %v9482_v6  ;;  %v2407_v6 = vld [vmem:[#allocation7 + $0x6a0] sm:$0xff] }
 0x393   :  { %5772 = vmatpush1.bf16.msra.mxu1 %v9484_v39  ;;  %5691 = vmatprep.subr.bf16.mxu0 %v9499_v40  ;;  %v2415_v39 = vld [vmem:[#allocation7 + $0x6e0] sm:$0xff]  ;;  %v2408_v40 = vld [vmem:[#allocation7 + $0x6a8] sm:$0xff] }
 0x394   :  { %5773 = vmatprep.subr.bf16.mxu1 %v9501_v41  ;;  %v2416_v41 = vld [vmem:[#allocation7 + $0x6e8] sm:$0xff]  ;;  %v9611_v44 = vcombine.high %v2407_v6, %v2415_v39  ;;  %v9610_v27 = vcombine.low %v2407_v6, %v2415_v39 }
 0x395   :  { %v9613_v20 = vcombine.high %v2408_v40, %v2416_v41  ;;  %v9612_v28 = vcombine.low %v2408_v40, %v2416_v41 }
 0x396   :  { %5692 = vmatpush1.bf16.msra.mxu0 %v9498_v23  ;;  %v2423_v23 = vld [vmem:[#allocation7 + $0x720] sm:$0xff] }
 0x397   :  { %5774 = vmatpush1.bf16.msra.mxu1 %v9500_v53  ;;  %5693 = vmatprep.subr.bf16.mxu0 %v9515_v24  ;;  %v2431_v53 = vld [vmem:[#allocation7 + $0x760] sm:$0xff]  ;;  %v2424_v24 = vld [vmem:[#allocation7 + $0x728] sm:$0xff] }
 0x398   :  { %5775 = vmatprep.subr.bf16.mxu1 %v9517_v26  ;;  %v2432_v26 = vld [vmem:[#allocation7 + $0x768] sm:$0xff]  ;;  %v9627_v45 = vcombine.high %v2423_v23, %v2431_v53  ;;  %v9626_v51 = vcombine.low %v2423_v23, %v2431_v53 }
 0x399   :  { %v9629_v46 = vcombine.high %v2424_v24, %v2432_v26  ;;  %v9628_v52 = vcombine.low %v2424_v24, %v2432_v26 }
 0x39a   :  { %5694 = vmatpush1.bf16.msra.mxu0 %v9514_v47  ;;  %v2439_v47 = vld [vmem:[#allocation7 + $0x7a0] sm:$0xff] }
 0x39b   :  { %5776 = vmatpush1.bf16.msra.mxu1 %v9516_v49  ;;  %5695 = vmatprep.subr.bf16.mxu0 %v9531_v61  ;;  %v2447_v49 = vld [vmem:[#allocation7 + $0x7e0] sm:$0xff]  ;;  %v2440_v61 = vld [vmem:[#allocation7 + $0x7a8] sm:$0xff] }
 0x39c   :  { %5777 = vmatprep.subr.bf16.mxu1 %v9533_v50  ;;  %v2448_v50 = vld [vmem:[#allocation7 + $0x7e8] sm:$0xff]  ;;  %v9643_v54 = vcombine.high %v2439_v47, %v2447_v49  ;;  %v9642_v60 = vcombine.low %v2439_v47, %v2447_v49 }
 0x39d   :  { %v9645_v55 = vcombine.high %v2440_v61, %v2448_v50  ;;  %v9644_v62 = vcombine.low %v2440_v61, %v2448_v50 }
 0x39e   :  { %5696 = vmatpush1.bf16.msra.mxu0 %v9530_v56  ;;  %v2455_v56 = vld [vmem:[#allocation7 + $0x820] sm:$0xff] }
 0x39f   :  { %5778 = vmatpush1.bf16.msra.mxu1 %v9532_v13  ;;  %5697 = vmatprep.subr.bf16.mxu0 %v9547_v57  ;;  %v2463_v13 = vld [vmem:[#allocation7 + $0x860] sm:$0xff]  ;;  %v2456_v57 = vld [vmem:[#allocation7 + $0x828] sm:$0xff] }
 0x3a0   :  { %5779 = vmatprep.subr.bf16.mxu1 %v9549_v58  ;;  %v2464_v58 = vld [vmem:[#allocation7 + $0x868] sm:$0xff]  ;;  %v9659_v1 = vcombine.high %v2455_v56, %v2463_v13 }
 0x3a1   :  { %v9661_v2 = vcombine.high %v2456_v57, %v2464_v58  ;;  %v9660_v21 = vcombine.low %v2456_v57, %v2464_v58 }
 0x3a2   :  { %5698 = vmatpush1.bf16.msra.mxu0 %v9546_v3  ;;  %v2471_v3 = vld [vmem:[#allocation7 + $0x8a0] sm:$0xff] }
 0x3a3   :  { %5780 = vmatpush1.bf16.msra.mxu1 %v9548_v7  ;;  %5699 = vmatprep.subr.bf16.mxu0 %v9563_v10  ;;  %v2479_v7 = vld [vmem:[#allocation7 + $0x8e0] sm:$0xff]  ;;  %v9658_v10 = vcombine.low %v2455_v56, %v2463_v13 }
 0x3a4   :  { %5781 = vmatprep.subr.bf16.mxu1 %v9565_v11  ;;  %v2472_v11 = vld [vmem:[#allocation7 + $0x8a8] sm:$0xff]  ;;  %v9675_v25 = vcombine.high %v2471_v3, %v2479_v7  ;;  %v9674_v16 = vcombine.low %v2471_v3, %v2479_v7 }
 0x3a5   :  { %v9676_v34 = vcombine.low %v2472_v11, %v2480_v14 }
 0x3a6   :  { %5700 = vmatpush1.bf16.msra.mxu0 %v9562_v30  ;;  %v2495_v30 = vld [vmem:[#allocation7 + $0x960] sm:$0xff] }
 0x3a7   :  { %5782 = vmatpush1.bf16.msra.mxu1 %v9564_v31  ;;  %5701 = vmatprep.subr.bf16.mxu0 %v9579_v32  ;;  %v9677_v31 = vcombine.high %v2472_v11, %v2480_v14  ;;  %v2488_v32 = vld [vmem:[#allocation7 + $0x928] sm:$0xff]  ;;  %v9691_v36 = vcombine.high %v2487_v29, %v2495_v30  ;;  %v9690_v6 = vcombine.low %v2487_v29, %v2495_v30 }
 0x3a8   :  { %5783 = vmatprep.subr.bf16.mxu1 %v9581_v33  ;;  %v2496_v33 = vld [vmem:[#allocation7 + $0x968] sm:$0xff] }
 0x3a9   :  { %v9693_v59 = vcombine.high %v2488_v32, %v2496_v33  ;;  %v9692_v39 = vcombine.low %v2488_v32, %v2496_v33  ;;  %v2576_v11 = vld [vmem:[#allocation7 + $0xbe8] sm:$0xff] }
 0x3aa   :  { %5702 = vmatpush1.bf16.msra.mxu0 %v9578_v63  ;;  %v2503_v63 = vld [vmem:[#allocation7 + $0x9a0] sm:$0xff] }
 0x3ab   :  { %5784 = vmatpush1.bf16.msra.mxu1 %v9580_v37  ;;  %5703 = vmatprep.subr.bf16.mxu0 %v9595_v18  ;;  %v2511_v37 = vld [vmem:[#allocation7 + $0x9e0] sm:$0xff]  ;;  %v2504_v18 = vld [vmem:[#allocation7 + $0x9a8] sm:$0xff] }
 0x3ac   :  { %5785 = vmatprep.subr.bf16.mxu1 %v9597_v0  ;;  %v2512_v0 = vld [vmem:[#allocation7 + $0x9e8] sm:$0xff]  ;;  %v9707_v40 = vcombine.high %v2503_v63, %v2511_v37  ;;  %v9706_v23 = vcombine.low %v2503_v63, %v2511_v37 }
 0x3ad   :  { %v9709_v41 = vcombine.high %v2504_v18, %v2512_v0  ;;  %v9708_v53 = vcombine.low %v2504_v18, %v2512_v0 }
 0x3ae   :  { %5704 = vmatpush1.bf16.msra.mxu0 %v9594_v42  ;;  %v2519_v42 = vld [vmem:[#allocation7 + $0xa20] sm:$0xff] }
 0x3af   :  { %5786 = vmatpush1.bf16.msra.mxu1 %v9596_v43  ;;  %5705 = vmatprep.subr.bf16.mxu0 %v9611_v44  ;;  %v2527_v43 = vld [vmem:[#allocation7 + $0xa60] sm:$0xff]  ;;  %v2520_v44 = vld [vmem:[#allocation7 + $0xa28] sm:$0xff] }
 0x3b0   :  { %5787 = vmatprep.subr.bf16.mxu1 %v9613_v20  ;;  %v2528_v20 = vld [vmem:[#allocation7 + $0xa68] sm:$0xff]  ;;  %v9723_v24 = vcombine.high %v2519_v42, %v2527_v43  ;;  %v9722_v47 = vcombine.low %v2519_v42, %v2527_v43 }
 0x3b1   :  { %v9725_v26 = vcombine.high %v2520_v44, %v2528_v20  ;;  %v9724_v49 = vcombine.low %v2520_v44, %v2528_v20 }
 0x3b2   :  { %5706 = vmatpush1.bf16.msra.mxu0 %v9610_v27  ;;  %v2535_v27 = vld [vmem:[#allocation7 + $0xaa0] sm:$0xff] }
 0x3b3   :  { %5788 = vmatpush1.bf16.msra.mxu1 %v9612_v28  ;;  %5707 = vmatprep.subr.bf16.mxu0 %v9627_v45  ;;  %v2543_v28 = vld [vmem:[#allocation7 + $0xae0] sm:$0xff]  ;;  %v2536_v45 = vld [vmem:[#allocation7 + $0xaa8] sm:$0xff] }
 0x3b4   :  { %5789 = vmatprep.subr.bf16.mxu1 %v9629_v46  ;;  %v2544_v46 = vld [vmem:[#allocation7 + $0xae8] sm:$0xff]  ;;  %v9739_v61 = vcombine.high %v2535_v27, %v2543_v28  ;;  %v9738_v56 = vcombine.low %v2535_v27, %v2543_v28 }
 0x3b5   :  { %v9741_v50 = vcombine.high %v2536_v45, %v2544_v46  ;;  %v9740_v13 = vcombine.low %v2536_v45, %v2544_v46 }
 0x3b6   :  { %5708 = vmatpush1.bf16.msra.mxu0 %v9626_v51  ;;  %v2551_v51 = vld [vmem:[#allocation7 + $0xb20] sm:$0xff] }
 0x3b7   :  { %5790 = vmatpush1.bf16.msra.mxu1 %v9628_v52  ;;  %5709 = vmatprep.subr.bf16.mxu0 %v9643_v54  ;;  %v2559_v52 = vld [vmem:[#allocation7 + $0xb60] sm:$0xff]  ;;  %v2552_v54 = vld [vmem:[#allocation7 + $0xb28] sm:$0xff] }
 0x3b8   :  { %5791 = vmatprep.subr.bf16.mxu1 %v9645_v55  ;;  %v2560_v55 = vld [vmem:[#allocation7 + $0xb68] sm:$0xff]  ;;  %v9755_v57 = vcombine.high %v2551_v51, %v2559_v52 }
 0x3ba   :  { %5710 = vmatpush1.bf16.msra.mxu0 %v9642_v60 }
 0x3bb   :  { %5792 = vmatpush1.bf16.msra.mxu1 %v9644_v62  ;;  %5720 = vmatprep.subr.bf16.mxu0 %v9659_v1  ;;  %v9757_v62 = vcombine.high %v2552_v54, %v2560_v55  ;;  %v2567_v1 = vld [vmem:[#allocation7 + $0xba0] sm:$0xff] }
 0x3bc   :  { %5802 = vmatprep.subr.bf16.mxu1 %v9661_v2  ;;  %v2575_v2 = vld [vmem:[#allocation7 + $0xbe0] sm:$0xff] }
 0x3bd   :  { %5712 = vmatmul.mubr.bf16.vlgmr.msra.gmra.mrb[24].mxu0 %v11293_v35  ;;  %v9771_v32 = vcombine.high %v2567_v1, %v2575_v2  ;;  %v9770_v63 = vcombine.low %v2567_v1, %v2575_v2 }
 0x3be   :  { %5794 = vmatmul.mubr.bf16.vlgmr.msra.gmra.mrb[24].mxu1 %v11293_v35  ;;  %5721 = vmatpush1.bf16.msra.mxu0 %v9658_v10  ;;  %v2568_v10 = vld [vmem:[#allocation7 + $0xba8] sm:$0xff] }
 0x3bf   :  { %5752 = vmatprep.mubr.bf16.mxu0 %v11297_v38  ;;  %5803 = vmatpush1.bf16.msra.mxu1 %v9660_v21  ;;  %v9773_v33 = vcombine.high %v2568_v10, %v2576_v11  ;;  %v9772_v37 = vcombine.low %v2568_v10, %v2576_v11 }
 0x3c0   :  { %5834 = vmatprep.mubr.bf16.mxu1 %v11297_v38  ;;  %5722 = vmatprep.subr.bf16.mxu0 %v9675_v25  ;;  %v9754_v25 = vcombine.low %v2551_v51, %v2559_v52 }
 0x3c1   :  { %5804 = vmatprep.subr.bf16.mxu1 %v9677_v31  ;;  %v9756_v31 = vcombine.low %v2552_v54, %v2560_v55 }
 0x3c2   :  { %5723 = vmatpush1.bf16.msra.mxu0 %v9674_v16  ;;  %v2583_v16 = vld [vmem:[#allocation7 + $0xc20] sm:$0xff] }
 0x3c3   :  { %5805 = vmatpush1.bf16.msra.mxu1 %v9676_v34  ;;  %5724 = vmatprep.subr.bf16.mxu0 %v9691_v36  ;;  %v2591_v34 = vld [vmem:[#allocation7 + $0xc60] sm:$0xff]  ;;  %v2584_v36 = vld [vmem:[#allocation7 + $0xc28] sm:$0xff] }
 0x3c4   :  { %5806 = vmatprep.subr.bf16.mxu1 %v9693_v59  ;;  %v2592_v59 = vld [vmem:[#allocation7 + $0xc68] sm:$0xff]  ;;  %v9787_v18 = vcombine.high %v2583_v16, %v2591_v34  ;;  %v9786_v42 = vcombine.low %v2583_v16, %v2591_v34  ;;  %v2679_v16 = vld [vmem:[#allocation7 + $0xf20] sm:$0xff] }
 0x3c5   :  { %v9789_v0 = vcombine.high %v2584_v36, %v2592_v59  ;;  %v9788_v43 = vcombine.low %v2584_v36, %v2592_v59  ;;  %v2687_v34 = vld [vmem:[#allocation7 + $0xf60] sm:$0xff]  ;;  %v2680_v36 = vld [vmem:[#allocation7 + $0xf28] sm:$0xff] }
 0x3c6   :  { %5725 = vmatpush1.bf16.msra.mxu0 %v9690_v6  ;;  %v2599_v6 = vld [vmem:[#allocation7 + $0xca0] sm:$0xff]  ;;  %v2688_v59 = vld [vmem:[#allocation7 + $0xf68] sm:$0xff] }
 0x3c7   :  { %5807 = vmatpush1.bf16.msra.mxu1 %v9692_v39  ;;  %5726 = vmatprep.subr.bf16.mxu0 %v9707_v40  ;;  %v2607_v39 = vld [vmem:[#allocation7 + $0xce0] sm:$0xff]  ;;  %v2600_v40 = vld [vmem:[#allocation7 + $0xca8] sm:$0xff] }
 0x3c8   :  { %5808 = vmatprep.subr.bf16.mxu1 %v9709_v41  ;;  %v2608_v41 = vld [vmem:[#allocation7 + $0xce8] sm:$0xff]  ;;  %v9803_v44 = vcombine.high %v2599_v6, %v2607_v39  ;;  %v9802_v27 = vcombine.low %v2599_v6, %v2607_v39  ;;  %v2695_v6 = vld [vmem:[#allocation7 + $0xfa0] sm:$0xff] }
 0x3c9   :  { %v9805_v20 = vcombine.high %v2600_v40, %v2608_v41  ;;  %v9804_v28 = vcombine.low %v2600_v40, %v2608_v41  ;;  %v2703_v39 = vld [vmem:[#allocation7 + $0xfe0] sm:$0xff]  ;;  %v2696_v40 = vld [vmem:[#allocation7 + $0xfa8] sm:$0xff] }
 0x3ca   :  { %5727 = vmatpush1.bf16.msra.mxu0 %v9706_v23  ;;  %v2615_v23 = vld [vmem:[#allocation7 + $0xd20] sm:$0xff]  ;;  %v2704_v41 = vld [vmem:[#allocation7 + $0xfe8] sm:$0xff] }
 0x3cb   :  { %5809 = vmatpush1.bf16.msra.mxu1 %v9708_v53  ;;  %5728 = vmatprep.subr.bf16.mxu0 %v9723_v24  ;;  %v2623_v53 = vld [vmem:[#allocation7 + $0xd60] sm:$0xff]  ;;  %v2616_v24 = vld [vmem:[#allocation7 + $0xd28] sm:$0xff] }
 0x3cc   :  { %5810 = vmatprep.subr.bf16.mxu1 %v9725_v26  ;;  %v2624_v26 = vld [vmem:[#allocation7 + $0xd68] sm:$0xff]  ;;  %v9819_v45 = vcombine.high %v2615_v23, %v2623_v53  ;;  %v9818_v51 = vcombine.low %v2615_v23, %v2623_v53  ;;  %v2201_v23 = vld [vmem:[#allocation7 + $0x30] sm:$0xff] }
 0x3cd   :  { %v9821_v46 = vcombine.high %v2616_v24, %v2624_v26  ;;  %v9820_v52 = vcombine.low %v2616_v24, %v2624_v26  ;;  %v2209_v53 = vld [vmem:[#allocation7 + $0x70] sm:$0xff]  ;;  %v2202_v24 = vld [vmem:[#allocation7 + $0x38] sm:$0xff] }
 0x3ce   :  { %5729 = vmatpush1.bf16.msra.mxu0 %v9722_v47  ;;  %v2631_v47 = vld [vmem:[#allocation7 + $0xda0] sm:$0xff]  ;;  %v2210_v26 = vld [vmem:[#allocation7 + $0x78] sm:$0xff] }
 0x3cf   :  { %5811 = vmatpush1.bf16.msra.mxu1 %v9724_v49  ;;  %5730 = vmatprep.subr.bf16.mxu0 %v9739_v61  ;;  %v2639_v49 = vld [vmem:[#allocation7 + $0xde0] sm:$0xff]  ;;  %v2632_v61 = vld [vmem:[#allocation7 + $0xda8] sm:$0xff] }
 0x3d0   :  { %v11329_v58 = vpop.f32.mrb[16].mxu0  ;;  %v11331_v60 = vpop.f32.mrb[16].mxu1  ;;  %5812 = vmatprep.subr.bf16.mxu1 %v9741_v50  ;;  %v2640_v50 = vld [vmem:[#allocation7 + $0xde8] sm:$0xff]  ;;  %v9835_v54 = vcombine.high %v2631_v47, %v2639_v49  ;;  %v9834_v1 = vcombine.low %v2631_v47, %v2639_v49  ;;  %v2217_v47 = vld [vmem:[#allocation7 + $0xb0] sm:$0xff] }
 0x3d1   :  { %v11333_v3 = vpop.f32.mrb[17].mxu0  ;;  %v11335_v7 = vpop.f32.mrb[17].mxu1  ;;  %v9837_v55 = vcombine.high %v2632_v61, %v2640_v50  ;;  %v9836_v2 = vcombine.low %v2632_v61, %v2640_v50  ;;  %v2225_v49 = vld [vmem:[#allocation7 + $0xf0] sm:$0xff]  ;;  %v9406_v61 = vcombine.low %v2201_v23, %v2209_v53  ;;  %v2218_v50 = vld [vmem:[#allocation7 + $0xb8] sm:$0xff] }
 0x3d2   :  { %v5430_v14 = vpop.f32.mrb[18].mxu0  ;;  %v5512_v21 = vpop.f32.mrb[18].mxu1  ;;  %5731 = vmatpush1.bf16.msra.mxu0 %v9738_v56  ;;  %v2647_v56 = vld [vmem:[#allocation7 + $0xe20] sm:$0xff] }
 0x3d3   :  { %5813 = vmatpush1.bf16.msra.mxu1 %v9740_v13  ;;  %v5431_v29 = vpop.f32.mrb[19].mxu0  ;;  %v5513_v30 = vpop.f32.mrb[19].mxu1  ;;  %5732 = vmatprep.subr.bf16.mxu0 %v9755_v57  ;;  %v2655_v13 = vld [vmem:[#allocation7 + $0xe60] sm:$0xff]  ;;  %v2648_v57 = vld [vmem:[#allocation7 + $0xe28] sm:$0xff] }
 0x3d4   :  { %5814 = vmatprep.subr.bf16.mxu1 %v9757_v62  ;;  %v2656_v62 = vld [vmem:[#allocation7 + $0xe68] sm:$0xff]  ;;  %v9851_v10 = vcombine.high %v2647_v56, %v2655_v13  ;;  %v2663_v14 = vld [vmem:[#allocation7 + $0xea0] sm:$0xff]  ;;  %v9850_v30 = vcombine.low %v2647_v56, %v2655_v13  ;;  %v2241_v56 = vld [vmem:[#allocation7 + $0x170] sm:$0xff] }
 0x3d5   :  { %v9853_v11 = vcombine.high %v2648_v57, %v2656_v62  ;;  %v2671_v21 = vld [vmem:[#allocation7 + $0xee0] sm:$0xff]  ;;  %v2672_v29 = vld [vmem:[#allocation7 + $0xee8] sm:$0xff] }
 0x3d6   :  { %5733 = vmatpush1.bf16.msra.mxu0 %v9754_v25  ;;  %v2664_v25 = vld [vmem:[#allocation7 + $0xea8] sm:$0xff] }
 0x3d7   :  { %5815 = vmatpush1.bf16.msra.mxu1 %v9756_v31  ;;  %5734 = vmatprep.subr.bf16.mxu0 %v9771_v32  ;;  %v9852_v31 = vcombine.low %v2648_v57, %v2656_v62  ;;  %v9867_v32 = vcombine.high %v2663_v14, %v2671_v21  ;;  %v2234_v57 = vld [vmem:[#allocation7 + $0x138] sm:$0xff] }
 0x3d8   :  { %5816 = vmatprep.subr.bf16.mxu1 %v9773_v33  ;;  %v9869_v33 = vcombine.high %v2664_v25, %v2672_v29  ;;  %v2242_v62 = vld [vmem:[#allocation7 + $0x178] sm:$0xff] }
 0x3da   :  { %5735 = vmatpush1.bf16.msra.mxu0 %v9770_v63  ;;  %v9866_v63 = vcombine.low %v2663_v14, %v2671_v21  ;;  %v2249_v14 = vld [vmem:[#allocation7 + $0x1b0] sm:$0xff] }
 0x3db   :  { %5817 = vmatpush1.bf16.msra.mxu1 %v9772_v37  ;;  %5736 = vmatprep.subr.bf16.mxu0 %v9787_v18  ;;  %v9868_v37 = vcombine.low %v2664_v25, %v2672_v29  ;;  %v9883_v18 = vcombine.high %v2679_v16, %v2687_v34  ;;  %v2257_v21 = vld [vmem:[#allocation7 + $0x1f0] sm:$0xff]  ;;  %v2250_v25 = vld [vmem:[#allocation7 + $0x1b8] sm:$0xff] }
 0x3dc   :  { %5818 = vmatprep.subr.bf16.mxu1 %v9789_v0  ;;  %v9885_v0 = vcombine.high %v2680_v36, %v2688_v59  ;;  %v2258_v29 = vld [vmem:[#allocation7 + $0x1f8] sm:$0xff] }
 0x3de   :  { %5737 = vmatpush1.bf16.msra.mxu0 %v9786_v42  ;;  %v9882_v42 = vcombine.low %v2679_v16, %v2687_v34  ;;  %v2265_v16 = vld [vmem:[#allocation7 + $0x230] sm:$0xff] }
 0x3df   :  { %5819 = vmatpush1.bf16.msra.mxu1 %v9788_v43  ;;  %5738 = vmatprep.subr.bf16.mxu0 %v9803_v44  ;;  %v9884_v43 = vcombine.low %v2680_v36, %v2688_v59  ;;  %v9899_v44 = vcombine.high %v2695_v6, %v2703_v39  ;;  %v2273_v34 = vld [vmem:[#allocation7 + $0x270] sm:$0xff]  ;;  %v2266_v36 = vld [vmem:[#allocation7 + $0x238] sm:$0xff] }
 0x3e0   :  { %5820 = vmatprep.subr.bf16.mxu1 %v9805_v20  ;;  %v9901_v20 = vcombine.high %v2696_v40, %v2704_v41  ;;  %v2274_v59 = vld [vmem:[#allocation7 + $0x278] sm:$0xff] }
 0x3e2   :  { %5739 = vmatpush1.bf16.msra.mxu0 %v9802_v27  ;;  %v9898_v27 = vcombine.low %v2695_v6, %v2703_v39  ;;  %v2289_v6 = vld [vmem:[#allocation7 + $0x2f0] sm:$0xff]  ;;  %v2282_v39 = vld [vmem:[#allocation7 + $0x2b8] sm:$0xff] }
 0x3e3   :  { %5821 = vmatpush1.bf16.msra.mxu1 %v9804_v28  ;;  %5740 = vmatprep.subr.bf16.mxu0 %v9819_v45  ;;  %v9900_v28 = vcombine.low %v2696_v40, %v2704_v41  ;;  %v9407_v45 = vcombine.high %v2201_v23, %v2209_v53  ;;  %v2290_v40 = vld [vmem:[#allocation7 + $0x2f8] sm:$0xff]  ;;  %v9470_v41 = vcombine.low %v2265_v16, %v2273_v34  ;;  %v2305_v23 = vld [vmem:[#allocation7 + $0x370] sm:$0xff] }
 0x3e4   :  { %5822 = vmatprep.subr.bf16.mxu1 %v9821_v46  ;;  %v9409_v46 = vcombine.high %v2202_v24, %v2210_v26  ;;  %v2298_v53 = vld [vmem:[#allocation7 + $0x338] sm:$0xff] }
 0x3e6   :  { %5741 = vmatpush1.bf16.msra.mxu0 %v9818_v51  ;;  %v2226_v51 = vld [vmem:[#allocation7 + $0xf8] sm:$0xff] }
 0x3e7   :  { %5823 = vmatpush1.bf16.msra.mxu1 %v9820_v52  ;;  %5742 = vmatprep.subr.bf16.mxu0 %v9835_v54  ;;  %v9408_v52 = vcombine.low %v2202_v24, %v2210_v26  ;;  %v9423_v54 = vcombine.high %v2217_v47, %v2225_v49  ;;  %v9425_v13 = vcombine.high %v2218_v50, %v2226_v51  ;;  %v2306_v24 = vld [vmem:[#allocation7 + $0x378] sm:$0xff] }
 0x3e8   :  { %5824 = vmatprep.subr.bf16.mxu1 %v9837_v55  ;;  %v2233_v55 = vld [vmem:[#allocation7 + $0x130] sm:$0xff] }
 0x3ea   :  { %5743 = vmatpush1.bf16.msra.mxu0 %v9834_v1  ;;  %v9422_v1 = vcombine.low %v2217_v47, %v2225_v49  ;;  %v2321_v47 = vld [vmem:[#allocation7 + $0x3f0] sm:$0xff]  ;;  %v2314_v49 = vld [vmem:[#allocation7 + $0x3b8] sm:$0xff] }
 0x3eb   :  { %5825 = vmatpush1.bf16.msra.mxu1 %v9836_v2  ;;  %5744 = vmatprep.subr.bf16.mxu0 %v9851_v10  ;;  %v9424_v2 = vcombine.low %v2218_v50, %v2226_v51  ;;  %v9439_v10 = vcombine.high %v2233_v55, %v2241_v56  ;;  %v9504_v51 = vcombine.low %v2298_v53, %v2306_v24 }
 0x3ec   :  { %5826 = vmatprep.subr.bf16.mxu1 %v9853_v11  ;;  %v9441_v11 = vcombine.high %v2234_v57, %v2242_v62 }
 0x3ee   :  { %5745 = vmatpush1.bf16.msra.mxu0 %v9850_v30  ;;  %v9438_v30 = vcombine.low %v2233_v55, %v2241_v56  ;;  %v2329_v55 = vld [vmem:[#allocation7 + $0x430] sm:$0xff] }
 0x3ef   :  { %5827 = vmatpush1.bf16.msra.mxu1 %v9852_v31  ;;  %5746 = vmatprep.subr.bf16.mxu0 %v9867_v32  ;;  %v9440_v31 = vcombine.low %v2234_v57, %v2242_v62  ;;  %v9455_v32 = vcombine.high %v2249_v14, %v2257_v21  ;;  %v2337_v56 = vld [vmem:[#allocation7 + $0x470] sm:$0xff]  ;;  %v2338_v57 = vld [vmem:[#allocation7 + $0x478] sm:$0xff] }
 0x3f0   :  { %5828 = vmatprep.subr.bf16.mxu1 %v9869_v33  ;;  %v9457_v33 = vcombine.high %v2250_v25, %v2258_v29 }
 0x3f2   :  { %5747 = vmatpush1.bf16.msra.mxu0 %v9866_v63  ;;  %v9456_v63 = vcombine.low %v2250_v25, %v2258_v29  ;;  %v2354_v25 = vld [vmem:[#allocation7 + $0x4f8] sm:$0xff]  ;;  %v9534_v29 = vcombine.low %v2329_v55, %v2337_v56 }
 0x3f3   :  { %5829 = vmatpush1.bf16.msra.mxu1 %v9868_v37  ;;  %5748 = vmatprep.subr.bf16.mxu0 %v9883_v18  ;;  %v9471_v37 = vcombine.high %v2265_v16, %v2273_v34  ;;  %v9473_v18 = vcombine.high %v2266_v36, %v2274_v59  ;;  %v2369_v16 = vld [vmem:[#allocation7 + $0x570] sm:$0xff]  ;;  %v2362_v34 = vld [vmem:[#allocation7 + $0x538] sm:$0xff] }
 0x3f4   :  { %5830 = vmatprep.subr.bf16.mxu1 %v9885_v0  ;;  %v2281_v0 = vld [vmem:[#allocation7 + $0x2b0] sm:$0xff] }
 0x3f5   :  { %v9486_v26 = vcombine.low %v2281_v0, %v2289_v6 }
 0x3f6   :  { %5749 = vmatpush1.bf16.msra.mxu0 %v9882_v42  ;;  %v9472_v42 = vcombine.low %v2266_v36, %v2274_v59  ;;  %v2370_v36 = vld [vmem:[#allocation7 + $0x578] sm:$0xff] }
 0x3f7   :  { %5831 = vmatpush1.bf16.msra.mxu1 %v9884_v43  ;;  %5750 = vmatprep.subr.bf16.mxu0 %v9899_v44  ;;  %v9487_v43 = vcombine.high %v2281_v0, %v2289_v6  ;;  %v9489_v44 = vcombine.high %v2282_v39, %v2290_v40  ;;  %v2385_v0 = vld [vmem:[#allocation7 + $0x5f0] sm:$0xff]  ;;  %v2378_v6 = vld [vmem:[#allocation7 + $0x5b8] sm:$0xff] }
 0x3f8   :  { %5832 = vmatprep.subr.bf16.mxu1 %v9901_v20  ;;  %v2297_v20 = vld [vmem:[#allocation7 + $0x330] sm:$0xff] }
 0x3f9   :  { %v9502_v50 = vcombine.low %v2297_v20, %v2305_v23 }
 0x3fa   :  { %5751 = vmatpush1.bf16.msra.mxu0 %v9898_v27  ;;  %v9488_v27 = vcombine.low %v2282_v39, %v2290_v40  ;;  %v2386_v39 = vld [vmem:[#allocation7 + $0x5f8] sm:$0xff] }
 0x3fb   :  { %5833 = vmatpush1.bf16.msra.mxu1 %v9900_v28  ;;  %5843 = vmatprep.subr.bf16.mxu0 %v9407_v45  ;;  %v9503_v28 = vcombine.high %v2297_v20, %v2305_v23  ;;  %v9505_v45 = vcombine.high %v2298_v53, %v2306_v24  ;;  %v2401_v20 = vld [vmem:[#allocation7 + $0x670] sm:$0xff]  ;;  %v2394_v23 = vld [vmem:[#allocation7 + $0x638] sm:$0xff] }
 0x3fc   :  { %5925 = vmatprep.subr.bf16.mxu1 %v9409_v46  ;;  %v2313_v46 = vld [vmem:[#allocation7 + $0x3b0] sm:$0xff]  ;;  %v2402_v53 = vld [vmem:[#allocation7 + $0x678] sm:$0xff] }
 0x3fd   :  { %5753 = vmatmul.mubr.bf16.vlgmr.msra.gmra.mrb[24].mxu0 %v11311_v48  ;;  %v9518_v62 = vcombine.low %v2313_v46, %v2321_v47 }
 0x3fe   :  { %5835 = vmatmul.mubr.bf16.vlgmr.msra.gmra.mrb[24].mxu1 %v11311_v48  ;;  %5844 = vmatpush1.bf16.msra.mxu0 %v9406_v61  ;;  %v2322_v61 = vld [vmem:[#allocation7 + $0x3f8] sm:$0xff] }
 0x3ff   :  { %5875 = vmatprep.mubr.bf16.mxu0 %v11291_v17  ;;  %5926 = vmatpush1.bf16.msra.mxu1 %v9408_v52  ;;  %v9519_v52 = vcombine.high %v2313_v46, %v2321_v47  ;;  %v2417_v46 = vld [vmem:[#allocation7 + $0x6f0] sm:$0xff]  ;;  %v2410_v47 = vld [vmem:[#allocation7 + $0x6b8] sm:$0xff] }
 0x400   :  { %5957 = vmatprep.mubr.bf16.mxu1 %v11291_v17  ;;  %5845 = vmatprep.subr.bf16.mxu0 %v9423_v54  ;;  %v9454_v17 = vcombine.low %v2249_v14, %v2257_v21  ;;  %v9521_v54 = vcombine.high %v2314_v49, %v2322_v61  ;;  %v2353_v14 = vld [vmem:[#allocation7 + $0x4f0] sm:$0xff]  ;;  %v2346_v21 = vld [vmem:[#allocation7 + $0x4b8] sm:$0xff] }
 0x401   :  { %5927 = vmatprep.subr.bf16.mxu1 %v9425_v13  ;;  %v2330_v13 = vld [vmem:[#allocation7 + $0x438] sm:$0xff] }
 0x402   :  { %5846 = vmatpush1.bf16.msra.mxu0 %v9422_v1  ;;  %v9520_v1 = vcombine.low %v2314_v49, %v2322_v61  ;;  %v2418_v49 = vld [vmem:[#allocation7 + $0x6f8] sm:$0xff] }
 0x403   :  { %5928 = vmatpush1.bf16.msra.mxu1 %v9424_v2  ;;  %5847 = vmatprep.subr.bf16.mxu0 %v9439_v10  ;;  %v9535_v2 = vcombine.high %v2329_v55, %v2337_v56  ;;  %v9537_v10 = vcombine.high %v2330_v13, %v2338_v57  ;;  %v2433_v55 = vld [vmem:[#allocation7 + $0x770] sm:$0xff]  ;;  %v2426_v56 = vld [vmem:[#allocation7 + $0x738] sm:$0xff] }
 0x404   :  { %5929 = vmatprep.subr.bf16.mxu1 %v9441_v11  ;;  %v2345_v11 = vld [vmem:[#allocation7 + $0x4b0] sm:$0xff] }
 0x405   :  { %v9550_v59 = vcombine.low %v2345_v11, %v2353_v14 }
 0x406   :  { %5848 = vmatpush1.bf16.msra.mxu0 %v9438_v30  ;;  %v9536_v30 = vcombine.low %v2330_v13, %v2338_v57  ;;  %v2434_v13 = vld [vmem:[#allocation7 + $0x778] sm:$0xff] }
 0x407   :  { %5930 = vmatpush1.bf16.msra.mxu1 %v9440_v31  ;;  %5849 = vmatprep.subr.bf16.mxu0 %v9455_v32  ;;  %v9551_v31 = vcombine.high %v2345_v11, %v2353_v14  ;;  %v9553_v32 = vcombine.high %v2346_v21, %v2354_v25  ;;  %v2449_v11 = vld [vmem:[#allocation7 + $0x7f0] sm:$0xff]  ;;  %v2442_v14 = vld [vmem:[#allocation7 + $0x7b8] sm:$0xff] }
 0x408   :  { %5931 = vmatprep.subr.bf16.mxu1 %v9457_v33  ;;  %v2361_v33 = vld [vmem:[#allocation7 + $0x530] sm:$0xff] }
 0x409   :  { %v9566_v40 = vcombine.low %v2361_v33, %v2369_v16 }
 0x40a   :  { %5850 = vmatpush1.bf16.msra.mxu0 %v9454_v17  ;;  %v9552_v17 = vcombine.low %v2346_v21, %v2354_v25  ;;  %v2450_v21 = vld [vmem:[#allocation7 + $0x7f8] sm:$0xff] }
 0x40b   :  { %5932 = vmatpush1.bf16.msra.mxu1 %v9456_v63  ;;  %5851 = vmatprep.subr.bf16.mxu0 %v9471_v37  ;;  %v9567_v63 = vcombine.high %v2361_v33, %v2369_v16  ;;  %v9569_v37 = vcombine.high %v2362_v34, %v2370_v36  ;;  %v2465_v33 = vld [vmem:[#allocation7 + $0x870] sm:$0xff]  ;;  %v2458_v16 = vld [vmem:[#allocation7 + $0x838] sm:$0xff] }
 0x40c   :  { %5933 = vmatprep.subr.bf16.mxu1 %v9473_v18  ;;  %v2377_v18 = vld [vmem:[#allocation7 + $0x5b0] sm:$0xff] }
 0x40d   :  { %v9582_v24 = vcombine.low %v2377_v18, %v2385_v0 }
 0x40e   :  { %5852 = vmatpush1.bf16.msra.mxu0 %v9470_v41  ;;  %v9568_v41 = vcombine.low %v2362_v34, %v2370_v36  ;;  %v2466_v34 = vld [vmem:[#allocation7 + $0x878] sm:$0xff] }
 0x40f   :  { %5934 = vmatpush1.bf16.msra.mxu1 %v9472_v42  ;;  %5853 = vmatprep.subr.bf16.mxu0 %v9487_v43  ;;  %v9583_v42 = vcombine.high %v2377_v18, %v2385_v0  ;;  %v9585_v43 = vcombine.high %v2378_v6, %v2386_v39  ;;  %v2481_v18 = vld [vmem:[#allocation7 + $0x8f0] sm:$0xff] }
 0x410   :  { %5935 = vmatprep.subr.bf16.mxu1 %v9489_v44  ;;  %v2393_v44 = vld [vmem:[#allocation7 + $0x630] sm:$0xff] }
 0x411   :  { %v9598_v61 = vcombine.low %v2393_v44, %v2401_v20 }
 0x412   :  { %5854 = vmatpush1.bf16.msra.mxu0 %v9486_v26  ;;  %v9584_v26 = vcombine.low %v2378_v6, %v2386_v39  ;;  %v2474_v6 = vld [vmem:[#allocation7 + $0x8b8] sm:$0xff] }
 0x413   :  { %5936 = vmatpush1.bf16.msra.mxu1 %v9488_v27  ;;  %5855 = vmatprep.subr.bf16.mxu0 %v9503_v28  ;;  %v9599_v27 = vcombine.high %v2393_v44, %v2401_v20  ;;  %v9601_v28 = vcombine.high %v2394_v23, %v2402_v53  ;;  %v2482_v39 = vld [vmem:[#allocation7 + $0x8f8] sm:$0xff] }
 0x414   :  { %5937 = vmatprep.subr.bf16.mxu1 %v9505_v45  ;;  %v2409_v45 = vld [vmem:[#allocation7 + $0x6b0] sm:$0xff]  ;;  %v9681_v44 = vcombine.high %v2474_v6, %v2482_v39  ;;  %v2490_v20 = vld [vmem:[#allocation7 + $0x938] sm:$0xff] }
 0x415   :  { %v9614_v57 = vcombine.low %v2409_v45, %v2417_v46 }
 0x416   :  { %5856 = vmatpush1.bf16.msra.mxu0 %v9502_v50  ;;  %v9600_v50 = vcombine.low %v2394_v23, %v2402_v53  ;;  %v2498_v23 = vld [vmem:[#allocation7 + $0x978] sm:$0xff] }
 0x417   :  { %5938 = vmatpush1.bf16.msra.mxu1 %v9504_v51  ;;  %5857 = vmatprep.subr.bf16.mxu0 %v9519_v52  ;;  %v9615_v51 = vcombine.high %v2409_v45, %v2417_v46  ;;  %v9617_v52 = vcombine.high %v2410_v47, %v2418_v49  ;;  %v2513_v45 = vld [vmem:[#allocation7 + $0x9f0] sm:$0xff]  ;;  %v2506_v46 = vld [vmem:[#allocation7 + $0x9b8] sm:$0xff] }
 0x418   :  { %5939 = vmatprep.subr.bf16.mxu1 %v9521_v54  ;;  %v2425_v54 = vld [vmem:[#allocation7 + $0x730] sm:$0xff] }
 0x419   :  { %v9630_v25 = vcombine.low %v2425_v54, %v2433_v55 }
 0x41a   :  { %5858 = vmatpush1.bf16.msra.mxu0 %v9518_v62  ;;  %v9616_v62 = vcombine.low %v2410_v47, %v2418_v49  ;;  %v2514_v47 = vld [vmem:[#allocation7 + $0x9f8] sm:$0xff] }
 0x41b   :  { %5940 = vmatpush1.bf16.msra.mxu1 %v9520_v1  ;;  %5859 = vmatprep.subr.bf16.mxu0 %v9535_v2  ;;  %v9631_v1 = vcombine.high %v2425_v54, %v2433_v55  ;;  %v9633_v2 = vcombine.high %v2426_v56, %v2434_v13  ;;  %v2522_v54 = vld [vmem:[#allocation7 + $0xa38] sm:$0xff] }
 0x41c   :  { %5941 = vmatprep.subr.bf16.mxu1 %v9537_v10  ;;  %v2441_v10 = vld [vmem:[#allocation7 + $0x7b0] sm:$0xff]  ;;  %v2530_v55 = vld [vmem:[#allocation7 + $0xa78] sm:$0xff] }
 0x41d   :  { %v9646_v36 = vcombine.low %v2441_v10, %v2449_v11 }
 0x41e   :  { %5860 = vmatpush1.bf16.msra.mxu0 %v9534_v29  ;;  %v9632_v29 = vcombine.low %v2426_v56, %v2434_v13  ;;  %v9712_v13 = vcombine.low %v2506_v46, %v2514_v47 }
 0x41f   :  { %5942 = vmatpush1.bf16.msra.mxu1 %v9536_v30  ;;  %5861 = vmatprep.subr.bf16.mxu0 %v9551_v31  ;;  %v9647_v30 = vcombine.high %v2441_v10, %v2449_v11  ;;  %v9649_v31 = vcombine.high %v2442_v14, %v2450_v21  ;;  %v2538_v11 = vld [vmem:[#allocation7 + $0xab8] sm:$0xff] }
 0x420   :  { %5943 = vmatprep.subr.bf16.mxu1 %v9553_v32  ;;  %v2457_v32 = vld [vmem:[#allocation7 + $0x830] sm:$0xff] }
 0x421   :  { %v9662_v0 = vcombine.low %v2457_v32, %v2465_v33 }
 0x422   :  { %5862 = vmatpush1.bf16.msra.mxu0 %v9550_v59  ;;  %v9648_v59 = vcombine.low %v2442_v14, %v2450_v21  ;;  %v2546_v14 = vld [vmem:[#allocation7 + $0xaf8] sm:$0xff] }
 0x423   :  { %5944 = vmatpush1.bf16.msra.mxu1 %v9552_v17  ;;  %5863 = vmatprep.subr.bf16.mxu0 %v9567_v63  ;;  %v9663_v17 = vcombine.high %v2457_v32, %v2465_v33  ;;  %v9665_v63 = vcombine.high %v2458_v16, %v2466_v34  ;;  %v9745_v32 = vcombine.high %v2538_v11, %v2546_v14  ;;  %v2553_v33 = vld [vmem:[#allocation7 + $0xb30] sm:$0xff] }
 0x424   :  { %5945 = vmatprep.subr.bf16.mxu1 %v9569_v37  ;;  %v2473_v37 = vld [vmem:[#allocation7 + $0x8b0] sm:$0xff] }
 0x425   :  { %v9678_v53 = vcombine.low %v2473_v37, %v2481_v18 }
 0x426   :  { %5864 = vmatpush1.bf16.msra.mxu0 %v9566_v40  ;;  %v9664_v40 = vcombine.low %v2458_v16, %v2466_v34  ;;  %v2561_v16 = vld [vmem:[#allocation7 + $0xb70] sm:$0xff] }
 0x427   :  { %5946 = vmatpush1.bf16.msra.mxu1 %v9568_v41  ;;  %5865 = vmatprep.subr.bf16.mxu0 %v9583_v42  ;;  %v9679_v41 = vcombine.high %v2473_v37, %v2481_v18  ;;  %v2489_v42 = vld [vmem:[#allocation7 + $0x930] sm:$0xff] }
 0x428   :  { %5947 = vmatprep.subr.bf16.mxu1 %v9585_v43  ;;  %v2497_v43 = vld [vmem:[#allocation7 + $0x970] sm:$0xff] }
 0x429   :  { %v9694_v49 = vcombine.low %v2489_v42, %v2497_v43 }
 0x42a   :  { %5866 = vmatpush1.bf16.msra.mxu0 %v9582_v24  ;;  %v9680_v24 = vcombine.low %v2474_v6, %v2482_v39  ;;  %v9744_v39 = vcombine.low %v2538_v11, %v2546_v14  ;;  %v2586_v14 = vld [vmem:[#allocation7 + $0xc38] sm:$0xff] }
 0x42b   :  { %5948 = vmatpush1.bf16.msra.mxu1 %v9584_v26  ;;  %5867 = vmatprep.subr.bf16.mxu0 %v9599_v27  ;;  %v9695_v26 = vcombine.high %v2489_v42, %v2497_v43  ;;  %v9697_v27 = vcombine.high %v2490_v20, %v2498_v23  ;;  %v2569_v43 = vld [vmem:[#allocation7 + $0xbb0] sm:$0xff] }
 0x42c   :  { %5949 = vmatprep.subr.bf16.mxu1 %v9601_v28  ;;  %v2505_v28 = vld [vmem:[#allocation7 + $0x9b0] sm:$0xff] }
 0x42d   :  { %v9710_v56 = vcombine.low %v2505_v28, %v2513_v45 }
 0x42e   :  { %5868 = vmatpush1.bf16.msra.mxu0 %v9598_v61  ;;  %v9711_v61 = vcombine.high %v2505_v28, %v2513_v45  ;;  %v2578_v28 = vld [vmem:[#allocation7 + $0xbf8] sm:$0xff] }
 0x42f   :  { %5950 = vmatpush1.bf16.msra.mxu1 %v9600_v50  ;;  %5869 = vmatprep.subr.bf16.mxu0 %v9615_v51  ;;  %v9713_v50 = vcombine.high %v2506_v46, %v2514_v47  ;;  %v2521_v51 = vld [vmem:[#allocation7 + $0xa30] sm:$0xff] }
 0x430   :  { %5951 = vmatprep.subr.bf16.mxu1 %v9617_v52  ;;  %v2529_v52 = vld [vmem:[#allocation7 + $0xa70] sm:$0xff] }
 0x432   :  { %5870 = vmatpush1.bf16.msra.mxu0 %v9614_v57  ;;  %v9727_v57 = vcombine.high %v2521_v51, %v2529_v52 }
 0x433   :  { %5952 = vmatpush1.bf16.msra.mxu1 %v9616_v62  ;;  %5871 = vmatprep.subr.bf16.mxu0 %v9631_v1  ;;  %v9729_v62 = vcombine.high %v2522_v54, %v2530_v55  ;;  %v2537_v1 = vld [vmem:[#allocation7 + $0xab0] sm:$0xff] }
 0x434   :  { %5953 = vmatprep.subr.bf16.mxu1 %v9633_v2  ;;  %v2545_v2 = vld [vmem:[#allocation7 + $0xaf0] sm:$0xff] }
 0x435   :  { %v9742_v6 = vcombine.low %v2537_v1, %v2545_v2 }
 0x436   :  { %5872 = vmatpush1.bf16.msra.mxu0 %v9630_v25  ;;  %v9726_v25 = vcombine.low %v2521_v51, %v2529_v52 }
 0x437   :  { %5954 = vmatpush1.bf16.msra.mxu1 %v9632_v29  ;;  %5873 = vmatprep.subr.bf16.mxu0 %v9647_v30  ;;  %v9728_v29 = vcombine.low %v2522_v54, %v2530_v55  ;;  %v9743_v30 = vcombine.high %v2537_v1, %v2545_v2  ;;  %v2593_v1 = vld [vmem:[#allocation7 + $0xc70] sm:$0xff] }
 0x438   :  { %5955 = vmatprep.subr.bf16.mxu1 %v9649_v31 }
 0x43a   :  { %5874 = vmatpush1.bf16.msra.mxu0 %v9646_v36 }
 0x43b   :  { %5956 = vmatpush1.bf16.msra.mxu1 %v9648_v59  ;;  %5884 = vmatprep.subr.bf16.mxu0 %v9663_v17  ;;  %v2554_v17 = vld [vmem:[#allocation7 + $0xb38] sm:$0xff] }
 0x43c   :  { %5966 = vmatprep.subr.bf16.mxu1 %v9665_v63  ;;  %v2562_v63 = vld [vmem:[#allocation7 + $0xb78] sm:$0xff] }
 0x43d   :  { %5876 = vmatmul.mubr.bf16.vlgmr.msra.gmra.mrb[28].mxu0 %v11293_v35  ;;  %v9760_v54 = vcombine.low %v2554_v17, %v2562_v63 }
 0x43e   :  { %5958 = vmatmul.mubr.bf16.vlgmr.msra.gmra.mrb[28].mxu1 %v11293_v35  ;;  %5885 = vmatpush1.bf16.msra.mxu0 %v9662_v0  ;;  %v9696_v35 = vcombine.low %v2490_v20, %v2498_v23 }
 0x43f   :  { %5916 = vmatprep.mubr.bf16.mxu0 %v11297_v38  ;;  %5967 = vmatpush1.bf16.msra.mxu1 %v9664_v40  ;;  %v9759_v40 = vcombine.high %v2553_v33, %v2561_v16 }
 0x440   :  { %5998 = vmatprep.mubr.bf16.mxu1 %v11297_v38  ;;  %5886 = vmatprep.subr.bf16.mxu0 %v9679_v41  ;;  %v11345_v38 = vld [vmem:[#allocation8] sm:$0xff] }
 0x441   :  { %5968 = vmatprep.subr.bf16.mxu1 %v9681_v44  ;;  %v2714_v10 = vrot.slane %v11345_v38, %v11225_v4  ;;  %v2722_v21 = vrot.slane %v11345_v38, %v11229_v8  ;;  %v2718_v31 = vrot.slane %v11345_v38, %v11227_v5  ;;  %v2726_v36 = vrot.slane %v11345_v38, %v11231_v9  ;;  %v2577_v44 = vld [vmem:[#allocation7 + $0xbf0] sm:$0xff] }
 0x442   :  { %5887 = vmatpush1.bf16.msra.mxu0 %v9678_v53  ;;  %v2730_v59 = vrot.slane %v11345_v38, %v11235_v12  ;;  %v2738_v18 = vrot.slane %v11345_v38, %v11238_v15  ;;  %v2734_v0 = vrot.slane %v11345_v38, %v11240_v19 }
 0x443   :  { %5969 = vmatpush1.bf16.msra.mxu1 %v9680_v24  ;;  %5888 = vmatprep.subr.bf16.mxu0 %v9695_v26  ;;  %v10323_v34 = vadd.f32 %v11329_v58, %v2714_v10  ;;  %v10325_v37 = vadd.f32 %v11331_v60, %v2722_v21  ;;  %v2742_v58 = vrot.slane %v11345_v38, %v11243_v22  ;;  %v2594_v21 = vld [vmem:[#allocation7 + $0xc78] sm:$0xff] }
 0x444   :  { %5970 = vmatprep.subr.bf16.mxu1 %v9697_v27  ;;  %v10324_v41 = vadd.f32 %v11333_v3, %v2718_v31  ;;  %v9761_v60 = vcombine.high %v2554_v17, %v2562_v63  ;;  %v10326_v23 = vadd.f32 %v11335_v7, %v2726_v36  ;;  %v2570_v27 = vld [vmem:[#allocation7 + $0xbb8] sm:$0xff]  ;;  %v9758_v3 = vcombine.low %v2553_v33, %v2561_v16  ;;  %v2609_v36 = vld [vmem:[#allocation7 + $0xcf0] sm:$0xff] }
 0x445   :  { %v6007_v20 = vmax.f32 %v10323_v34, 0.0  ;;  %v6009_v45 = vmax.f32 %v10325_v37, 0.0  ;;  %v9775_v7 = vcombine.high %v2569_v43, %v2577_v44  ;;  %v9793_v16 = vcombine.high %v2586_v14, %v2594_v21  ;;  %v2601_v34 = vld [vmem:[#allocation7 + $0xcb0] sm:$0xff]  ;;  %v2610_v17 = vld [vmem:[#allocation7 + $0xcf8] sm:$0xff] }
 0x446   :  { %5889 = vmatpush1.bf16.msra.mxu0 %v9694_v49  ;;  %v6008_v55 = vmax.f32 %v10324_v41, 0.0  ;;  %v6010_v2 = vmax.f32 %v10326_v23, 0.0  ;;  %v9792_v37 = vcombine.low %v2586_v14, %v2594_v21  ;;  %v9806_v41 = vcombine.low %v2601_v34, %v2609_v36  ;;  %v2634_v23 = vld [vmem:[#allocation7 + $0xdb8] sm:$0xff] }
 0x447   :  { %5971 = vmatpush1.bf16.msra.mxu1 %v9696_v35  ;;  %5890 = vmatprep.subr.bf16.mxu0 %v9711_v61 }
 0x448   :  { %5972 = vmatprep.subr.bf16.mxu1 %v9713_v50 }
 0x44a   :  { %5891 = vmatpush1.bf16.msra.mxu0 %v9710_v56 }
 0x44b   :  { %5973 = vmatpush1.bf16.msra.mxu1 %v9712_v13  ;;  %5892 = vmatprep.subr.bf16.mxu0 %v9727_v57  ;;  %v9777_v57 = vcombine.high %v2570_v27, %v2578_v28 }
 0x44c   :  { %5974 = vmatprep.subr.bf16.mxu1 %v9729_v62  ;;  %v2585_v62 = vld [vmem:[#allocation7 + $0xc30] sm:$0xff] }
 0x44d   :  { %v9791_v33 = vcombine.high %v2585_v62, %v2593_v1  ;;  %v9790_v63 = vcombine.low %v2585_v62, %v2593_v1  ;;  %v2689_v62 = vld [vmem:[#allocation7 + $0xf70] sm:$0xff]  ;;  %v2682_v1 = vld [vmem:[#allocation7 + $0xf38] sm:$0xff] }
 0x44e   :  { %5893 = vmatpush1.bf16.msra.mxu0 %v9726_v25 }
 0x44f   :  { %5975 = vmatpush1.bf16.msra.mxu1 %v9728_v29  ;;  %5894 = vmatprep.subr.bf16.mxu0 %v9743_v30  ;;  %v9774_v30 = vcombine.low %v2569_v43, %v2577_v44  ;;  %v2633_v44 = vld [vmem:[#allocation7 + $0xdb0] sm:$0xff] }
 0x450   :  { %v5590_v42 = vpop.f32.mrb[20].mxu0  ;;  %5976 = vmatprep.subr.bf16.mxu1 %v9745_v32  ;;  %v9776_v32 = vcombine.low %v2570_v27, %v2578_v28 }
 0x451   :  { %v10327_v53 = vadd.f32 %v5590_v42, %v2730_v59  ;;  %v5672_v24 = vpop.f32.mrb[20].mxu1  ;;  %v5592_v26 = vpop.f32.mrb[21].mxu0  ;;  %v2602_v59 = vld [vmem:[#allocation7 + $0xcb8] sm:$0xff] }
 0x452   :  { %v10329_v46 = vadd.f32 %v5672_v24, %v2738_v18  ;;  %v10328_v47 = vadd.f32 %v5592_v26, %v2734_v0  ;;  %v5674_v49 = vpop.f32.mrb[21].mxu1  ;;  %v5594_v35 = vpop.f32.mrb[22].mxu0  ;;  %5895 = vmatpush1.bf16.msra.mxu0 %v9742_v6  ;;  %v9807_v18 = vcombine.high %v2601_v34, %v2609_v36  ;;  %v9809_v0 = vcombine.high %v2602_v59, %v2610_v17  ;;  %v2617_v6 = vld [vmem:[#allocation7 + $0xd30] sm:$0xff]  ;;  %v2706_v34 = vld [vmem:[#allocation7 + $0xff8] sm:$0xff] }
 0x453   :  { %v6011_v61 = vmax.f32 %v10327_v53, 0.0  ;;  %v10330_v50 = vadd.f32 %v5674_v49, %v2742_v58  ;;  %v5676_v51 = vpop.f32.mrb[22].mxu1  ;;  %5977 = vmatpush1.bf16.msra.mxu1 %v9744_v39  ;;  %v5595_v52 = vpop.f32.mrb[23].mxu0  ;;  %5896 = vmatprep.subr.bf16.mxu0 %v9759_v40  ;;  %v2625_v58 = vld [vmem:[#allocation7 + $0xd70] sm:$0xff]  ;;  %v2618_v39 = vld [vmem:[#allocation7 + $0xd38] sm:$0xff]  ;;  %v9808_v42 = vcombine.low %v2602_v59, %v2610_v17 }
 0x454   :  { %v6013_v38 = vmax.f32 %v10329_v46, 0.0  ;;  %v6012_v56 = vmax.f32 %v10328_v47, 0.0  ;;  %v5677_v13 = vpop.f32.mrb[23].mxu1  ;;  %5978 = vmatprep.subr.bf16.mxu1 %v9761_v60  ;;  %v2626_v40 = vld [vmem:[#allocation7 + $0xd78] sm:$0xff]  ;;  %v9823_v60 = vcombine.high %v2617_v6, %v2625_v58  ;;  %v9822_v24 = vcombine.low %v2617_v6, %v2625_v58  ;;  %v2657_v46 = vld [vmem:[#allocation7 + $0xe70] sm:$0xff] }
 0x455   :  { %v11367_v10 = vmax.f32 %v6007_v20, %v6011_v61  ;;  %v6014_v11 = vmax.f32 %v10330_v50, 0.0  ;;  %v9825_v43 = vcombine.high %v2618_v39, %v2626_v40  ;;  %v2641_v20 = vld [vmem:[#allocation7 + $0xdf0] sm:$0xff]  ;;  %v2642_v53 = vld [vmem:[#allocation7 + $0xdf8] sm:$0xff]  ;;  %v9824_v26 = vcombine.low %v2618_v39, %v2626_v40 }
 0x456   :  { %v11369_v25 = vmax.f32 %v6009_v45, %v6013_v38  ;;  %v11371_v29 = vmax.f32 %v6008_v55, %v6012_v56  ;;  %5897 = vmatpush1.bf16.msra.mxu0 %v9758_v3  ;;  %v9839_v27 = vcombine.high %v2633_v44, %v2641_v20  ;;  %v9841_v28 = vcombine.high %v2634_v23, %v2642_v53  ;;  %v2649_v45 = vld [vmem:[#allocation7 + $0xe30] sm:$0xff]  ;;  %v2650_v47 = vld [vmem:[#allocation7 + $0xe38] sm:$0xff] }
 0x457   :  { %v11373_v31 = vmax.f32 %v6010_v2, %v6014_v11  ;;  %5979 = vmatpush1.bf16.msra.mxu1 %v9760_v54  ;;  %5898 = vmatprep.subr.bf16.mxu0 %v9775_v7  ;;  %v2658_v49 = vld [vmem:[#allocation7 + $0xe78] sm:$0xff]  ;;  %v9838_v35 = vcombine.low %v2633_v44, %v2641_v20  ;;  %v9840_v3 = vcombine.low %v2634_v23, %v2642_v53  ;;  %v2665_v51 = vld [vmem:[#allocation7 + $0xeb0] sm:$0xff] }
 0x458   :  { %5980 = vmatprep.subr.bf16.mxu1 %v9777_v57  ;;  %v9855_v61 = vcombine.high %v2649_v45, %v2657_v46  ;;  %v9857_v50 = vcombine.high %v2650_v47, %v2658_v49  ;;  %v2673_v52 = vld [vmem:[#allocation7 + $0xef0] sm:$0xff]  ;;  %v2666_v54 = vld [vmem:[#allocation7 + $0xeb8] sm:$0xff]  ;;  %v9854_v55 = vcombine.low %v2649_v45, %v2657_v46  ;;  %v9856_v38 = vcombine.low %v2650_v47, %v2658_v49 }
 0x459   :  { %v2674_v7 = vld [vmem:[#allocation7 + $0xef8] sm:$0xff]  ;;  %v9871_v56 = vcombine.high %v2665_v51, %v2673_v52  ;;  %v2681_v57 = vld [vmem:[#allocation7 + $0xf30] sm:$0xff]  ;;  %v9870_v11 = vcombine.low %v2665_v51, %v2673_v52 }
 0x45a   :  { %5899 = vmatpush1.bf16.msra.mxu0 %v9774_v30  ;;  %v9873_v13 = vcombine.high %v2666_v54, %v2674_v7  ;;  %v2690_v2 = vld [vmem:[#allocation7 + $0xf78] sm:$0xff]  ;;  %v9872_v14 = vcombine.low %v2666_v54, %v2674_v7  ;;  %v9887_v21 = vcombine.high %v2681_v57, %v2689_v62  ;;  %v9886_v36 = vcombine.low %v2681_v57, %v2689_v62 }
 0x45b   :  { %5981 = vmatpush1.bf16.msra.mxu1 %v9776_v32  ;;  %5900 = vmatprep.subr.bf16.mxu0 %v9791_v33  ;;  %v9889_v30 = vcombine.high %v2682_v1, %v2690_v2  ;;  %v2697_v32 = vld [vmem:[#allocation7 + $0xfb0] sm:$0xff]  ;;  %v9888_v59 = vcombine.low %v2682_v1, %v2690_v2  ;;  %v6044_v6 = vld [vmem:[#allocation10 + $0x28] sm:$0xff] }
 0x45c   :  { %5982 = vmatprep.subr.bf16.mxu1 %v9793_v16  ;;  %v2705_v33 = vld [vmem:[#allocation7 + $0xff0] sm:$0xff]  ;;  %v2698_v16 = vld [vmem:[#allocation7 + $0xfb8] sm:$0xff] }
 0x45d   :  { %v9903_v17 = vcombine.high %v2697_v32, %v2705_v33  ;;  %v9902_v58 = vcombine.low %v2697_v32, %v2705_v33  ;;  %v9904_v39 = vcombine.low %v2698_v16, %v2706_v34  ;;  %v6052_v44 = vld [vmem:[#allocation10 + $0x68] sm:$0xff] }
 0x45e   :  { %5901 = vmatpush1.bf16.msra.mxu0 %v9790_v63  ;;  %v9905_v63 = vcombine.high %v2698_v16, %v2706_v34  ;;  %v6060_v45 = vld [vmem:[#allocation10 + $0xa8] sm:$0xff] }
 0x45f   :  { %5983 = vmatpush1.bf16.msra.mxu1 %v9792_v37  ;;  %5902 = vmatprep.subr.bf16.mxu0 %v9807_v18  ;;  %v6039_v37 = vld [vmem:[#allocation10] sm:$0xff]  ;;  %v6068_v51 = vld [vmem:[#allocation10 + $0xe8] sm:$0xff] }
 0x460   :  { %5984 = vmatprep.subr.bf16.mxu1 %v9809_v0  ;;  %v6043_v18 = vld [vmem:[#allocation10 + $0x20] sm:$0xff]  ;;  %v6040_v0 = vld [vmem:[#allocation10 + $0x8] sm:$0xff] }
 0x461   :  { %v9907_v40 = vcombine.high %v6039_v37, %v6043_v18  ;;  %v9906_v20 = vcombine.low %v6039_v37, %v6043_v18  ;;  %v9908_v23 = vcombine.low %v6040_v0, %v6044_v6 }
 0x462   :  { %5903 = vmatpush1.bf16.msra.mxu0 %v9806_v41  ;;  %v9909_v41 = vcombine.high %v6040_v0, %v6044_v6 }
 0x463   :  { %5985 = vmatpush1.bf16.msra.mxu1 %v9808_v42  ;;  %5904 = vmatprep.subr.bf16.mxu0 %v9823_v60  ;;  %v6047_v42 = vld [vmem:[#allocation10 + $0x40] sm:$0xff] }
 0x464   :  { %5986 = vmatprep.subr.bf16.mxu1 %v9825_v43  ;;  %v6051_v60 = vld [vmem:[#allocation10 + $0x60] sm:$0xff]  ;;  %v6048_v43 = vld [vmem:[#allocation10 + $0x48] sm:$0xff] }
 0x465   :  { %v9915_v53 = vcombine.high %v6047_v42, %v6051_v60  ;;  %v9914_v46 = vcombine.low %v6047_v42, %v6051_v60  ;;  %v9916_v47 = vcombine.low %v6048_v43, %v6052_v44 }
 0x466   :  { %5905 = vmatpush1.bf16.msra.mxu0 %v9822_v24  ;;  %v9917_v24 = vcombine.high %v6048_v43, %v6052_v44 }
 0x467   :  { %5987 = vmatpush1.bf16.msra.mxu1 %v9824_v26  ;;  %5906 = vmatprep.subr.bf16.mxu0 %v9839_v27  ;;  %v6055_v26 = vld [vmem:[#allocation10 + $0x80] sm:$0xff] }
 0x468   :  { %5988 = vmatprep.subr.bf16.mxu1 %v9841_v28  ;;  %v6059_v27 = vld [vmem:[#allocation10 + $0xa0] sm:$0xff]  ;;  %v6056_v28 = vld [vmem:[#allocation10 + $0x88] sm:$0xff] }
 0x469   :  { %v9923_v49 = vcombine.high %v6055_v26, %v6059_v27  ;;  %v9922_v52 = vcombine.low %v6055_v26, %v6059_v27  ;;  %v9924_v54 = vcombine.low %v6056_v28, %v6060_v45 }
 0x46a   :  { %5907 = vmatpush1.bf16.msra.mxu0 %v9838_v35  ;;  %v9925_v35 = vcombine.high %v6056_v28, %v6060_v45 }
 0x46b   :  { %5989 = vmatpush1.bf16.msra.mxu1 %v9840_v3  ;;  %5908 = vmatprep.subr.bf16.mxu0 %v9855_v61  ;;  %v6063_v3 = vld [vmem:[#allocation10 + $0xc0] sm:$0xff] }
 0x46c   :  { %5990 = vmatprep.subr.bf16.mxu1 %v9857_v50  ;;  %v6067_v61 = vld [vmem:[#allocation10 + $0xe0] sm:$0xff]  ;;  %v6064_v50 = vld [vmem:[#allocation10 + $0xc8] sm:$0xff] }
 0x46d   :  { %v9931_v7 = vcombine.high %v6063_v3, %v6067_v61  ;;  %v9930_v57 = vcombine.low %v6063_v3, %v6067_v61  ;;  %v9932_v62 = vcombine.low %v6064_v50, %v6068_v51 }
 0x46e   :  { %5909 = vmatpush1.bf16.msra.mxu0 %v9854_v55  ;;  %v6071_v55 = vld [vmem:[#allocation10 + $0x100] sm:$0xff] }
 0x46f   :  { %5991 = vmatpush1.bf16.msra.mxu1 %v9856_v38  ;;  %5910 = vmatprep.subr.bf16.mxu0 %v9871_v56  ;;  %v6075_v38 = vld [vmem:[#allocation10 + $0x120] sm:$0xff]  ;;  %v6072_v56 = vld [vmem:[#allocation10 + $0x108] sm:$0xff] }
 0x470   :  { %5992 = vmatprep.subr.bf16.mxu1 %v9873_v13  ;;  %v6076_v13 = vld [vmem:[#allocation10 + $0x128] sm:$0xff]  ;;  %v9939_v1 = vcombine.high %v6071_v55, %v6075_v38  ;;  %v9938_v32 = vcombine.low %v6071_v55, %v6075_v38 }
 0x471   :  { %v9941_v2 = vcombine.high %v6072_v56, %v6076_v13  ;;  %v9940_v33 = vcombine.low %v6072_v56, %v6076_v13 }
 0x472   :  { %5911 = vmatpush1.bf16.msra.mxu0 %v9870_v11  ;;  %v6079_v11 = vld [vmem:[#allocation10 + $0x140] sm:$0xff] }
 0x473   :  { %5993 = vmatpush1.bf16.msra.mxu1 %v9872_v14  ;;  %5912 = vmatprep.subr.bf16.mxu0 %v9887_v21  ;;  %v6083_v14 = vld [vmem:[#allocation10 + $0x160] sm:$0xff]  ;;  %v6080_v21 = vld [vmem:[#allocation10 + $0x148] sm:$0xff] }
 0x474   :  { %5994 = vmatprep.subr.bf16.mxu1 %v9889_v30  ;;  %v6084_v30 = vld [vmem:[#allocation10 + $0x168] sm:$0xff]  ;;  %v9947_v16 = vcombine.high %v6079_v11, %v6083_v14  ;;  %v9946_v37 = vcombine.low %v6079_v11, %v6083_v14 }
 0x475   :  { %v9949_v34 = vcombine.high %v6080_v21, %v6084_v30  ;;  %v9948_v18 = vcombine.low %v6080_v21, %v6084_v30 }
 0x476   :  { %5913 = vmatpush1.bf16.msra.mxu0 %v9886_v36  ;;  %v6087_v36 = vld [vmem:[#allocation10 + $0x180] sm:$0xff] }
 0x477   :  { %5995 = vmatpush1.bf16.msra.mxu1 %v9888_v59  ;;  %5914 = vmatprep.subr.bf16.mxu0 %v9903_v17  ;;  %v6091_v59 = vld [vmem:[#allocation10 + $0x1a0] sm:$0xff]  ;;  %v6088_v17 = vld [vmem:[#allocation10 + $0x188] sm:$0xff] }
 0x478   :  { %5996 = vmatprep.subr.bf16.mxu1 %v9905_v63  ;;  %v6092_v63 = vld [vmem:[#allocation10 + $0x1a8] sm:$0xff]  ;;  %v9955_v0 = vcombine.high %v6087_v36, %v6091_v59  ;;  %v9954_v42 = vcombine.low %v6087_v36, %v6091_v59 }
 0x479   :  { %v9957_v6 = vcombine.high %v6088_v17, %v6092_v63  ;;  %v9956_v60 = vcombine.low %v6088_v17, %v6092_v63 }
 0x47a   :  { %5915 = vmatpush1.bf16.msra.mxu0 %v9902_v58  ;;  %v6095_v58 = vld [vmem:[#allocation10 + $0x1c0] sm:$0xff] }
 0x47b   :  { %5997 = vmatpush1.bf16.msra.mxu1 %v9904_v39  ;;  %7617 = vmatprep.subr.bf16.mxu0 %v9907_v40  ;;  %v6099_v39 = vld [vmem:[#allocation10 + $0x1e0] sm:$0xff]  ;;  %v6096_v40 = vld [vmem:[#allocation10 + $0x1c8] sm:$0xff] }
 0x47c   :  { %7699 = vmatprep.subr.bf16.mxu1 %v9909_v41  ;;  %v6100_v41 = vld [vmem:[#allocation10 + $0x1e8] sm:$0xff]  ;;  %v9963_v43 = vcombine.high %v6095_v58, %v6099_v39  ;;  %v9962_v26 = vcombine.low %v6095_v58, %v6099_v39 }
 0x47d   :  { %5917 = vmatmul.mubr.bf16.vlgmr.msra.gmra.mrb[28].mxu0 %v11311_v48  ;;  %v9965_v44 = vcombine.high %v6096_v40, %v6100_v41  ;;  %v9964_v27 = vcombine.low %v6096_v40, %v6100_v41  ;;  %v6144_v58 = vld [vmem:[#allocation10 + $0x348] sm:$0xff] }
 0x47e   :  { %5999 = vmatmul.mubr.bf16.vlgmr.msra.gmra.mrb[28].mxu1 %v11311_v48  ;;  %7618 = vmatpush1.bf16.msra.mxu0 %v9906_v20  ;;  %v9933_v48 = vcombine.high %v6064_v50, %v6068_v51  ;;  %v6103_v20 = vld [vmem:[#allocation10 + $0x200] sm:$0xff]  ;;  %v6148_v41 = vld [vmem:[#allocation10 + $0x368] sm:$0xff] }
 0x47f   :  { %7700 = vmatpush1.bf16.msra.mxu1 %v9908_v23  ;;  %7619 = vmatprep.subr.bf16.mxu0 %v9915_v53  ;;  %v6107_v23 = vld [vmem:[#allocation10 + $0x220] sm:$0xff]  ;;  %v6104_v53 = vld [vmem:[#allocation10 + $0x208] sm:$0xff] }
 0x480   :  { %7701 = vmatprep.subr.bf16.mxu1 %v9917_v24  ;;  %v6108_v24 = vld [vmem:[#allocation10 + $0x228] sm:$0xff]  ;;  %v9971_v28 = vcombine.high %v6103_v20, %v6107_v23  ;;  %v9970_v3 = vcombine.low %v6103_v20, %v6107_v23 }
 0x481   :  { %v9973_v45 = vcombine.high %v6104_v53, %v6108_v24  ;;  %v9972_v61 = vcombine.low %v6104_v53, %v6108_v24  ;;  %v10013_v53 = vcombine.high %v6144_v58, %v6148_v41 }
 0x482   :  { %7620 = vmatpush1.bf16.msra.mxu0 %v9914_v46  ;;  %v6111_v46 = vld [vmem:[#allocation10 + $0x240] sm:$0xff] }
 0x483   :  { %7702 = vmatpush1.bf16.msra.mxu1 %v9916_v47  ;;  %7621 = vmatprep.subr.bf16.mxu0 %v9923_v49  ;;  %v6115_v47 = vld [vmem:[#allocation10 + $0x260] sm:$0xff]  ;;  %v6112_v49 = vld [vmem:[#allocation10 + $0x248] sm:$0xff] }
 0x484   :  { %7703 = vmatprep.subr.bf16.mxu1 %v9925_v35  ;;  %v6116_v35 = vld [vmem:[#allocation10 + $0x268] sm:$0xff]  ;;  %v9979_v50 = vcombine.high %v6111_v46, %v6115_v47  ;;  %v9978_v55 = vcombine.low %v6111_v46, %v6115_v47 }
 0x485   :  { %v9981_v51 = vcombine.high %v6112_v49, %v6116_v35  ;;  %v9980_v38 = vcombine.low %v6112_v49, %v6116_v35  ;;  %v6156_v49 = vld [vmem:[#allocation10 + $0x3a8] sm:$0xff] }
 0x486   :  { %7622 = vmatpush1.bf16.msra.mxu0 %v9922_v52  ;;  %v6119_v52 = vld [vmem:[#allocation10 + $0x280] sm:$0xff] }
 0x487   :  { %7704 = vmatpush1.bf16.msra.mxu1 %v9924_v54  ;;  %7623 = vmatprep.subr.bf16.mxu0 %v9931_v7  ;;  %v6123_v54 = vld [vmem:[#allocation10 + $0x2a0] sm:$0xff]  ;;  %v6120_v7 = vld [vmem:[#allocation10 + $0x288] sm:$0xff] }
 0x488   :  { %7705 = vmatprep.subr.bf16.mxu1 %v9933_v48  ;;  %v6124_v48 = vld [vmem:[#allocation10 + $0x2a8] sm:$0xff]  ;;  %v9987_v56 = vcombine.high %v6119_v52, %v6123_v54  ;;  %v9986_v11 = vcombine.low %v6119_v52, %v6123_v54 }
 0x489   :  { %v9989_v13 = vcombine.high %v6120_v7, %v6124_v48  ;;  %v9988_v14 = vcombine.low %v6120_v7, %v6124_v48  ;;  %v6160_v52 = vld [vmem:[#allocation10 + $0x3c8] sm:$0xff] }
 0x48a   :  { %7624 = vmatpush1.bf16.msra.mxu0 %v9930_v57  ;;  %v6127_v57 = vld [vmem:[#allocation10 + $0x2c0] sm:$0xff]  ;;  %v6164_v7 = vld [vmem:[#allocation10 + $0x3e8] sm:$0xff] }
 0x48b   :  { %7706 = vmatpush1.bf16.msra.mxu1 %v9932_v62  ;;  %7625 = vmatprep.subr.bf16.mxu0 %v9939_v1  ;;  %v6131_v62 = vld [vmem:[#allocation10 + $0x2e0] sm:$0xff]  ;;  %v6128_v1 = vld [vmem:[#allocation10 + $0x2c8] sm:$0xff] }
 0x48c   :  { %7707 = vmatprep.subr.bf16.mxu1 %v9941_v2  ;;  %v6132_v2 = vld [vmem:[#allocation10 + $0x2e8] sm:$0xff]  ;;  %v9995_v21 = vcombine.high %v6127_v57, %v6131_v62  ;;  %v9994_v36 = vcombine.low %v6127_v57, %v6131_v62 }
 0x48d   :  { %v9997_v30 = vcombine.high %v6128_v1, %v6132_v2  ;;  %v9996_v59 = vcombine.low %v6128_v1, %v6132_v2  ;;  %v11381_v57 = vld [vmem:[#allocation10 + $0x408] sm:$0xff] }
 0x48e   :  { %7626 = vmatpush1.bf16.msra.mxu0 %v9938_v32  ;;  %v6135_v32 = vld [vmem:[#allocation10 + $0x300] sm:$0xff]  ;;  %v11387_v2 = vld [vmem:[#allocation10 + $0x428] sm:$0xff] }
 0x48f   :  { %7708 = vmatpush1.bf16.msra.mxu1 %v9940_v33  ;;  %7627 = vmatprep.subr.bf16.mxu0 %v9947_v16  ;;  %v6139_v33 = vld [vmem:[#allocation10 + $0x320] sm:$0xff]  ;;  %v6136_v16 = vld [vmem:[#allocation10 + $0x308] sm:$0xff] }
 0x490   :  { %7709 = vmatprep.subr.bf16.mxu1 %v9949_v34  ;;  %v6140_v34 = vld [vmem:[#allocation10 + $0x328] sm:$0xff]  ;;  %v10003_v17 = vcombine.high %v6135_v32, %v6139_v33 }
 0x491   :  { %v10005_v63 = vcombine.high %v6136_v16, %v6140_v34 }
 0x492   :  { %7628 = vmatpush1.bf16.msra.mxu0 %v9946_v37  ;;  %v10002_v37 = vcombine.low %v6135_v32, %v6139_v33 }
 0x493   :  { %7710 = vmatpush1.bf16.msra.mxu1 %v9948_v18  ;;  %7629 = vmatprep.subr.bf16.mxu0 %v9955_v0  ;;  %v10004_v18 = vcombine.low %v6136_v16, %v6140_v34  ;;  %v6143_v0 = vld [vmem:[#allocation10 + $0x340] sm:$0xff] }
 0x494   :  { %7711 = vmatprep.subr.bf16.mxu1 %v9957_v6  ;;  %v6147_v6 = vld [vmem:[#allocation10 + $0x360] sm:$0xff] }
 0x495   :  { %v10011_v40 = vcombine.high %v6143_v0, %v6147_v6 }
 0x496   :  { %7630 = vmatpush1.bf16.msra.mxu0 %v9954_v42 }
 0x497   :  { %7712 = vmatpush1.bf16.msra.mxu1 %v9956_v60  ;;  %7631 = vmatprep.subr.bf16.mxu0 %v9963_v43  ;;  %v10010_v43 = vcombine.low %v6143_v0, %v6147_v6 }
 0x498   :  { %7713 = vmatprep.subr.bf16.mxu1 %v9965_v44  ;;  %v10012_v44 = vcombine.low %v6144_v58, %v6148_v41 }
 0x49a   :  { %7632 = vmatpush1.bf16.msra.mxu0 %v9962_v26 }
 0x49b   :  { %7714 = vmatpush1.bf16.msra.mxu1 %v9964_v27  ;;  %7633 = vmatprep.subr.bf16.mxu0 %v9971_v28  ;;  %v6151_v27 = vld [vmem:[#allocation10 + $0x380] sm:$0xff] }
 0x49c   :  { %7715 = vmatprep.subr.bf16.mxu1 %v9973_v45  ;;  %v6155_v28 = vld [vmem:[#allocation10 + $0x3a0] sm:$0xff]  ;;  %v6152_v45 = vld [vmem:[#allocation10 + $0x388] sm:$0xff] }
 0x49d   :  { %v10019_v47 = vcombine.high %v6151_v27, %v6155_v28  ;;  %v10018_v35 = vcombine.low %v6151_v27, %v6155_v28 }
 0x49e   :  { %7634 = vmatpush1.bf16.msra.mxu0 %v9970_v3  ;;  %v10020_v3 = vcombine.low %v6152_v45, %v6156_v49 }
 0x49f   :  { %7716 = vmatpush1.bf16.msra.mxu1 %v9972_v61  ;;  %7635 = vmatprep.subr.bf16.mxu0 %v9979_v50  ;;  %v10021_v61 = vcombine.high %v6152_v45, %v6156_v49  ;;  %v6159_v50 = vld [vmem:[#allocation10 + $0x3c0] sm:$0xff] }
 0x4a0   :  { %7717 = vmatprep.subr.bf16.mxu1 %v9981_v51  ;;  %v6163_v51 = vld [vmem:[#allocation10 + $0x3e0] sm:$0xff] }
 0x4a1   :  { %v10027_v54 = vcombine.high %v6159_v50, %v6163_v51  ;;  %v10026_v48 = vcombine.low %v6159_v50, %v6163_v51 }
 0x4a2   :  { %7636 = vmatpush1.bf16.msra.mxu0 %v9978_v55  ;;  %v10028_v55 = vcombine.low %v6160_v52, %v6164_v7 }
 0x4a3   :  { %7718 = vmatpush1.bf16.msra.mxu1 %v9980_v38  ;;  %7637 = vmatprep.subr.bf16.mxu0 %v9987_v56  ;;  %v10029_v38 = vcombine.high %v6160_v52, %v6164_v7  ;;  %v11377_v56 = vld [vmem:[#allocation10 + $0x400] sm:$0xff] }
 0x4a4   :  { %7719 = vmatprep.subr.bf16.mxu1 %v9989_v13  ;;  %v11379_v13 = vld [vmem:[#allocation10 + $0x420] sm:$0xff] }
 0x4a5   :  { %v10034_v62 = vcombine.low %v11377_v56, %v11379_v13  ;;  %v10035_v1 = vcombine.high %v11377_v56, %v11379_v13  ;;  %v6175_v7 = vld [vmem:[#allocation10 + $0x440] sm:$0xff] }
 0x4a6   :  { %7638 = vmatpush1.bf16.msra.mxu0 %v9986_v11  ;;  %v10036_v11 = vcombine.low %v11381_v57, %v11387_v2 }
 0x4a7   :  { %7720 = vmatpush1.bf16.msra.mxu1 %v9988_v14  ;;  %7639 = vmatprep.subr.bf16.mxu0 %v9995_v21  ;;  %v10037_v14 = vcombine.high %v11381_v57, %v11387_v2  ;;  %v2708_v21 = vld [vmem:[#allocation8 + $0x8] sm:$0xff]  ;;  %v6180_v57 = vld [vmem:[#allocation10 + $0x468] sm:$0xff] }
 0x4a8   :  { %7721 = vmatprep.subr.bf16.mxu1 %v9997_v30  ;;  %v2746_v30 = vrot.slane %v2708_v21, %v11225_v4  ;;  %v2754_v32 = vrot.slane %v2708_v21, %v11229_v8  ;;  %v2750_v33 = vrot.slane %v2708_v21, %v11227_v5  ;;  %v2758_v16 = vrot.slane %v2708_v21, %v11231_v9 }
 0x4a9   :  { %v2762_v34 = vrot.slane %v2708_v21, %v11235_v12 }
 0x4aa   :  { %7640 = vmatpush1.bf16.msra.mxu0 %v9994_v36  ;;  %v2770_v36 = vrot.slane %v2708_v21, %v11238_v15 }
 0x4ab   :  { %7722 = vmatpush1.bf16.msra.mxu1 %v9996_v59  ;;  %7641 = vmatprep.subr.bf16.mxu0 %v10003_v17  ;;  %v2766_v59 = vrot.slane %v2708_v21, %v11240_v19 }
 0x4ac   :  { %7723 = vmatprep.subr.bf16.mxu1 %v10005_v63  ;;  %v2774_v63 = vrot.slane %v2708_v21, %v11243_v22  ;;  %v6187_v21 = vld [vmem:[#allocation10 + $0x4a0] sm:$0xff] }
 0x4ae   :  { %7642 = vmatpush1.bf16.msra.mxu0 %v10002_v37 }
 0x4af   :  { %7724 = vmatpush1.bf16.msra.mxu1 %v10004_v18  ;;  %7643 = vmatprep.subr.bf16.mxu0 %v10011_v40 }
 0x4b0   :  { %7725 = vmatprep.subr.bf16.mxu1 %v10013_v53 }
 0x4b2   :  { %7644 = vmatpush1.bf16.msra.mxu0 %v10010_v43 }
 0x4b3   :  { %7726 = vmatpush1.bf16.msra.mxu1 %v10012_v44  ;;  %7645 = vmatprep.subr.bf16.mxu0 %v10019_v47 }
 0x4b4   :  { %7727 = vmatprep.subr.bf16.mxu1 %v10021_v61 }
 0x4b6   :  { %7646 = vmatpush1.bf16.msra.mxu0 %v10018_v35 }
 0x4b7   :  { %7728 = vmatpush1.bf16.msra.mxu1 %v10020_v3  ;;  %7647 = vmatprep.subr.bf16.mxu0 %v10027_v54 }
 0x4b8   :  { %7729 = vmatprep.subr.bf16.mxu1 %v10029_v38  ;;  %v6176_v38 = vld [vmem:[#allocation10 + $0x448] sm:$0xff] }
 0x4ba   :  { %7648 = vmatpush1.bf16.msra.mxu0 %v10026_v48 }
 0x4bb   :  { %7730 = vmatpush1.bf16.msra.mxu1 %v10028_v55  ;;  %7658 = vmatprep.subr.bf16.mxu0 %v10035_v1  ;;  %v6179_v55 = vld [vmem:[#allocation10 + $0x460] sm:$0xff] }
 0x4bc   :  { %7740 = vmatprep.subr.bf16.mxu1 %v10037_v14  ;;  %v6183_v14 = vld [vmem:[#allocation10 + $0x480] sm:$0xff] }
 0x4d0   :  { %v5754_v39 = vpop.f32.mrb[24].mxu0 }
 0x4d1   :  { %v5836_v42 = vpop.f32.mrb[24].mxu1  ;;  %v5756_v60 = vpop.f32.mrb[25].mxu0  ;;  %v10331_v17 = vadd.f32 %v5754_v39, %v2746_v30  ;;  %v6184_v30 = vld [vmem:[#allocation10 + $0x488] sm:$0xff] }
 0x4d2   :  { %v5838_v20 = vpop.f32.mrb[25].mxu1  ;;  %v5758_v23 = vpop.f32.mrb[26].mxu0  ;;  %v10333_v37 = vadd.f32 %v5836_v42, %v2754_v32  ;;  %v10332_v18 = vadd.f32 %v5756_v60, %v2750_v33  ;;  %v10044_v33 = vcombine.low %v6176_v38, %v6180_v57 }
 0x4d3   :  { %v5840_v24 = vpop.f32.mrb[26].mxu1  ;;  %v5759_v26 = vpop.f32.mrb[27].mxu0  ;;  %v10334_v6 = vadd.f32 %v5838_v20, %v2758_v16  ;;  %v10051_v16 = vcombine.high %v6183_v14, %v6187_v21 }
 0x4d4   :  { %v5841_v46 = vpop.f32.mrb[27].mxu1  ;;  %v6015_v24 = vmax.f32 %v10331_v17, 0.0  ;;  %v6016_v39 = vmax.f32 %v10332_v18, 0.0  ;;  %v6192_v17 = vld [vmem:[#allocation10 + $0x4c8] sm:$0xff]  ;;  %v6203_v18 = vld [vmem:[#allocation10 + $0x520] sm:$0xff] }
 0x4d5   :  { %v6017_v46 = vmax.f32 %v10333_v37, 0.0  ;;  %v6018_v60 = vmax.f32 %v10334_v6, 0.0  ;;  %v10050_v37 = vcombine.low %v6183_v14, %v6187_v21  ;;  %v6204_v6 = vld [vmem:[#allocation10 + $0x528] sm:$0xff] }
 0x4d6   :  { %v6232_v14 = vld [vmem:[#allocation10 + $0x608] sm:$0xff] }
 0x550   :  { %v5918_v0 = vpop.f32.mrb[28].mxu0 }
 0x551   :  { %v10335_v58 = vadd.f32 %v5918_v0, %v2762_v34  ;;  %v6000_v40 = vpop.f32.mrb[28].mxu1  ;;  %v5920_v41 = vpop.f32.mrb[29].mxu0  ;;  %v6200_v0 = vld [vmem:[#allocation10 + $0x508] sm:$0xff] }
 0x552   :  { %v10337_v43 = vadd.f32 %v6000_v40, %v2770_v36  ;;  %v10336_v44 = vadd.f32 %v5920_v41, %v2766_v59  ;;  %v6002_v23 = vpop.f32.mrb[29].mxu1  ;;  %v5922_v53 = vpop.f32.mrb[30].mxu0  ;;  %v6191_v36 = vld [vmem:[#allocation10 + $0x4c0] sm:$0xff] }
 0x553   :  { %v6019_v26 = vmax.f32 %v10335_v58, 0.0  ;;  %v10338_v27 = vadd.f32 %v6002_v23, %v2774_v63  ;;  %v6004_v28 = vpop.f32.mrb[30].mxu1  ;;  %v5923_v45 = vpop.f32.mrb[31].mxu0  ;;  %v6195_v59 = vld [vmem:[#allocation10 + $0x4e0] sm:$0xff]  ;;  %v6196_v63 = vld [vmem:[#allocation10 + $0x4e8] sm:$0xff] }
 0x554   :  { %v6021_v47 = vmax.f32 %v10337_v43, 0.0  ;;  %v6020_v49 = vmax.f32 %v10336_v44, 0.0  ;;  %v6005_v42 = vpop.f32.mrb[31].mxu1  ;;  %v10059_v13 = vcombine.high %v6191_v36, %v6195_v59  ;;  %v10058_v58 = vcombine.low %v6191_v36, %v6195_v59  ;;  %v6207_v44 = vld [vmem:[#allocation10 + $0x540] sm:$0xff]  ;;  %v6208_v53 = vld [vmem:[#allocation10 + $0x548] sm:$0xff] }
 0x555   :  { %v6027_v35 = vmax.f32 %v6015_v24, %v6019_v26  ;;  %v6022_v20 = vmax.f32 %v10338_v27, 0.0  ;;  %v10060_v40 = vcombine.low %v6192_v17, %v6196_v63  ;;  %v10069_v43 = vcombine.high %v6200_v0, %v6204_v6  ;;  %v6211_v23 = vld [vmem:[#allocation10 + $0x560] sm:$0xff]  ;;  %v6212_v24 = vld [vmem:[#allocation10 + $0x568] sm:$0xff] }
 0x556   :  { %v6029_v3 = vmax.f32 %v6017_v46, %v6021_v47  ;;  %v6028_v61 = vmax.f32 %v6016_v39, %v6020_v49  ;;  %v10068_v27 = vcombine.low %v6200_v0, %v6204_v6  ;;  %v10075_v28 = vcombine.high %v6207_v44, %v6211_v23  ;;  %v6215_v46 = vld [vmem:[#allocation10 + $0x580] sm:$0xff]  ;;  %v6216_v47 = vld [vmem:[#allocation10 + $0x588] sm:$0xff] }
 0x557   :  { %v6031_v50 = vmax.f32 %v11367_v10, %v6027_v35  ;;  %v6030_v51 = vmax.f32 %v6018_v60, %v6022_v20  ;;  %v10043_v10 = vcombine.high %v6175_v7, %v6179_v55  ;;  %v10077_v45 = vcombine.high %v6208_v53, %v6212_v24  ;;  %v6219_v39 = vld [vmem:[#allocation10 + $0x5a0] sm:$0xff]  ;;  %v6220_v49 = vld [vmem:[#allocation10 + $0x5a8] sm:$0xff] }
 0x558   :  { %v11403_v52 = vmax.f32 %v11369_v25, %v6029_v3  ;;  %v6032_v54 = vmax.f32 %v11371_v29, %v6028_v61  ;;  %v10045_v25 = vcombine.high %v6176_v38, %v6180_v57  ;;  %v6188_v29 = vld [vmem:[#allocation10 + $0x4a8] sm:$0xff]  ;;  %v10074_v42 = vcombine.low %v6207_v44, %v6211_v23  ;;  %v6223_v3 = vld [vmem:[#allocation10 + $0x5c0] sm:$0xff] }
 0x559   :  { %v6034_v48 = vmax.f32 %v11373_v31, %v6030_v51  ;;  %v11409_v2 = vpack.c.bf16 %v6031_v50, %v6031_v50  ;;  %v10042_v31 = vcombine.low %v6175_v7, %v6179_v55  ;;  %v10053_v34 = vcombine.high %v6184_v30, %v6188_v29  ;;  %v6227_v61 = vld [vmem:[#allocation10 + $0x5e0] sm:$0xff]  ;;  %v6224_v50 = vld [vmem:[#allocation10 + $0x5c8] sm:$0xff] }
 0x55a   :  { %v11407_v1 = vpack.c.bf16 %v6032_v54, %v6032_v54  ;;  %v10052_v56 = vcombine.low %v6184_v30, %v6188_v29  ;;  %v10076_v60 = vcombine.low %v6208_v53, %v6212_v24  ;;  %v10083_v35 = vcombine.high %v6215_v46, %v6219_v39  ;;  %v6228_v51 = vld [vmem:[#allocation10 + $0x5e8] sm:$0xff]  ;;  %v6231_v38 = vld [vmem:[#allocation10 + $0x600] sm:$0xff] }
 0x55b   :  { %v11413_v32 = vpack.c.bf16 %v6034_v48, %v6034_v48  ;;  %v10085_v20 = vcombine.high %v6216_v47, %v6220_v49  ;;  %v10082_v54 = vcombine.low %v6215_v46, %v6219_v39  ;;  %v10084_v7 = vcombine.low %v6216_v47, %v6220_v49  ;;  %v6235_v57 = vld [vmem:[#allocation10 + $0x620] sm:$0xff] }
 0x55c   :  { %7649 = vmatprep.mubr.bf16.mxu0 %v11407_v1  ;;  %7731 = vmatprep.mubr.bf16.mxu1 %v11407_v1  ;;  %v10091_v48 = vcombine.high %v6223_v3, %v6227_v61  ;;  %v10093_v55 = vcombine.high %v6224_v50, %v6228_v51  ;;  %v10092_v21 = vcombine.low %v6224_v50, %v6228_v51 }
 0x55d   :  { %7650 = vmatmul.mubr.bf16.vlgmr.msra.gmra.mrb[32].mxu0 %v11409_v2  ;;  %7732 = vmatmul.mubr.bf16.vlgmr.msra.gmra.mrb[32].mxu1 %v11409_v2  ;;  %v10099_v30 = vcombine.high %v6231_v38, %v6235_v57  ;;  %v10098_v36 = vcombine.low %v6231_v38, %v6235_v57 }
 0x55e   :  { %7659 = vmatpush1.bf16.msra.mxu0 %v10034_v62  ;;  %7741 = vmatpush1.bf16.msra.mxu1 %v10036_v11  ;;  %v10061_v62 = vcombine.high %v6192_v17, %v6196_v63  ;;  %v6199_v11 = vld [vmem:[#allocation10 + $0x500] sm:$0xff] }
 0x55f   :  { %7690 = vmatprep.mubr.bf16.mxu0 %v11413_v32  ;;  %7772 = vmatprep.mubr.bf16.mxu1 %v11413_v32  ;;  %v10067_v41 = vcombine.high %v6199_v11, %v6203_v18  ;;  %v10066_v26 = vcombine.low %v6199_v11, %v6203_v18 }
 0x560   :  { %7660 = vmatprep.subr.bf16.mxu0 %v10043_v10  ;;  %7742 = vmatprep.subr.bf16.mxu1 %v10045_v25  ;;  %v6236_v10 = vld [vmem:[#allocation10 + $0x628] sm:$0xff]  ;;  %v10090_v25 = vcombine.low %v6223_v3, %v6227_v61 }
 0x561   :  { %v10101_v29 = vcombine.high %v6232_v14, %v6236_v10  ;;  %v10100_v59 = vcombine.low %v6232_v14, %v6236_v10 }
 0x562   :  { %7661 = vmatpush1.bf16.msra.mxu0 %v10042_v31  ;;  %7743 = vmatpush1.bf16.msra.mxu1 %v10044_v33  ;;  %v6239_v31 = vld [vmem:[#allocation10 + $0x640] sm:$0xff] }
 0x563   :  { %7662 = vmatprep.subr.bf16.mxu0 %v10051_v16  ;;  %7744 = vmatprep.subr.bf16.mxu1 %v10053_v34  ;;  %v6243_v33 = vld [vmem:[#allocation10 + $0x660] sm:$0xff]  ;;  %v6240_v16 = vld [vmem:[#allocation10 + $0x648] sm:$0xff] }
 0x564   :  { %v6244_v34 = vld [vmem:[#allocation10 + $0x668] sm:$0xff]  ;;  %v10107_v17 = vcombine.high %v6239_v31, %v6243_v33  ;;  %v10106_v11 = vcombine.low %v6239_v31, %v6243_v33 }
 0x565   :  { %v10109_v63 = vcombine.high %v6240_v16, %v6244_v34  ;;  %v10108_v18 = vcombine.low %v6240_v16, %v6244_v34 }
 0x566   :  { %7663 = vmatpush1.bf16.msra.mxu0 %v10050_v37  ;;  %7745 = vmatpush1.bf16.msra.mxu1 %v10052_v56  ;;  %v6247_v37 = vld [vmem:[#allocation10 + $0x680] sm:$0xff] }
 0x567   :  { %7664 = vmatprep.subr.bf16.mxu0 %v10059_v13  ;;  %7746 = vmatprep.subr.bf16.mxu1 %v10061_v62  ;;  %v6251_v56 = vld [vmem:[#allocation10 + $0x6a0] sm:$0xff]  ;;  %v6248_v13 = vld [vmem:[#allocation10 + $0x688] sm:$0xff] }
 0x568   :  { %v6252_v62 = vld [vmem:[#allocation10 + $0x6a8] sm:$0xff]  ;;  %v10115_v0 = vcombine.high %v6247_v37, %v6251_v56  ;;  %v10114_v44 = vcombine.low %v6247_v37, %v6251_v56 }
 0x569   :  { %v10117_v6 = vcombine.high %v6248_v13, %v6252_v62  ;;  %v10116_v23 = vcombine.low %v6248_v13, %v6252_v62 }
 0x56a   :  { %7665 = vmatpush1.bf16.msra.mxu0 %v10058_v58  ;;  %7747 = vmatpush1.bf16.msra.mxu1 %v10060_v40  ;;  %v6255_v58 = vld [vmem:[#allocation10 + $0x6c0] sm:$0xff] }
 0x56b   :  { %7666 = vmatprep.subr.bf16.mxu0 %v10067_v41  ;;  %7748 = vmatprep.subr.bf16.mxu1 %v10069_v43  ;;  %v6259_v40 = vld [vmem:[#allocation10 + $0x6e0] sm:$0xff]  ;;  %v6256_v41 = vld [vmem:[#allocation10 + $0x6c8] sm:$0xff] }
 0x56c   :  { %v6260_v43 = vld [vmem:[#allocation10 + $0x6e8] sm:$0xff]  ;;  %v10123_v53 = vcombine.high %v6255_v58, %v6259_v40  ;;  %v10122_v46 = vcombine.low %v6255_v58, %v6259_v40  ;;  %v11424_v40 = vpack.c.bf16 %v11403_v52, %v11403_v52 }
 0x56d   :  { %v10125_v24 = vcombine.high %v6256_v41, %v6260_v43  ;;  %v10124_v39 = vcombine.low %v6256_v41, %v6260_v43 }
 0x56e   :  { %7667 = vmatpush1.bf16.msra.mxu0 %v10066_v26  ;;  %7749 = vmatpush1.bf16.msra.mxu1 %v10068_v27  ;;  %v6263_v26 = vld [vmem:[#allocation10 + $0x700] sm:$0xff] }
 0x56f   :  { %7668 = vmatprep.subr.bf16.mxu0 %v10075_v28  ;;  %7750 = vmatprep.subr.bf16.mxu1 %v10077_v45  ;;  %v6267_v27 = vld [vmem:[#allocation10 + $0x720] sm:$0xff]  ;;  %v6264_v28 = vld [vmem:[#allocation10 + $0x708] sm:$0xff] }
 0x570   :  { %v6268_v45 = vld [vmem:[#allocation10 + $0x728] sm:$0xff]  ;;  %v10131_v47 = vcombine.high %v6263_v26, %v6267_v27  ;;  %v10130_v3 = vcombine.low %v6263_v26, %v6267_v27  ;;  %v6062_v26 = vld [vmem:[#allocation10 + $0xb8] sm:$0xff] }
 0x571   :  { %v10133_v49 = vcombine.high %v6264_v28, %v6268_v45  ;;  %v10132_v61 = vcombine.low %v6264_v28, %v6268_v45 }
 0x572   :  { %7669 = vmatpush1.bf16.msra.mxu0 %v10074_v42  ;;  %7751 = vmatpush1.bf16.msra.mxu1 %v10076_v60  ;;  %v6271_v42 = vld [vmem:[#allocation10 + $0x740] sm:$0xff] }
 0x573   :  { %7670 = vmatprep.subr.bf16.mxu0 %v10083_v35  ;;  %7752 = vmatprep.subr.bf16.mxu1 %v10085_v20  ;;  %v6275_v60 = vld [vmem:[#allocation10 + $0x760] sm:$0xff]  ;;  %v6272_v35 = vld [vmem:[#allocation10 + $0x748] sm:$0xff] }
 0x574   :  { %v6276_v20 = vld [vmem:[#allocation10 + $0x768] sm:$0xff]  ;;  %v10139_v50 = vcombine.high %v6271_v42, %v6275_v60  ;;  %v10138_v38 = vcombine.low %v6271_v42, %v6275_v60 }
 0x575   :  { %v10141_v51 = vcombine.high %v6272_v35, %v6276_v20  ;;  %v10140_v57 = vcombine.low %v6272_v35, %v6276_v20 }
 0x576   :  { %7671 = vmatpush1.bf16.msra.mxu0 %v10082_v54  ;;  %7753 = vmatpush1.bf16.msra.mxu1 %v10084_v7  ;;  %v6279_v54 = vld [vmem:[#allocation10 + $0x780] sm:$0xff] }
 0x577   :  { %7672 = vmatprep.subr.bf16.mxu0 %v10091_v48  ;;  %7754 = vmatprep.subr.bf16.mxu1 %v10093_v55  ;;  %v6283_v7 = vld [vmem:[#allocation10 + $0x7a0] sm:$0xff]  ;;  %v6280_v48 = vld [vmem:[#allocation10 + $0x788] sm:$0xff] }
 0x578   :  { %v6284_v55 = vld [vmem:[#allocation10 + $0x7a8] sm:$0xff]  ;;  %v10147_v14 = vcombine.high %v6279_v54, %v6283_v7  ;;  %v10146_v31 = vcombine.low %v6279_v54, %v6283_v7 }
 0x579   :  { %v10149_v10 = vcombine.high %v6280_v48, %v6284_v55  ;;  %v10148_v33 = vcombine.low %v6280_v48, %v6284_v55  ;;  %v6081_v55 = vld [vmem:[#allocation10 + $0x150] sm:$0xff] }
 0x57a   :  { %7673 = vmatpush1.bf16.msra.mxu0 %v10090_v25  ;;  %7755 = vmatpush1.bf16.msra.mxu1 %v10092_v21  ;;  %v6287_v25 = vld [vmem:[#allocation10 + $0x7c0] sm:$0xff] }
 0x57b   :  { %7674 = vmatprep.subr.bf16.mxu0 %v10099_v30  ;;  %7756 = vmatprep.subr.bf16.mxu1 %v10101_v29  ;;  %v6291_v21 = vld [vmem:[#allocation10 + $0x7e0] sm:$0xff]  ;;  %v6288_v30 = vld [vmem:[#allocation10 + $0x7c8] sm:$0xff] }
 0x57c   :  { %v6292_v29 = vld [vmem:[#allocation10 + $0x7e8] sm:$0xff]  ;;  %v10155_v16 = vcombine.high %v6287_v25, %v6291_v21  ;;  %v10154_v37 = vcombine.low %v6287_v25, %v6291_v21 }
 0x57d   :  { %v10157_v34 = vcombine.high %v6288_v30, %v6292_v29  ;;  %v10156_v56 = vcombine.low %v6288_v30, %v6292_v29  ;;  %v6089_v29 = vld [vmem:[#allocation10 + $0x190] sm:$0xff] }
 0x57e   :  { %7675 = vmatpush1.bf16.msra.mxu0 %v10098_v36  ;;  %7757 = vmatpush1.bf16.msra.mxu1 %v10100_v59  ;;  %v6041_v36 = vld [vmem:[#allocation10 + $0x10] sm:$0xff] }
 0x57f   :  { %7676 = vmatprep.subr.bf16.mxu0 %v10107_v17  ;;  %7758 = vmatprep.subr.bf16.mxu1 %v10109_v63  ;;  %v6045_v59 = vld [vmem:[#allocation10 + $0x30] sm:$0xff]  ;;  %v6042_v17 = vld [vmem:[#allocation10 + $0x18] sm:$0xff] }
 0x580   :  { %v6046_v63 = vld [vmem:[#allocation10 + $0x38] sm:$0xff]  ;;  %v9911_v13 = vcombine.high %v6041_v36, %v6045_v59  ;;  %v9910_v58 = vcombine.low %v6041_v36, %v6045_v59 }
 0x581   :  { %v9913_v62 = vcombine.high %v6042_v17, %v6046_v63  ;;  %v9912_v41 = vcombine.low %v6042_v17, %v6046_v63  ;;  %v6097_v63 = vld [vmem:[#allocation10 + $0x1d0] sm:$0xff] }
 0x582   :  { %7677 = vmatpush1.bf16.msra.mxu0 %v10106_v11  ;;  %7759 = vmatpush1.bf16.msra.mxu1 %v10108_v18  ;;  %v6049_v11 = vld [vmem:[#allocation10 + $0x50] sm:$0xff] }
 0x583   :  { %7678 = vmatprep.subr.bf16.mxu0 %v10115_v0  ;;  %7760 = vmatprep.subr.bf16.mxu1 %v10117_v6  ;;  %v6053_v18 = vld [vmem:[#allocation10 + $0x70] sm:$0xff]  ;;  %v6050_v0 = vld [vmem:[#allocation10 + $0x58] sm:$0xff] }
 0x584   :  { %v6054_v6 = vld [vmem:[#allocation10 + $0x78] sm:$0xff]  ;;  %v9919_v43 = vcombine.high %v6049_v11, %v6053_v18  ;;  %v9918_v27 = vcombine.low %v6049_v11, %v6053_v18 }
 0x585   :  { %v9920_v52 = vcombine.low %v6050_v0, %v6054_v6 }
 0x586   :  { %7679 = vmatpush1.bf16.msra.mxu0 %v10114_v44  ;;  %7761 = vmatpush1.bf16.msra.mxu1 %v10116_v23  ;;  %v9921_v44 = vcombine.high %v6050_v0, %v6054_v6  ;;  %v6057_v23 = vld [vmem:[#allocation10 + $0x90] sm:$0xff] }
 0x587   :  { %7680 = vmatprep.subr.bf16.mxu0 %v10123_v53  ;;  %7762 = vmatprep.subr.bf16.mxu1 %v10125_v24  ;;  %v6061_v53 = vld [vmem:[#allocation10 + $0xb0] sm:$0xff]  ;;  %v6058_v24 = vld [vmem:[#allocation10 + $0x98] sm:$0xff] }
 0x588   :  { %v9927_v28 = vcombine.high %v6057_v23, %v6061_v53  ;;  %v9929_v45 = vcombine.high %v6058_v24, %v6062_v26  ;;  %v9926_v42 = vcombine.low %v6057_v23, %v6061_v53  ;;  %v9928_v60 = vcombine.low %v6058_v24, %v6062_v26  ;;  %v6105_v6 = vld [vmem:[#allocation10 + $0x210] sm:$0xff] }
 0x589   :  { %v6113_v26 = vld [vmem:[#allocation10 + $0x250] sm:$0xff] }
 0x58a   :  { %7681 = vmatpush1.bf16.msra.mxu0 %v10122_v46  ;;  %7763 = vmatpush1.bf16.msra.mxu1 %v10124_v39  ;;  %v6065_v46 = vld [vmem:[#allocation10 + $0xd0] sm:$0xff] }
 0x58b   :  { %7682 = vmatprep.subr.bf16.mxu0 %v10131_v47  ;;  %7764 = vmatprep.subr.bf16.mxu1 %v10133_v49  ;;  %v6069_v39 = vld [vmem:[#allocation10 + $0xf0] sm:$0xff]  ;;  %v6066_v47 = vld [vmem:[#allocation10 + $0xd8] sm:$0xff] }
 0x58c   :  { %v6070_v49 = vld [vmem:[#allocation10 + $0xf8] sm:$0xff]  ;;  %v9935_v35 = vcombine.high %v6065_v46, %v6069_v39 }
 0x58d   :  { %v9937_v20 = vcombine.high %v6066_v47, %v6070_v49  ;;  %v9936_v54 = vcombine.low %v6066_v47, %v6070_v49  ;;  %v6121_v49 = vld [vmem:[#allocation10 + $0x290] sm:$0xff] }
 0x58e   :  { %7683 = vmatpush1.bf16.msra.mxu0 %v10130_v3  ;;  %7765 = vmatpush1.bf16.msra.mxu1 %v10132_v61  ;;  %v6073_v3 = vld [vmem:[#allocation10 + $0x110] sm:$0xff] }
 0x58f   :  { %7684 = vmatprep.subr.bf16.mxu0 %v10139_v50  ;;  %7766 = vmatprep.subr.bf16.mxu1 %v10141_v51  ;;  %v6077_v61 = vld [vmem:[#allocation10 + $0x130] sm:$0xff]  ;;  %v6078_v50 = vld [vmem:[#allocation10 + $0x138] sm:$0xff]  ;;  %v9934_v51 = vcombine.low %v6065_v46, %v6069_v39 }
 0x590   :  { %v9943_v7 = vcombine.high %v6073_v3, %v6077_v61 }
 0x592   :  { %7685 = vmatpush1.bf16.msra.mxu0 %v10138_v38  ;;  %7767 = vmatpush1.bf16.msra.mxu1 %v10140_v57  ;;  %v6085_v38 = vld [vmem:[#allocation10 + $0x170] sm:$0xff]  ;;  %v6082_v57 = vld [vmem:[#allocation10 + $0x158] sm:$0xff] }
 0x593   :  { %7686 = vmatprep.subr.bf16.mxu0 %v10147_v14  ;;  %7768 = vmatprep.subr.bf16.mxu1 %v10149_v10  ;;  %v6086_v14 = vld [vmem:[#allocation10 + $0x178] sm:$0xff]  ;;  %v9942_v10 = vcombine.low %v6073_v3, %v6077_v61  ;;  %v9951_v21 = vcombine.high %v6081_v55, %v6085_v38 }
 0x594   :  { %v9953_v30 = vcombine.high %v6082_v57, %v6086_v14  ;;  %v9952_v36 = vcombine.low %v6082_v57, %v6086_v14  ;;  %v6137_v14 = vld [vmem:[#allocation10 + $0x310] sm:$0xff] }
 0x596   :  { %7687 = vmatpush1.bf16.msra.mxu0 %v10146_v31  ;;  %7769 = vmatpush1.bf16.msra.mxu1 %v10148_v33  ;;  %v6093_v31 = vld [vmem:[#allocation10 + $0x1b0] sm:$0xff]  ;;  %v6090_v33 = vld [vmem:[#allocation10 + $0x198] sm:$0xff] }
 0x597   :  { %7688 = vmatprep.subr.bf16.mxu0 %v10155_v16  ;;  %7770 = vmatprep.subr.bf16.mxu1 %v10157_v34  ;;  %v6094_v16 = vld [vmem:[#allocation10 + $0x1b8] sm:$0xff]  ;;  %v9950_v34 = vcombine.low %v6081_v55, %v6085_v38  ;;  %v9959_v59 = vcombine.high %v6089_v29, %v6093_v31 }
 0x598   :  { %v9961_v17 = vcombine.high %v6090_v33, %v6094_v16  ;;  %v9960_v11 = vcombine.low %v6090_v33, %v6094_v16  ;;  %v6145_v16 = vld [vmem:[#allocation10 + $0x350] sm:$0xff] }
 0x59a   :  { %7689 = vmatpush1.bf16.msra.mxu0 %v10154_v37  ;;  %7771 = vmatpush1.bf16.msra.mxu1 %v10156_v56  ;;  %v6101_v37 = vld [vmem:[#allocation10 + $0x1f0] sm:$0xff]  ;;  %v6098_v56 = vld [vmem:[#allocation10 + $0x1d8] sm:$0xff] }
 0x59b   :  { %7781 = vmatprep.subr.bf16.mxu0 %v9911_v13  ;;  %7863 = vmatprep.subr.bf16.mxu1 %v9913_v62  ;;  %v6102_v13 = vld [vmem:[#allocation10 + $0x1f8] sm:$0xff]  ;;  %v9958_v62 = vcombine.low %v6089_v29, %v6093_v31  ;;  %v9967_v18 = vcombine.high %v6097_v63, %v6101_v37 }
 0x59c   :  { %v9969_v0 = vcombine.high %v6098_v56, %v6102_v13  ;;  %v9968_v23 = vcombine.low %v6098_v56, %v6102_v13  ;;  %v6153_v13 = vld [vmem:[#allocation10 + $0x390] sm:$0xff] }
 0x59d   :  { %7691 = vmatmul.mubr.bf16.vlgmr.msra.gmra.mrb[32].mxu0 %v11424_v40  ;;  %7773 = vmatmul.mubr.bf16.vlgmr.msra.gmra.mrb[32].mxu1 %v11424_v40 }
 0x59e   :  { %7782 = vmatpush1.bf16.msra.mxu0 %v9910_v58  ;;  %7813 = vmatprep.mubr.bf16.mxu0 %v11407_v1  ;;  %v6109_v58 = vld [vmem:[#allocation10 + $0x230] sm:$0xff] }
 0x59f   :  { %7864 = vmatpush1.bf16.msra.mxu1 %v9912_v41  ;;  %7895 = vmatprep.mubr.bf16.mxu1 %v11407_v1  ;;  %v6074_v1 = vld [vmem:[#allocation10 + $0x118] sm:$0xff]  ;;  %v9975_v53 = vcombine.high %v6105_v6, %v6109_v58 }
 0x5a0   :  { %7783 = vmatprep.subr.bf16.mxu0 %v9919_v43  ;;  %7865 = vmatprep.subr.bf16.mxu1 %v9921_v44  ;;  %v9945_v48 = vcombine.high %v6074_v1, %v6078_v50  ;;  %v9944_v25 = vcombine.low %v6074_v1, %v6078_v50  ;;  %v6106_v41 = vld [vmem:[#allocation10 + $0x218] sm:$0xff]  ;;  %v9966_v44 = vcombine.low %v6097_v63, %v6101_v37  ;;  %v6129_v50 = vld [vmem:[#allocation10 + $0x2d0] sm:$0xff] }
 0x5a1   :  { %v6110_v43 = vld [vmem:[#allocation10 + $0x238] sm:$0xff] }
 0x5a2   :  { %7784 = vmatpush1.bf16.msra.mxu0 %v9918_v27  ;;  %v9977_v24 = vcombine.high %v6106_v41, %v6110_v43  ;;  %v6117_v27 = vld [vmem:[#allocation10 + $0x270] sm:$0xff]  ;;  %v9976_v46 = vcombine.low %v6106_v41, %v6110_v43 }
 0x5a3   :  { %7866 = vmatpush1.bf16.msra.mxu1 %v9920_v52  ;;  %7785 = vmatprep.subr.bf16.mxu0 %v9927_v28  ;;  %v6114_v52 = vld [vmem:[#allocation10 + $0x258] sm:$0xff]  ;;  %v9983_v39 = vcombine.high %v6113_v26, %v6117_v27  ;;  %v6161_v43 = vld [vmem:[#allocation10 + $0x3d0] sm:$0xff] }
 0x5a4   :  { %7867 = vmatprep.subr.bf16.mxu1 %v9929_v45  ;;  %v6118_v28 = vld [vmem:[#allocation10 + $0x278] sm:$0xff]  ;;  %v9974_v45 = vcombine.low %v6105_v6, %v6109_v58 }
 0x5a5   :  { %v9985_v47 = vcombine.high %v6114_v52, %v6118_v28  ;;  %v9984_v3 = vcombine.low %v6114_v52, %v6118_v28  ;;  %v6169_v28 = vld [vmem:[#allocation10 + $0x410] sm:$0xff] }
 0x5a6   :  { %7786 = vmatpush1.bf16.msra.mxu0 %v9926_v42  ;;  %v6125_v42 = vld [vmem:[#allocation10 + $0x2b0] sm:$0xff] }
 0x5a7   :  { %7868 = vmatpush1.bf16.msra.mxu1 %v9928_v60  ;;  %7787 = vmatprep.subr.bf16.mxu0 %v9935_v35  ;;  %v6122_v60 = vld [vmem:[#allocation10 + $0x298] sm:$0xff]  ;;  %v9991_v61 = vcombine.high %v6121_v49, %v6125_v42 }
 0x5a8   :  { %7869 = vmatprep.subr.bf16.mxu1 %v9937_v20  ;;  %v6126_v35 = vld [vmem:[#allocation10 + $0x2b8] sm:$0xff]  ;;  %v9982_v20 = vcombine.low %v6113_v26, %v6117_v27 }
 0x5a9   :  { %v9993_v1 = vcombine.high %v6122_v60, %v6126_v35  ;;  %v9992_v55 = vcombine.low %v6122_v60, %v6126_v35  ;;  %v6177_v35 = vld [vmem:[#allocation10 + $0x450] sm:$0xff] }
 0x5aa   :  { %7788 = vmatpush1.bf16.msra.mxu0 %v9934_v51  ;;  %v6133_v51 = vld [vmem:[#allocation10 + $0x2f0] sm:$0xff] }
 0x5ab   :  { %7870 = vmatpush1.bf16.msra.mxu1 %v9936_v54  ;;  %7789 = vmatprep.subr.bf16.mxu0 %v9943_v7  ;;  %v6130_v54 = vld [vmem:[#allocation10 + $0x2d8] sm:$0xff]  ;;  %v9999_v38 = vcombine.high %v6129_v50, %v6133_v51 }
 0x5ac   :  { %7871 = vmatprep.subr.bf16.mxu1 %v9945_v48  ;;  %v6134_v7 = vld [vmem:[#allocation10 + $0x2f8] sm:$0xff]  ;;  %v9990_v48 = vcombine.low %v6121_v49, %v6125_v42 }
 0x5ad   :  { %v10001_v57 = vcombine.high %v6130_v54, %v6134_v7  ;;  %v10000_v29 = vcombine.low %v6130_v54, %v6134_v7  ;;  %v6185_v54 = vld [vmem:[#allocation10 + $0x490] sm:$0xff] }
 0x5ae   :  { %7790 = vmatpush1.bf16.msra.mxu0 %v9942_v10  ;;  %v6141_v10 = vld [vmem:[#allocation10 + $0x330] sm:$0xff] }
 0x5af   :  { %7872 = vmatpush1.bf16.msra.mxu1 %v9944_v25  ;;  %7791 = vmatprep.subr.bf16.mxu0 %v9951_v21  ;;  %v6138_v25 = vld [vmem:[#allocation10 + $0x318] sm:$0xff]  ;;  %v10007_v31 = vcombine.high %v6137_v14, %v6141_v10  ;;  %v6189_v7 = vld [vmem:[#allocation10 + $0x4b0] sm:$0xff] }
 0x5b0   :  { %7873 = vmatprep.subr.bf16.mxu1 %v9953_v30  ;;  %v6142_v21 = vld [vmem:[#allocation10 + $0x338] sm:$0xff]  ;;  %v9998_v30 = vcombine.low %v6129_v50, %v6133_v51 }
 0x5b1   :  { %v10009_v33 = vcombine.high %v6138_v25, %v6142_v21  ;;  %v10008_v63 = vcombine.low %v6138_v25, %v6142_v21  ;;  %v6193_v21 = vld [vmem:[#allocation10 + $0x4d0] sm:$0xff] }
 0x5b2   :  { %7792 = vmatpush1.bf16.msra.mxu0 %v9950_v34  ;;  %v6149_v34 = vld [vmem:[#allocation10 + $0x370] sm:$0xff] }
 0x5b3   :  { %7874 = vmatpush1.bf16.msra.mxu1 %v9952_v36  ;;  %7793 = vmatprep.subr.bf16.mxu0 %v9959_v59  ;;  %v6146_v36 = vld [vmem:[#allocation10 + $0x358] sm:$0xff]  ;;  %v10015_v37 = vcombine.high %v6145_v16, %v6149_v34 }
 0x5b4   :  { %7875 = vmatprep.subr.bf16.mxu1 %v9961_v17  ;;  %v6150_v59 = vld [vmem:[#allocation10 + $0x378] sm:$0xff]  ;;  %v10006_v17 = vcombine.low %v6137_v14, %v6141_v10  ;;  %v10055_v10 = vcombine.high %v6185_v54, %v6189_v7 }
 0x5b5   :  { %v10017_v56 = vcombine.high %v6146_v36, %v6150_v59  ;;  %v10016_v6 = vcombine.low %v6146_v36, %v6150_v59  ;;  %v6201_v36 = vld [vmem:[#allocation10 + $0x510] sm:$0xff] }
 0x5b6   :  { %7794 = vmatpush1.bf16.msra.mxu0 %v9958_v62  ;;  %v6157_v62 = vld [vmem:[#allocation10 + $0x3b0] sm:$0xff] }
 0x5b7   :  { %7876 = vmatpush1.bf16.msra.mxu1 %v9960_v11  ;;  %7795 = vmatprep.subr.bf16.mxu0 %v9967_v18  ;;  %v6154_v11 = vld [vmem:[#allocation10 + $0x398] sm:$0xff]  ;;  %v10023_v58 = vcombine.high %v6153_v13, %v6157_v62  ;;  %v6205_v59 = vld [vmem:[#allocation10 + $0x530] sm:$0xff] }
 0x5b8   :  { %7877 = vmatprep.subr.bf16.mxu1 %v9969_v0  ;;  %v6158_v18 = vld [vmem:[#allocation10 + $0x3b8] sm:$0xff]  ;;  %v10014_v0 = vcombine.low %v6145_v16, %v6149_v34 }
 0x5b9   :  { %v10025_v41 = vcombine.high %v6154_v11, %v6158_v18  ;;  %v10024_v26 = vcombine.low %v6154_v11, %v6158_v18  ;;  %v6213_v11 = vld [vmem:[#allocation10 + $0x570] sm:$0xff]  ;;  %v6210_v18 = vld [vmem:[#allocation10 + $0x558] sm:$0xff] }
 0x5ba   :  { %7796 = vmatpush1.bf16.msra.mxu0 %v9966_v44  ;;  %v6165_v44 = vld [vmem:[#allocation10 + $0x3f0] sm:$0xff] }
 0x5bb   :  { %7878 = vmatpush1.bf16.msra.mxu1 %v9968_v23  ;;  %7797 = vmatprep.subr.bf16.mxu0 %v9975_v53  ;;  %v6162_v23 = vld [vmem:[#allocation10 + $0x3d8] sm:$0xff]  ;;  %v10031_v27 = vcombine.high %v6161_v43, %v6165_v44 }
 0x5bc   :  { %7879 = vmatprep.subr.bf16.mxu1 %v9977_v24  ;;  %v6166_v53 = vld [vmem:[#allocation10 + $0x3f8] sm:$0xff]  ;;  %v10022_v24 = vcombine.low %v6153_v13, %v6157_v62  ;;  %v6209_v62 = vld [vmem:[#allocation10 + $0x550] sm:$0xff] }
 0x5bd   :  { %v10033_v52 = vcombine.high %v6162_v23, %v6166_v53  ;;  %v10032_v49 = vcombine.low %v6162_v23, %v6166_v53  ;;  %v6221_v23 = vld [vmem:[#allocation10 + $0x5b0] sm:$0xff]  ;;  %v6218_v53 = vld [vmem:[#allocation10 + $0x598] sm:$0xff] }
 0x5be   :  { %7798 = vmatpush1.bf16.msra.mxu0 %v9974_v45  ;;  %v6173_v45 = vld [vmem:[#allocation10 + $0x430] sm:$0xff] }
 0x5bf   :  { %7880 = vmatpush1.bf16.msra.mxu1 %v9976_v46  ;;  %7799 = vmatprep.subr.bf16.mxu0 %v9983_v39  ;;  %v6170_v46 = vld [vmem:[#allocation10 + $0x418] sm:$0xff]  ;;  %v10039_v42 = vcombine.high %v6169_v28, %v6173_v45 }
 0x5c0   :  { %7881 = vmatprep.subr.bf16.mxu1 %v9985_v47  ;;  %v6174_v39 = vld [vmem:[#allocation10 + $0x438] sm:$0xff]  ;;  %v10030_v47 = vcombine.low %v6161_v43, %v6165_v44  ;;  %v6217_v44 = vld [vmem:[#allocation10 + $0x590] sm:$0xff] }
 0x5c1   :  { %v10041_v60 = vcombine.high %v6170_v46, %v6174_v39  ;;  %v10040_v50 = vcombine.low %v6170_v46, %v6174_v39  ;;  %v6229_v46 = vld [vmem:[#allocation10 + $0x5f0] sm:$0xff]  ;;  %v6226_v39 = vld [vmem:[#allocation10 + $0x5d8] sm:$0xff] }
 0x5c2   :  { %7800 = vmatpush1.bf16.msra.mxu0 %v9982_v20  ;;  %v6181_v20 = vld [vmem:[#allocation10 + $0x470] sm:$0xff] }
 0x5c3   :  { %7882 = vmatpush1.bf16.msra.mxu1 %v9984_v3  ;;  %7801 = vmatprep.subr.bf16.mxu0 %v9991_v61  ;;  %v10038_v3 = vcombine.low %v6169_v28, %v6173_v45  ;;  %v6178_v61 = vld [vmem:[#allocation10 + $0x458] sm:$0xff]  ;;  %v10047_v51 = vcombine.high %v6177_v35, %v6181_v20  ;;  %v6225_v45 = vld [vmem:[#allocation10 + $0x5d0] sm:$0xff] }
 0x5c4   :  { %7883 = vmatprep.subr.bf16.mxu1 %v9993_v1  ;;  %v6182_v1 = vld [vmem:[#allocation10 + $0x478] sm:$0xff] }
 0x5c5   :  { %v10048_v14 = vcombine.low %v6178_v61, %v6182_v1 }
 0x5c6   :  { %7802 = vmatpush1.bf16.msra.mxu0 %v9990_v48  ;;  %v10049_v48 = vcombine.high %v6178_v61, %v6182_v1  ;;  %v6234_v61 = vld [vmem:[#allocation10 + $0x618] sm:$0xff] }
 0x5c7   :  { %7884 = vmatpush1.bf16.msra.mxu1 %v9992_v55  ;;  %7803 = vmatprep.subr.bf16.mxu0 %v9999_v38  ;;  %v6186_v55 = vld [vmem:[#allocation10 + $0x498] sm:$0xff] }
 0x5c8   :  { %7885 = vmatprep.subr.bf16.mxu1 %v10001_v57  ;;  %v6190_v38 = vld [vmem:[#allocation10 + $0x4b8] sm:$0xff]  ;;  %v10046_v57 = vcombine.low %v6177_v35, %v6181_v20  ;;  %v6233_v20 = vld [vmem:[#allocation10 + $0x610] sm:$0xff] }
 0x5c9   :  { %v10057_v25 = vcombine.high %v6186_v55, %v6190_v38  ;;  %v6238_v1 = vld [vmem:[#allocation10 + $0x638] sm:$0xff] }
 0x5ca   :  { %7804 = vmatpush1.bf16.msra.mxu0 %v9998_v30  ;;  %v6197_v30 = vld [vmem:[#allocation10 + $0x4f0] sm:$0xff] }
 0x5cb   :  { %7886 = vmatpush1.bf16.msra.mxu1 %v10000_v29  ;;  %7805 = vmatprep.subr.bf16.mxu0 %v10007_v31  ;;  %v6194_v29 = vld [vmem:[#allocation10 + $0x4d8] sm:$0xff]  ;;  %v10063_v16 = vcombine.high %v6193_v21, %v6197_v30 }
 0x5cc   :  { %7887 = vmatprep.subr.bf16.mxu1 %v10009_v33  ;;  %v6198_v31 = vld [vmem:[#allocation10 + $0x4f8] sm:$0xff]  ;;  %v10054_v33 = vcombine.low %v6185_v54, %v6189_v7  ;;  %v10105_v7 = vcombine.high %v6234_v61, %v6238_v1 }
 0x5cd   :  { %v10065_v34 = vcombine.high %v6194_v29, %v6198_v31 }
 0x5ce   :  { %7806 = vmatpush1.bf16.msra.mxu0 %v10006_v17  ;;  %v6202_v17 = vld [vmem:[#allocation10 + $0x518] sm:$0xff] }
 0x5cf   :  { %7888 = vmatpush1.bf16.msra.mxu1 %v10008_v63  ;;  %7807 = vmatprep.subr.bf16.mxu0 %v10015_v37  ;;  %v6206_v63 = vld [vmem:[#allocation10 + $0x538] sm:$0xff]  ;;  %v10064_v37 = vcombine.low %v6194_v29, %v6198_v31  ;;  %v6253_v29 = vld [vmem:[#allocation10 + $0x6b0] sm:$0xff] }
 0x5d0   :  { %7889 = vmatprep.subr.bf16.mxu1 %v10017_v56  ;;  %v10071_v56 = vcombine.high %v6201_v36, %v6205_v59  ;;  %v10073_v13 = vcombine.high %v6202_v17, %v6206_v63  ;;  %v6250_v31 = vld [vmem:[#allocation10 + $0x698] sm:$0xff] }
 0x5d2   :  { %7808 = vmatpush1.bf16.msra.mxu0 %v10014_v0  ;;  %v6214_v0 = vld [vmem:[#allocation10 + $0x578] sm:$0xff] }
 0x5d3   :  { %7890 = vmatpush1.bf16.msra.mxu1 %v10016_v6  ;;  %7809 = vmatprep.subr.bf16.mxu0 %v10023_v58  ;;  %v10070_v6 = vcombine.low %v6201_v36, %v6205_v59  ;;  %v10072_v58 = vcombine.low %v6202_v17, %v6206_v63  ;;  %v10081_v43 = vcombine.high %v6210_v18, %v6214_v0  ;;  %v6257_v59 = vld [vmem:[#allocation10 + $0x6d0] sm:$0xff]  ;;  %v6258_v63 = vld [vmem:[#allocation10 + $0x6d8] sm:$0xff] }
 0x5d4   :  { %7891 = vmatprep.subr.bf16.mxu1 %v10025_v41  ;;  %v10079_v41 = vcombine.high %v6209_v62, %v6213_v11  ;;  %v6261_v17 = vld [vmem:[#allocation10 + $0x6f0] sm:$0xff] }
 0x5d6   :  { %7810 = vmatpush1.bf16.msra.mxu0 %v10022_v24  ;;  %v6222_v24 = vld [vmem:[#allocation10 + $0x5b8] sm:$0xff] }
 0x5d7   :  { %7892 = vmatpush1.bf16.msra.mxu1 %v10024_v26  ;;  %7811 = vmatprep.subr.bf16.mxu0 %v10031_v27  ;;  %v10078_v26 = vcombine.low %v6209_v62, %v6213_v11  ;;  %v10080_v27 = vcombine.low %v6210_v18, %v6214_v0  ;;  %v10089_v28 = vcombine.high %v6218_v53, %v6222_v24  ;;  %v6265_v11 = vld [vmem:[#allocation10 + $0x710] sm:$0xff]  ;;  %v6266_v0 = vld [vmem:[#allocation10 + $0x718] sm:$0xff] }
 0x5d8   :  { %7893 = vmatprep.subr.bf16.mxu1 %v10033_v52  ;;  %v10087_v52 = vcombine.high %v6217_v44, %v6221_v23  ;;  %v6269_v18 = vld [vmem:[#allocation10 + $0x730] sm:$0xff] }
 0x5da   :  { %7812 = vmatpush1.bf16.msra.mxu0 %v10030_v47  ;;  %v6230_v47 = vld [vmem:[#allocation10 + $0x5f8] sm:$0xff] }
 0x5db   :  { %7894 = vmatpush1.bf16.msra.mxu1 %v10032_v49  ;;  %7822 = vmatprep.subr.bf16.mxu0 %v10039_v42  ;;  %v10086_v49 = vcombine.low %v6217_v44, %v6221_v23  ;;  %v10088_v42 = vcombine.low %v6218_v53, %v6222_v24  ;;  %v10097_v35 = vcombine.high %v6226_v39, %v6230_v47  ;;  %v6273_v23 = vld [vmem:[#allocation10 + $0x750] sm:$0xff]  ;;  %v6274_v24 = vld [vmem:[#allocation10 + $0x758] sm:$0xff] }
 0x5dc   :  { %7904 = vmatprep.subr.bf16.mxu1 %v10041_v60  ;;  %v10095_v60 = vcombine.high %v6225_v45, %v6229_v46  ;;  %v6277_v53 = vld [vmem:[#allocation10 + $0x770] sm:$0xff] }
 0x5dd   :  { %7814 = vmatmul.mubr.bf16.vlgmr.msra.gmra.mrb[36].mxu0 %v11409_v2 }
 0x5de   :  { %7896 = vmatmul.mubr.bf16.vlgmr.msra.gmra.mrb[36].mxu1 %v11409_v2  ;;  %7823 = vmatpush1.bf16.msra.mxu0 %v10038_v3  ;;  %v10056_v2 = vcombine.low %v6186_v55, %v6190_v38  ;;  %v6237_v3 = vld [vmem:[#allocation10 + $0x630] sm:$0xff]  ;;  %v6242_v38 = vld [vmem:[#allocation10 + $0x658] sm:$0xff] }
 0x5df   :  { %7854 = vmatprep.mubr.bf16.mxu0 %v11413_v32  ;;  %7905 = vmatpush1.bf16.msra.mxu1 %v10040_v50  ;;  %v10094_v50 = vcombine.low %v6225_v45, %v6229_v46  ;;  %v10103_v54 = vcombine.high %v6233_v20, %v6237_v3  ;;  %v6245_v55 = vld [vmem:[#allocation10 + $0x670] sm:$0xff] }
 0x5e0   :  { %7936 = vmatprep.mubr.bf16.mxu1 %v11413_v32  ;;  %7824 = vmatprep.subr.bf16.mxu0 %v10047_v51  ;;  %v10062_v32 = vcombine.low %v6193_v21, %v6197_v30  ;;  %v10096_v51 = vcombine.low %v6226_v39, %v6230_v47  ;;  %v6249_v30 = vld [vmem:[#allocation10 + $0x690] sm:$0xff]  ;;  %v6282_v47 = vld [vmem:[#allocation10 + $0x798] sm:$0xff] }
 0x5e1   :  { %7906 = vmatprep.subr.bf16.mxu1 %v10049_v48  ;;  %v6241_v48 = vld [vmem:[#allocation10 + $0x650] sm:$0xff] }
 0x5e2   :  { %7825 = vmatpush1.bf16.msra.mxu0 %v10046_v57  ;;  %v6246_v57 = vld [vmem:[#allocation10 + $0x678] sm:$0xff]  ;;  %v6281_v46 = vld [vmem:[#allocation10 + $0x790] sm:$0xff] }
 0x5e3   :  { %7907 = vmatpush1.bf16.msra.mxu1 %v10048_v14  ;;  %7826 = vmatprep.subr.bf16.mxu0 %v10055_v10  ;;  %v10102_v14 = vcombine.low %v6233_v20, %v6237_v3  ;;  %v10104_v10 = vcombine.low %v6234_v61, %v6238_v1  ;;  %v10113_v21 = vcombine.high %v6242_v38, %v6246_v57  ;;  %v6285_v39 = vld [vmem:[#allocation10 + $0x7b0] sm:$0xff]  ;;  %v6290_v1 = vld [vmem:[#allocation10 + $0x7d8] sm:$0xff] }
 0x5e4   :  { %7908 = vmatprep.subr.bf16.mxu1 %v10057_v25  ;;  %v10111_v25 = vcombine.high %v6241_v48, %v6245_v55  ;;  %v6289_v3 = vld [vmem:[#allocation10 + $0x7d0] sm:$0xff] }
 0x5e5   :  { %v6293_v61 = vld [vmem:[#allocation10 + $0x7f0] sm:$0xff] }
 0x5e6   :  { %7827 = vmatpush1.bf16.msra.mxu0 %v10054_v33  ;;  %v6254_v33 = vld [vmem:[#allocation10 + $0x6b8] sm:$0xff] }
 0x5e7   :  { %7909 = vmatpush1.bf16.msra.mxu1 %v10056_v2  ;;  %7828 = vmatprep.subr.bf16.mxu0 %v10063_v16  ;;  %v10110_v2 = vcombine.low %v6241_v48, %v6245_v55  ;;  %v10112_v16 = vcombine.low %v6242_v38, %v6246_v57  ;;  %v10121_v36 = vcombine.high %v6250_v31, %v6254_v33  ;;  %v10426_v57 = vld [vmem:[%s11723_s7 + $0x4] ss:$16 sps:$4 sm:$0xff]  }
 0x5e8   :  { %7910 = vmatprep.subr.bf16.mxu1 %v10065_v34  ;;  %v10119_v34 = vcombine.high %v6249_v30, %v6253_v29  ;;  %v10158_v55 = vcombine.low %v6289_v3, %v6293_v61 }
 0x5ea   :  { %7829 = vmatpush1.bf16.msra.mxu0 %v10062_v32  ;;  %v6262_v32 = vld [vmem:[#allocation10 + $0x6f8] sm:$0xff] }
 0x5eb   :  { %7911 = vmatpush1.bf16.msra.mxu1 %v10064_v37  ;;  %7830 = vmatprep.subr.bf16.mxu0 %v10071_v56  ;;  %v10118_v37 = vcombine.low %v6249_v30, %v6253_v29  ;;  %v10120_v56 = vcombine.low %v6250_v31, %v6254_v33  ;;  %v10129_v62 = vcombine.high %v6258_v63, %v6262_v32  ;;  %v10435_v30 = vld [vmem:[%s11723_s7 + $0x2c] ss:$16 sps:$4 sm:$0xff]   ;;  %v10430_v29 = vld [vmem:[%s11723_s7 + $0x20] ss:$16 sps:$4 sm:$0xff]   ;;  %v10433_v31 = vld [vmem:[%s11723_s7 + $0x28] ss:$16 sps:$4 sm:$0xff]  }
 0x5ec   :  { %7912 = vmatprep.subr.bf16.mxu1 %v10073_v13  ;;  %v10127_v13 = vcombine.high %v6257_v59, %v6261_v17  ;;  %v10438_v33 = vld [vmem:[%s11723_s7 + $0x44] ss:$16 sps:$4 sm:$0xff]  }
 0x5ee   :  { %7831 = vmatpush1.bf16.msra.mxu0 %v10070_v6  ;;  %v6270_v6 = vld [vmem:[#allocation10 + $0x738] sm:$0xff] }
 0x5ef   :  { %7913 = vmatpush1.bf16.msra.mxu1 %v10072_v58  ;;  %7832 = vmatprep.subr.bf16.mxu0 %v10079_v41  ;;  %v10126_v58 = vcombine.low %v6257_v59, %v6261_v17  ;;  %v10128_v41 = vcombine.low %v6258_v63, %v6262_v32  ;;  %v10137_v44 = vcombine.high %v6266_v0, %v6270_v6  ;;  %v10442_v59 = vld [vmem:[%s11723_s7 + $0x60] ss:$16 sps:$4 sm:$0xff]   ;;  %v10445_v17 = vld [vmem:[%s11723_s7 + $0x68] ss:$16 sps:$4 sm:$0xff]   ;;  %v10450_v63 = vld [vmem:[%s11723_s7 + $0x84] ss:$16 sps:$4 sm:$0xff]  }
 0x5f0   :  { %7914 = vmatprep.subr.bf16.mxu1 %v10081_v43  ;;  %v10135_v43 = vcombine.high %v6265_v11, %v6269_v18  ;;  %v10453_v32 = vld [vmem:[%s11723_s7 + $0x8c] ss:$16 sps:$4 sm:$0xff]  }
 0x5f2   :  { %7833 = vmatpush1.bf16.msra.mxu0 %v10078_v26  ;;  %v6278_v26 = vld [vmem:[#allocation10 + $0x778] sm:$0xff] }
 0x5f3   :  { %7915 = vmatpush1.bf16.msra.mxu1 %v10080_v27  ;;  %7834 = vmatprep.subr.bf16.mxu0 %v10087_v52  ;;  %v10134_v27 = vcombine.low %v6265_v11, %v6269_v18  ;;  %v10136_v52 = vcombine.low %v6266_v0, %v6270_v6  ;;  %v10145_v45 = vcombine.high %v6274_v24, %v6278_v26  ;;  %v10454_v11 = vld [vmem:[%s11723_s7 + $0xa0] ss:$16 sps:$4 sm:$0xff]   ;;  %v10457_v18 = vld [vmem:[%s11723_s7 + $0xa8] ss:$16 sps:$4 sm:$0xff]   ;;  %v10462_v0 = vld [vmem:[%s11723_s7 + $0xc4] ss:$16 sps:$4 sm:$0xff]  }
 0x5f4   :  { %7916 = vmatprep.subr.bf16.mxu1 %v10089_v28  ;;  %v10143_v28 = vcombine.high %v6273_v23, %v6277_v53  ;;  %v10465_v6 = vld [vmem:[%s11723_s7 + $0xcc] ss:$16 sps:$4 sm:$0xff]  }
 0x5f6   :  { %7835 = vmatpush1.bf16.msra.mxu0 %v10086_v49  ;;  %v6286_v49 = vld [vmem:[#allocation10 + $0x7b8] sm:$0xff] }
 0x5f7   :  { %7917 = vmatpush1.bf16.msra.mxu1 %v10088_v42  ;;  %7836 = vmatprep.subr.bf16.mxu0 %v10095_v60  ;;  %v10142_v42 = vcombine.low %v6273_v23, %v6277_v53  ;;  %v10144_v60 = vcombine.low %v6274_v24, %v6278_v26  ;;  %v10153_v20 = vcombine.high %v6282_v47, %v6286_v49  ;;  %v10466_v23 = vld [vmem:[%s11723_s7 + $0xe0] ss:$16 sps:$4 sm:$0xff]   ;;  %v10469_v53 = vld [vmem:[%s11723_s7 + $0xe8] ss:$16 sps:$4 sm:$0xff]   ;;  %v10474_v24 = vld [vmem:[%s11723_s7 + $0x104] ss:$16 sps:$4 sm:$0xff]  }
 0x5f8   :  { %7918 = vmatprep.subr.bf16.mxu1 %v10097_v35  ;;  %v10151_v35 = vcombine.high %v6281_v46, %v6285_v39  ;;  %v10477_v26 = vld [vmem:[%s11723_s7 + $0x10c] ss:$16 sps:$4 sm:$0xff]  }
 0x5fa   :  { %7837 = vmatpush1.bf16.msra.mxu0 %v10094_v50  ;;  %v6294_v50 = vld [vmem:[#allocation10 + $0x7f8] sm:$0xff] }
 0x5fb   :  { %7919 = vmatpush1.bf16.msra.mxu1 %v10096_v51  ;;  %7838 = vmatprep.subr.bf16.mxu0 %v10103_v54  ;;  %v10150_v51 = vcombine.low %v6281_v46, %v6285_v39  ;;  %v10152_v54 = vcombine.low %v6282_v47, %v6286_v49  ;;  %v10161_v48 = vcombine.high %v6290_v1, %v6294_v50  ;;  %v10478_v46 = vld [vmem:[%s11723_s7 + $0x120] ss:$16 sps:$4 sm:$0xff]   ;;  %v10481_v39 = vld [vmem:[%s11723_s7 + $0x128] ss:$16 sps:$4 sm:$0xff]   ;;  %v10486_v47 = vld [vmem:[%s11723_s7 + $0x144] ss:$16 sps:$4 sm:$0xff]  }
 0x5fc   :  { %7920 = vmatprep.subr.bf16.mxu1 %v10105_v7  ;;  %v10159_v7 = vcombine.high %v6289_v3, %v6293_v61  ;;  %v10160_v38 = vcombine.low %v6290_v1, %v6294_v50  ;;  %v10489_v49 = vld [vmem:[%s11723_s7 + $0x14c] ss:$16 sps:$4 sm:$0xff]   ;;  %v10490_v3 = vld [vmem:[%s11723_s7 + $0x160] ss:$16 sps:$4 sm:$0xff]   ;;  %v10493_v61 = vld [vmem:[%s11723_s7 + $0x168] ss:$16 sps:$4 sm:$0xff]  }
 0x5fd   :  { %v10498_v1 = vld [vmem:[%s11723_s7 + $0x184] ss:$16 sps:$4 sm:$0xff]   ;;  %v10501_v50 = vld [vmem:[%s11723_s7 + $0x18c] ss:$16 sps:$4 sm:$0xff]  }
 0x5fe   :  { %7839 = vmatpush1.bf16.msra.mxu0 %v10102_v14  ;;  %v10429_v14 = vld [vmem:[%s11723_s7 + $0xc] ss:$16 sps:$4 sm:$0xff]  }
 0x5ff   :  { %7921 = vmatpush1.bf16.msra.mxu1 %v10104_v10  ;;  %7840 = vmatprep.subr.bf16.mxu0 %v10111_v25  ;;  %v10424_v10 = vld [vmem:[%s11723_s7] ss:$16 sps:$4 sm:$0xff]   ;;  %v10427_v25 = vld [vmem:[%s11723_s7 + $0x8] ss:$16 sps:$4 sm:$0xff]  }
 0x600   :  { %7922 = vmatprep.subr.bf16.mxu1 %v10113_v21  ;;  %v10432_v21 = vld [vmem:[%s11723_s7 + $0x24] ss:$16 sps:$4 sm:$0xff]  }
 0x602   :  { %7841 = vmatpush1.bf16.msra.mxu0 %v10110_v2  ;;  %v10436_v2 = vld [vmem:[%s11723_s7 + $0x40] ss:$16 sps:$4 sm:$0xff]  }
 0x603   :  { %7923 = vmatpush1.bf16.msra.mxu1 %v10112_v16  ;;  %7842 = vmatprep.subr.bf16.mxu0 %v10119_v34  ;;  %v10439_v16 = vld [vmem:[%s11723_s7 + $0x48] ss:$16 sps:$4 sm:$0xff]   ;;  %v10444_v34 = vld [vmem:[%s11723_s7 + $0x64] ss:$16 sps:$4 sm:$0xff]  }
 0x604   :  { %7924 = vmatprep.subr.bf16.mxu1 %v10121_v36  ;;  %v10447_v36 = vld [vmem:[%s11723_s7 + $0x6c] ss:$16 sps:$4 sm:$0xff]  }
 0x606   :  { %7843 = vmatpush1.bf16.msra.mxu0 %v10118_v37  ;;  %v10448_v37 = vld [vmem:[%s11723_s7 + $0x80] ss:$16 sps:$4 sm:$0xff]  }
 0x607   :  { %7925 = vmatpush1.bf16.msra.mxu1 %v10120_v56  ;;  %7844 = vmatprep.subr.bf16.mxu0 %v10127_v13  ;;  %v10451_v56 = vld [vmem:[%s11723_s7 + $0x88] ss:$16 sps:$4 sm:$0xff]   ;;  %v10456_v13 = vld [vmem:[%s11723_s7 + $0xa4] ss:$16 sps:$4 sm:$0xff]  }
 0x608   :  { %7926 = vmatprep.subr.bf16.mxu1 %v10129_v62  ;;  %v10459_v62 = vld [vmem:[%s11723_s7 + $0xac] ss:$16 sps:$4 sm:$0xff]  }
 0x60a   :  { %7845 = vmatpush1.bf16.msra.mxu0 %v10126_v58  ;;  %v10460_v58 = vld [vmem:[%s11723_s7 + $0xc0] ss:$16 sps:$4 sm:$0xff]  }
 0x60b   :  { %7927 = vmatpush1.bf16.msra.mxu1 %v10128_v41  ;;  %7846 = vmatprep.subr.bf16.mxu0 %v10135_v43  ;;  %v10463_v41 = vld [vmem:[%s11723_s7 + $0xc8] ss:$16 sps:$4 sm:$0xff]   ;;  %v10468_v43 = vld [vmem:[%s11723_s7 + $0xe4] ss:$16 sps:$4 sm:$0xff]  }
 0x60c   :  { %7928 = vmatprep.subr.bf16.mxu1 %v10137_v44  ;;  %v10471_v44 = vld [vmem:[%s11723_s7 + $0xec] ss:$16 sps:$4 sm:$0xff]  }
 0x60e   :  { %7847 = vmatpush1.bf16.msra.mxu0 %v10134_v27  ;;  %v10472_v27 = vld [vmem:[%s11723_s7 + $0x100] ss:$16 sps:$4 sm:$0xff]  }
 0x60f   :  { %7929 = vmatpush1.bf16.msra.mxu1 %v10136_v52  ;;  %7848 = vmatprep.subr.bf16.mxu0 %v10143_v28  ;;  %v10475_v52 = vld [vmem:[%s11723_s7 + $0x108] ss:$16 sps:$4 sm:$0xff]   ;;  %v10480_v28 = vld [vmem:[%s11723_s7 + $0x124] ss:$16 sps:$4 sm:$0xff]  }
 0x610   :  { %7930 = vmatprep.subr.bf16.mxu1 %v10145_v45  ;;  %v10483_v45 = vld [vmem:[%s11723_s7 + $0x12c] ss:$16 sps:$4 sm:$0xff]  }
 0x612   :  { %7849 = vmatpush1.bf16.msra.mxu0 %v10142_v42  ;;  %v10484_v42 = vld [vmem:[%s11723_s7 + $0x140] ss:$16 sps:$4 sm:$0xff]  }
 0x613   :  { %7931 = vmatpush1.bf16.msra.mxu1 %v10144_v60  ;;  %7850 = vmatprep.subr.bf16.mxu0 %v10151_v35  ;;  %v10487_v60 = vld [vmem:[%s11723_s7 + $0x148] ss:$16 sps:$4 sm:$0xff]   ;;  %v10492_v35 = vld [vmem:[%s11723_s7 + $0x164] ss:$16 sps:$4 sm:$0xff]  }
 0x614   :  { %7932 = vmatprep.subr.bf16.mxu1 %v10153_v20  ;;  %v10495_v20 = vld [vmem:[%s11723_s7 + $0x16c] ss:$16 sps:$4 sm:$0xff]  }
 0x616   :  { %7851 = vmatpush1.bf16.msra.mxu0 %v10150_v51  ;;  %v10496_v51 = vld [vmem:[%s11723_s7 + $0x180] ss:$16 sps:$4 sm:$0xff]  }
 0x617   :  { %7933 = vmatpush1.bf16.msra.mxu1 %v10152_v54  ;;  %7852 = vmatprep.subr.bf16.mxu0 %v10159_v7  ;;  %v10499_v54 = vld [vmem:[%s11723_s7 + $0x188] ss:$16 sps:$4 sm:$0xff]   ;;  %v11592_v7 = vld [vmem:[#allocation11] sm:$0xff] }
 0x618   :  { %7934 = vmatprep.subr.bf16.mxu1 %v10161_v48  ;;  %v6300_v48 = vrot.slane %v11592_v7, %v11225_v4 }
 0x61a   :  { %7853 = vmatpush1.bf16.msra.mxu0 %v10158_v55  ;;  %v6308_v55 = vrot.slane %v11592_v7, %v11229_v8 }
 0x61b   :  { %7935 = vmatpush1.bf16.msra.mxu1 %v10160_v38  ;;  %8367 = vmatprep.subr.bf16.mxu0 %v10426_v57  ;;  %v6304_v38 = vrot.slane %v11592_v7, %v11227_v5  ;;  %v6312_v57 = vrot.slane %v11592_v7, %v11231_v9 }
 0x61c   :  { %8408 = vmatprep.subr.bf16.mxu1 %v10429_v14 }
 0x61d   :  { %7855 = vmatmul.mubr.bf16.vlgmr.msra.gmra.mrb[36].mxu0 %v11424_v40 }
 0x61e   :  { %7937 = vmatmul.mubr.bf16.vlgmr.msra.gmra.mrb[36].mxu1 %v11424_v40  ;;  %8368 = vmatpush1.bf16.msra.mxu0 %v10424_v10  ;;  %v10441_v40 = vld [vmem:[%s11723_s7 + $0x4c] ss:$16 sps:$4 sm:$0xff]  }
 0x61f   :  { %8409 = vmatpush1.bf16.msra.mxu1 %v10427_v25  ;;  %8369 = vmatprep.subr.bf16.mxu0 %v10432_v21 }
 0x620   :  { %8410 = vmatprep.subr.bf16.mxu1 %v10435_v30 }
 0x622   :  { %8370 = vmatpush1.bf16.msra.mxu0 %v10430_v29 }
 0x623   :  { %8411 = vmatpush1.bf16.msra.mxu1 %v10433_v31  ;;  %8371 = vmatprep.subr.bf16.mxu0 %v10438_v33  ;;  %v10504_v31 = vld [vmem:[%s11723_s7 + $0x1a4] ss:$16 sps:$4 sm:$0xff]   ;;  %v10507_v33 = vld [vmem:[%s11723_s7 + $0x1ac] ss:$16 sps:$4 sm:$0xff]  }
 0x624   :  { %8412 = vmatprep.subr.bf16.mxu1 %v10441_v40 }
 0x626   :  { %8372 = vmatpush1.bf16.msra.mxu0 %v10436_v2 }
 0x627   :  { %8413 = vmatpush1.bf16.msra.mxu1 %v10439_v16  ;;  %8373 = vmatprep.subr.bf16.mxu0 %v10444_v34 }
 0x628   :  { %8414 = vmatprep.subr.bf16.mxu1 %v10447_v36  ;;  %v10502_v36 = vld [vmem:[%s11723_s7 + $0x1a0] ss:$16 sps:$4 sm:$0xff]  }
 0x62a   :  { %8374 = vmatpush1.bf16.msra.mxu0 %v10442_v59  ;;  %v10505_v59 = vld [vmem:[%s11723_s7 + $0x1a8] ss:$16 sps:$4 sm:$0xff]  }
 0x62b   :  { %8415 = vmatpush1.bf16.msra.mxu1 %v10445_v17  ;;  %8375 = vmatprep.subr.bf16.mxu0 %v10450_v63 }
 0x62c   :  { %8416 = vmatprep.subr.bf16.mxu1 %v10453_v32 }
 0x62e   :  { %8376 = vmatpush1.bf16.msra.mxu0 %v10448_v37 }
 0x62f   :  { %8417 = vmatpush1.bf16.msra.mxu1 %v10451_v56  ;;  %8377 = vmatprep.subr.bf16.mxu0 %v10456_v13 }
 0x630   :  { %8418 = vmatprep.subr.bf16.mxu1 %v10459_v62 }
 0x632   :  { %8378 = vmatpush1.bf16.msra.mxu0 %v10454_v11  ;;  %v10510_v11 = vld [vmem:[%s11723_s7 + $0x1c4] ss:$16 sps:$4 sm:$0xff]  }
 0x633   :  { %8419 = vmatpush1.bf16.msra.mxu1 %v10457_v18  ;;  %8379 = vmatprep.subr.bf16.mxu0 %v10462_v0  ;;  %v10513_v18 = vld [vmem:[%s11723_s7 + $0x1cc] ss:$16 sps:$4 sm:$0xff]  }
 0x634   :  { %8420 = vmatprep.subr.bf16.mxu1 %v10465_v6  ;;  %v10508_v6 = vld [vmem:[%s11723_s7 + $0x1c0] ss:$16 sps:$4 sm:$0xff]  }
 0x636   :  { %8380 = vmatpush1.bf16.msra.mxu0 %v10460_v58  ;;  %v10511_v58 = vld [vmem:[%s11723_s7 + $0x1c8] ss:$16 sps:$4 sm:$0xff]  }
 0x637   :  { %8421 = vmatpush1.bf16.msra.mxu1 %v10463_v41  ;;  %8381 = vmatprep.subr.bf16.mxu0 %v10468_v43  ;;  %v10516_v41 = vld [vmem:[%s11723_s7 + $0x1e4] ss:$16 sps:$4 sm:$0xff]   ;;  %v10519_v43 = vld [vmem:[%s11723_s7 + $0x1ec] ss:$16 sps:$4 sm:$0xff]  }
 0x638   :  { %8422 = vmatprep.subr.bf16.mxu1 %v10471_v44  ;;  %v10514_v44 = vld [vmem:[%s11723_s7 + $0x1e0] ss:$16 sps:$4 sm:$0xff]  }
 0x63a   :  { %8382 = vmatpush1.bf16.msra.mxu0 %v10466_v23  ;;  %v10517_v23 = vld [vmem:[%s11723_s7 + $0x1e8] ss:$16 sps:$4 sm:$0xff]  }
 0x63b   :  { %8423 = vmatpush1.bf16.msra.mxu1 %v10469_v53  ;;  %8383 = vmatprep.subr.bf16.mxu0 %v10474_v24  ;;  %v10522_v53 = vld [vmem:[#allocation14 + $0x4] ss:$8 sps:$4 sm:$0xff]   ;;  %v6316_v24 = vrot.slane %v11592_v7, %v11235_v12 }
 0x63c   :  { %8424 = vmatprep.subr.bf16.mxu1 %v10477_v26  ;;  %v6324_v26 = vrot.slane %v11592_v7, %v11238_v15 }
 0x63e   :  { %8384 = vmatpush1.bf16.msra.mxu0 %v10472_v27  ;;  %v6320_v27 = vrot.slane %v11592_v7, %v11240_v19 }
 0x63f   :  { %8425 = vmatpush1.bf16.msra.mxu1 %v10475_v52  ;;  %8385 = vmatprep.subr.bf16.mxu0 %v10480_v28  ;;  %v6328_v52 = vrot.slane %v11592_v7, %v11243_v22 }
 0x640   :  { %8426 = vmatprep.subr.bf16.mxu1 %v10483_v45 }
 0x642   :  { %8386 = vmatpush1.bf16.msra.mxu0 %v10478_v46 }
 0x643   :  { %8427 = vmatpush1.bf16.msra.mxu1 %v10481_v39  ;;  %8387 = vmatprep.subr.bf16.mxu0 %v10486_v47 }
 0x644   :  { %8428 = vmatprep.subr.bf16.mxu1 %v10489_v49 }
 0x646   :  { %8388 = vmatpush1.bf16.msra.mxu0 %v10484_v42 }
 0x647   :  { %8429 = vmatpush1.bf16.msra.mxu1 %v10487_v60  ;;  %8389 = vmatprep.subr.bf16.mxu0 %v10492_v35 }
 0x648   :  { %8430 = vmatprep.subr.bf16.mxu1 %v10495_v20 }
 0x64a   :  { %8390 = vmatpush1.bf16.msra.mxu0 %v10490_v3 }
 0x64b   :  { %8431 = vmatpush1.bf16.msra.mxu1 %v10493_v61  ;;  %8391 = vmatprep.subr.bf16.mxu0 %v10498_v1 }
 0x64c   :  { %8432 = vmatprep.subr.bf16.mxu1 %v10501_v50 }
 0x64e   :  { %8392 = vmatpush1.bf16.msra.mxu0 %v10496_v51 }
 0x64f   :  { %8433 = vmatpush1.bf16.msra.mxu1 %v10499_v54  ;;  %8393 = vmatprep.subr.bf16.mxu0 %v10504_v31  ;;  %v10537_v31 = vld [vmem:[#allocation14 + $0x54] ss:$8 sps:$4 sm:$0xff]  }
 0x650   :  { %8434 = vmatprep.subr.bf16.mxu1 %v10507_v33  ;;  %v10535_v33 = vld [vmem:[#allocation14 + $0x50] ss:$8 sps:$4 sm:$0xff]  }
 0x652   :  { %8394 = vmatpush1.bf16.msra.mxu0 %v10502_v36  ;;  %v10546_v36 = vld [vmem:[#allocation14 + $0x84] ss:$8 sps:$4 sm:$0xff]  }
 0x653   :  { %8435 = vmatpush1.bf16.msra.mxu1 %v10505_v59  ;;  %8395 = vmatprep.subr.bf16.mxu0 %v10510_v11  ;;  %v10544_v59 = vld [vmem:[#allocation14 + $0x80] ss:$8 sps:$4 sm:$0xff]  }
 0x654   :  { %8436 = vmatprep.subr.bf16.mxu1 %v10513_v18  ;;  %v10556_v11 = vld [vmem:[#allocation14 + $0xc0] ss:$8 sps:$4 sm:$0xff]   ;;  %v10561_v18 = vld [vmem:[#allocation14 + $0xd4] ss:$8 sps:$4 sm:$0xff]  }
 0x656   :  { %8396 = vmatpush1.bf16.msra.mxu0 %v10508_v6  ;;  %v10564_v6 = vld [vmem:[#allocation14 + $0xe4] ss:$8 sps:$4 sm:$0xff]  }
 0x657   :  { %8437 = vmatpush1.bf16.msra.mxu1 %v10511_v58  ;;  %8397 = vmatprep.subr.bf16.mxu0 %v10516_v41  ;;  %v10562_v58 = vld [vmem:[#allocation14 + $0xe0] ss:$8 sps:$4 sm:$0xff]   ;;  %v10567_v41 = vld [vmem:[#allocation14 + $0xf4] ss:$8 sps:$4 sm:$0xff]  }
 0x658   :  { %8438 = vmatprep.subr.bf16.mxu1 %v10519_v43  ;;  %v10565_v43 = vld [vmem:[#allocation14 + $0xf0] ss:$8 sps:$4 sm:$0xff]  }
 0x65a   :  { %8398 = vmatpush1.bf16.msra.mxu0 %v10514_v44  ;;  %v10570_v44 = vld [vmem:[#allocation14 + $0x104] ss:$8 sps:$4 sm:$0xff]  }
 0x65b   :  { %8439 = vmatpush1.bf16.msra.mxu1 %v10517_v23  ;;  %8773 = vmatprep.subr.bf16.mxu0 %v10522_v53  ;;  %v10595_v23 = vld [vmem:[%s11727_s11] sm:$0xff]   ;;  %v10935_v53 = vmov 0  }
 0x65c   :  { %8974 = vmatprep.subr.bf16.mxu1 %v10935_v53 }
 0x670   :  { %v7692_v14 = vpop.f32.mrb[32].mxu0  ;;  %v7774_v10 = vpop.f32.mrb[32].mxu1 }
 0x671   :  { %v10339_v25 = vadd.f32 %v7692_v14, %v6300_v48  ;;  %v10341_v21 = vadd.f32 %v7774_v10, %v6308_v55  ;;  %v7694_v30 = vpop.f32.mrb[33].mxu0  ;;  %v7776_v29 = vpop.f32.mrb[33].mxu1  ;;  %v10520_v48 = vld [vmem:[#allocation14] ss:$8 sps:$4 sm:$0xff]   ;;  %v10528_v14 = vld [vmem:[#allocation14 + $0x24] ss:$8 sps:$4 sm:$0xff]  }
 0x672   :  { %v10340_v40 = vadd.f32 %v7694_v30, %v6304_v38  ;;  %v10342_v2 = vadd.f32 %v7776_v29, %v6312_v57  ;;  %v7696_v16 = vpop.f32.mrb[34].mxu0  ;;  %v7778_v34 = vpop.f32.mrb[34].mxu1  ;;  %v10525_v38 = vld [vmem:[#allocation14 + $0x14] ss:$8 sps:$4 sm:$0xff]   ;;  %v10523_v57 = vld [vmem:[#allocation14 + $0x10] ss:$8 sps:$4 sm:$0xff]  }
 0x673   :  { %v7945_v17 = vmax.f32 %v10339_v25, 0.0  ;;  %v7947_v63 = vmax.f32 %v10341_v21, 0.0  ;;  %v7697_v32 = vpop.f32.mrb[35].mxu0  ;;  %v7779_v37 = vpop.f32.mrb[35].mxu1  ;;  %v10526_v10 = vld [vmem:[#allocation14 + $0x20] ss:$8 sps:$4 sm:$0xff]  }
 0x674   :  { %v7946_v56 = vmax.f32 %v10340_v40, 0.0  ;;  %v7948_v13 = vmax.f32 %v10342_v2, 0.0  ;;  %v10531_v25 = vld [vmem:[#allocation14 + $0x34] ss:$8 sps:$4 sm:$0xff]   ;;  %v10529_v21 = vld [vmem:[#allocation14 + $0x30] ss:$8 sps:$4 sm:$0xff]  }
 0x675   :  { %v7953_v62 = vmax.f32 %v7945_v17, %v7947_v63  ;;  %v10534_v30 = vld [vmem:[#allocation14 + $0x44] ss:$8 sps:$4 sm:$0xff]   ;;  %v10532_v29 = vld [vmem:[#allocation14 + $0x40] ss:$8 sps:$4 sm:$0xff]   ;;  %v10543_v16 = vld [vmem:[#allocation14 + $0x74] ss:$8 sps:$4 sm:$0xff]  }
 0x676   :  { %v7954_v0 = vmax.f32 %v7946_v56, %v7948_v13  ;;  %v10540_v40 = vld [vmem:[#allocation14 + $0x64] ss:$8 sps:$4 sm:$0xff]   ;;  %v10538_v2 = vld [vmem:[#allocation14 + $0x60] ss:$8 sps:$4 sm:$0xff]   ;;  %v10541_v34 = vld [vmem:[#allocation14 + $0x70] ss:$8 sps:$4 sm:$0xff]  }
 0x677   :  { %v10549_v17 = vld [vmem:[#allocation14 + $0x94] ss:$8 sps:$4 sm:$0xff]   ;;  %v10547_v63 = vld [vmem:[#allocation14 + $0x90] ss:$8 sps:$4 sm:$0xff]   ;;  %v10552_v32 = vld [vmem:[#allocation14 + $0xa4] ss:$8 sps:$4 sm:$0xff]  }
 0x678   :  { %v10550_v37 = vld [vmem:[#allocation14 + $0xa0] ss:$8 sps:$4 sm:$0xff]   ;;  %v10555_v56 = vld [vmem:[#allocation14 + $0xb4] ss:$8 sps:$4 sm:$0xff]   ;;  %v10553_v13 = vld [vmem:[#allocation14 + $0xb0] ss:$8 sps:$4 sm:$0xff]  }
 0x6f0   :  { %v7856_v28 = vpop.f32.mrb[36].mxu0 }
 0x6f1   :  { %v10343_v45 = vadd.f32 %v7856_v28, %v6316_v24  ;;  %v7938_v46 = vpop.f32.mrb[36].mxu1  ;;  %v7858_v39 = vpop.f32.mrb[37].mxu0  ;;  %v10596_v24 = vld [vmem:[%s11727_s11 + $0x8] sm:$0xff]  }
 0x6f2   :  { %v10345_v47 = vadd.f32 %v7938_v46, %v6324_v26  ;;  %v10344_v49 = vadd.f32 %v7858_v39, %v6320_v27  ;;  %v7940_v42 = vpop.f32.mrb[37].mxu1  ;;  %v7860_v60 = vpop.f32.mrb[38].mxu0  ;;  %v10597_v26 = vld [vmem:[%s11727_s11 + $0x10] sm:$0xff]   ;;  %v10598_v27 = vld [vmem:[%s11727_s11 + $0x18] sm:$0xff]   ;;  %v10600_v28 = vld [vmem:[%s11727_s11 + $0x28] sm:$0xff]  }
 0x6f3   :  { %v7949_v35 = vmax.f32 %v10343_v45, 0.0  ;;  %v10346_v20 = vadd.f32 %v7940_v42, %v6328_v52  ;;  %v7942_v12 = vpop.f32.mrb[38].mxu1  ;;  %v7861_v3 = vpop.f32.mrb[39].mxu0  ;;  %v10599_v52 = vld [vmem:[%s11727_s11 + $0x20] sm:$0xff]   ;;  %v10601_v45 = vld [vmem:[%s11727_s11 + $0x30] sm:$0xff]   ;;  %v10602_v46 = vld [vmem:[%s11727_s11 + $0x38] sm:$0xff]  }
 0x6f4   :  { %v7951_v61 = vmax.f32 %v10345_v47, 0.0  ;;  %v7950_v15 = vmax.f32 %v10344_v49, 0.0  ;;  %v7943_v1 = vpop.f32.mrb[39].mxu1  ;;  %v10603_v39 = vld [vmem:[%s11727_s11 + $0x40] sm:$0xff]   ;;  %v10604_v47 = vld [vmem:[%s11727_s11 + $0x48] sm:$0xff]   ;;  %v10605_v49 = vld [vmem:[%s11727_s11 + $0x50] sm:$0xff]  }
 0x6f5   :  { %v7952_v50 = vmax.f32 %v10346_v20, 0.0  ;;  %v8025_v42 = vld [vmem:[#allocation13] sm:$0xf] }
 0x6f6   :  { %v7955_v19 = vmax.f32 %v7949_v35, %v7951_v61  ;;  %v8030_v60 = vrot.slane %v8025_v42, %v11225_v4  ;;  %v8034_v35 = vrot.slane %v8025_v42, %v11227_v5  ;;  %v8042_v20 = vrot.slane %v8025_v42, %v11231_v9 }
 0x6f7   :  { %v7956_v51 = vmax.f32 %v7950_v15, %v7952_v50 }
 0x6f8   :  { %v7957_v54 = vmax.f32 %v7953_v62, %v7955_v19  ;;  %v10558_v62 = vld [vmem:[#allocation14 + $0xc4] ss:$8 sps:$4 sm:$0xff]  }
 0x6f9   :  { %v7958_v22 = vmax.f32 %v7954_v0, %v7956_v51  ;;  %v10559_v0 = vld [vmem:[#allocation14 + $0xd0] ss:$8 sps:$4 sm:$0xff]  }
 0x6fa   :  { %v7959_v55 = vpack.c.bf16 %v7957_v54, %v7957_v54 }
 0x6fb   :  { %v7960_v7 = vpack.c.bf16 %v7958_v22, %v7958_v22 }
 0x6fd   :  { %8399 = vmatprep.mubr.bf16.mxu0 %v7960_v7  ;;  %8440 = vmatprep.mubr.bf16.mxu1 %v7960_v7 }
 0x6fe   :  { %8400 = vmatmul.mubr.bf16.vlgmr.msra.gmra.mrb[40].mxu0 %v7959_v55  ;;  %8441 = vmatmul.mubr.bf16.vlgmr.msra.gmra.mrb[40].mxu1 %v7959_v55 }
 0x6ff   :  { %8774 = vmatpush1.bf16.msra.mxu0 %v10520_v48  ;;  %8975 = vmatpush1.bf16.msra.mxu1 %v10595_v23 }
 0x700   :  { %8775 = vmatprep.subr.bf16.mxu0 %v10525_v38  ;;  %8976 = vmatprep.subr.bf16.mxu1 %v10935_v53 }
 0x703   :  { %8776 = vmatpush1.bf16.msra.mxu0 %v10523_v57  ;;  %8977 = vmatpush1.bf16.msra.mxu1 %v10596_v24 }
 0x704   :  { %8777 = vmatprep.subr.bf16.mxu0 %v10528_v14  ;;  %8978 = vmatprep.subr.bf16.mxu1 %v10935_v53  ;;  %v10568_v14 = vld [vmem:[#allocation14 + $0x100] ss:$8 sps:$4 sm:$0xff]  }
 0x707   :  { %8778 = vmatpush1.bf16.msra.mxu0 %v10526_v10  ;;  %8979 = vmatpush1.bf16.msra.mxu1 %v10597_v26 }
 0x708   :  { %8779 = vmatprep.subr.bf16.mxu0 %v10531_v25  ;;  %8980 = vmatprep.subr.bf16.mxu1 %v10935_v53  ;;  %v10573_v25 = vld [vmem:[#allocation14 + $0x114] ss:$8 sps:$4 sm:$0xff]  }
 0x70b   :  { %8780 = vmatpush1.bf16.msra.mxu0 %v10529_v21  ;;  %8981 = vmatpush1.bf16.msra.mxu1 %v10598_v27  ;;  %v10571_v21 = vld [vmem:[#allocation14 + $0x110] ss:$8 sps:$4 sm:$0xff]  }
 0x70c   :  { %8781 = vmatprep.subr.bf16.mxu0 %v10534_v30  ;;  %8982 = vmatprep.subr.bf16.mxu1 %v10935_v53  ;;  %v10576_v30 = vld [vmem:[#allocation14 + $0x124] ss:$8 sps:$4 sm:$0xff]  }
 0x70f   :  { %8782 = vmatpush1.bf16.msra.mxu0 %v10532_v29  ;;  %8983 = vmatpush1.bf16.msra.mxu1 %v10599_v52  ;;  %v10574_v29 = vld [vmem:[#allocation14 + $0x120] ss:$8 sps:$4 sm:$0xff]  }
 0x710   :  { %8783 = vmatprep.subr.bf16.mxu0 %v10537_v31  ;;  %8984 = vmatprep.subr.bf16.mxu1 %v10935_v53  ;;  %v10579_v31 = vld [vmem:[#allocation14 + $0x134] ss:$8 sps:$4 sm:$0xff]  }
 0x713   :  { %8784 = vmatpush1.bf16.msra.mxu0 %v10535_v33  ;;  %8985 = vmatpush1.bf16.msra.mxu1 %v10600_v28  ;;  %v10577_v33 = vld [vmem:[#allocation14 + $0x130] ss:$8 sps:$4 sm:$0xff]  }
 0x714   :  { %8785 = vmatprep.subr.bf16.mxu0 %v10540_v40  ;;  %8986 = vmatprep.subr.bf16.mxu1 %v10935_v53  ;;  %v10582_v40 = vld [vmem:[#allocation14 + $0x144] ss:$8 sps:$4 sm:$0xff]  }
 0x717   :  { %8786 = vmatpush1.bf16.msra.mxu0 %v10538_v2  ;;  %8987 = vmatpush1.bf16.msra.mxu1 %v10601_v45  ;;  %v10580_v2 = vld [vmem:[#allocation14 + $0x140] ss:$8 sps:$4 sm:$0xff]  }
 0x718   :  { %8787 = vmatprep.subr.bf16.mxu0 %v10543_v16  ;;  %8988 = vmatprep.subr.bf16.mxu1 %v10935_v53  ;;  %v10585_v16 = vld [vmem:[#allocation14 + $0x154] ss:$8 sps:$4 sm:$0xff]  }
 0x71b   :  { %8788 = vmatpush1.bf16.msra.mxu0 %v10541_v34  ;;  %8989 = vmatpush1.bf16.msra.mxu1 %v10602_v46  ;;  %v10583_v34 = vld [vmem:[#allocation14 + $0x150] ss:$8 sps:$4 sm:$0xff]  }
 0x71c   :  { %8789 = vmatprep.subr.bf16.mxu0 %v10546_v36  ;;  %8990 = vmatprep.subr.bf16.mxu1 %v10935_v53  ;;  %v10588_v36 = vld [vmem:[#allocation14 + $0x164] ss:$8 sps:$4 sm:$0xff]   ;;  %v10608_v46 = vld [vmem:[#allocation19] sm:$0xff]  }
 0x71f   :  { %8790 = vmatpush1.bf16.msra.mxu0 %v10544_v59  ;;  %8991 = vmatpush1.bf16.msra.mxu1 %v10603_v39  ;;  %v10586_v59 = vld [vmem:[#allocation14 + $0x160] ss:$8 sps:$4 sm:$0xff]  }
 0x720   :  { %8791 = vmatprep.subr.bf16.mxu0 %v10549_v17  ;;  %8992 = vmatprep.subr.bf16.mxu1 %v10935_v53  ;;  %v8038_v17 = vrot.slane %v8025_v42, %v11229_v8  ;;  %v10607_v8 = vld [vmem:[%s11727_s11 + $0x60] ss:$0 sps:$4 sm:$0xff]   ;;  %v10613_v42 = vld [vmem:[#allocation19 + $0x28] ss:$0 sps:$4 sm:$0x33]  }
 0x723   :  { %8792 = vmatpush1.bf16.msra.mxu0 %v10547_v63  ;;  %8993 = vmatpush1.bf16.msra.mxu1 %v10604_v47  ;;  %v10591_v63 = vld [vmem:[#allocation14 + $0x174] ss:$8 sps:$4 sm:$0xff]  }
 0x724   :  { %8793 = vmatprep.subr.bf16.mxu0 %v10552_v32  ;;  %8994 = vmatprep.subr.bf16.mxu1 %v10935_v53  ;;  %v10589_v32 = vld [vmem:[#allocation14 + $0x170] ss:$8 sps:$4 sm:$0xff]   ;;  %v10609_v47 = vld [vmem:[#allocation19 + $0x8] sm:$0xff]  }
 0x727   :  { %8794 = vmatpush1.bf16.msra.mxu0 %v10550_v37  ;;  %8995 = vmatpush1.bf16.msra.mxu1 %v10605_v49  ;;  %v10612_v49 = vld [vmem:[#allocation19 + $0x20] sm:$0xff]  }
 0x728   :  { %8795 = vmatprep.subr.bf16.mxu0 %v10555_v56  ;;  %8996 = vmatprep.subr.bf16.mxu1 %v10935_v53  ;;  %v10594_v56 = vld [vmem:[#allocation14 + $0x184] ss:$8 sps:$4 sm:$0xff]  }
 0x72b   :  { %8796 = vmatpush1.bf16.msra.mxu0 %v10553_v13  ;;  %v10592_v13 = vld [vmem:[#allocation14 + $0x180] ss:$8 sps:$4 sm:$0xff]  }
 0x72c   :  { %8797 = vmatprep.subr.bf16.mxu0 %v10558_v62 }
 0x72f   :  { %8798 = vmatpush1.bf16.msra.mxu0 %v10556_v11 }
 0x730   :  { %8799 = vmatprep.subr.bf16.mxu0 %v10561_v18  ;;  %v10606_v18 = vld [vmem:[%s11727_s11 + $0x58] sm:$0xff]   ;;  %s10938_s11 = smov [#allocation22]  }
 0x731   :  { %8997 = vmatpush1.bf16.msra.mxu1 %v10606_v18  ;;  %s9122_s2 = sshll.u32 %s10938_s11, 4  ;;  %s9123_s2 = int_to_ptr.vmem [resolvable:$true] %s9122_s2 }
 0x732   :  { %8998 = vmatprep.subr.bf16.mxu1 %v10935_v53  ;;  %s10878_s19 = scalar_lea.vmem %s9123_s2, 32  ;;  %p10883_p13 = scmp.lt.s32.totalorder %s9123_s2, %s9123_s2 }
 0x733   :  { %8800 = vmatpush1.bf16.msra.mxu0 %v10559_v0  ;;  %v8972_v0 = vsel %vm8970_vm1, %v10607_v8, 0  ;;  %p10879_p12 = scmp.ne.s32.totalorder %s9123_s2, %s10878_s19  ;;  %p10884_p0 = scmp.lt.s32.totalorder %s10878_s19, %s10878_s19 }
 0x734   :  { %8801 = vmatprep.subr.bf16.mxu0 %v10564_v6  ;;  %v10936_v6 = vmov 0.0  }
 0x735   :  { %8999 = vmatpush1.bf16.msra.mxu1 %v8972_v0  ;;  %p10885_p1 = por %p10884_p0, %p10883_p13 }
 0x736   :  { %10307 = vmatprep.subr.bf16.mxu1 %v10936_v6 }
 0x737   :  { %8802 = vmatpush1.bf16.msra.mxu0 %v10562_v58  ;;  %v8507_v58 = vld [vmem:[#allocation16] sm:$0x3]  ;;  %p10886_p2 = pnand %p10885_p1, %p10879_p12 }
 0x738   :  { %8803 = vmatprep.subr.bf16.mxu0 %v10567_v41  ;;  %v8512_v41 = vrot.slane %v8507_v58, %v11225_v4  ;;  %v10610_v4 = vld [vmem:[#allocation19 + $0x10] sm:$0xff]  }
 0x73b   :  { %8804 = vmatpush1.bf16.msra.mxu0 %v10565_v43  ;;  %v8516_v43 = vrot.slane %v8507_v58, %v11227_v5  ;;  %v10611_v5 = vld [vmem:[#allocation19 + $0x18] sm:$0xff]  }
 0x73c   :  { %8814 = vmatprep.subr.bf16.mxu0 %v10570_v44 }
 0x7d1   :  { %v8401_v12 = vpop.f32.mrb[40].mxu0  ;;  %v8442_v3 = vpop.f32.mrb[40].mxu1 }
 0x7d2   :  { %v8402_v61 = vadd.f32 %v8401_v12, %v8030_v60  ;;  %v8403_v15 = vpop.f32.mrb[41].mxu0  ;;  %v8444_v1 = vpop.f32.mrb[41].mxu1  ;;  %v8443_v37 = vadd.f32 %v8442_v3, %v8038_v17  ;;  %v9073_v60 = vsel %vm9071_vm3, %v10613_v42, 0 }
 0x7d3   :  { %v8404_v50 = vadd.f32 %v8403_v15, %v8034_v35  ;;  %v8445_v19 = vadd.f32 %v8444_v1, %v8042_v20  ;;  %v8405_v51 = vpop.f32.mrb[42].mxu0  ;;  %v8446_v54 = vpop.f32.mrb[42].mxu1  ;;  %v10277_v35 = vld [vmem:[#allocation17] ss:$0 sm:$0xff] }
 0x7d4   :  { %v8449_v22 = vmax.f32 %v8402_v61, 0.0  ;;  %v8406_v7 = vpop.f32.mrb[43].mxu0  ;;  %v8447_v48 = vpop.f32.mrb[43].mxu1  ;;  %v8451_v62 = vmax.f32 %v8443_v37, 0.0 }
 0x7d5   :  { %v8450_v55 = vmax.f32 %v8404_v50, 0.0  ;;  %v8452_v38 = vmax.f32 %v8445_v19, 0.0  ;;  %v10292_v19 = vld [vmem:[#allocation20] ss:$0 sm:$0xff] }
 0x7d6   :  { %v8453_v10 = vpack.c.bf16 %v8449_v22, %v8449_v22  ;;  %v8455_v11 = vpack.c.bf16 %v8451_v62, %v8451_v62 }
 0x7d7   :  { %v8454_v57 = vpack.c.bf16 %v8450_v55, %v8450_v55  ;;  %v8456_v9 = vpack.c.bf16 %v8452_v38, %v8452_v38 }
 0x7d9   :  { %8805 = vmatprep.mubr.bf16.mxu0 %v8454_v57 }
 0x7da   :  { %8806 = vmatmul.mubr.bf16.vlgmr.msra.gmra.mrb[44].mxu0 %v8453_v10 }
 0x7db   :  { %8815 = vmatpush1.bf16.msra.mxu0 %v10568_v14  ;;  %10276 = vmatprep.mubr.msk.bf16.mxu0 %vm8769_vm0, %v8456_v9 }
 0x7dc   :  { %8816 = vmatprep.subr.bf16.mxu0 %v10573_v25 }
 0x7df   :  { %8817 = vmatpush1.bf16.msra.mxu0 %v10571_v21 }
 0x7e0   :  { %8818 = vmatprep.subr.bf16.mxu0 %v10576_v30 }
 0x7e3   :  { %8819 = vmatpush1.bf16.msra.mxu0 %v10574_v29 }
 0x7e4   :  { %8820 = vmatprep.subr.bf16.mxu0 %v10579_v31 }
 0x7e7   :  { %8821 = vmatpush1.bf16.msra.mxu0 %v10577_v33 }
 0x7e8   :  { %8822 = vmatprep.subr.bf16.mxu0 %v10582_v40 }
 0x7eb   :  { %8823 = vmatpush1.bf16.msra.mxu0 %v10580_v2 }
 0x7ec   :  { %8824 = vmatprep.subr.bf16.mxu0 %v10585_v16 }
 0x7ef   :  { %8825 = vmatpush1.bf16.msra.mxu0 %v10583_v34 }
 0x7f0   :  { %8826 = vmatprep.subr.bf16.mxu0 %v10588_v36 }
 0x7f3   :  { %8827 = vmatpush1.bf16.msra.mxu0 %v10586_v59 }
 0x7f4   :  { %8828 = vmatprep.subr.bf16.mxu0 %v10591_v63 }
 0x7f7   :  { %8829 = vmatpush1.bf16.msra.mxu0 %v10589_v32 }
 0x7f8   :  { %8830 = vmatprep.subr.bf16.mxu0 %v10594_v56 }
 0x7fb   :  { %8831 = vmatpush1.bf16.msra.mxu0 %v10592_v13 }
 0x7fe   :  { %8847 = vmatmul.mubr.bf16.vlgmr.msra.gmra.mrb[44].mxu0 %v8455_v11 }
 0x8d1   :  { %v8848_v44 = vpop.f32.mrb[44].mxu0 }
 0x8d2   :  { %v10347_v23 = vadd.f32 %v8848_v44, %v8512_v41  ;;  %v8850_v24 = vpop.f32.mrb[45].mxu0 }
 0x8d3   :  { %v10348_v26 = vadd.f32 %v8850_v24, %v8516_v43  ;;  %v8852_v27 = vpop.f32.mrb[46].mxu0 }
 0x8d4   :  { %v8855_v53 = vmax.f32 %v10347_v23, 0.0  ;;  %v8853_v52 = vpop.f32.mrb[47].mxu0 }
 0x8d5   :  { %v8856_v28 = vmax.f32 %v10348_v26, 0.0 }
 0x8d6   :  { %v8857_v39 = vpack.c.bf16 %v8855_v53, %v8855_v53 }
 0x8d7   :  { %v8858_v45 = vpack.c.bf16 %v8856_v28, %v8856_v28 }
 0x8d9   :  { %10291 = vmatprep.mubr.msk.bf16.mxu1 %vm8966_vm2, %v8858_v45 }
 0x8da   :  { %9007 = vmatmul.mubr.bf16.vlgmr.msra.gmra.mrb[44].mxu1 %v8857_v39 }
 0x8db   :  { %10308 = vmatpush3.bf16.msra.mxu1 %v10608_v46  ;;  %10319 = vmatprep.mubr.msk.bf16.mxu1 %vm10937_vm4, %v10936_v6 }
 0x8dc   :  { %10309 = vmatprep.subr.bf16.mxu1 %v10936_v6 }
 0x8df   :  { %10310 = vmatpush3.bf16.msra.mxu1 %v10609_v47 }
 0x8e0   :  { %10311 = vmatprep.subr.bf16.mxu1 %v10936_v6 }
 0x8e3   :  { %10312 = vmatpush3.bf16.msra.mxu1 %v10610_v4 }
 0x8e4   :  { %10313 = vmatprep.subr.bf16.mxu1 %v10936_v6 }
 0x8e7   :  { %10314 = vmatpush3.bf16.msra.mxu1 %v10611_v5 }
 0x8e8   :  { %10315 = vmatprep.subr.bf16.mxu1 %v10936_v6 }
 0x8eb   :  { %10316 = vmatpush3.bf16.msra.mxu1 %v10612_v49 }
 0x8ec   :  { %10317 = vmatprep.subr.bf16.mxu1 %v10936_v6 }
 0x8ef   :  { %10318 = vmatpush3.bf16.msra.mxu1 %v9073_v60 }
 0x9ad   :  { %v9008_v20 = vpop.f32.mrb[44].mxu1 }
 0x9ae   :  { %v9009_v12 = vadd.f32 %v10277_v35, %v9008_v20  ;;  %v9010_v3 = vpop.f32.mrb[45].mxu1 }
 0x9af   :  { %v9011_v61 = vpop.f32.mrb[46].mxu1 }
 0x9b0   :  { %v9014_v15 = vmax.f32 %v9009_v12, 0.0  ;;  %v9012_v1 = vpop.f32.mrb[47].mxu1 }
 0x9b2   :  { %v9015_v50 = vpack.c.bf16 %v9014_v15, %v9014_v15 }
 0x9b4   :  { %10320 = vmatmul.mubr.msk.bf16.vlgmr.msra.gmra.mrb[48].mxu1 %vm9067_vm5, %v9015_v50 }
 0xa87   :  { %v9109_v51 = vpop.f32.mrb[48].mxu1 }
 0xa88   :  { %v9110_v54 = vadd.f32 %v10292_v19, %v9109_v51  ;;  %v10321_v22 = vpop.f32.mrb[49].mxu1 }
 0xa89   :  { %v9112_v7 = vpop.f32.mrb[50].mxu1 }
 0xa8a   :  { %9115 = vst [vmem:[#allocation22] sm:$0x3] %v9110_v54  ;;  %v10322_v48 = vpop.f32.mrb[51].mxu1 }
 0xa8b   :  { %10889 = shalt.err (!%p10886_p2)
}
 0xa8c   :  { %s10890_s16 = scalar_lea.hbm %s11731_s15, 32 }
 0xa8d   :  { %p10891_p3 = scmp.ne.s32.totalorder %s11731_s15, %s10890_s16  ;;  %p10894_p4 = scmp.lt.u32.totalorder %s10890_s16, %s11731_s15 }
 0xa8f   :  { %p10896_p5 = pnand %p10894_p4, %p10891_p3 }
 0xa91   :  { %10899 = shalt.err (!%p10896_p5)
}
 0xa92   :  { %9125 = dma.vmem_to_hbm [thread:$0]  %s9123_s2, 32, %s11731_s15, [#allocation4]  }
 0xa93   :  { %10914 = dma.done.wait [#allocation4], 32  }
 0xa94   :  { %10915 = vsyncadd [#allocation4], 4294967264 }
 0xa95   :  { %9129 = vsyncpa [#allocation3], 1 }
 0xa96   :  { %9130 = vsyncpa [#allocation6], 1 }
 0xa97   :  { %9131 = vsyncpa [#allocation9], 1 }
 0xa98   :  { %9132 = vsyncpa [#allocation12], 1 }
 0xa99   :  { %9133 = vsyncpa [#allocation15], 1 }
 0xa9a   :  { %9134 = vsyncpa [#allocation18], 1 }
 0xa9b   :  { %9135 = vsyncpa [#allocation21], 1 }
 0xa9c   :  { %9136 = vsyncpa [#allocation4], 1 }

</bundles_post_ra>
